<compile_context>
chip_gen: v7x
topology: tpu7x:2x2x1
jax: 0.10.0
libtpu: 0.0.40
codegen_flags: <defaults>
</compile_context>

<pallas_src>
import functools

import jax
import jax.numpy as jnp
from jax.experimental import pallas as pl
from jax.experimental.pallas import tpu as pltpu

F_IN = 5
F_IN_PAD = 16        # bf16 packs 16 sublane rows per vreg -> dense layer-1 tiles
HID = 800
F_OUT = 2
F_OUT_PAD = 128      # lane-dense (unmasked) output stores


def _default_hid_pad():
    # v5e's MXU is 128x128: 896 (= 7*128) trims the dominant hidden-layer
    # matmul passes ~23% vs 1024. v6e/v7x MXUs are 256-wide, where 896 rounds
    # up to the same number of passes as 1024, so keep 1024 there.
    try:
        kind = jax.devices()[0].device_kind.lower()
    except Exception:
        return 1024
    if "v5 lite" in kind or "v5e" in kind or "v5lite" in kind:
        return 896
    return 1024


HID_PAD = _default_hid_pad()


def _mlp_kernel(x_ref, w1_ref, b1_ref, w2_ref, b2_ref, w3_ref, b3_ref,
                w4_ref, b4_ref, o_ref):
    # Layer 1: (tile_b, 16) @ (16, HID_PAD), bf16 operands, f32 accumulate.
    h = jnp.dot(x_ref[...], w1_ref[...], preferred_element_type=jnp.float32)
    h = jnp.maximum(h + b1_ref[...], 0.0)
    # Layer 2.
    h = jnp.dot(h.astype(jnp.bfloat16), w2_ref[...],
                preferred_element_type=jnp.float32)
    h = jnp.maximum(h + b2_ref[...], 0.0)
    # Layer 3.
    h = jnp.dot(h.astype(jnp.bfloat16), w3_ref[...],
                preferred_element_type=jnp.float32)
    h = jnp.maximum(h + b3_ref[...], 0.0)
    # Output layer + sigmoid (f32), stored as bf16. Columns >= 2 are padding
    # (sigmoid(0)=0.5) and are sliced off in the wrapper.
    logits = jnp.dot(h.astype(jnp.bfloat16), w4_ref[...],
                     preferred_element_type=jnp.float32) + b4_ref[...]
    o_ref[...] = jax.nn.sigmoid(logits).astype(o_ref.dtype)


def _round_up(v, m):
    return (v + m - 1) // m * m


def prepare_params(params):
    """Zero-pad params to MXU/lane-aligned shapes and cast weights to bf16.

    Call once per weight set (at load time / per training step), not per
    forward call.
    """
    def pad(a, shape):
        return jnp.zeros(shape, a.dtype).at[:a.shape[0], :a.shape[1]].set(a)

    w1 = pad(params["w1"], (F_IN_PAD, HID_PAD)).astype(jnp.bfloat16)
    w2 = pad(params["w2"], (HID_PAD, HID_PAD)).astype(jnp.bfloat16)
    w3 = pad(params["w3"], (HID_PAD, HID_PAD)).astype(jnp.bfloat16)
    w4 = pad(params["w4"], (HID_PAD, F_OUT_PAD)).astype(jnp.bfloat16)
    b1 = pad(params["b1"], (1, HID_PAD))    # biases stay f32
    b2 = pad(params["b2"], (1, HID_PAD))
    b3 = pad(params["b3"], (1, HID_PAD))
    b4 = pad(params["b4"], (1, F_OUT_PAD))
    return (w1, b1, w2, b2, w3, b3, w4, b4)


@functools.lru_cache(maxsize=None)
def _build_call(tile_b, n_tiles, b_pad, weight_buffer_count):
    const = lambda i: (0, 0)   # weights/biases: same block every step -> resident
    pm = pl.Buffered(weight_buffer_count) if weight_buffer_count else None

    def wspec(shape):
        if pm is None:
            return pl.BlockSpec(shape, const)
        return pl.BlockSpec(shape, const, pipeline_mode=pm)

    flops = 2 * b_pad * (F_IN_PAD * HID_PAD + 2 * HID_PAD * HID_PAD
                         + HID_PAD * F_OUT_PAD)
    weight_bytes = (2 * (F_IN_PAD * HID_PAD + 2 * HID_PAD * HID_PAD
                         + HID_PAD * F_OUT_PAD)
                    + 4 * (3 * HID_PAD + F_OUT_PAD))
    bytes_accessed = weight_bytes + b_pad * 2 * (F_IN_PAD + F_OUT_PAD)

    return pl.pallas_call(
        _mlp_kernel,
        out_shape=jax.ShapeDtypeStruct((b_pad, F_OUT_PAD), jnp.bfloat16),
        grid=(n_tiles,),
        in_specs=[
            pl.BlockSpec((tile_b, F_IN_PAD), lambda i: (i, 0)),  # x (pipelined)
            wspec((F_IN_PAD, HID_PAD)),    # w1
            wspec((1, HID_PAD)),           # b1
            wspec((HID_PAD, HID_PAD)),     # w2
            wspec((1, HID_PAD)),           # b2
            wspec((HID_PAD, HID_PAD)),     # w3
            wspec((1, HID_PAD)),           # b3
            wspec((HID_PAD, F_OUT_PAD)),   # w4
            wspec((1, F_OUT_PAD)),         # b4
        ],
        out_specs=pl.BlockSpec((tile_b, F_OUT_PAD), lambda i: (i, 0)),
        compiler_params=pltpu.CompilerParams(
            dimension_semantics=("parallel",),
            vmem_limit_bytes=32 << 20,
        ),
        cost_estimate=pl.CostEstimate(
            flops=flops,
            transcendentals=b_pad * F_OUT_PAD,
            bytes_accessed=bytes_accessed,
        ),
    )


# Lazily-resolved probe: does this JAX build accept pl.Buffered(1) on the
# invariant weight BlockSpecs? (None = unknown, True/False once resolved.)
_WEIGHT_SINGLE_BUFFER_OK = None


def stock_network_forward(x, padded_params, *, tile_b=512):
    """x: (B, 5) float32. padded_params: output of prepare_params. -> (B, 2) f32."""
    global _WEIGHT_SINGLE_BUFFER_OK
    B = x.shape[0]

    b8 = _round_up(max(B, 1), 8)
    if b8 <= tile_b:
        # Small batch: split into two tiles when possible so the "parallel"
        # batch axis can spread across v7x's two TensorCores (harmless ~0.35us
        # extra grid step on single-TC chips).
        tile = _round_up((b8 + 1) // 2, 8) if b8 >= 16 else b8
    else:
        tile = tile_b
    b_pad = _round_up(b8, tile)
    n_tiles = b_pad // tile

    # Pad batch to a tile multiple and features 5 -> 16, cast activations bf16.
    xp = jnp.zeros((b_pad, F_IN_PAD), jnp.float32)
    xp = xp.at[:B, :F_IN].set(x).astype(jnp.bfloat16)

    args = (xp,) + tuple(padded_params)

    if _WEIGHT_SINGLE_BUFFER_OK is None:
        try:
            out = jax.block_until_ready(_build_call(tile, n_tiles, b_pad, 1)(*args))
            _WEIGHT_SINGLE_BUFFER_OK = True
        except Exception:
            # pl.Buffered(1) unsupported here: fall back to default buffering
            # (weights are still DMA'd only once thanks to the constant
            # index_map; footprint ~9-13 MiB, well within scoped VMEM).
            _WEIGHT_SINGLE_BUFFER_OK = False
            out = _build_call(tile, n_tiles, b_pad, None)(*args)
    else:
        wb = 1 if _WEIGHT_SINGLE_BUFFER_OK else None
        out = _build_call(tile, n_tiles, b_pad, wb)(*args)

    return out[:B, :F_OUT].astype(jnp.float32)


def init_params(key):
    """Mimics nn.Linear init: U(-1/sqrt(fan_in), 1/sqrt(fan_in)); W stored (in, out)."""
    dims = [(F_IN, HID), (HID, HID), (HID, HID), (HID, F_OUT)]
    params = {}
    keys = jax.random.split(key, 2 * len(dims))
    for i, (fin, fout) in enumerate(dims):
        bound = 1.0 / jnp.sqrt(jnp.float32(fin))
        params[f"w{i + 1}"] = jax.random.uniform(
            keys[2 * i], (fin, fout), jnp.float32, -bound, bound)
        params[f"b{i + 1}"] = jax.random.uniform(
            keys[2 * i + 1], (1, fout), jnp.float32, -bound, bound)
    return params


def reference_forward(x, params):
    """Pure-JAX reference mirroring the kernel's bf16-weight / f32-accumulate math."""
    def dense(h, w, b):
        return jnp.dot(h.astype(jnp.bfloat16), w.astype(jnp.bfloat16),
                       preferred_element_type=jnp.float32) + b
    h = jnp.maximum(dense(x, params["w1"], params["b1"]), 0.0)
    h = jnp.maximum(dense(h, params["w2"], params["b2"]), 0.0)
    h = jnp.maximum(dense(h, params["w3"], params["b3"]), 0.0)
    return jax.nn.sigmoid(dense(h, params["w4"], params["b4"]))


if __name__ == "__main__":
    key = jax.random.PRNGKey(0)
    pkey, xkey = jax.random.split(key)
    params = init_params(pkey)
    padded_params = prepare_params(params)

    B = 8
    x = jax.random.normal(xkey, (B, F_IN), jnp.float32)

    out = jax.block_until_ready(stock_network_forward(x, padded_params))
    ref = reference_forward(x, params)

    assert out.shape == (B, F_OUT)
    assert jnp.allclose(out, ref, atol=1e-2, rtol=0), float(
        jnp.max(jnp.abs(out - ref)))

    print("KERNEL_OK")
</pallas_src>

<mosaic_0001>
module attributes {stable_mosaic.version = 11 : i64} {
  func.func @_mlp_kernel(%arg0: i32, %arg1: memref<8x16xbf16, #tpu.memory_space<vmem>>, %arg2: memref<16x1024xbf16, #tpu.memory_space<vmem>>, %arg3: memref<1x1024xf32, #tpu.memory_space<vmem>>, %arg4: memref<1024x1024xbf16, #tpu.memory_space<vmem>>, %arg5: memref<1x1024xf32, #tpu.memory_space<vmem>>, %arg6: memref<1024x1024xbf16, #tpu.memory_space<vmem>>, %arg7: memref<1x1024xf32, #tpu.memory_space<vmem>>, %arg8: memref<1024x128xbf16, #tpu.memory_space<vmem>>, %arg9: memref<1x128xf32, #tpu.memory_space<vmem>>, %arg10: memref<8x128xbf16, #tpu.memory_space<vmem>>) attributes {dimension_semantics = [#tpu.dimension_semantics<parallel>], iteration_bounds = array<i64: 1>, scalar_prefetch = 0 : i64, scratch_operands = 0 : i64, tpu.core_type = #tpu.core_type<tc>, window_params = [{transform_indices = @transform_0, window_bounds = array<i64: 8, 16>}, {pipeline_mode = #tpu.pipeline_mode<synchronous>, transform_indices = @transform_1, window_bounds = array<i64: 16, 1024>}, {pipeline_mode = #tpu.pipeline_mode<synchronous>, transform_indices = @transform_2, window_bounds = array<i64: 1, 1024>}, {pipeline_mode = #tpu.pipeline_mode<synchronous>, transform_indices = @transform_3, window_bounds = array<i64: 1024, 1024>}, {pipeline_mode = #tpu.pipeline_mode<synchronous>, transform_indices = @transform_4, window_bounds = array<i64: 1, 1024>}, {pipeline_mode = #tpu.pipeline_mode<synchronous>, transform_indices = @transform_5, window_bounds = array<i64: 1024, 1024>}, {pipeline_mode = #tpu.pipeline_mode<synchronous>, transform_indices = @transform_6, window_bounds = array<i64: 1, 1024>}, {pipeline_mode = #tpu.pipeline_mode<synchronous>, transform_indices = @transform_7, window_bounds = array<i64: 1024, 128>}, {pipeline_mode = #tpu.pipeline_mode<synchronous>, transform_indices = @transform_8, window_bounds = array<i64: 1, 128>}, {transform_indices = @transform_9, window_bounds = array<i64: 8, 128>}]} {
    %c0 = arith.constant 0 : index
    %c0_0 = arith.constant 0 : index
    %0 = vector.load %arg1[%c0, %c0_0] : memref<8x16xbf16, #tpu.memory_space<vmem>>, vector<8x16xbf16>
    %c0_1 = arith.constant 0 : index
    %c0_2 = arith.constant 0 : index
    %1 = vector.load %arg2[%c0_1, %c0_2] : memref<16x1024xbf16, #tpu.memory_space<vmem>>, vector<16x1024xbf16>
    %cst = arith.constant dense<0.000000e+00> : vector<8x1024xf32>
    %2 = tpu.matmul %0, %1, %cst {dimension_numbers = #tpu.dot_dimension_numbers<[1], [0], [0], [1], [0, 0, 1, 1], [], []>} : vector<8x16xbf16>, vector<16x1024xbf16>, vector<8x1024xf32> -> vector<8x1024xf32>
    %c0_3 = arith.constant 0 : index
    %c0_4 = arith.constant 0 : index
    %3 = vector.load %arg3[%c0_3, %c0_4] : memref<1x1024xf32, #tpu.memory_space<vmem>>, vector<1x1024xf32>
    %4 = vector.broadcast %3 : vector<1x1024xf32> to vector<8x1024xf32>
    %5 = arith.addf %2, %4 : vector<8x1024xf32>
    %cst_5 = arith.constant 0.000000e+00 : f32
    %6 = vector.broadcast %cst_5 : f32 to vector<8x1024xf32>
    %7 = arith.maximumf %5, %6 : vector<8x1024xf32>
    %8 = arith.truncf %7 : vector<8x1024xf32> to vector<8x1024xbf16>
    %c0_6 = arith.constant 0 : index
    %c0_7 = arith.constant 0 : index
    %9 = vector.load %arg4[%c0_6, %c0_7] : memref<1024x1024xbf16, #tpu.memory_space<vmem>>, vector<1024x1024xbf16>
    %cst_8 = arith.constant dense<0.000000e+00> : vector<8x1024xf32>
    %10 = tpu.matmul %8, %9, %cst_8 {dimension_numbers = #tpu.dot_dimension_numbers<[1], [0], [0], [1], [0, 0, 1, 1], [], []>} : vector<8x1024xbf16>, vector<1024x1024xbf16>, vector<8x1024xf32> -> vector<8x1024xf32>
    %c0_9 = arith.constant 0 : index
    %c0_10 = arith.constant 0 : index
    %11 = vector.load %arg5[%c0_9, %c0_10] : memref<1x1024xf32, #tpu.memory_space<vmem>>, vector<1x1024xf32>
    %12 = vector.broadcast %11 : vector<1x1024xf32> to vector<8x1024xf32>
    %13 = arith.addf %10, %12 : vector<8x1024xf32>
    %cst_11 = arith.constant 0.000000e+00 : f32
    %14 = vector.broadcast %cst_11 : f32 to vector<8x1024xf32>
    %15 = arith.maximumf %13, %14 : vector<8x1024xf32>
    %16 = arith.truncf %15 : vector<8x1024xf32> to vector<8x1024xbf16>
    %c0_12 = arith.constant 0 : index
    %c0_13 = arith.constant 0 : index
    %17 = vector.load %arg6[%c0_12, %c0_13] : memref<1024x1024xbf16, #tpu.memory_space<vmem>>, vector<1024x1024xbf16>
    %cst_14 = arith.constant dense<0.000000e+00> : vector<8x1024xf32>
    %18 = tpu.matmul %16, %17, %cst_14 {dimension_numbers = #tpu.dot_dimension_numbers<[1], [0], [0], [1], [0, 0, 1, 1], [], []>} : vector<8x1024xbf16>, vector<1024x1024xbf16>, vector<8x1024xf32> -> vector<8x1024xf32>
    %c0_15 = arith.constant 0 : index
    %c0_16 = arith.constant 0 : index
    %19 = vector.load %arg7[%c0_15, %c0_16] : memref<1x1024xf32, #tpu.memory_space<vmem>>, vector<1x1024xf32>
    %20 = vector.broadcast %19 : vector<1x1024xf32> to vector<8x1024xf32>
    %21 = arith.addf %18, %20 : vector<8x1024xf32>
    %cst_17 = arith.constant 0.000000e+00 : f32
    %22 = vector.broadcast %cst_17 : f32 to vector<8x1024xf32>
    %23 = arith.maximumf %21, %22 : vector<8x1024xf32>
    %24 = arith.truncf %23 : vector<8x1024xf32> to vector<8x1024xbf16>
    %c0_18 = arith.constant 0 : index
    %c0_19 = arith.constant 0 : index
    %25 = vector.load %arg8[%c0_18, %c0_19] : memref<1024x128xbf16, #tpu.memory_space<vmem>>, vector<1024x128xbf16>
    %cst_20 = arith.constant dense<0.000000e+00> : vector<8x128xf32>
    %26 = tpu.matmul %24, %25, %cst_20 {dimension_numbers = #tpu.dot_dimension_numbers<[1], [0], [0], [1], [0, 0, 1, 1], [], []>} : vector<8x1024xbf16>, vector<1024x128xbf16>, vector<8x128xf32> -> vector<8x128xf32>
    %c0_21 = arith.constant 0 : index
    %c0_22 = arith.constant 0 : index
    %27 = vector.load %arg9[%c0_21, %c0_22] : memref<1x128xf32, #tpu.memory_space<vmem>>, vector<1x128xf32>
    %28 = vector.broadcast %27 : vector<1x128xf32> to vector<8x128xf32>
    %29 = arith.addf %26, %28 : vector<8x128xf32>
    %30 = arith.negf %29 : vector<8x128xf32>
    %31 = math.exp %30 : vector<8x128xf32>
    %cst_23 = arith.constant 1.000000e+00 : f32
    %32 = vector.broadcast %cst_23 : f32 to vector<8x128xf32>
    %33 = arith.addf %32, %31 : vector<8x128xf32>
    %34 = arith.divf %32, %33 : vector<8x128xf32>
    %35 = arith.truncf %34 : vector<8x128xf32> to vector<8x128xbf16>
    %c0_24 = arith.constant 0 : index
    %c0_25 = arith.constant 0 : index
    %36 = vector.load %arg10[%c0_24, %c0_25] : memref<8x128xbf16, #tpu.memory_space<vmem>>, vector<8x128xbf16>
    tpu.vector_store %arg10[%c0_24, %c0_25], %35 {strides = array<i32>} : memref<8x128xbf16, #tpu.memory_space<vmem>>, vector<8x128xbf16>,
    return
  }
  func.func @transform_0(%arg0: i32) -> (i32, i32) {
    %c0_i32 = arith.constant 0 : i32
    %c0_i32_0 = arith.constant 0 : i32
    return %arg0, %c0_i32 : i32, i32
  }
  func.func @transform_1(%arg0: i32) -> (i32, i32) {
    %c0_i32 = arith.constant 0 : i32
    %c0_i32_0 = arith.constant 0 : i32
    %c0_i32_1 = arith.constant 0 : i32
    return %c0_i32, %c0_i32_0 : i32, i32
  }
  func.func @transform_2(%arg0: i32) -> (i32, i32) {
    %c0_i32 = arith.constant 0 : i32
    %c0_i32_0 = arith.constant 0 : i32
    %c0_i32_1 = arith.constant 0 : i32
    return %c0_i32, %c0_i32_0 : i32, i32
  }
  func.func @transform_3(%arg0: i32) -> (i32, i32) {
    %c0_i32 = arith.constant 0 : i32
    %c0_i32_0 = arith.constant 0 : i32
    %c0_i32_1 = arith.constant 0 : i32
    return %c0_i32, %c0_i32_0 : i32, i32
  }
  func.func @transform_4(%arg0: i32) -> (i32, i32) {
    %c0_i32 = arith.constant 0 : i32
    %c0_i32_0 = arith.constant 0 : i32
    %c0_i32_1 = arith.constant 0 : i32
    return %c0_i32, %c0_i32_0 : i32, i32
  }
  func.func @transform_5(%arg0: i32) -> (i32, i32) {
    %c0_i32 = arith.constant 0 : i32
    %c0_i32_0 = arith.constant 0 : i32
    %c0_i32_1 = arith.constant 0 : i32
    return %c0_i32, %c0_i32_0 : i32, i32
  }
  func.func @transform_6(%arg0: i32) -> (i32, i32) {
    %c0_i32 = arith.constant 0 : i32
    %c0_i32_0 = arith.constant 0 : i32
    %c0_i32_1 = arith.constant 0 : i32
    return %c0_i32, %c0_i32_0 : i32, i32
  }
  func.func @transform_7(%arg0: i32) -> (i32, i32) {
    %c0_i32 = arith.constant 0 : i32
    %c0_i32_0 = arith.constant 0 : i32
    %c0_i32_1 = arith.constant 0 : i32
    return %c0_i32, %c0_i32_0 : i32, i32
  }
  func.func @transform_8(%arg0: i32) -> (i32, i32) {
    %c0_i32 = arith.constant 0 : i32
    %c0_i32_0 = arith.constant 0 : i32
    %c0_i32_1 = arith.constant 0 : i32
    return %c0_i32, %c0_i32_0 : i32, i32
  }
  func.func @transform_9(%arg0: i32) -> (i32, i32) {
    %c0_i32 = arith.constant 0 : i32
    %c0_i32_0 = arith.constant 0 : i32
    return %arg0, %c0_i32 : i32, i32
  }
}

module attributes {stable_mosaic.version = 11 : i64} {
  func.func @_mlp_kernel(%arg0: i32, %arg1: memref<8x16xbf16, #tpu.memory_space<vmem>>, %arg2: memref<16x1024xbf16, #tpu.memory_space<vmem>>, %arg3: memref<1x1024xf32, #tpu.memory_space<vmem>>, %arg4: memref<1024x1024xbf16, #tpu.memory_space<vmem>>, %arg5: memref<1x1024xf32, #tpu.memory_space<vmem>>, %arg6: memref<1024x1024xbf16, #tpu.memory_space<vmem>>, %arg7: memref<1x1024xf32, #tpu.memory_space<vmem>>, %arg8: memref<1024x128xbf16, #tpu.memory_space<vmem>>, %arg9: memref<1x128xf32, #tpu.memory_space<vmem>>, %arg10: memref<8x128xbf16, #tpu.memory_space<vmem>>) attributes {dimension_semantics = [#tpu.dimension_semantics<parallel>], iteration_bounds = array<i64: 1>, scalar_prefetch = 0 : i64, scratch_operands = 0 : i64, tpu.core_type = #tpu.core_type<tc>, window_params = [{transform_indices = @transform_0, window_bounds = array<i64: 8, 16>}, {pipeline_mode = #tpu.pipeline_mode<synchronous>, transform_indices = @transform_1, window_bounds = array<i64: 16, 1024>}, {pipeline_mode = #tpu.pipeline_mode<synchronous>, transform_indices = @transform_2, window_bounds = array<i64: 1, 1024>}, {pipeline_mode = #tpu.pipeline_mode<synchronous>, transform_indices = @transform_3, window_bounds = array<i64: 1024, 1024>}, {pipeline_mode = #tpu.pipeline_mode<synchronous>, transform_indices = @transform_4, window_bounds = array<i64: 1, 1024>}, {pipeline_mode = #tpu.pipeline_mode<synchronous>, transform_indices = @transform_5, window_bounds = array<i64: 1024, 1024>}, {pipeline_mode = #tpu.pipeline_mode<synchronous>, transform_indices = @transform_6, window_bounds = array<i64: 1, 1024>}, {pipeline_mode = #tpu.pipeline_mode<synchronous>, transform_indices = @transform_7, window_bounds = array<i64: 1024, 128>}, {pipeline_mode = #tpu.pipeline_mode<synchronous>, transform_indices = @transform_8, window_bounds = array<i64: 1, 128>}, {transform_indices = @transform_9, window_bounds = array<i64: 8, 128>}]} {
    %c0 = arith.constant 0 : index
    %c0_0 = arith.constant 0 : index
    %0 = vector.load %arg1[%c0, %c0_0] : memref<8x16xbf16, #tpu.memory_space<vmem>>, vector<8x16xbf16>
    %c0_1 = arith.constant 0 : index
    %c0_2 = arith.constant 0 : index
    %1 = vector.load %arg2[%c0_1, %c0_2] : memref<16x1024xbf16, #tpu.memory_space<vmem>>, vector<16x1024xbf16>
    %cst = arith.constant dense<0.000000e+00> : vector<8x1024xf32>
    %2 = tpu.matmul %0, %1, %cst {dimension_numbers = #tpu.dot_dimension_numbers<[1], [0], [0], [1], [0, 0, 1, 1], [], []>} : vector<8x16xbf16>, vector<16x1024xbf16>, vector<8x1024xf32> -> vector<8x1024xf32>
    %c0_3 = arith.constant 0 : index
    %c0_4 = arith.constant 0 : index
    %3 = vector.load %arg3[%c0_3, %c0_4] : memref<1x1024xf32, #tpu.memory_space<vmem>>, vector<1x1024xf32>
    %4 = vector.broadcast %3 : vector<1x1024xf32> to vector<8x1024xf32>
    %5 = arith.addf %2, %4 : vector<8x1024xf32>
    %cst_5 = arith.constant 0.000000e+00 : f32
    %6 = vector.broadcast %cst_5 : f32 to vector<8x1024xf32>
    %7 = arith.maximumf %5, %6 : vector<8x1024xf32>
    %8 = arith.truncf %7 : vector<8x1024xf32> to vector<8x1024xbf16>
    %c0_6 = arith.constant 0 : index
    %c0_7 = arith.constant 0 : index
    %9 = vector.load %arg4[%c0_6, %c0_7] : memref<1024x1024xbf16, #tpu.memory_space<vmem>>, vector<1024x1024xbf16>
    %cst_8 = arith.constant dense<0.000000e+00> : vector<8x1024xf32>
    %10 = tpu.matmul %8, %9, %cst_8 {dimension_numbers = #tpu.dot_dimension_numbers<[1], [0], [0], [1], [0, 0, 1, 1], [], []>} : vector<8x1024xbf16>, vector<1024x1024xbf16>, vector<8x1024xf32> -> vector<8x1024xf32>
    %c0_9 = arith.constant 0 : index
    %c0_10 = arith.constant 0 : index
    %11 = vector.load %arg5[%c0_9, %c0_10] : memref<1x1024xf32, #tpu.memory_space<vmem>>, vector<1x1024xf32>
    %12 = vector.broadcast %11 : vector<1x1024xf32> to vector<8x1024xf32>
    %13 = arith.addf %10, %12 : vector<8x1024xf32>
    %cst_11 = arith.constant 0.000000e+00 : f32
    %14 = vector.broadcast %cst_11 : f32 to vector<8x1024xf32>
    %15 = arith.maximumf %13, %14 : vector<8x1024xf32>
    %16 = arith.truncf %15 : vector<8x1024xf32> to vector<8x1024xbf16>
    %c0_12 = arith.constant 0 : index
    %c0_13 = arith.constant 0 : index
    %17 = vector.load %arg6[%c0_12, %c0_13] : memref<1024x1024xbf16, #tpu.memory_space<vmem>>, vector<1024x1024xbf16>
    %cst_14 = arith.constant dense<0.000000e+00> : vector<8x1024xf32>
    %18 = tpu.matmul %16, %17, %cst_14 {dimension_numbers = #tpu.dot_dimension_numbers<[1], [0], [0], [1], [0, 0, 1, 1], [], []>} : vector<8x1024xbf16>, vector<1024x1024xbf16>, vector<8x1024xf32> -> vector<8x1024xf32>
    %c0_15 = arith.constant 0 : index
    %c0_16 = arith.constant 0 : index
    %19 = vector.load %arg7[%c0_15, %c0_16] : memref<1x1024xf32, #tpu.memory_space<vmem>>, vector<1x1024xf32>
    %20 = vector.broadcast %19 : vector<1x1024xf32> to vector<8x1024xf32>
    %21 = arith.addf %18, %20 : vector<8x1024xf32>
    %cst_17 = arith.constant 0.000000e+00 : f32
    %22 = vector.broadcast %cst_17 : f32 to vector<8x1024xf32>
    %23 = arith.maximumf %21, %22 : vector<8x1024xf32>
    %24 = arith.truncf %23 : vector<8x1024xf32> to vector<8x1024xbf16>
    %c0_18 = arith.constant 0 : index
    %c0_19 = arith.constant 0 : index
    %25 = vector.load %arg8[%c0_18, %c0_19] : memref<1024x128xbf16, #tpu.memory_space<vmem>>, vector<1024x128xbf16>
    %cst_20 = arith.constant dense<0.000000e+00> : vector<8x128xf32>
    %26 = tpu.matmul %24, %25, %cst_20 {dimension_numbers = #tpu.dot_dimension_numbers<[1], [0], [0], [1], [0, 0, 1, 1], [], []>} : vector<8x1024xbf16>, vector<1024x128xbf16>, vector<8x128xf32> -> vector<8x128xf32>
    %c0_21 = arith.constant 0 : index
    %c0_22 = arith.constant 0 : index
    %27 = vector.load %arg9[%c0_21, %c0_22] : memref<1x128xf32, #tpu.memory_space<vmem>>, vector<1x128xf32>
    %28 = vector.broadcast %27 : vector<1x128xf32> to vector<8x128xf32>
    %29 = arith.addf %26, %28 : vector<8x128xf32>
    %30 = arith.negf %29 : vector<8x128xf32>
    %31 = math.exp %30 : vector<8x128xf32>
    %cst_23 = arith.constant 1.000000e+00 : f32
    %32 = vector.broadcast %cst_23 : f32 to vector<8x128xf32>
    %33 = arith.addf %32, %31 : vector<8x128xf32>
    %34 = arith.divf %32, %33 : vector<8x128xf32>
    %35 = arith.truncf %34 : vector<8x128xf32> to vector<8x128xbf16>
    %c0_24 = arith.constant 0 : index
    %c0_25 = arith.constant 0 : index
    %36 = vector.load %arg10[%c0_24, %c0_25] : memref<8x128xbf16, #tpu.memory_space<vmem>>, vector<8x128xbf16>
    tpu.vector_store %arg10[%c0_24, %c0_25], %35 {strides = array<i32>} : memref<8x128xbf16, #tpu.memory_space<vmem>>, vector<8x128xbf16>,
    return
  }
  func.func @transform_0(%arg0: i32) -> (i32, i32) {
    %c0_i32 = arith.constant 0 : i32
    %c0_i32_0 = arith.constant 0 : i32
    return %arg0, %c0_i32 : i32, i32
  }
  func.func @transform_1(%arg0: i32) -> (i32, i32) {
    %c0_i32 = arith.constant 0 : i32
    %c0_i32_0 = arith.constant 0 : i32
    %c0_i32_1 = arith.constant 0 : i32
    return %c0_i32, %c0_i32_0 : i32, i32
  }
  func.func @transform_2(%arg0: i32) -> (i32, i32) {
    %c0_i32 = arith.constant 0 : i32
    %c0_i32_0 = arith.constant 0 : i32
    %c0_i32_1 = arith.constant 0 : i32
    return %c0_i32, %c0_i32_0 : i32, i32
  }
  func.func @transform_3(%arg0: i32) -> (i32, i32) {
    %c0_i32 = arith.constant 0 : i32
    %c0_i32_0 = arith.constant 0 : i32
    %c0_i32_1 = arith.constant 0 : i32
    return %c0_i32, %c0_i32_0 : i32, i32
  }
  func.func @transform_4(%arg0: i32) -> (i32, i32) {
    %c0_i32 = arith.constant 0 : i32
    %c0_i32_0 = arith.constant 0 : i32
    %c0_i32_1 = arith.constant 0 : i32
    return %c0_i32, %c0_i32_0 : i32, i32
  }
  func.func @transform_5(%arg0: i32) -> (i32, i32) {
    %c0_i32 = arith.constant 0 : i32
    %c0_i32_0 = arith.constant 0 : i32
    %c0_i32_1 = arith.constant 0 : i32
    return %c0_i32, %c0_i32_0 : i32, i32
  }
  func.func @transform_6(%arg0: i32) -> (i32, i32) {
    %c0_i32 = arith.constant 0 : i32
    %c0_i32_0 = arith.constant 0 : i32
    %c0_i32_1 = arith.constant 0 : i32
    return %c0_i32, %c0_i32_0 : i32, i32
  }
  func.func @transform_7(%arg0: i32) -> (i32, i32) {
    %c0_i32 = arith.constant 0 : i32
    %c0_i32_0 = arith.constant 0 : i32
    %c0_i32_1 = arith.constant 0 : i32
    return %c0_i32, %c0_i32_0 : i32, i32
  }
  func.func @transform_8(%arg0: i32) -> (i32, i32) {
    %c0_i32 = arith.constant 0 : i32
    %c0_i32_0 = arith.constant 0 : i32
    %c0_i32_1 = arith.constant 0 : i32
    return %c0_i32, %c0_i32_0 : i32, i32
  }
  func.func @transform_9(%arg0: i32) -> (i32, i32) {
    %c0_i32 = arith.constant 0 : i32
    %c0_i32_0 = arith.constant 0 : i32
    return %arg0, %c0_i32 : i32, i32
  }
}

</mosaic_0001>

<bundles_post_ra>
// kernel: tpu_custom_call.1
= control target key start
LH: loop header
LB: loop body
LE: loop exit
PB: predicated region body
PF: predicated region fallthrough
CT: control target
= control target key end

     0   :  { %14 = vsyncpa [#allocation3], 0  ;;  %s10735_s0 = inlined_call_operand.hbm [shape: bf16[8,16], index: 0, kind: input, shape index: {}]   ;;  %s10736_s1 = inlined_call_operand.hbm [shape: bf16[16,1024], index: 1, kind: input, shape index: {}]   ;;  %s10737_s2 = inlined_call_operand.hbm [shape: f32[1,1024], index: 2, kind: input, shape index: {}]   ;;  %s10738_s3 = inlined_call_operand.hbm [shape: bf16[1024,1024], index: 3, kind: input, shape index: {}]   ;;  %s10739_s4 = inlined_call_operand.hbm [shape: f32[1,1024], index: 4, kind: input, shape index: {}]   ;;  %s10740_s5 = inlined_call_operand.hbm [shape: bf16[1024,1024], index: 5, kind: input, shape index: {}]   ;;  %s10741_s6 = inlined_call_operand.hbm [shape: f32[1,1024], index: 6, kind: input, shape index: {}]   ;;  %s10742_s7 = inlined_call_operand.hbm [shape: bf16[1024,128], index: 7, kind: input, shape index: {}]   ;;  %s10743_s8 = inlined_call_operand.hbm [shape: f32[1,128], index: 8, kind: input, shape index: {}]   ;;  %s10744_s9 = inlined_call_operand.hbm [shape: bf16[8,128], index: 9, kind: output, shape index: {}]  }
   0x1   :  { %15 = vsyncpa [#allocation6], 0 }
   0x2   :  { %16 = vsyncpa [#allocation9], 0 }
   0x3   :  { %17 = vsyncpa [#allocation12], 0 }
   0x4   :  { %18 = vsyncpa [#allocation15], 0 }
   0x5   :  { %19 = vsyncpa [#allocation4], 0  ;;  %s10318_s30 = smov [#allocation5]   ;;  %s10086_s13 = scalar_lea.hbm %s10736_s1, 1024 }
   0x6   :  { %s35_s10 = sshll.u32 %s10318_s30, 4  ;;  %p10087_p0 = scmp.ne.s32.totalorder %s10736_s1, %s10086_s13  ;;  %s36_s10 = int_to_ptr.vmem [resolvable:$true] %s35_s10 }
   0x7   :  { %p10090_p1 = scmp.lt.u32.totalorder %s10086_s13, %s10736_s1 }
   0x9   :  { %p10092_p2 = pnand %p10090_p1, %p10087_p0 }
   0xb   :  { %10095 = shalt.err (!%p10092_p2)
}
   0xc   :  { %s10096_s18 = scalar_lea.vmem %s36_s10, 1024  ;;  %p10101_p4 = scmp.lt.s32.totalorder %s36_s10, %s36_s10 }
   0xd   :  { %p10097_p3 = scmp.ne.s32.totalorder %s36_s10, %s10096_s18  ;;  %p10102_p5 = scmp.lt.s32.totalorder %s10096_s18, %s10096_s18 }
   0xf   :  { %p10103_p6 = por %p10102_p5, %p10101_p4 }
  0x11   :  { %p10104_p7 = pnand %p10103_p6, %p10097_p3 }
  0x13   :  { %10107 = shalt.err (!%p10104_p7)
}
  0x14   :  { %s10319_s19 = smov 512   ;;  %s10320_s20 = smov 32  }
  0x15   :  { %41 = dma.hbm_to_vmem [thread:$0]  %s10736_s1, 1024, %s36_s10, [#allocation6], %s10319_s19, %s10319_s19, %s10320_s20  }
  0x16   :  { %s10321_s23 = smov [#allocation8]   ;;  %s10322_s25 = smov [#allocation11]  }
  0x17   :  { %s57_s24 = sshll.u32 %s10321_s23, 4  ;;  %s79_s26 = sshll.u32 %s10322_s25, 4  ;;  %s58_s24 = int_to_ptr.vmem [resolvable:$true] %s57_s24  ;;  %s80_s26 = int_to_ptr.vmem [resolvable:$true] %s79_s26 }
  0x18   :  { %s10108_s29 = scalar_lea.hbm %s10738_s3, 65536 }
  0x19   :  { %p10109_p8 = scmp.ne.s32.totalorder %s10738_s3, %s10108_s29  ;;  %p10112_p9 = scmp.lt.u32.totalorder %s10108_s29, %s10738_s3 }
  0x1b   :  { %p10114_p10 = pnand %p10112_p9, %p10109_p8 }
  0x1d   :  { %10117 = shalt.err (!%p10114_p10)
}
  0x1e   :  { %s10118_s1 = scalar_lea.vmem %s58_s24, 65536  ;;  %p10123_p12 = scmp.lt.s32.totalorder %s58_s24, %s58_s24 }
  0x1f   :  { %p10119_p11 = scmp.ne.s32.totalorder %s58_s24, %s10118_s1  ;;  %p10124_p13 = scmp.lt.s32.totalorder %s10118_s1, %s10118_s1 }
  0x21   :  { %p10125_p0 = por %p10124_p13, %p10123_p12 }
  0x23   :  { %p10126_p1 = pnand %p10125_p0, %p10119_p11 }
  0x25   :  { %10129 = shalt.err (!%p10126_p1)
}
  0x26   :  { %63 = dma.hbm_to_vmem [thread:$0]  %s10738_s3, 65536, %s58_s24, [#allocation9], %s10319_s19, %s10319_s19, %s10320_s20  }
  0x27   :  { %s10130_s17 = scalar_lea.hbm %s10740_s5, 65536 }
  0x28   :  { %p10131_p2 = scmp.ne.s32.totalorder %s10740_s5, %s10130_s17  ;;  %p10134_p3 = scmp.lt.u32.totalorder %s10130_s17, %s10740_s5 }
  0x2a   :  { %p10136_p4 = pnand %p10134_p3, %p10131_p2 }
  0x2c   :  { %10139 = shalt.err (!%p10136_p4)
}
  0x2d   :  { %s10140_s25 = scalar_lea.vmem %s80_s26, 65536  ;;  %p10145_p6 = scmp.lt.s32.totalorder %s80_s26, %s80_s26 }
  0x2e   :  { %p10141_p5 = scmp.ne.s32.totalorder %s80_s26, %s10140_s25  ;;  %p10146_p7 = scmp.lt.s32.totalorder %s10140_s25, %s10140_s25 }
  0x30   :  { %p10147_p8 = por %p10146_p7, %p10145_p6 }
  0x32   :  { %p10148_p9 = pnand %p10147_p8, %p10141_p5 }
  0x34   :  { %10151 = shalt.err (!%p10148_p9)
}
  0x35   :  { %85 = dma.hbm_to_vmem [thread:$0]  %s10740_s5, 65536, %s80_s26, [#allocation12], %s10319_s19, %s10319_s19, %s10320_s20  }
  0x36   :  { %s10323_s27 = smov [#allocation14]   ;;  %s10152_s11 = scalar_lea.hbm %s10742_s7, 8192 }
  0x37   :  { %s101_s28 = sshll.u32 %s10323_s27, 4  ;;  %p10153_p10 = scmp.ne.s32.totalorder %s10742_s7, %s10152_s11  ;;  %s102_s28 = int_to_ptr.vmem [resolvable:$true] %s101_s28 }
  0x38   :  { %p10156_p11 = scmp.lt.u32.totalorder %s10152_s11, %s10742_s7 }
  0x3a   :  { %p10158_p12 = pnand %p10156_p11, %p10153_p10 }
  0x3c   :  { %10161 = shalt.err (!%p10158_p12)
}
  0x3d   :  { %s10162_s14 = scalar_lea.vmem %s102_s28, 8192  ;;  %p10167_p0 = scmp.lt.s32.totalorder %s102_s28, %s102_s28 }
  0x3e   :  { %p10163_p13 = scmp.ne.s32.totalorder %s102_s28, %s10162_s14  ;;  %p10168_p1 = scmp.lt.s32.totalorder %s10162_s14, %s10162_s14 }
  0x40   :  { %p10169_p2 = por %p10168_p1, %p10167_p0 }
  0x42   :  { %p10170_p3 = pnand %p10169_p2, %p10163_p13 }
  0x44   :  { %10173 = shalt.err (!%p10170_p3)
}
  0x45   :  { %s10324_s5 = smov 64   ;;  %s10325_s19 = smov 4  }
  0x46   :  { %107 = dma.hbm_to_vmem [thread:$0]  %s10742_s7, 8192, %s102_s28, [#allocation15], %s10324_s5, %s10324_s5, %s10325_s19  }
  0x47   :  { %s10326_s15 = smov [#allocation2]   ;;  %s10327_s17 = smov [#allocation7]  }
  0x48   :  { %s26_s16 = sshll.u32 %s10326_s15, 4  ;;  %s48_s18 = sshll.u32 %s10327_s17, 4  ;;  %s27_s16 = int_to_ptr.vmem [resolvable:$true] %s26_s16  ;;  %s49_s18 = int_to_ptr.vmem [resolvable:$true] %s48_s18 }
  0x49   :  { %s10174_s23 = scalar_lea.hbm %s10735_s0, 64 }
  0x4a   :  { %p10175_p4 = scmp.ne.s32.totalorder %s10735_s0, %s10174_s23  ;;  %p10178_p5 = scmp.lt.u32.totalorder %s10174_s23, %s10735_s0 }
  0x4c   :  { %p10180_p6 = pnand %p10178_p5, %p10175_p4 }
  0x4e   :  { %10183 = shalt.err (!%p10180_p6)
}
  0x4f   :  { %s10184_s7 = scalar_lea.vmem %s27_s16, 64  ;;  %p10189_p8 = scmp.lt.s32.totalorder %s27_s16, %s27_s16 }
  0x50   :  { %p10185_p7 = scmp.ne.s32.totalorder %s27_s16, %s10184_s7  ;;  %p10190_p9 = scmp.lt.s32.totalorder %s10184_s7, %s10184_s7 }
  0x52   :  { %p10191_p10 = por %p10190_p9, %p10189_p8 }
  0x54   :  { %p10192_p11 = pnand %p10191_p10, %p10185_p7 }
  0x56   :  { %10195 = shalt.err (!%p10192_p11)
}
  0x57   :  { %29 = dma.hbm_to_vmem [thread:$0]  %s10735_s0, 64, %s27_s16, [#allocation3]  }
  0x58   :  { %s10196_s12 = scalar_lea.hbm %s10737_s2, 128 }
  0x59   :  { %p10197_p12 = scmp.ne.s32.totalorder %s10737_s2, %s10196_s12  ;;  %p10200_p13 = scmp.lt.u32.totalorder %s10196_s12, %s10737_s2 }
  0x5b   :  { %p10202_p0 = pnand %p10200_p13, %p10197_p12 }
  0x5d   :  { %10205 = shalt.err (!%p10202_p0)
}
  0x5e   :  { %s10206_s5 = scalar_lea.vmem %s49_s18, 128  ;;  %p10211_p2 = scmp.lt.s32.totalorder %s49_s18, %s49_s18 }
  0x5f   :  { %p10207_p1 = scmp.ne.s32.totalorder %s49_s18, %s10206_s5  ;;  %p10212_p3 = scmp.lt.s32.totalorder %s10206_s5, %s10206_s5 }
  0x61   :  { %p10213_p4 = por %p10212_p3, %p10211_p2 }
  0x63   :  { %p10214_p5 = pnand %p10213_p4, %p10207_p1 }
  0x65   :  { %10217 = shalt.err (!%p10214_p5)
}
  0x66   :  { %51 = dma.hbm_to_vmem [thread:$0]  %s10737_s2, 128, %s49_s18, [#allocation6]  }
  0x67   :  { %s10328_s20 = smov [#allocation10]   ;;  %s10329_s15 = smov [#allocation13]  }
  0x68   :  { %s70_s26 = sshll.u32 %s10328_s20, 4  ;;  %s92_s16 = sshll.u32 %s10329_s15, 4  ;;  %s71_s26 = int_to_ptr.vmem [resolvable:$true] %s70_s26  ;;  %s93_s16 = int_to_ptr.vmem [resolvable:$true] %s92_s16 }
  0x69   :  { %s10218_s22 = scalar_lea.hbm %s10739_s4, 128 }
  0x6a   :  { %p10219_p6 = scmp.ne.s32.totalorder %s10739_s4, %s10218_s22  ;;  %p10222_p7 = scmp.lt.u32.totalorder %s10218_s22, %s10739_s4 }
  0x6c   :  { %p10224_p8 = pnand %p10222_p7, %p10219_p6 }
  0x6e   :  { %10227 = shalt.err (!%p10224_p8)
}
  0x6f   :  { %s10228_s2 = scalar_lea.vmem %s71_s26, 128  ;;  %p10233_p10 = scmp.lt.s32.totalorder %s71_s26, %s71_s26 }
  0x70   :  { %p10229_p9 = scmp.ne.s32.totalorder %s71_s26, %s10228_s2  ;;  %p10234_p11 = scmp.lt.s32.totalorder %s10228_s2, %s10228_s2 }
  0x72   :  { %p10235_p12 = por %p10234_p11, %p10233_p10 }
  0x74   :  { %p10236_p13 = pnand %p10235_p12, %p10229_p9 }
  0x76   :  { %10239 = shalt.err (!%p10236_p13)
}
  0x77   :  { %73 = dma.hbm_to_vmem [thread:$0]  %s10739_s4, 128, %s71_s26, [#allocation9]  }
  0x78   :  { %s10240_s29 = scalar_lea.hbm %s10741_s6, 128 }
  0x79   :  { %p10241_p0 = scmp.ne.s32.totalorder %s10741_s6, %s10240_s29  ;;  %p10244_p1 = scmp.lt.u32.totalorder %s10240_s29, %s10741_s6 }
  0x7b   :  { %p10246_p2 = pnand %p10244_p1, %p10241_p0 }
  0x7d   :  { %10249 = shalt.err (!%p10246_p2)
}
  0x7e   :  { %s10250_s1 = scalar_lea.vmem %s93_s16, 128  ;;  %p10255_p4 = scmp.lt.s32.totalorder %s93_s16, %s93_s16 }
  0x7f   :  { %p10251_p3 = scmp.ne.s32.totalorder %s93_s16, %s10250_s1  ;;  %p10256_p5 = scmp.lt.s32.totalorder %s10250_s1, %s10250_s1 }
  0x81   :  { %p10257_p6 = por %p10256_p5, %p10255_p4 }
  0x83   :  { %p10258_p7 = pnand %p10257_p6, %p10251_p3 }
  0x85   :  { %10261 = shalt.err (!%p10258_p7)
}
  0x86   :  { %95 = dma.hbm_to_vmem [thread:$0]  %s10741_s6, 128, %s93_s16, [#allocation12]  }
  0x87   :  { %s10330_s14 = smov [#allocation16]   ;;  %s10262_s20 = scalar_lea.hbm %s10743_s8, 16 }
  0x88   :  { %s114_s5 = sshll.u32 %s10330_s14, 4  ;;  %p10263_p8 = scmp.ne.s32.totalorder %s10743_s8, %s10262_s20  ;;  %s115_s5 = int_to_ptr.vmem [resolvable:$true] %s114_s5 }
  0x89   :  { %p10266_p9 = scmp.lt.u32.totalorder %s10262_s20, %s10743_s8 }
  0x8b   :  { %p10268_p10 = pnand %p10266_p9, %p10263_p8 }
  0x8d   :  { %10271 = shalt.err (!%p10268_p10)
}
  0x8e   :  { %s10272_s22 = scalar_lea.vmem %s115_s5, 16  ;;  %s10276_s6 = scalar_lea.vmem %s115_s5, 32 }
  0x8f   :  { %p10273_p11 = scmp.ne.s32.totalorder %s115_s5, %s10272_s22  ;;  %p10277_p12 = scmp.lt.s32.totalorder %s115_s5, %s115_s5 }
  0x90   :  { %p10278_p13 = scmp.lt.s32.totalorder %s10276_s6, %s10272_s22 }
  0x92   :  { %p10279_p0 = por %p10278_p13, %p10277_p12 }
  0x94   :  { %p10280_p1 = pnand %p10279_p0, %p10273_p11 }
  0x96   :  { %10283 = shalt.err (!%p10280_p1)
}
  0x97   :  { %117 = dma.hbm_to_vmem [thread:$0]  %s10743_s8, 16, %s115_s5, [#allocation15]  }
  0x98   :  { %10306 = dma.done.wait [#allocation3], 64  }
  0x99   :  { %10307 = vsyncadd [#allocation3], 4294967232 }
  0x9a   :  { %10308 = dma.done.wait [#allocation6], 1152  }
  0x9b   :  { %10309 = vsyncadd [#allocation6], 4294966144 }
  0x9c   :  { %10310 = dma.done.wait [#allocation9], 65664  }
  0x9d   :  { %10311 = vsyncadd [#allocation9], 4294901632 }
  0x9e   :  { %10312 = dma.done.wait [#allocation12], 65664  }
  0x9f   :  { %10313 = vsyncadd [#allocation12], 4294901632 }
  0xa0   :  { %10314 = dma.done.wait [#allocation15], 8208  }
  0xa1   :  { %10315 = vsyncadd [#allocation15], 4294959088  ;;  %v10331_v0 = vmov 0   ;;  %v147_v1 = vld [vmem:[#allocation5] sm:$0xff]  ;;  %v148_v5 = vld [vmem:[#allocation5 + $0x8] sm:$0xff]  ;;  %vm237_vm0 = vcmask 130048  }
  0xa2   :  { %273 = vmatprep.mubr.bf16.mxu0 %v10331_v0  ;;  %314 = vmatprep.mubr.bf16.mxu1 %v10331_v0  ;;  %v151_v2 = vld [vmem:[#allocation5 + $0x20] sm:$0xff]  ;;  %v152_v6 = vld [vmem:[#allocation5 + $0x28] sm:$0xff]  ;;  %v149_v7 = vld [vmem:[#allocation5 + $0x10] sm:$0xff]  ;;  %s10332_s8 = smov [#allocation17]  }
  0xa3   :  { %v8700_v3 = vcombine.high %v147_v1, %v151_v2  ;;  %v8699_v4 = vcombine.low %v147_v1, %v151_v2  ;;  %v8702_v8 = vcombine.high %v148_v5, %v152_v6  ;;  %v8701_v9 = vcombine.low %v148_v5, %v152_v6  ;;  %v153_v10 = vld [vmem:[#allocation5 + $0x30] sm:$0xff]  ;;  %v150_v11 = vld [vmem:[#allocation5 + $0x18] sm:$0xff]  ;;  %v421_v15 = vld [vmem:[#allocation8] sm:$0xff]  ;;  %s8686_s25 = sshll.u32 %s10332_s8, 4  ;;  %s8687_s25 = int_to_ptr.vmem [resolvable:$true] %s8686_s25 }
  0xa4   :  { %v154_v12 = vld [vmem:[#allocation5 + $0x38] sm:$0xff]  ;;  %v8704_v13 = vcombine.high %v149_v7, %v153_v10  ;;  %v425_v16 = vld [vmem:[#allocation8 + $0x20] sm:$0xff]  ;;  %v8703_v18 = vcombine.low %v149_v7, %v153_v10  ;;  %v422_v19 = vld [vmem:[#allocation8 + $0x8] sm:$0xff]  ;;  %s10284_s3 = scalar_lea.vmem %s8687_s25, 64  ;;  %p10289_p3 = scmp.lt.s32.totalorder %s8687_s25, %s8687_s25 }
  0xa5   :  { %241 = vmatprep.subr.bf16.mxu0 %v8700_v3  ;;  %v8706_v14 = vcombine.high %v150_v11, %v154_v12  ;;  %v146_v17 = vld [vmem:[#allocation2] sm:$0xf]  ;;  %282 = vmatprep.subr.bf16.mxu1 %v8702_v8  ;;  %v426_v20 = vld [vmem:[#allocation8 + $0x28] sm:$0xff]  ;;  %v8705_v21 = vcombine.low %v150_v11, %v154_v12  ;;  %v8712_v22 = vcombine.high %v421_v15, %v425_v16  ;;  %v429_v24 = vld [vmem:[#allocation8 + $0x40] sm:$0xff]  ;;  %p10285_p2 = scmp.ne.s32.totalorder %s8687_s25, %s10284_s3  ;;  %p10290_p4 = scmp.lt.s32.totalorder %s10284_s3, %s10284_s3 }
  0xa6   :  { %242 = vmatpush1.bf16.msra.mxu0 %v8699_v4  ;;  %283 = vmatpush1.bf16.msra.mxu1 %v8701_v9  ;;  %v8714_v23 = vcombine.high %v422_v19, %v426_v20  ;;  %v433_v25 = vld [vmem:[#allocation8 + $0x60] sm:$0xff]  ;;  %v430_v26 = vld [vmem:[#allocation8 + $0x48] sm:$0xff]  ;;  %v8711_v28 = vcombine.low %v421_v15, %v425_v16  ;;  %v8713_v29 = vcombine.low %v422_v19, %v426_v20 }
  0xa7   :  { %323 = vmatprep.subr.bf16.mxu0 %v8704_v13  ;;  %364 = vmatprep.subr.bf16.mxu1 %v8706_v14  ;;  %v434_v27 = vld [vmem:[#allocation8 + $0x68] sm:$0xff]  ;;  %v8720_v30 = vcombine.high %v429_v24, %v433_v25  ;;  %v437_v32 = vld [vmem:[#allocation8 + $0x80] sm:$0xff]  ;;  %v8719_v36 = vcombine.low %v429_v24, %v433_v25  ;;  %p10291_p5 = por %p10290_p4, %p10289_p3 }
  0xa8   :  { %v8722_v31 = vcombine.high %v430_v26, %v434_v27  ;;  %v441_v33 = vld [vmem:[#allocation8 + $0xa0] sm:$0xff]  ;;  %v438_v34 = vld [vmem:[#allocation8 + $0x88] sm:$0xff]  ;;  %v8721_v37 = vcombine.low %v430_v26, %v434_v27 }
  0xa9   :  { %8707 = vmatmul.mubr.msk.bf16.vlgmr.msra.gmra.mrb[0].mxu0 %vm237_vm0, %v146_v17  ;;  %8708 = vmatmul.mubr.msk.bf16.vlgmr.msra.gmra.mrb[0].mxu1 %vm237_vm0, %v146_v17  ;;  %v442_v35 = vld [vmem:[#allocation8 + $0xa8] sm:$0xff]  ;;  %v8728_v38 = vcombine.high %v437_v32, %v441_v33  ;;  %v445_v40 = vld [vmem:[#allocation8 + $0xc0] sm:$0xff]  ;;  %v8727_v44 = vcombine.low %v437_v32, %v441_v33  ;;  %p10292_p6 = pnand %p10291_p5, %p10285_p2 }
  0xaa   :  { %324 = vmatpush1.bf16.msra.mxu0 %v8703_v18  ;;  %355 = vmatprep.mubr.bf16.mxu0 %v10331_v0  ;;  %v8730_v39 = vcombine.high %v438_v34, %v442_v35  ;;  %v449_v41 = vld [vmem:[#allocation8 + $0xe0] sm:$0xff]  ;;  %v446_v42 = vld [vmem:[#allocation8 + $0xc8] sm:$0xff]  ;;  %v8729_v46 = vcombine.low %v438_v34, %v442_v35 }
  0xab   :  { %365 = vmatpush1.bf16.msra.mxu1 %v8705_v21  ;;  %396 = vmatprep.mubr.bf16.mxu1 %v10331_v0  ;;  %v450_v43 = vld [vmem:[#allocation8 + $0xe8] sm:$0xff]  ;;  %v453_v45 = vld [vmem:[#allocation8 + $0x100] sm:$0xff]  ;;  %v8736_v47 = vcombine.high %v445_v40, %v449_v41  ;;  %v8735_v52 = vcombine.low %v445_v40, %v449_v41 }
  0xac   :  { %3535 = vmatprep.subr.bf16.mxu0 %v8712_v22  ;;  %3699 = vmatprep.subr.bf16.mxu1 %v8714_v23  ;;  %v457_v48 = vld [vmem:[#allocation8 + $0x120] sm:$0xff]  ;;  %v454_v49 = vld [vmem:[#allocation8 + $0x108] sm:$0xff]  ;;  %v8738_v51 = vcombine.high %v446_v42, %v450_v43  ;;  %v8737_v55 = vcombine.low %v446_v42, %v450_v43 }
  0xad   :  { %v458_v50 = vld [vmem:[#allocation8 + $0x128] sm:$0xff]  ;;  %v461_v53 = vld [vmem:[#allocation8 + $0x140] sm:$0xff]  ;;  %v8744_v56 = vcombine.high %v453_v45, %v457_v48  ;;  %v8743_v60 = vcombine.low %v453_v45, %v457_v48 }
  0xae   :  { %v465_v54 = vld [vmem:[#allocation8 + $0x160] sm:$0xff]  ;;  %v462_v57 = vld [vmem:[#allocation8 + $0x148] sm:$0xff]  ;;  %v8746_v59 = vcombine.high %v454_v49, %v458_v50  ;;  %v8745_v63 = vcombine.low %v454_v49, %v458_v50 }
  0xaf   :  { %v466_v58 = vld [vmem:[#allocation8 + $0x168] sm:$0xff]  ;;  %v469_v61 = vld [vmem:[#allocation8 + $0x180] sm:$0xff]  ;;  %v8752_v0 = vcombine.high %v461_v53, %v465_v54  ;;  %v8751_v4 = vcombine.low %v461_v53, %v465_v54 }
  0xb0   :  { %v473_v62 = vld [vmem:[#allocation8 + $0x1a0] sm:$0xff]  ;;  %v470_v1 = vld [vmem:[#allocation8 + $0x188] sm:$0xff]  ;;  %v8754_v3 = vcombine.high %v462_v57, %v466_v58  ;;  %v8753_v7 = vcombine.low %v462_v57, %v466_v58 }
  0xb1   :  { %8709 = vmatmul.mubr.msk.bf16.vlgmr.msra.gmra.mrb[4].mxu0 %vm237_vm0, %v146_v17  ;;  %8710 = vmatmul.mubr.msk.bf16.vlgmr.msra.gmra.mrb[4].mxu1 %vm237_vm0, %v146_v17  ;;  %v474_v2 = vld [vmem:[#allocation8 + $0x1a8] sm:$0xff]  ;;  %v477_v5 = vld [vmem:[#allocation8 + $0x1c0] sm:$0xff]  ;;  %v8760_v8 = vcombine.high %v469_v61, %v473_v62  ;;  %v8759_v12 = vcombine.low %v469_v61, %v473_v62 }
  0xb2   :  { %3536 = vmatpush1.bf16.msra.mxu0 %v8711_v28  ;;  %3700 = vmatpush1.bf16.msra.mxu1 %v8713_v29  ;;  %v481_v6 = vld [vmem:[#allocation8 + $0x1e0] sm:$0xff]  ;;  %v478_v9 = vld [vmem:[#allocation8 + $0x1c8] sm:$0xff]  ;;  %v8762_v11 = vcombine.high %v470_v1, %v474_v2  ;;  %v8761_v15 = vcombine.low %v470_v1, %v474_v2 }
  0xb3   :  { %3537 = vmatprep.subr.bf16.mxu0 %v8720_v30  ;;  %3701 = vmatprep.subr.bf16.mxu1 %v8722_v31  ;;  %v482_v10 = vld [vmem:[#allocation8 + $0x1e8] sm:$0xff]  ;;  %v485_v13 = vld [vmem:[#allocation8 + $0x200] sm:$0xff]  ;;  %v8768_v16 = vcombine.high %v477_v5, %v481_v6  ;;  %v8767_v20 = vcombine.low %v477_v5, %v481_v6 }
  0xb4   :  { %v489_v14 = vld [vmem:[#allocation8 + $0x220] sm:$0xff]  ;;  %v486_v17 = vld [vmem:[#allocation8 + $0x208] sm:$0xff]  ;;  %v8770_v19 = vcombine.high %v478_v9, %v482_v10  ;;  %v8769_v23 = vcombine.low %v478_v9, %v482_v10 }
  0xb5   :  { %v490_v18 = vld [vmem:[#allocation8 + $0x228] sm:$0xff]  ;;  %v493_v21 = vld [vmem:[#allocation8 + $0x240] sm:$0xff]  ;;  %v8776_v24 = vcombine.high %v485_v13, %v489_v14  ;;  %v8775_v28 = vcombine.low %v485_v13, %v489_v14 }
  0xb6   :  { %3538 = vmatpush1.bf16.msra.mxu0 %v8719_v36  ;;  %3702 = vmatpush1.bf16.msra.mxu1 %v8721_v37  ;;  %v497_v22 = vld [vmem:[#allocation8 + $0x260] sm:$0xff]  ;;  %v494_v25 = vld [vmem:[#allocation8 + $0x248] sm:$0xff]  ;;  %v8778_v27 = vcombine.high %v486_v17, %v490_v18  ;;  %v8777_v31 = vcombine.low %v486_v17, %v490_v18 }
  0xb7   :  { %3539 = vmatprep.subr.bf16.mxu0 %v8728_v38  ;;  %3703 = vmatprep.subr.bf16.mxu1 %v8730_v39  ;;  %v498_v26 = vld [vmem:[#allocation8 + $0x268] sm:$0xff]  ;;  %v501_v29 = vld [vmem:[#allocation8 + $0x280] sm:$0xff]  ;;  %v8784_v32 = vcombine.high %v493_v21, %v497_v22  ;;  %v8783_v36 = vcombine.low %v493_v21, %v497_v22 }
  0xb8   :  { %v505_v30 = vld [vmem:[#allocation8 + $0x2a0] sm:$0xff]  ;;  %v502_v33 = vld [vmem:[#allocation8 + $0x288] sm:$0xff]  ;;  %v8786_v35 = vcombine.high %v494_v25, %v498_v26  ;;  %v8785_v39 = vcombine.low %v494_v25, %v498_v26  ;;  %v157_v26 = vlaneseq }
  0xb9   :  { %v506_v34 = vld [vmem:[#allocation8 + $0x2a8] sm:$0xff]  ;;  %v509_v37 = vld [vmem:[#allocation8 + $0x2c0] sm:$0xff]  ;;  %v8792_v40 = vcombine.high %v501_v29, %v505_v30 }
  0xba   :  { %3540 = vmatpush1.bf16.msra.mxu0 %v8727_v44  ;;  %3704 = vmatpush1.bf16.msra.mxu1 %v8729_v46  ;;  %v513_v38 = vld [vmem:[#allocation8 + $0x2e0] sm:$0xff]  ;;  %v510_v41 = vld [vmem:[#allocation8 + $0x2c8] sm:$0xff]  ;;  %v8794_v43 = vcombine.high %v502_v33, %v506_v34  ;;  %v8791_v44 = vcombine.low %v501_v29, %v505_v30  ;;  %v10509_v29 = vld [vmem:[#allocation7] sm:$0xff] }
  0xbb   :  { %3541 = vmatprep.subr.bf16.mxu0 %v8736_v47  ;;  %3705 = vmatprep.subr.bf16.mxu1 %v8738_v51  ;;  %v514_v42 = vld [vmem:[#allocation8 + $0x2e8] sm:$0xff]  ;;  %v517_v45 = vld [vmem:[#allocation8 + $0x300] sm:$0xff]  ;;  %v8793_v47 = vcombine.low %v502_v33, %v506_v34  ;;  %v8800_v48 = vcombine.high %v509_v37, %v513_v38 }
  0xbc   :  { %v521_v46 = vld [vmem:[#allocation8 + $0x320] sm:$0xff]  ;;  %v518_v49 = vld [vmem:[#allocation8 + $0x308] sm:$0xff]  ;;  %v8802_v51 = vcombine.high %v510_v41, %v514_v42 }
  0xbd   :  { %v522_v50 = vld [vmem:[#allocation8 + $0x328] sm:$0xff]  ;;  %v525_v53 = vld [vmem:[#allocation8 + $0x340] sm:$0xff] }
  0xbe   :  { %3542 = vmatpush1.bf16.msra.mxu0 %v8735_v52  ;;  %3706 = vmatpush1.bf16.msra.mxu1 %v8737_v55  ;;  %v8799_v52 = vcombine.low %v509_v37, %v513_v38  ;;  %v529_v54 = vld [vmem:[#allocation8 + $0x360] sm:$0xff]  ;;  %v8801_v55 = vcombine.low %v510_v41, %v514_v42  ;;  %v526_v57 = vld [vmem:[#allocation8 + $0x348] sm:$0xff]  ;;  %v8809_v61 = vcombine.low %v518_v49, %v522_v50 }
  0xbf   :  { %3543 = vmatprep.subr.bf16.mxu0 %v8744_v56  ;;  %3707 = vmatprep.subr.bf16.mxu1 %v8746_v59  ;;  %v8808_v56 = vcombine.high %v517_v45, %v521_v46  ;;  %v530_v58 = vld [vmem:[#allocation8 + $0x368] sm:$0xff]  ;;  %v8810_v59 = vcombine.high %v518_v49, %v522_v50  ;;  %v8816_v62 = vcombine.high %v525_v53, %v529_v54  ;;  %v533_v2 = vld [vmem:[#allocation8 + $0x380] sm:$0xff] }
  0xc0   :  { %v8817_v1 = vcombine.low %v526_v57, %v530_v58  ;;  %v538_v6 = vld [vmem:[#allocation8 + $0x3a8] sm:$0xff]  ;;  %v541_v10 = vld [vmem:[#allocation8 + $0x3c0] sm:$0xff] }
  0xc1   :  { %v546_v14 = vld [vmem:[#allocation8 + $0x3e8] sm:$0xff]  ;;  %v549_v18 = vld [vmem:[#allocation8 + $0x400] sm:$0xff] }
  0xc2   :  { %3544 = vmatpush1.bf16.msra.mxu0 %v8743_v60  ;;  %3708 = vmatpush1.bf16.msra.mxu1 %v8745_v63  ;;  %v8807_v60 = vcombine.low %v517_v45, %v521_v46  ;;  %v8818_v63 = vcombine.high %v526_v57, %v530_v58  ;;  %v554_v22 = vld [vmem:[#allocation8 + $0x428] sm:$0xff]  ;;  %v565_v57 = vld [vmem:[#allocation8 + $0x480] sm:$0xff] }
  0xc3   :  { %3545 = vmatprep.subr.bf16.mxu0 %v8752_v0  ;;  %3709 = vmatprep.subr.bf16.mxu1 %v8754_v3  ;;  %v8815_v0 = vcombine.low %v525_v53, %v529_v54  ;;  %v537_v3 = vld [vmem:[#allocation8 + $0x3a0] sm:$0xff]  ;;  %v558_v49 = vld [vmem:[#allocation8 + $0x448] sm:$0xff] }
  0xc4   :  { %v8824_v5 = vcombine.high %v533_v2, %v537_v3  ;;  %v562_v50 = vld [vmem:[#allocation8 + $0x468] sm:$0xff]  ;;  %v569_v58 = vld [vmem:[#allocation8 + $0x4a0] sm:$0xff] }
  0xc6   :  { %3546 = vmatpush1.bf16.msra.mxu0 %v8751_v4  ;;  %3710 = vmatpush1.bf16.msra.mxu1 %v8753_v7  ;;  %v534_v4 = vld [vmem:[#allocation8 + $0x388] sm:$0xff]  ;;  %v8823_v7 = vcombine.low %v533_v2, %v537_v3  ;;  %v8856_v3 = vcombine.high %v565_v57, %v569_v58 }
  0xc7   :  { %3547 = vmatprep.subr.bf16.mxu0 %v8760_v8  ;;  %3711 = vmatprep.subr.bf16.mxu1 %v8762_v11  ;;  %v8825_v8 = vcombine.low %v534_v4, %v538_v6  ;;  %v8826_v9 = vcombine.high %v534_v4, %v538_v6  ;;  %v545_v11 = vld [vmem:[#allocation8 + $0x3e0] sm:$0xff] }
  0xc8   :  { %v8832_v13 = vcombine.high %v541_v10, %v545_v11 }
  0xca   :  { %3548 = vmatpush1.bf16.msra.mxu0 %v8759_v12  ;;  %3712 = vmatpush1.bf16.msra.mxu1 %v8761_v15  ;;  %v542_v12 = vld [vmem:[#allocation8 + $0x3c8] sm:$0xff]  ;;  %v8831_v15 = vcombine.low %v541_v10, %v545_v11  ;;  %v8855_v10 = vcombine.low %v565_v57, %v569_v58 }
  0xcb   :  { %3549 = vmatprep.subr.bf16.mxu0 %v8768_v16  ;;  %3713 = vmatprep.subr.bf16.mxu1 %v8770_v19  ;;  %v8833_v16 = vcombine.low %v542_v12, %v546_v14  ;;  %v8834_v17 = vcombine.high %v542_v12, %v546_v14  ;;  %v553_v19 = vld [vmem:[#allocation8 + $0x420] sm:$0xff]  ;;  %v618_v57 = vld [vmem:[#allocation8 + $0x628] sm:$0xff] }
  0xcc   :  { %v8840_v21 = vcombine.high %v549_v18, %v553_v19  ;;  %v581_v14 = vld [vmem:[#allocation8 + $0x500] sm:$0xff] }
  0xce   :  { %3550 = vmatpush1.bf16.msra.mxu0 %v8767_v20  ;;  %3714 = vmatpush1.bf16.msra.mxu1 %v8769_v23  ;;  %v550_v20 = vld [vmem:[#allocation8 + $0x408] sm:$0xff]  ;;  %v8839_v23 = vcombine.low %v549_v18, %v553_v19 }
  0xcf   :  { %3551 = vmatprep.subr.bf16.mxu0 %v8776_v24  ;;  %3715 = vmatprep.subr.bf16.mxu1 %v8778_v27  ;;  %v8841_v24 = vcombine.low %v550_v20, %v554_v22  ;;  %v8842_v25 = vcombine.high %v550_v20, %v554_v22  ;;  %v10504_v27 = vshrl.u32 %v157_v26, 7  ;;  %v589_v22 = vld [vmem:[#allocation8 + $0x540] sm:$0xff] }
  0xd1   :  { %v10512_v30 = vsub.s32 1, %v10504_v27 }
  0xd2   :  { %3552 = vmatpush1.bf16.msra.mxu0 %v8775_v28  ;;  %3716 = vmatpush1.bf16.msra.mxu1 %v8777_v31  ;;  %v10507_v28 = vsub.s32 0, %v10504_v27  ;;  %v10515_v31 = vsub.s32 3, %v10504_v27 }
  0xd3   :  { %3553 = vmatprep.subr.bf16.mxu0 %v8784_v32  ;;  %3717 = vmatprep.subr.bf16.mxu1 %v8786_v35  ;;  %v164_v33 = vrot.slane %v10509_v29, %v10512_v30 }
  0xd4   :  { %v160_v32 = vrot.slane %v10509_v29, %v10507_v28  ;;  %v172_v34 = vrot.slane %v10509_v29, %v10515_v31 }
  0xd6   :  { %3554 = vmatpush1.bf16.msra.mxu0 %v8783_v36  ;;  %3718 = vmatpush1.bf16.msra.mxu1 %v8785_v39 }
  0xd7   :  { %3555 = vmatprep.subr.bf16.mxu0 %v8792_v40  ;;  %3719 = vmatprep.subr.bf16.mxu1 %v8794_v43 }
  0xda   :  { %3556 = vmatpush1.bf16.msra.mxu0 %v8791_v44  ;;  %3720 = vmatpush1.bf16.msra.mxu1 %v8793_v47  ;;  %v557_v44 = vld [vmem:[#allocation8 + $0x440] sm:$0xff] }
  0xdb   :  { %3557 = vmatprep.subr.bf16.mxu0 %v8800_v48  ;;  %3721 = vmatprep.subr.bf16.mxu1 %v8802_v51  ;;  %v561_v48 = vld [vmem:[#allocation8 + $0x460] sm:$0xff] }
  0xde   :  { %3558 = vmatpush1.bf16.msra.mxu0 %v8799_v52  ;;  %3722 = vmatpush1.bf16.msra.mxu1 %v8801_v55  ;;  %v8848_v55 = vcombine.high %v557_v44, %v561_v48 }
  0xdf   :  { %3559 = vmatprep.subr.bf16.mxu0 %v8808_v56  ;;  %3723 = vmatprep.subr.bf16.mxu1 %v8810_v59  ;;  %v8850_v56 = vcombine.high %v558_v49, %v562_v50  ;;  %v566_v59 = vld [vmem:[#allocation8 + $0x488] sm:$0xff] }
  0xe2   :  { %3560 = vmatpush1.bf16.msra.mxu0 %v8807_v60  ;;  %3724 = vmatpush1.bf16.msra.mxu1 %v8809_v61  ;;  %v570_v60 = vld [vmem:[#allocation8 + $0x4a8] sm:$0xff] }
  0xe3   :  { %3561 = vmatprep.subr.bf16.mxu0 %v8816_v62  ;;  %3725 = vmatprep.subr.bf16.mxu1 %v8818_v63  ;;  %v8858_v4 = vcombine.high %v566_v59, %v570_v60  ;;  %v8857_v11 = vcombine.low %v566_v59, %v570_v60 }
  0xe6   :  { %3562 = vmatpush1.bf16.msra.mxu0 %v8815_v0  ;;  %3726 = vmatpush1.bf16.msra.mxu1 %v8817_v1  ;;  %v8847_v0 = vcombine.low %v557_v44, %v561_v48  ;;  %v8849_v1 = vcombine.low %v558_v49, %v562_v50  ;;  %v605_v44 = vld [vmem:[#allocation8 + $0x5c0] sm:$0xff] }
  0xe7   :  { %3563 = vmatprep.subr.bf16.mxu0 %v8824_v5  ;;  %3727 = vmatprep.subr.bf16.mxu1 %v8826_v9  ;;  %v573_v5 = vld [vmem:[#allocation8 + $0x4c0] sm:$0xff]  ;;  %v578_v9 = vld [vmem:[#allocation8 + $0x4e8] sm:$0xff] }
  0xea   :  { %3564 = vmatpush1.bf16.msra.mxu0 %v8823_v7  ;;  %3728 = vmatpush1.bf16.msra.mxu1 %v8825_v8  ;;  %v577_v7 = vld [vmem:[#allocation8 + $0x4e0] sm:$0xff]  ;;  %v574_v8 = vld [vmem:[#allocation8 + $0x4c8] sm:$0xff] }
  0xeb   :  { %3565 = vmatprep.subr.bf16.mxu0 %v8832_v13  ;;  %3729 = vmatprep.subr.bf16.mxu1 %v8834_v17  ;;  %v8864_v12 = vcombine.high %v573_v5, %v577_v7  ;;  %v8866_v13 = vcombine.high %v574_v8, %v578_v9  ;;  %v586_v17 = vld [vmem:[#allocation8 + $0x528] sm:$0xff]  ;;  %v8863_v18 = vcombine.low %v573_v5, %v577_v7 }
  0xec   :  { %v8865_v19 = vcombine.low %v574_v8, %v578_v9  ;;  %v629_v9 = vld [vmem:[#allocation8 + $0x680] sm:$0xff] }
  0xee   :  { %3566 = vmatpush1.bf16.msra.mxu0 %v8831_v15  ;;  %3730 = vmatpush1.bf16.msra.mxu1 %v8833_v16  ;;  %v585_v15 = vld [vmem:[#allocation8 + $0x520] sm:$0xff]  ;;  %v582_v16 = vld [vmem:[#allocation8 + $0x508] sm:$0xff] }
  0xef   :  { %3576 = vmatprep.subr.bf16.mxu0 %v8840_v21  ;;  %3740 = vmatprep.subr.bf16.mxu1 %v8842_v25  ;;  %v8872_v20 = vcombine.high %v581_v14, %v585_v15  ;;  %v8874_v21 = vcombine.high %v582_v16, %v586_v17  ;;  %v594_v25 = vld [vmem:[#allocation8 + $0x568] sm:$0xff]  ;;  %v8871_v26 = vcombine.low %v581_v14, %v585_v15 }
 0x17c   :  { %v275_v35 = vpop.f32.mrb[0].mxu0  ;;  %v10523_v38 = vpop.f32.mrb[0].mxu1 }
 0x17d   :  { %v276_v36 = vadd.f32 %v275_v35, %v160_v32  ;;  %v277_v37 = vpop.f32.mrb[1].mxu0  ;;  %v318_v41 = vpop.f32.mrb[1].mxu1  ;;  %v8873_v32 = vcombine.low %v582_v16, %v586_v17  ;;  %v597_v35 = vld [vmem:[#allocation8 + $0x580] sm:$0xff] }
 0x17e   :  { %v278_v39 = vadd.f32 %v277_v37, %v164_v33  ;;  %v279_v40 = vpop.f32.mrb[2].mxu0  ;;  %v319_v45 = vadd.f32 %v318_v41, %v172_v34  ;;  %v320_v46 = vpop.f32.mrb[2].mxu1  ;;  %v598_v37 = vld [vmem:[#allocation8 + $0x588] sm:$0xff]  ;;  %v637_v17 = vld [vmem:[#allocation8 + $0x6c0] sm:$0xff] }
 0x17f   :  { %v405_v42 = vmax.f32 %v276_v36, 0.0  ;;  %v280_v43 = vpop.f32.mrb[3].mxu0  ;;  %v321_v51 = vpop.f32.mrb[3].mxu1  ;;  %v601_v36 = vld [vmem:[#allocation8 + $0x5a0] sm:$0xff]  ;;  %v606_v46 = vld [vmem:[#allocation8 + $0x5c8] sm:$0xff] }
 0x180   :  { %v406_v47 = vmax.f32 %v278_v39, 0.0  ;;  %v408_v52 = vmax.f32 %v319_v45, 0.0  ;;  %v602_v39 = vld [vmem:[#allocation8 + $0x5a8] sm:$0xff]  ;;  %v609_v45 = vld [vmem:[#allocation8 + $0x5e0] sm:$0xff]  ;;  %v8887_v48 = vcombine.low %v597_v35, %v601_v36 }
 0x181   :  { %v10527_v54 = vpack.c.bf16 %v405_v42, %v405_v42  ;;  %v8888_v42 = vcombine.high %v597_v35, %v601_v36  ;;  %v8890_v43 = vcombine.high %v598_v37, %v602_v39  ;;  %v8889_v49 = vcombine.low %v598_v37, %v602_v39  ;;  %v653_v39 = vld [vmem:[#allocation8 + $0x740] sm:$0xff] }
 0x182   :  { %v10525_v53 = vpack.c.bf16 %v406_v47, %v406_v47  ;;  %v10531_v61 = vpack.c.bf16 %v408_v52, %v408_v52  ;;  %v610_v47 = vld [vmem:[#allocation8 + $0x5e8] sm:$0xff]  ;;  %v8896_v50 = vcombine.high %v605_v44, %v609_v45  ;;  %v613_v52 = vld [vmem:[#allocation8 + $0x600] sm:$0xff]  ;;  %v8895_v58 = vcombine.low %v605_v44, %v609_v45 }
 0x183   :  { %v8898_v51 = vcombine.high %v606_v46, %v610_v47  ;;  %v8897_v59 = vcombine.low %v606_v46, %v610_v47 }
 0x184   :  { %3567 = vmatprep.mubr.bf16.mxu0 %v10525_v53  ;;  %3731 = vmatprep.mubr.bf16.mxu1 %v10525_v53  ;;  %v10533_v62 = vpop.f32.mrb[4].mxu0  ;;  %v10544_v46 = vpop.f32.mrb[4].mxu1 }
 0x185   :  { %3568 = vmatmul.mubr.bf16.vlgmr.msra.gmra.mrb[8].mxu0 %v10527_v54  ;;  %3732 = vmatmul.mubr.bf16.vlgmr.msra.gmra.mrb[8].mxu1 %v10527_v54  ;;  %v10537_v63 = vpop.f32.mrb[5].mxu0 }
 0x186   :  { %3577 = vmatpush1.bf16.msra.mxu0 %v8839_v23  ;;  %3741 = vmatpush1.bf16.msra.mxu1 %v8841_v24  ;;  %v361_v2 = vpop.f32.mrb[6].mxu0  ;;  %v593_v23 = vld [vmem:[#allocation8 + $0x560] sm:$0xff]  ;;  %v590_v24 = vld [vmem:[#allocation8 + $0x548] sm:$0xff] }
 0x187   :  { %3578 = vmatprep.subr.bf16.mxu0 %v8848_v55  ;;  %3742 = vmatprep.subr.bf16.mxu1 %v8850_v56  ;;  %v362_v6 = vpop.f32.mrb[7].mxu0  ;;  %v8880_v33 = vcombine.high %v589_v22, %v593_v23  ;;  %v8882_v34 = vcombine.high %v590_v24, %v594_v25  ;;  %v8879_v40 = vcombine.low %v589_v22, %v593_v23  ;;  %v617_v55 = vld [vmem:[#allocation8 + $0x620] sm:$0xff]  ;;  %v614_v56 = vld [vmem:[#allocation8 + $0x608] sm:$0xff] }
 0x188   :  { %3608 = vmatprep.mubr.bf16.mxu0 %v10531_v61  ;;  %3772 = vmatprep.mubr.bf16.mxu1 %v10531_v61  ;;  %v8881_v41 = vcombine.low %v590_v24, %v594_v25  ;;  %v8904_v60 = vcombine.high %v613_v52, %v617_v55  ;;  %v625_v2 = vld [vmem:[#allocation8 + $0x660] sm:$0xff]  ;;  %v8903_v5 = vcombine.low %v613_v52, %v617_v55  ;;  %v662_v52 = vld [vmem:[#allocation8 + $0x788] sm:$0xff] }
 0x189   :  { %v8905_v6 = vcombine.low %v614_v56, %v618_v57  ;;  %v645_v25 = vld [vmem:[#allocation8 + $0x700] sm:$0xff]  ;;  %v666_v55 = vld [vmem:[#allocation8 + $0x7a8] sm:$0xff] }
 0x18a   :  { %3579 = vmatpush1.bf16.msra.mxu0 %v8847_v0  ;;  %3743 = vmatpush1.bf16.msra.mxu1 %v8849_v1  ;;  %v8906_v0 = vcombine.high %v614_v56, %v618_v57  ;;  %v621_v1 = vld [vmem:[#allocation8 + $0x640] sm:$0xff]  ;;  %v10549_v56 = vsub.s32 5, %v10504_v27 }
 0x18b   :  { %3580 = vmatprep.subr.bf16.mxu0 %v8856_v3  ;;  %3744 = vmatprep.subr.bf16.mxu1 %v8858_v4  ;;  %v622_v3 = vld [vmem:[#allocation8 + $0x648] sm:$0xff]  ;;  %v8912_v7 = vcombine.high %v621_v1, %v625_v2 }
 0x18c   :  { %v626_v4 = vld [vmem:[#allocation8 + $0x668] sm:$0xff] }
 0x18d   :  { %v8914_v8 = vcombine.high %v622_v3, %v626_v4  ;;  %v8913_v14 = vcombine.low %v622_v3, %v626_v4  ;;  %v669_v3 = vld [vmem:[#allocation8 + $0x7c0] sm:$0xff] }
 0x18e   :  { %3581 = vmatpush1.bf16.msra.mxu0 %v8855_v10  ;;  %3745 = vmatpush1.bf16.msra.mxu1 %v8857_v11  ;;  %v633_v10 = vld [vmem:[#allocation8 + $0x6a0] sm:$0xff]  ;;  %v630_v11 = vld [vmem:[#allocation8 + $0x688] sm:$0xff] }
 0x18f   :  { %3582 = vmatprep.subr.bf16.mxu0 %v8864_v12  ;;  %3746 = vmatprep.subr.bf16.mxu1 %v8866_v13  ;;  %v634_v12 = vld [vmem:[#allocation8 + $0x6a8] sm:$0xff]  ;;  %v8911_v13 = vcombine.low %v621_v1, %v625_v2  ;;  %v8920_v15 = vcombine.high %v629_v9, %v633_v10  ;;  %v8954_v2 = vcombine.high %v662_v52, %v666_v55  ;;  %v673_v4 = vld [vmem:[#allocation8 + $0x7e0] sm:$0xff] }
 0x190   :  { %v8922_v16 = vcombine.high %v630_v11, %v634_v12  ;;  %v8921_v22 = vcombine.low %v630_v11, %v634_v12  ;;  %v8960_v11 = vcombine.high %v669_v3, %v673_v4 }
 0x192   :  { %3583 = vmatpush1.bf16.msra.mxu0 %v8863_v18  ;;  %3747 = vmatpush1.bf16.msra.mxu1 %v8865_v19  ;;  %v641_v18 = vld [vmem:[#allocation8 + $0x6e0] sm:$0xff]  ;;  %v638_v19 = vld [vmem:[#allocation8 + $0x6c8] sm:$0xff] }
 0x193   :  { %3584 = vmatprep.subr.bf16.mxu0 %v8872_v20  ;;  %3748 = vmatprep.subr.bf16.mxu1 %v8874_v21  ;;  %v642_v20 = vld [vmem:[#allocation8 + $0x6e8] sm:$0xff]  ;;  %v8919_v21 = vcombine.low %v629_v9, %v633_v10  ;;  %v8928_v23 = vcombine.high %v637_v17, %v641_v18  ;;  %v8953_v10 = vcombine.low %v662_v52, %v666_v55 }
 0x194   :  { %v8930_v24 = vcombine.high %v638_v19, %v642_v20  ;;  %v8929_v35 = vcombine.low %v638_v19, %v642_v20  ;;  %v8959_v19 = vcombine.low %v669_v3, %v673_v4  ;;  %v706_v52 = vld [vmem:[#allocation8 + $0x8e8] sm:$0xff] }
 0x196   :  { %3585 = vmatpush1.bf16.msra.mxu0 %v8871_v26  ;;  %3749 = vmatpush1.bf16.msra.mxu1 %v8873_v32  ;;  %v649_v26 = vld [vmem:[#allocation8 + $0x720] sm:$0xff]  ;;  %v646_v32 = vld [vmem:[#allocation8 + $0x708] sm:$0xff] }
 0x197   :  { %3586 = vmatprep.subr.bf16.mxu0 %v8880_v33  ;;  %3750 = vmatprep.subr.bf16.mxu1 %v8882_v34  ;;  %v650_v33 = vld [vmem:[#allocation8 + $0x728] sm:$0xff]  ;;  %v8927_v34 = vcombine.low %v637_v17, %v641_v18  ;;  %v8936_v36 = vcombine.high %v645_v25, %v649_v26  ;;  %v8935_v44 = vcombine.low %v645_v25, %v649_v26 }
 0x198   :  { %v8938_v37 = vcombine.high %v646_v32, %v650_v33  ;;  %v8937_v45 = vcombine.low %v646_v32, %v650_v33  ;;  %v690_v25 = vld [vmem:[#allocation8 + $0x868] sm:$0xff] }
 0x19a   :  { %3587 = vmatpush1.bf16.msra.mxu0 %v8879_v40  ;;  %3751 = vmatpush1.bf16.msra.mxu1 %v8881_v41  ;;  %v657_v40 = vld [vmem:[#allocation8 + $0x760] sm:$0xff]  ;;  %v654_v41 = vld [vmem:[#allocation8 + $0x748] sm:$0xff] }
 0x19b   :  { %3588 = vmatprep.subr.bf16.mxu0 %v8888_v42  ;;  %3752 = vmatprep.subr.bf16.mxu1 %v8890_v43  ;;  %v658_v42 = vld [vmem:[#allocation8 + $0x768] sm:$0xff]  ;;  %v10542_v43 = vsub.s32 2, %v10504_v27  ;;  %v8944_v47 = vcombine.high %v653_v39, %v657_v40 }
 0x19e   :  { %3589 = vmatpush1.bf16.msra.mxu0 %v8887_v48  ;;  %3753 = vmatpush1.bf16.msra.mxu1 %v8889_v49  ;;  %v8946_v48 = vcombine.high %v654_v41, %v658_v42  ;;  %v661_v49 = vld [vmem:[#allocation8 + $0x780] sm:$0xff] }
 0x19f   :  { %3590 = vmatprep.subr.bf16.mxu0 %v8896_v50  ;;  %3754 = vmatprep.subr.bf16.mxu1 %v8898_v51  ;;  %v10546_v50 = vpop.f32.mrb[5].mxu1  ;;  %v665_v51 = vld [vmem:[#allocation8 + $0x7a0] sm:$0xff] }
 0x1a0   :  { %v402_v57 = vpop.f32.mrb[6].mxu1  ;;  %v8952_v1 = vcombine.high %v661_v49, %v665_v51  ;;  %v8951_v9 = vcombine.low %v661_v49, %v665_v51  ;;  %v705_v49 = vld [vmem:[#allocation8 + $0x8e0] sm:$0xff]  ;;  %v702_v51 = vld [vmem:[#allocation8 + $0x8c8] sm:$0xff] }
 0x1a1   :  { %v8993_v4 = vcombine.low %v702_v51, %v706_v52 }
 0x1a2   :  { %3591 = vmatpush1.bf16.msra.mxu0 %v8895_v58  ;;  %3755 = vmatpush1.bf16.msra.mxu1 %v8897_v59  ;;  %v168_v58 = vrot.slane %v10509_v29, %v10542_v43  ;;  %v403_v59 = vpop.f32.mrb[7].mxu1 }
 0x1a3   :  { %3592 = vmatprep.subr.bf16.mxu0 %v8904_v60  ;;  %3756 = vmatprep.subr.bf16.mxu1 %v8906_v0  ;;  %v8943_v60 = vcombine.low %v653_v39, %v657_v40  ;;  %v8945_v0 = vcombine.low %v654_v41, %v658_v42  ;;  %v694_v39 = vld [vmem:[#allocation8 + $0x888] sm:$0xff]  ;;  %v8994_v59 = vcombine.high %v702_v51, %v706_v52 }
 0x1a4   :  { %v698_v40 = vld [vmem:[#allocation8 + $0x8a8] sm:$0xff] }
 0x1a5   :  { %v8985_v57 = vcombine.low %v694_v39, %v698_v40  ;;  %v754_v51 = vld [vmem:[#allocation8 + $0xa68] sm:$0xff] }
 0x1a6   :  { %3593 = vmatpush1.bf16.msra.mxu0 %v8903_v5  ;;  %3757 = vmatpush1.bf16.msra.mxu1 %v8905_v6  ;;  %v670_v5 = vld [vmem:[#allocation8 + $0x7c8] sm:$0xff] }
 0x1a7   :  { %3594 = vmatprep.subr.bf16.mxu0 %v8912_v7  ;;  %3758 = vmatprep.subr.bf16.mxu1 %v8914_v8  ;;  %v674_v6 = vld [vmem:[#allocation8 + $0x7e8] sm:$0xff]  ;;  %v180_v7 = vrot.slane %v10509_v29, %v10549_v56  ;;  %v317_v8 = vadd.f32 %v10523_v38, %v168_v58 }
 0x1a8   :  { %v8962_v12 = vcombine.high %v670_v5, %v674_v6  ;;  %v8961_v20 = vcombine.low %v670_v5, %v674_v6 }
 0x1a9   :  { %v360_v17 = vadd.f32 %v10537_v63, %v180_v7  ;;  %v407_v18 = vmax.f32 %v317_v8, 0.0  ;;  %v717_v7 = vld [vmem:[#allocation8 + $0x940] sm:$0xff] }
 0x1aa   :  { %3595 = vmatpush1.bf16.msra.mxu0 %v8911_v13  ;;  %3759 = vmatpush1.bf16.msra.mxu1 %v8913_v14  ;;  %v677_v13 = vld [vmem:[#allocation8 + $0x800] sm:$0xff] }
 0x1ab   :  { %3596 = vmatprep.subr.bf16.mxu0 %v8920_v15  ;;  %3760 = vmatprep.subr.bf16.mxu1 %v8922_v16  ;;  %v681_v14 = vld [vmem:[#allocation8 + $0x820] sm:$0xff]  ;;  %v678_v15 = vld [vmem:[#allocation8 + $0x808] sm:$0xff]  ;;  %v410_v26 = vmax.f32 %v360_v17, 0.0  ;;  %v10557_v32 = vpack.c.bf16 %v407_v18, %v407_v18 }
 0x1ac   :  { %v682_v16 = vld [vmem:[#allocation8 + $0x828] sm:$0xff]  ;;  %v8968_v38 = vcombine.high %v677_v13, %v681_v14  ;;  %v8967_v33 = vcombine.low %v677_v13, %v681_v14  ;;  %v721_v8 = vld [vmem:[#allocation8 + $0x960] sm:$0xff] }
 0x1ad   :  { %v8969_v63 = vcombine.low %v678_v15, %v682_v16  ;;  %v10559_v41 = vpack.c.bf16 %v410_v26, %v410_v26  ;;  %v9008_v13 = vcombine.high %v717_v7, %v721_v8  ;;  %v726_v17 = vld [vmem:[#allocation8 + $0x988] sm:$0xff] }
 0x1ae   :  { %3597 = vmatpush1.bf16.msra.mxu0 %v8919_v21  ;;  %3761 = vmatpush1.bf16.msra.mxu1 %v8921_v22  ;;  %v8970_v21 = vcombine.high %v678_v15, %v682_v16  ;;  %v685_v22 = vld [vmem:[#allocation8 + $0x840] sm:$0xff]  ;;  %v730_v18 = vld [vmem:[#allocation8 + $0x9a8] sm:$0xff] }
 0x1af   :  { %3598 = vmatprep.subr.bf16.mxu0 %v8928_v23  ;;  %3762 = vmatprep.subr.bf16.mxu1 %v8930_v24  ;;  %v689_v23 = vld [vmem:[#allocation8 + $0x860] sm:$0xff]  ;;  %v686_v24 = vld [vmem:[#allocation8 + $0x848] sm:$0xff] }
 0x1b0   :  { %v8975_v42 = vcombine.low %v685_v22, %v689_v23  ;;  %v725_v15 = vld [vmem:[#allocation8 + $0x980] sm:$0xff] }
 0x1b1   :  { %v729_v16 = vld [vmem:[#allocation8 + $0x9a0] sm:$0xff] }
 0x1b2   :  { %3599 = vmatpush1.bf16.msra.mxu0 %v8927_v34  ;;  %3763 = vmatpush1.bf16.msra.mxu1 %v8929_v35  ;;  %v8976_v34 = vcombine.high %v685_v22, %v689_v23  ;;  %v8978_v35 = vcombine.high %v686_v24, %v690_v25  ;;  %v733_v22 = vld [vmem:[#allocation8 + $0x9c0] sm:$0xff]  ;;  %v9015_v26 = vcombine.low %v725_v15, %v729_v16 }
 0x1b3   :  { %3600 = vmatprep.subr.bf16.mxu0 %v8936_v36  ;;  %3764 = vmatprep.subr.bf16.mxu1 %v8938_v37  ;;  %v693_v36 = vld [vmem:[#allocation8 + $0x880] sm:$0xff] }
 0x1b4   :  { %v697_v37 = vld [vmem:[#allocation8 + $0x8a0] sm:$0xff] }
 0x1b5   :  { %v8983_v55 = vcombine.low %v693_v36, %v697_v37  ;;  %v737_v23 = vld [vmem:[#allocation8 + $0x9e0] sm:$0xff] }
 0x1b6   :  { %3601 = vmatpush1.bf16.msra.mxu0 %v8935_v44  ;;  %3765 = vmatpush1.bf16.msra.mxu1 %v8937_v45  ;;  %v8977_v44 = vcombine.low %v686_v24, %v690_v25  ;;  %v8984_v45 = vcombine.high %v693_v36, %v697_v37  ;;  %v734_v24 = vld [vmem:[#allocation8 + $0x9c8] sm:$0xff]  ;;  %v745_v36 = vld [vmem:[#allocation8 + $0xa20] sm:$0xff] }
 0x1b7   :  { %3602 = vmatprep.subr.bf16.mxu0 %v8944_v47  ;;  %3766 = vmatprep.subr.bf16.mxu1 %v8946_v48  ;;  %v8986_v47 = vcombine.high %v694_v39, %v698_v40  ;;  %v701_v48 = vld [vmem:[#allocation8 + $0x8c0] sm:$0xff]  ;;  %v738_v25 = vld [vmem:[#allocation8 + $0x9e8] sm:$0xff]  ;;  %v9023_v40 = vcombine.low %v733_v22, %v737_v23 }
 0x1b8   :  { %v8992_v58 = vcombine.high %v701_v48, %v705_v49  ;;  %v8991_v3 = vcombine.low %v701_v48, %v705_v49  ;;  %v742_v37 = vld [vmem:[#allocation8 + $0xa08] sm:$0xff]  ;;  %v753_v48 = vld [vmem:[#allocation8 + $0xa60] sm:$0xff] }
 0x1b9   :  { %v746_v39 = vld [vmem:[#allocation8 + $0xa28] sm:$0xff] }
 0x1ba   :  { %3603 = vmatpush1.bf16.msra.mxu0 %v8943_v60  ;;  %3767 = vmatpush1.bf16.msra.mxu1 %v8945_v0  ;;  %v709_v60 = vld [vmem:[#allocation8 + $0x900] sm:$0xff]  ;;  %v750_v49 = vld [vmem:[#allocation8 + $0xa48] sm:$0xff] }
 0x1bb   :  { %3604 = vmatprep.subr.bf16.mxu0 %v8952_v1  ;;  %3768 = vmatprep.subr.bf16.mxu1 %v8954_v2  ;;  %v713_v0 = vld [vmem:[#allocation8 + $0x920] sm:$0xff]  ;;  %v710_v1 = vld [vmem:[#allocation8 + $0x908] sm:$0xff] }
 0x1bc   :  { %v714_v2 = vld [vmem:[#allocation8 + $0x928] sm:$0xff]  ;;  %v9000_v5 = vcombine.high %v709_v60, %v713_v0 }
 0x1bd   :  { %v9002_v6 = vcombine.high %v710_v1, %v714_v2 }
 0x1be   :  { %3605 = vmatpush1.bf16.msra.mxu0 %v8951_v9  ;;  %3769 = vmatpush1.bf16.msra.mxu1 %v8953_v10  ;;  %v718_v9 = vld [vmem:[#allocation8 + $0x948] sm:$0xff] }
 0x1bf   :  { %3606 = vmatprep.subr.bf16.mxu0 %v8960_v11  ;;  %3770 = vmatprep.subr.bf16.mxu1 %v8962_v12  ;;  %v722_v10 = vld [vmem:[#allocation8 + $0x968] sm:$0xff]  ;;  %v8999_v11 = vcombine.low %v709_v60, %v713_v0  ;;  %v9001_v12 = vcombine.low %v710_v1, %v714_v2  ;;  %v761_v60 = vld [vmem:[#allocation8 + $0xaa0] sm:$0xff] }
 0x1c0   :  { %v9010_v14 = vcombine.high %v718_v9, %v722_v10  ;;  %v758_v0 = vld [vmem:[#allocation8 + $0xa88] sm:$0xff] }
 0x1c1   :  { %v762_v1 = vld [vmem:[#allocation8 + $0xaa8] sm:$0xff] }
 0x1c2   :  { %3607 = vmatpush1.bf16.msra.mxu0 %v8959_v19  ;;  %3771 = vmatpush1.bf16.msra.mxu1 %v8961_v20  ;;  %v9007_v19 = vcombine.low %v717_v7, %v721_v8  ;;  %v9009_v20 = vcombine.low %v718_v9, %v722_v10  ;;  %v769_v7 = vld [vmem:[#allocation8 + $0xae0] sm:$0xff]  ;;  %v766_v8 = vld [vmem:[#allocation8 + $0xac8] sm:$0xff] }
 0x1c3   :  { %3617 = vmatprep.subr.bf16.mxu0 %v8968_v38  ;;  %3781 = vmatprep.subr.bf16.mxu1 %v8970_v21  ;;  %v9016_v38 = vcombine.high %v725_v15, %v729_v16  ;;  %v9018_v21 = vcombine.high %v726_v17, %v730_v18  ;;  %v770_v9 = vld [vmem:[#allocation8 + $0xae8] sm:$0xff]  ;;  %v777_v15 = vld [vmem:[#allocation8 + $0xb20] sm:$0xff] }
 0x1c4   :  { %v774_v16 = vld [vmem:[#allocation8 + $0xb08] sm:$0xff] }
 0x1c5   :  { %3609 = vmatmul.mubr.bf16.vlgmr.msra.gmra.mrb[8].mxu0 %v10557_v32  ;;  %3773 = vmatmul.mubr.bf16.vlgmr.msra.gmra.mrb[8].mxu1 %v10557_v32 }
 0x1c6   :  { %3618 = vmatpush1.bf16.msra.mxu0 %v8967_v33  ;;  %3782 = vmatpush1.bf16.msra.mxu1 %v8969_v63  ;;  %v9017_v33 = vcombine.low %v726_v17, %v730_v18  ;;  %v9024_v63 = vcombine.high %v733_v22, %v737_v23  ;;  %v778_v17 = vld [vmem:[#allocation8 + $0xb28] sm:$0xff]  ;;  %v785_v22 = vld [vmem:[#allocation8 + $0xb60] sm:$0xff] }
 0x1c7   :  { %3619 = vmatprep.subr.bf16.mxu0 %v8976_v34  ;;  %3783 = vmatprep.subr.bf16.mxu1 %v8978_v35  ;;  %v9026_v34 = vcombine.high %v734_v24, %v738_v25  ;;  %v741_v35 = vld [vmem:[#allocation8 + $0xa00] sm:$0xff]  ;;  %v782_v23 = vld [vmem:[#allocation8 + $0xb48] sm:$0xff] }
 0x1c8   :  { %3649 = vmatprep.mubr.bf16.mxu0 %v10559_v41  ;;  %3813 = vmatprep.mubr.bf16.mxu1 %v10559_v41  ;;  %v9031_v52 = vcombine.low %v741_v35, %v745_v36 }
 0x1ca   :  { %3620 = vmatpush1.bf16.msra.mxu0 %v8975_v42  ;;  %3784 = vmatpush1.bf16.msra.mxu1 %v8977_v44  ;;  %v9025_v42 = vcombine.low %v734_v24, %v738_v25  ;;  %v9032_v44 = vcombine.high %v741_v35, %v745_v36  ;;  %v786_v24 = vld [vmem:[#allocation8 + $0xb68] sm:$0xff]  ;;  %v10566_v25 = vsub.s32 4, %v10504_v27  ;;  %v789_v35 = vld [vmem:[#allocation8 + $0xb80] sm:$0xff] }
 0x1cb   :  { %3621 = vmatprep.subr.bf16.mxu0 %v8984_v45  ;;  %3785 = vmatprep.subr.bf16.mxu1 %v8986_v47  ;;  %v9034_v45 = vcombine.high %v742_v37, %v746_v39  ;;  %v749_v47 = vld [vmem:[#allocation8 + $0xa40] sm:$0xff] }
 0x1cc   :  { %v9039_v2 = vcombine.low %v749_v47, %v753_v48  ;;  %v793_v36 = vld [vmem:[#allocation8 + $0xba0] sm:$0xff] }
 0x1ce   :  { %3622 = vmatpush1.bf16.msra.mxu0 %v8983_v55  ;;  %3786 = vmatpush1.bf16.msra.mxu1 %v8985_v57  ;;  %v9033_v55 = vcombine.low %v742_v37, %v746_v39  ;;  %v9040_v57 = vcombine.high %v749_v47, %v753_v48  ;;  %v790_v37 = vld [vmem:[#allocation8 + $0xb88] sm:$0xff]  ;;  %v9080_v47 = vcombine.high %v789_v35, %v793_v36 }
 0x1cf   :  { %3623 = vmatprep.subr.bf16.mxu0 %v8992_v58  ;;  %3787 = vmatprep.subr.bf16.mxu1 %v8994_v59  ;;  %v9042_v58 = vcombine.high %v750_v49, %v754_v51  ;;  %v757_v59 = vld [vmem:[#allocation8 + $0xa80] sm:$0xff]  ;;  %v794_v39 = vld [vmem:[#allocation8 + $0xba8] sm:$0xff] }
 0x1d0   :  { %v9047_v10 = vcombine.low %v757_v59, %v761_v60  ;;  %v9082_v48 = vcombine.high %v790_v37, %v794_v39 }
 0x1d2   :  { %3624 = vmatpush1.bf16.msra.mxu0 %v8991_v3  ;;  %3788 = vmatpush1.bf16.msra.mxu1 %v8993_v4  ;;  %v9041_v3 = vcombine.low %v750_v49, %v754_v51  ;;  %v9048_v4 = vcombine.high %v757_v59, %v761_v60  ;;  %v797_v49 = vld [vmem:[#allocation8 + $0xbc0] sm:$0xff]  ;;  %v9079_v59 = vcombine.low %v789_v35, %v793_v36  ;;  %v830_v35 = vld [vmem:[#allocation8 + $0xcc8] sm:$0xff] }
 0x1d3   :  { %3625 = vmatprep.subr.bf16.mxu0 %v9000_v5  ;;  %3789 = vmatprep.subr.bf16.mxu1 %v9002_v6  ;;  %v9050_v5 = vcombine.high %v758_v0, %v762_v1  ;;  %v765_v6 = vld [vmem:[#allocation8 + $0xac0] sm:$0xff]  ;;  %v9081_v60 = vcombine.low %v790_v37, %v794_v39  ;;  %v834_v36 = vld [vmem:[#allocation8 + $0xce8] sm:$0xff] }
 0x1d4   :  { %v9055_v18 = vcombine.low %v765_v6, %v769_v7  ;;  %v801_v51 = vld [vmem:[#allocation8 + $0xbe0] sm:$0xff] }
 0x1d6   :  { %3626 = vmatpush1.bf16.msra.mxu0 %v8999_v11  ;;  %3790 = vmatpush1.bf16.msra.mxu1 %v9001_v12  ;;  %v9049_v11 = vcombine.low %v758_v0, %v762_v1  ;;  %v9056_v12 = vcombine.high %v765_v6, %v769_v7  ;;  %v9088_v0 = vcombine.high %v797_v49, %v801_v51 }
 0x1d7   :  { %3627 = vmatprep.subr.bf16.mxu0 %v9008_v13  ;;  %3791 = vmatprep.subr.bf16.mxu1 %v9010_v14  ;;  %v9058_v13 = vcombine.high %v766_v8, %v770_v9  ;;  %v773_v14 = vld [vmem:[#allocation8 + $0xb00] sm:$0xff] }
 0x1da   :  { %3628 = vmatpush1.bf16.msra.mxu0 %v9007_v19  ;;  %3792 = vmatpush1.bf16.msra.mxu1 %v9009_v20  ;;  %v9057_v19 = vcombine.low %v766_v8, %v770_v9  ;;  %v9064_v20 = vcombine.high %v773_v14, %v777_v15 }
 0x1db   :  { %3629 = vmatprep.subr.bf16.mxu0 %v9016_v38  ;;  %3793 = vmatprep.subr.bf16.mxu1 %v9018_v21  ;;  %v9066_v38 = vcombine.high %v774_v16, %v778_v17  ;;  %v781_v21 = vld [vmem:[#allocation8 + $0xb40] sm:$0xff] }
 0x1de   :  { %3630 = vmatpush1.bf16.msra.mxu0 %v9015_v26  ;;  %3794 = vmatpush1.bf16.msra.mxu1 %v9017_v33  ;;  %v9063_v26 = vcombine.low %v773_v14, %v777_v15  ;;  %v9065_v33 = vcombine.low %v774_v16, %v778_v17 }
 0x1df   :  { %3631 = vmatprep.subr.bf16.mxu0 %v9024_v63  ;;  %3795 = vmatprep.subr.bf16.mxu1 %v9026_v34  ;;  %v9072_v63 = vcombine.high %v781_v21, %v785_v22  ;;  %v9074_v34 = vcombine.high %v782_v23, %v786_v24 }
 0x1e2   :  { %3632 = vmatpush1.bf16.msra.mxu0 %v9023_v40  ;;  %3796 = vmatpush1.bf16.msra.mxu1 %v9025_v42  ;;  %v10569_v40 = vsub.s32 7, %v10504_v27  ;;  %v176_v42 = vrot.slane %v10509_v29, %v10566_v25 }
 0x1e3   :  { %3633 = vmatprep.subr.bf16.mxu0 %v9032_v44  ;;  %3797 = vmatprep.subr.bf16.mxu1 %v9034_v45  ;;  %v9071_v44 = vcombine.low %v781_v21, %v785_v22  ;;  %v9073_v45 = vcombine.low %v782_v23, %v786_v24  ;;  %v826_v21 = vld [vmem:[#allocation8 + $0xca8] sm:$0xff] }
 0x1e6   :  { %3634 = vmatpush1.bf16.msra.mxu0 %v9031_v52  ;;  %3798 = vmatpush1.bf16.msra.mxu1 %v9033_v55  ;;  %v798_v52 = vld [vmem:[#allocation8 + $0xbc8] sm:$0xff] }
 0x1e7   :  { %3635 = vmatprep.subr.bf16.mxu0 %v9040_v57  ;;  %3799 = vmatprep.subr.bf16.mxu1 %v9042_v58  ;;  %v802_v55 = vld [vmem:[#allocation8 + $0xbe8] sm:$0xff]  ;;  %v188_v57 = vrot.slane %v10509_v29, %v10569_v40  ;;  %v358_v58 = vadd.f32 %v10533_v62, %v176_v42  ;;  %v9087_v29 = vcombine.low %v797_v49, %v801_v51 }
 0x1e8   :  { %v9090_v1 = vcombine.high %v798_v52, %v802_v55  ;;  %v9089_v8 = vcombine.low %v798_v52, %v802_v55  ;;  %v842_v49 = vld [vmem:[#allocation8 + $0xd28] sm:$0xff]  ;;  %v9121_v52 = vcombine.low %v830_v35, %v834_v36 }
 0x1e9   :  { %v401_v6 = vadd.f32 %v10546_v50, %v188_v57  ;;  %v409_v7 = vmax.f32 %v358_v58, 0.0  ;;  %v845_v58 = vld [vmem:[#allocation8 + $0xd40] sm:$0xff] }
 0x1ea   :  { %3636 = vmatpush1.bf16.msra.mxu0 %v9039_v2  ;;  %3800 = vmatpush1.bf16.msra.mxu1 %v9041_v3  ;;  %v805_v2 = vld [vmem:[#allocation8 + $0xc00] sm:$0xff] }
 0x1eb   :  { %3637 = vmatprep.subr.bf16.mxu0 %v9048_v4  ;;  %3801 = vmatprep.subr.bf16.mxu1 %v9050_v5  ;;  %v809_v3 = vld [vmem:[#allocation8 + $0xc20] sm:$0xff]  ;;  %v806_v4 = vld [vmem:[#allocation8 + $0xc08] sm:$0xff]  ;;  %v412_v14 = vmax.f32 %v401_v6, 0.0  ;;  %v10577_v15 = vpack.c.bf16 %v409_v7, %v409_v7 }
 0x1ec   :  { %v810_v5 = vld [vmem:[#allocation8 + $0xc28] sm:$0xff]  ;;  %v9096_v62 = vcombine.high %v805_v2, %v809_v3  ;;  %v9095_v16 = vcombine.low %v805_v2, %v809_v3  ;;  %v857_v6 = vld [vmem:[#allocation8 + $0xda0] sm:$0xff] }
 0x1ed   :  { %v9098_v9 = vcombine.high %v806_v4, %v810_v5  ;;  %v9097_v50 = vcombine.low %v806_v4, %v810_v5  ;;  %v10579_v22 = vpack.c.bf16 %v412_v14, %v412_v14  ;;  %v853_v5 = vld [vmem:[#allocation8 + $0xd80] sm:$0xff]  ;;  %v854_v7 = vld [vmem:[#allocation8 + $0xd88] sm:$0xff] }
 0x1ee   :  { %3638 = vmatpush1.bf16.msra.mxu0 %v9047_v10  ;;  %3802 = vmatpush1.bf16.msra.mxu1 %v9049_v11  ;;  %v813_v10 = vld [vmem:[#allocation8 + $0xc40] sm:$0xff]  ;;  %v866_v14 = vld [vmem:[#allocation8 + $0xde8] sm:$0xff] }
 0x1ef   :  { %3639 = vmatprep.subr.bf16.mxu0 %v9056_v12  ;;  %3803 = vmatprep.subr.bf16.mxu1 %v9058_v13  ;;  %v817_v11 = vld [vmem:[#allocation8 + $0xc60] sm:$0xff]  ;;  %v814_v12 = vld [vmem:[#allocation8 + $0xc48] sm:$0xff] }
 0x1f0   :  { %v818_v13 = vld [vmem:[#allocation8 + $0xc68] sm:$0xff]  ;;  %v9104_v17 = vcombine.high %v813_v10, %v817_v11  ;;  %v9103_v23 = vcombine.low %v813_v10, %v817_v11  ;;  %v861_v11 = vld [vmem:[#allocation8 + $0xdc0] sm:$0xff] }
 0x1f1   :  { %v9105_v24 = vcombine.low %v814_v12, %v818_v13 }
 0x1f2   :  { %3640 = vmatpush1.bf16.msra.mxu0 %v9055_v18  ;;  %3804 = vmatpush1.bf16.msra.mxu1 %v9057_v19  ;;  %v9106_v18 = vcombine.high %v814_v12, %v818_v13  ;;  %v821_v19 = vld [vmem:[#allocation8 + $0xc80] sm:$0xff]  ;;  %v862_v13 = vld [vmem:[#allocation8 + $0xdc8] sm:$0xff] }
 0x1f3   :  { %3641 = vmatprep.subr.bf16.mxu0 %v9064_v20  ;;  %3805 = vmatprep.subr.bf16.mxu1 %v9066_v38  ;;  %v825_v20 = vld [vmem:[#allocation8 + $0xca0] sm:$0xff]  ;;  %v822_v38 = vld [vmem:[#allocation8 + $0xc88] sm:$0xff] }
 0x1f4   :  { %v9111_v37 = vcombine.low %v821_v19, %v825_v20  ;;  %v9113_v39 = vcombine.low %v822_v38, %v826_v21  ;;  %v865_v12 = vld [vmem:[#allocation8 + $0xde0] sm:$0xff] }
 0x1f6   :  { %3642 = vmatpush1.bf16.msra.mxu0 %v9063_v26  ;;  %3806 = vmatpush1.bf16.msra.mxu1 %v9065_v33  ;;  %v9112_v26 = vcombine.high %v821_v19, %v825_v20  ;;  %v9114_v33 = vcombine.high %v822_v38, %v826_v21  ;;  %v869_v19 = vld [vmem:[#allocation8 + $0xe00] sm:$0xff]  ;;  %v870_v38 = vld [vmem:[#allocation8 + $0xe08] sm:$0xff] }
 0x1f7   :  { %3643 = vmatprep.subr.bf16.mxu0 %v9072_v63  ;;  %3807 = vmatprep.subr.bf16.mxu1 %v9074_v34  ;;  %v829_v63 = vld [vmem:[#allocation8 + $0xcc0] sm:$0xff]  ;;  %v874_v21 = vld [vmem:[#allocation8 + $0xe28] sm:$0xff] }
 0x1f8   :  { %v833_v34 = vld [vmem:[#allocation8 + $0xce0] sm:$0xff] }
 0x1f9   :  { %v9120_v42 = vcombine.high %v829_v63, %v833_v34  ;;  %v9119_v51 = vcombine.low %v829_v63, %v833_v34  ;;  %v873_v20 = vld [vmem:[#allocation8 + $0xe20] sm:$0xff] }
 0x1fa   :  { %3644 = vmatpush1.bf16.msra.mxu0 %v9071_v44  ;;  %3808 = vmatpush1.bf16.msra.mxu1 %v9073_v45  ;;  %v9122_v44 = vcombine.high %v830_v35, %v834_v36  ;;  %v837_v45 = vld [vmem:[#allocation8 + $0xd00] sm:$0xff]  ;;  %v878_v35 = vld [vmem:[#allocation8 + $0xe48] sm:$0xff] }
 0x1fb   :  { %3645 = vmatprep.subr.bf16.mxu0 %v9080_v47  ;;  %3809 = vmatprep.subr.bf16.mxu1 %v9082_v48  ;;  %v841_v47 = vld [vmem:[#allocation8 + $0xd20] sm:$0xff]  ;;  %v838_v48 = vld [vmem:[#allocation8 + $0xd08] sm:$0xff] }
 0x1fc   :  { %v9128_v55 = vcombine.high %v837_v45, %v841_v47  ;;  %v9130_v57 = vcombine.high %v838_v48, %v842_v49  ;;  %v9129_v2 = vcombine.low %v838_v48, %v842_v49  ;;  %v877_v63 = vld [vmem:[#allocation8 + $0xe40] sm:$0xff]  ;;  %v882_v36 = vld [vmem:[#allocation8 + $0xe68] sm:$0xff] }
 0x1fd   :  { %v881_v34 = vld [vmem:[#allocation8 + $0xe60] sm:$0xff]  ;;  %v886_v48 = vld [vmem:[#allocation8 + $0xe88] sm:$0xff] }
 0x1fe   :  { %3646 = vmatpush1.bf16.msra.mxu0 %v9079_v59  ;;  %3810 = vmatpush1.bf16.msra.mxu1 %v9081_v60  ;;  %v849_v59 = vld [vmem:[#allocation8 + $0xd60] sm:$0xff]  ;;  %v846_v60 = vld [vmem:[#allocation8 + $0xd48] sm:$0xff] }
 0x1ff   :  { %3647 = vmatprep.subr.bf16.mxu0 %v9088_v0  ;;  %3811 = vmatprep.subr.bf16.mxu1 %v9090_v1  ;;  %v850_v0 = vld [vmem:[#allocation8 + $0xd68] sm:$0xff]  ;;  %v9127_v1 = vcombine.low %v837_v45, %v841_v47  ;;  %v9136_v3 = vcombine.high %v845_v58, %v849_v59  ;;  %v885_v45 = vld [vmem:[#allocation8 + $0xe80] sm:$0xff] }
 0x200   :  { %v9138_v4 = vcombine.high %v846_v60, %v850_v0  ;;  %v889_v47 = vld [vmem:[#allocation8 + $0xea0] sm:$0xff]  ;;  %v890_v49 = vld [vmem:[#allocation8 + $0xea8] sm:$0xff] }
 0x202   :  { %3648 = vmatpush1.bf16.msra.mxu0 %v9087_v29  ;;  %3812 = vmatpush1.bf16.msra.mxu1 %v9089_v8  ;;  %v858_v29 = vld [vmem:[#allocation8 + $0xda8] sm:$0xff]  ;;  %v9135_v8 = vcombine.low %v845_v58, %v849_v59  ;;  %v893_v58 = vld [vmem:[#allocation8 + $0xec0] sm:$0xff] }
 0x203   :  { %3658 = vmatprep.subr.bf16.mxu0 %v9096_v62  ;;  %3822 = vmatprep.subr.bf16.mxu1 %v9098_v9  ;;  %v9137_v62 = vcombine.low %v846_v60, %v850_v0  ;;  %v9144_v9 = vcombine.high %v853_v5, %v857_v6  ;;  %v9146_v10 = vcombine.high %v854_v7, %v858_v29  ;;  %v897_v59 = vld [vmem:[#allocation8 + $0xee0] sm:$0xff]  ;;  %v894_v60 = vld [vmem:[#allocation8 + $0xec8] sm:$0xff] }
 0x204   :  { %v898_v0 = vld [vmem:[#allocation8 + $0xee8] sm:$0xff] }
 0x205   :  { %3650 = vmatmul.mubr.bf16.vlgmr.msra.gmra.mrb[8].mxu0 %v10577_v15  ;;  %3814 = vmatmul.mubr.bf16.vlgmr.msra.gmra.mrb[8].mxu1 %v10577_v15 }
 0x206   :  { %3659 = vmatpush1.bf16.msra.mxu0 %v9095_v16  ;;  %3823 = vmatpush1.bf16.msra.mxu1 %v9097_v50  ;;  %v9143_v16 = vcombine.low %v853_v5, %v857_v6  ;;  %v9145_v50 = vcombine.low %v854_v7, %v858_v29  ;;  %v901_v5 = vld [vmem:[#allocation8 + $0xf00] sm:$0xff]  ;;  %v902_v7 = vld [vmem:[#allocation8 + $0xf08] sm:$0xff] }
 0x207   :  { %3660 = vmatprep.subr.bf16.mxu0 %v9104_v17  ;;  %3824 = vmatprep.subr.bf16.mxu1 %v9106_v18  ;;  %v9152_v17 = vcombine.high %v861_v11, %v865_v12  ;;  %v9154_v18 = vcombine.high %v862_v13, %v866_v14  ;;  %v905_v6 = vld [vmem:[#allocation8 + $0xf20] sm:$0xff]  ;;  %v906_v29 = vld [vmem:[#allocation8 + $0xf28] sm:$0xff] }
 0x208   :  { %3690 = vmatprep.mubr.bf16.mxu0 %v10579_v22  ;;  %3854 = vmatprep.mubr.bf16.mxu1 %v10579_v22 }
 0x20a   :  { %3661 = vmatpush1.bf16.msra.mxu0 %v9103_v23  ;;  %3825 = vmatpush1.bf16.msra.mxu1 %v9105_v24  ;;  %v9151_v23 = vcombine.low %v861_v11, %v865_v12  ;;  %v9153_v24 = vcombine.low %v862_v13, %v866_v14  ;;  %v909_v11 = vld [vmem:[#allocation8 + $0xf40] sm:$0xff]  ;;  %v910_v13 = vld [vmem:[#allocation8 + $0xf48] sm:$0xff] }
 0x20b   :  { %3662 = vmatprep.subr.bf16.mxu0 %v9112_v26  ;;  %3826 = vmatprep.subr.bf16.mxu1 %v9114_v33  ;;  %v9160_v26 = vcombine.high %v869_v19, %v873_v20  ;;  %v9162_v33 = vcombine.high %v870_v38, %v874_v21  ;;  %v913_v12 = vld [vmem:[#allocation8 + $0xf60] sm:$0xff]  ;;  %v914_v14 = vld [vmem:[#allocation8 + $0xf68] sm:$0xff] }
 0x20e   :  { %3663 = vmatpush1.bf16.msra.mxu0 %v9111_v37  ;;  %3827 = vmatpush1.bf16.msra.mxu1 %v9113_v39  ;;  %v9159_v37 = vcombine.low %v869_v19, %v873_v20  ;;  %v9161_v39 = vcombine.low %v870_v38, %v874_v21  ;;  %v9202_v19 = vcombine.high %v910_v13, %v914_v14  ;;  %v917_v20 = vld [vmem:[#allocation8 + $0xf80] sm:$0xff]  ;;  %v918_v21 = vld [vmem:[#allocation8 + $0xf88] sm:$0xff] }
 0x20f   :  { %3664 = vmatprep.subr.bf16.mxu0 %v9120_v42  ;;  %3828 = vmatprep.subr.bf16.mxu1 %v9122_v44  ;;  %v9168_v42 = vcombine.high %v877_v63, %v881_v34  ;;  %v9170_v44 = vcombine.high %v878_v35, %v882_v36  ;;  %v921_v38 = vld [vmem:[#allocation8 + $0xfa0] sm:$0xff] }
 0x212   :  { %3665 = vmatpush1.bf16.msra.mxu0 %v9119_v51  ;;  %3829 = vmatpush1.bf16.msra.mxu1 %v9121_v52  ;;  %v9167_v51 = vcombine.low %v877_v63, %v881_v34  ;;  %v9169_v52 = vcombine.low %v878_v35, %v882_v36  ;;  %v9208_v34 = vcombine.high %v917_v20, %v921_v38  ;;  %v925_v35 = vld [vmem:[#allocation8 + $0xfc0] sm:$0xff] }
 0x213   :  { %3666 = vmatprep.subr.bf16.mxu0 %v9128_v55  ;;  %3830 = vmatprep.subr.bf16.mxu1 %v9130_v57  ;;  %v9176_v55 = vcombine.high %v885_v45, %v889_v47  ;;  %v9178_v57 = vcombine.high %v886_v48, %v890_v49  ;;  %v929_v36 = vld [vmem:[#allocation8 + $0xfe0] sm:$0xff] }
 0x216   :  { %3667 = vmatpush1.bf16.msra.mxu0 %v9127_v1  ;;  %3831 = vmatpush1.bf16.msra.mxu1 %v9129_v2  ;;  %v9175_v1 = vcombine.low %v885_v45, %v889_v47  ;;  %v9177_v2 = vcombine.low %v886_v48, %v890_v49  ;;  %v9216_v47 = vcombine.high %v925_v35, %v929_v36  ;;  %v423_v49 = vld [vmem:[#allocation8 + $0x10] sm:$0xff] }
 0x217   :  { %3668 = vmatprep.subr.bf16.mxu0 %v9136_v3  ;;  %3832 = vmatprep.subr.bf16.mxu1 %v9138_v4  ;;  %v9184_v3 = vcombine.high %v893_v58, %v897_v59  ;;  %v9186_v4 = vcombine.high %v894_v60, %v898_v0 }
 0x21a   :  { %3669 = vmatpush1.bf16.msra.mxu0 %v9135_v8  ;;  %3833 = vmatpush1.bf16.msra.mxu1 %v9137_v62  ;;  %v9183_v8 = vcombine.low %v893_v58, %v897_v59  ;;  %v9185_v62 = vcombine.low %v894_v60, %v898_v0 }
 0x21b   :  { %3670 = vmatprep.subr.bf16.mxu0 %v9144_v9  ;;  %3834 = vmatprep.subr.bf16.mxu1 %v9146_v10  ;;  %v9192_v9 = vcombine.high %v901_v5, %v905_v6  ;;  %v9194_v10 = vcombine.high %v902_v7, %v906_v29 }
 0x21e   :  { %3671 = vmatpush1.bf16.msra.mxu0 %v9143_v16  ;;  %3835 = vmatpush1.bf16.msra.mxu1 %v9145_v50  ;;  %v9191_v16 = vcombine.low %v901_v5, %v905_v6  ;;  %v9193_v50 = vcombine.low %v902_v7, %v906_v29 }
 0x21f   :  { %3672 = vmatprep.subr.bf16.mxu0 %v9152_v17  ;;  %3836 = vmatprep.subr.bf16.mxu1 %v9154_v18  ;;  %v10586_v17 = vsub.s32 6, %v10504_v27  ;;  %v9200_v18 = vcombine.high %v909_v11, %v913_v12 }
 0x222   :  { %3673 = vmatpush1.bf16.msra.mxu0 %v9151_v23  ;;  %3837 = vmatpush1.bf16.msra.mxu1 %v9153_v24  ;;  %v922_v23 = vld [vmem:[#allocation8 + $0xfa8] sm:$0xff]  ;;  %v9199_v24 = vcombine.low %v909_v11, %v913_v12 }
 0x223   :  { %3674 = vmatprep.subr.bf16.mxu0 %v9160_v26  ;;  %3838 = vmatprep.subr.bf16.mxu1 %v9162_v33  ;;  %v9201_v26 = vcombine.low %v910_v13, %v914_v14  ;;  %v10084_v33 = vld [vmem:[#allocation7] sm:$0xff]  ;;  %v9210_v27 = vcombine.high %v918_v21, %v922_v23 }
 0x224   :  { %v184_v63 = vrot.slane %v10084_v33, %v10586_v17  ;;  %v460_v33 = vld [vmem:[#allocation8 + $0x138] sm:$0xff] }
 0x226   :  { %3675 = vmatpush1.bf16.msra.mxu0 %v9159_v37  ;;  %3839 = vmatpush1.bf16.msra.mxu1 %v9161_v39  ;;  %v926_v37 = vld [vmem:[#allocation8 + $0xfc8] sm:$0xff]  ;;  %v399_v45 = vadd.f32 %v10544_v46, %v184_v63  ;;  %v432_v46 = vld [vmem:[#allocation8 + $0x58] sm:$0xff] }
 0x227   :  { %3676 = vmatprep.subr.bf16.mxu0 %v9168_v42  ;;  %3840 = vmatprep.subr.bf16.mxu1 %v9170_v44  ;;  %v930_v39 = vld [vmem:[#allocation8 + $0xfe8] sm:$0xff]  ;;  %v9207_v42 = vcombine.low %v917_v20, %v921_v38  ;;  %v9209_v44 = vcombine.low %v918_v21, %v922_v23 }
 0x228   :  { %v9218_v48 = vcombine.high %v926_v37, %v930_v39  ;;  %v9217_v58 = vcombine.low %v926_v37, %v930_v39  ;;  %v411_v59 = vmax.f32 %v399_v45, 0.0  ;;  %v467_v37 = vld [vmem:[#allocation8 + $0x170] sm:$0xff]  ;;  %v464_v39 = vld [vmem:[#allocation8 + $0x158] sm:$0xff] }
 0x22a   :  { %3677 = vmatpush1.bf16.msra.mxu0 %v9167_v51  ;;  %3841 = vmatpush1.bf16.msra.mxu1 %v9169_v52  ;;  %v427_v51 = vld [vmem:[#allocation8 + $0x30] sm:$0xff]  ;;  %v424_v52 = vld [vmem:[#allocation8 + $0x18] sm:$0xff]  ;;  %v10590_v5 = vpack.c.bf16 %v411_v59, %v411_v59 }
 0x22b   :  { %3678 = vmatprep.subr.bf16.mxu0 %v9176_v55  ;;  %3842 = vmatprep.subr.bf16.mxu1 %v9178_v57  ;;  %v428_v55 = vld [vmem:[#allocation8 + $0x38] sm:$0xff]  ;;  %v9215_v57 = vcombine.low %v925_v35, %v929_v36  ;;  %v8716_v60 = vcombine.high %v423_v49, %v427_v51  ;;  %v463_v36 = vld [vmem:[#allocation8 + $0x150] sm:$0xff] }
 0x22c   :  { %v8718_v0 = vcombine.high %v424_v52, %v428_v55  ;;  %v8717_v6 = vcombine.low %v424_v52, %v428_v55  ;;  %v472_v52 = vld [vmem:[#allocation8 + $0x198] sm:$0xff] }
 0x22d   :  { %v476_v55 = vld [vmem:[#allocation8 + $0x1b8] sm:$0xff] }
 0x22e   :  { %3679 = vmatpush1.bf16.msra.mxu0 %v9175_v1  ;;  %3843 = vmatpush1.bf16.msra.mxu1 %v9177_v2  ;;  %v431_v1 = vld [vmem:[#allocation8 + $0x50] sm:$0xff] }
 0x22f   :  { %3680 = vmatprep.subr.bf16.mxu0 %v9184_v3  ;;  %3844 = vmatprep.subr.bf16.mxu1 %v9186_v4  ;;  %v435_v2 = vld [vmem:[#allocation8 + $0x70] sm:$0xff]  ;;  %v436_v3 = vld [vmem:[#allocation8 + $0x78] sm:$0xff]  ;;  %v8715_v4 = vcombine.low %v423_v49, %v427_v51 }
 0x230   :  { %v8724_v7 = vcombine.high %v431_v1, %v435_v2  ;;  %v8726_v29 = vcombine.high %v432_v46, %v436_v3  ;;  %v8723_v11 = vcombine.low %v431_v1, %v435_v2  ;;  %v8725_v12 = vcombine.low %v432_v46, %v436_v3  ;;  %v471_v49 = vld [vmem:[#allocation8 + $0x190] sm:$0xff]  ;;  %v480_v2 = vld [vmem:[#allocation8 + $0x1d8] sm:$0xff] }
 0x231   :  { %v475_v51 = vld [vmem:[#allocation8 + $0x1b0] sm:$0xff]  ;;  %v484_v46 = vld [vmem:[#allocation8 + $0x1f8] sm:$0xff] }
 0x232   :  { %3681 = vmatpush1.bf16.msra.mxu0 %v9183_v8  ;;  %3845 = vmatpush1.bf16.msra.mxu1 %v9185_v62  ;;  %v439_v8 = vld [vmem:[#allocation8 + $0x90] sm:$0xff]  ;;  %v8764_v59 = vcombine.high %v471_v49, %v475_v51  ;;  %v8763_v3 = vcombine.low %v471_v49, %v475_v51  ;;  %v520_v51 = vld [vmem:[#allocation8 + $0x318] sm:$0xff] }
 0x233   :  { %3682 = vmatprep.subr.bf16.mxu0 %v9192_v9  ;;  %3846 = vmatprep.subr.bf16.mxu1 %v9194_v10  ;;  %v443_v62 = vld [vmem:[#allocation8 + $0xb0] sm:$0xff]  ;;  %v440_v9 = vld [vmem:[#allocation8 + $0x98] sm:$0xff] }
 0x234   :  { %v444_v10 = vld [vmem:[#allocation8 + $0xb8] sm:$0xff]  ;;  %v8732_v13 = vcombine.high %v439_v8, %v443_v62  ;;  %v8731_v20 = vcombine.low %v439_v8, %v443_v62  ;;  %v483_v1 = vld [vmem:[#allocation8 + $0x1f0] sm:$0xff] }
 0x235   :  { %v8734_v14 = vcombine.high %v440_v9, %v444_v10  ;;  %v8733_v38 = vcombine.low %v440_v9, %v444_v10  ;;  %v491_v8 = vld [vmem:[#allocation8 + $0x230] sm:$0xff]  ;;  %v488_v62 = vld [vmem:[#allocation8 + $0x218] sm:$0xff] }
 0x236   :  { %3683 = vmatpush1.bf16.msra.mxu0 %v9191_v16  ;;  %3847 = vmatpush1.bf16.msra.mxu1 %v9193_v50  ;;  %v447_v16 = vld [vmem:[#allocation8 + $0xd0] sm:$0xff]  ;;  %v492_v9 = vld [vmem:[#allocation8 + $0x238] sm:$0xff] }
 0x237   :  { %3684 = vmatprep.subr.bf16.mxu0 %v9200_v18  ;;  %3848 = vmatprep.subr.bf16.mxu1 %v9202_v19  ;;  %v451_v50 = vld [vmem:[#allocation8 + $0xf0] sm:$0xff]  ;;  %v448_v18 = vld [vmem:[#allocation8 + $0xd8] sm:$0xff] }
 0x238   :  { %v452_v19 = vld [vmem:[#allocation8 + $0xf8] sm:$0xff]  ;;  %v8740_v21 = vcombine.high %v447_v16, %v451_v50  ;;  %v8739_v63 = vcombine.low %v447_v16, %v451_v50  ;;  %v499_v16 = vld [vmem:[#allocation8 + $0x270] sm:$0xff] }
 0x239   :  { %v8742_v23 = vcombine.high %v448_v18, %v452_v19  ;;  %v496_v50 = vld [vmem:[#allocation8 + $0x258] sm:$0xff]  ;;  %v523_v49 = vld [vmem:[#allocation8 + $0x330] sm:$0xff] }
 0x23a   :  { %3685 = vmatpush1.bf16.msra.mxu0 %v9199_v24  ;;  %3849 = vmatpush1.bf16.msra.mxu1 %v9201_v26  ;;  %v455_v24 = vld [vmem:[#allocation8 + $0x110] sm:$0xff] }
 0x23b   :  { %3686 = vmatprep.subr.bf16.mxu0 %v9208_v34  ;;  %3850 = vmatprep.subr.bf16.mxu1 %v9210_v27  ;;  %v459_v26 = vld [vmem:[#allocation8 + $0x130] sm:$0xff]  ;;  %v8741_v34 = vcombine.low %v448_v18, %v452_v19  ;;  %v500_v18 = vld [vmem:[#allocation8 + $0x278] sm:$0xff] }
 0x23c   :  { %v8748_v27 = vcombine.high %v455_v24, %v459_v26 }
 0x23e   :  { %3687 = vmatpush1.bf16.msra.mxu0 %v9207_v42  ;;  %3851 = vmatpush1.bf16.msra.mxu1 %v9209_v44  ;;  %v468_v42 = vld [vmem:[#allocation8 + $0x178] sm:$0xff]  ;;  %v8747_v44 = vcombine.low %v455_v24, %v459_v26  ;;  %v507_v24 = vld [vmem:[#allocation8 + $0x2b0] sm:$0xff] }
 0x23f   :  { %3688 = vmatprep.subr.bf16.mxu0 %v9216_v47  ;;  %3852 = vmatprep.subr.bf16.mxu1 %v9218_v48  ;;  %v8756_v47 = vcombine.high %v463_v36, %v467_v37  ;;  %v8758_v48 = vcombine.high %v464_v39, %v468_v42  ;;  %v504_v26 = vld [vmem:[#allocation8 + $0x298] sm:$0xff] }
 0x242   :  { %3689 = vmatpush1.bf16.msra.mxu0 %v9215_v57  ;;  %3853 = vmatpush1.bf16.msra.mxu1 %v9217_v58  ;;  %v8755_v57 = vcombine.low %v463_v36, %v467_v37  ;;  %v8757_v58 = vcombine.low %v464_v39, %v468_v42  ;;  %v515_v36 = vld [vmem:[#allocation8 + $0x2f0] sm:$0xff]  ;;  %v512_v37 = vld [vmem:[#allocation8 + $0x2d8] sm:$0xff] }
 0x243   :  { %3863 = vmatprep.subr.bf16.mxu0 %v8716_v60  ;;  %4027 = vmatprep.subr.bf16.mxu1 %v8718_v0  ;;  %v8766_v60 = vcombine.high %v472_v52, %v476_v55  ;;  %v479_v0 = vld [vmem:[#allocation8 + $0x1d0] sm:$0xff]  ;;  %v516_v39 = vld [vmem:[#allocation8 + $0x2f8] sm:$0xff] }
 0x244   :  { %v8771_v10 = vcombine.low %v479_v0, %v483_v1 }
 0x245   :  { %3691 = vmatmul.mubr.bf16.vlgmr.msra.gmra.mrb[8].mxu0 %v10590_v5  ;;  %3855 = vmatmul.mubr.bf16.vlgmr.msra.gmra.mrb[8].mxu1 %v10590_v5 }
 0x246   :  { %3864 = vmatpush1.bf16.msra.mxu0 %v8715_v4  ;;  %3895 = vmatprep.mubr.bf16.mxu0 %v10525_v53  ;;  %v8765_v4 = vcombine.low %v472_v52, %v476_v55  ;;  %v524_v52 = vld [vmem:[#allocation8 + $0x338] sm:$0xff] }
 0x247   :  { %4028 = vmatpush1.bf16.msra.mxu1 %v8717_v6  ;;  %4059 = vmatprep.mubr.bf16.mxu1 %v10525_v53  ;;  %v456_v53 = vld [vmem:[#allocation8 + $0x118] sm:$0xff]  ;;  %v8772_v6 = vcombine.high %v479_v0, %v483_v1  ;;  %v531_v0 = vld [vmem:[#allocation8 + $0x370] sm:$0xff] }
 0x248   :  { %3865 = vmatprep.subr.bf16.mxu0 %v8724_v7  ;;  %4029 = vmatprep.subr.bf16.mxu1 %v8726_v29  ;;  %v8750_v35 = vcombine.high %v456_v53, %v460_v33  ;;  %v8749_v45 = vcombine.low %v456_v53, %v460_v33  ;;  %v8774_v7 = vcombine.high %v480_v2, %v484_v46  ;;  %v487_v29 = vld [vmem:[#allocation8 + $0x210] sm:$0xff]  ;;  %v508_v53 = vld [vmem:[#allocation8 + $0x2b8] sm:$0xff] }
 0x249   :  { %v8779_v19 = vcombine.low %v487_v29, %v491_v8  ;;  %v528_v1 = vld [vmem:[#allocation8 + $0x358] sm:$0xff] }
 0x24a   :  { %3866 = vmatpush1.bf16.msra.mxu0 %v8723_v11  ;;  %v8773_v11 = vcombine.low %v480_v2, %v484_v46  ;;  %v532_v2 = vld [vmem:[#allocation8 + $0x378] sm:$0xff] }
 0x24b   :  { %4030 = vmatpush1.bf16.msra.mxu1 %v8725_v12  ;;  %3867 = vmatprep.subr.bf16.mxu0 %v8732_v13  ;;  %v8780_v12 = vcombine.high %v487_v29, %v491_v8  ;;  %v8782_v13 = vcombine.high %v488_v62, %v492_v9  ;;  %v539_v29 = vld [vmem:[#allocation8 + $0x3b0] sm:$0xff]  ;;  %v536_v8 = vld [vmem:[#allocation8 + $0x398] sm:$0xff] }
 0x24c   :  { %4031 = vmatprep.subr.bf16.mxu1 %v8734_v14  ;;  %v495_v14 = vld [vmem:[#allocation8 + $0x250] sm:$0xff] }
 0x24d   :  { %v8787_v33 = vcombine.low %v495_v14, %v499_v16 }
 0x24e   :  { %3868 = vmatpush1.bf16.msra.mxu0 %v8731_v20  ;;  %v8781_v20 = vcombine.low %v488_v62, %v492_v9  ;;  %v540_v62 = vld [vmem:[#allocation8 + $0x3b8] sm:$0xff] }
 0x24f   :  { %4032 = vmatpush1.bf16.msra.mxu1 %v8733_v38  ;;  %3869 = vmatprep.subr.bf16.mxu0 %v8740_v21  ;;  %v8788_v38 = vcombine.high %v495_v14, %v499_v16  ;;  %v8790_v21 = vcombine.high %v496_v50, %v500_v18  ;;  %v547_v14 = vld [vmem:[#allocation8 + $0x3f0] sm:$0xff]  ;;  %v544_v16 = vld [vmem:[#allocation8 + $0x3d8] sm:$0xff] }
 0x250   :  { %4033 = vmatprep.subr.bf16.mxu1 %v8742_v23  ;;  %v503_v23 = vld [vmem:[#allocation8 + $0x290] sm:$0xff] }
 0x251   :  { %v8795_v42 = vcombine.low %v503_v23, %v507_v24 }
 0x252   :  { %3870 = vmatpush1.bf16.msra.mxu0 %v8739_v63  ;;  %v8789_v63 = vcombine.low %v496_v50, %v500_v18  ;;  %v548_v50 = vld [vmem:[#allocation8 + $0x3f8] sm:$0xff] }
 0x253   :  { %4034 = vmatpush1.bf16.msra.mxu1 %v8741_v34  ;;  %3871 = vmatprep.subr.bf16.mxu0 %v8748_v27  ;;  %v8796_v34 = vcombine.high %v503_v23, %v507_v24  ;;  %v8798_v27 = vcombine.high %v504_v26, %v508_v53  ;;  %v555_v23 = vld [vmem:[#allocation8 + $0x430] sm:$0xff]  ;;  %v552_v24 = vld [vmem:[#allocation8 + $0x418] sm:$0xff] }
 0x254   :  { %4035 = vmatprep.subr.bf16.mxu1 %v8750_v35  ;;  %v511_v35 = vld [vmem:[#allocation8 + $0x2d0] sm:$0xff] }
 0x255   :  { %v8803_v55 = vcombine.low %v511_v35, %v515_v36 }
 0x256   :  { %3872 = vmatpush1.bf16.msra.mxu0 %v8747_v44  ;;  %v8797_v44 = vcombine.low %v504_v26, %v508_v53  ;;  %v556_v26 = vld [vmem:[#allocation8 + $0x438] sm:$0xff] }
 0x257   :  { %4036 = vmatpush1.bf16.msra.mxu1 %v8749_v45  ;;  %3873 = vmatprep.subr.bf16.mxu0 %v8756_v47  ;;  %v8804_v45 = vcombine.high %v511_v35, %v515_v36  ;;  %v8806_v47 = vcombine.high %v512_v37, %v516_v39  ;;  %v563_v35 = vld [vmem:[#allocation8 + $0x470] sm:$0xff] }
 0x258   :  { %4037 = vmatprep.subr.bf16.mxu1 %v8758_v48  ;;  %v519_v48 = vld [vmem:[#allocation8 + $0x310] sm:$0xff] }
 0x259   :  { %v8811_v46 = vcombine.low %v519_v48, %v523_v49 }
 0x25a   :  { %3874 = vmatpush1.bf16.msra.mxu0 %v8755_v57  ;;  %v8805_v57 = vcombine.low %v512_v37, %v516_v39  ;;  %v560_v37 = vld [vmem:[#allocation8 + $0x458] sm:$0xff] }
 0x25b   :  { %4038 = vmatpush1.bf16.msra.mxu1 %v8757_v58  ;;  %3875 = vmatprep.subr.bf16.mxu0 %v8764_v59  ;;  %v8812_v58 = vcombine.high %v519_v48, %v523_v49  ;;  %v8814_v59 = vcombine.high %v520_v51, %v524_v52  ;;  %v564_v39 = vld [vmem:[#allocation8 + $0x478] sm:$0xff] }
 0x25c   :  { %4039 = vmatprep.subr.bf16.mxu1 %v8766_v60  ;;  %v527_v60 = vld [vmem:[#allocation8 + $0x350] sm:$0xff]  ;;  %v8854_v48 = vcombine.high %v560_v37, %v564_v39  ;;  %v568_v49 = vld [vmem:[#allocation8 + $0x498] sm:$0xff] }
 0x25d   :  { %v8819_v9 = vcombine.low %v527_v60, %v531_v0 }
 0x25e   :  { %3876 = vmatpush1.bf16.msra.mxu0 %v8763_v3  ;;  %v8813_v3 = vcombine.low %v520_v51, %v524_v52  ;;  %v572_v51 = vld [vmem:[#allocation8 + $0x4b8] sm:$0xff] }
 0x25f   :  { %4040 = vmatpush1.bf16.msra.mxu1 %v8765_v4  ;;  %3877 = vmatprep.subr.bf16.mxu0 %v8772_v6  ;;  %v8820_v4 = vcombine.high %v527_v60, %v531_v0  ;;  %v8822_v6 = vcombine.high %v528_v1, %v532_v2  ;;  %v579_v60 = vld [vmem:[#allocation8 + $0x4f0] sm:$0xff]  ;;  %v576_v0 = vld [vmem:[#allocation8 + $0x4d8] sm:$0xff] }
 0x260   :  { %4041 = vmatprep.subr.bf16.mxu1 %v8774_v7  ;;  %v535_v7 = vld [vmem:[#allocation8 + $0x390] sm:$0xff] }
 0x261   :  { %v8827_v18 = vcombine.low %v535_v7, %v539_v29 }
 0x262   :  { %3878 = vmatpush1.bf16.msra.mxu0 %v8771_v10  ;;  %v8821_v10 = vcombine.low %v528_v1, %v532_v2  ;;  %v580_v1 = vld [vmem:[#allocation8 + $0x4f8] sm:$0xff] }
 0x263   :  { %4042 = vmatpush1.bf16.msra.mxu1 %v8773_v11  ;;  %3879 = vmatprep.subr.bf16.mxu0 %v8780_v12  ;;  %v8828_v11 = vcombine.high %v535_v7, %v539_v29  ;;  %v8830_v12 = vcombine.high %v536_v8, %v540_v62  ;;  %v584_v7 = vld [vmem:[#allocation8 + $0x518] sm:$0xff] }
 0x264   :  { %4043 = vmatprep.subr.bf16.mxu1 %v8782_v13  ;;  %v543_v13 = vld [vmem:[#allocation8 + $0x3d0] sm:$0xff]  ;;  %v588_v29 = vld [vmem:[#allocation8 + $0x538] sm:$0xff] }
 0x265   :  { %v8835_v53 = vcombine.low %v543_v13, %v547_v14 }
 0x266   :  { %3880 = vmatpush1.bf16.msra.mxu0 %v8779_v19  ;;  %v8829_v19 = vcombine.low %v536_v8, %v540_v62  ;;  %v8869_v8 = vcombine.low %v576_v0, %v580_v1 }
 0x267   :  { %4044 = vmatpush1.bf16.msra.mxu1 %v8781_v20  ;;  %3881 = vmatprep.subr.bf16.mxu0 %v8788_v38  ;;  %v8836_v20 = vcombine.high %v543_v13, %v547_v14  ;;  %v8838_v38 = vcombine.high %v544_v16, %v548_v50  ;;  %v596_v13 = vld [vmem:[#allocation8 + $0x578] sm:$0xff] }
 0x268   :  { %4045 = vmatprep.subr.bf16.mxu1 %v8790_v21  ;;  %v551_v21 = vld [vmem:[#allocation8 + $0x410] sm:$0xff] }
 0x269   :  { %v8843_v36 = vcombine.low %v551_v21, %v555_v23 }
 0x26a   :  { %3882 = vmatpush1.bf16.msra.mxu0 %v8787_v33  ;;  %v8837_v33 = vcombine.low %v544_v16, %v548_v50  ;;  %v8877_v16 = vcombine.low %v584_v7, %v588_v29 }
 0x26b   :  { %4046 = vmatpush1.bf16.msra.mxu1 %v8789_v63  ;;  %3883 = vmatprep.subr.bf16.mxu0 %v8796_v34  ;;  %v8844_v63 = vcombine.high %v551_v21, %v555_v23  ;;  %v8846_v34 = vcombine.high %v552_v24, %v556_v26  ;;  %v604_v21 = vld [vmem:[#allocation8 + $0x5b8] sm:$0xff] }
 0x26c   :  { %4047 = vmatprep.subr.bf16.mxu1 %v8798_v27  ;;  %v559_v27 = vld [vmem:[#allocation8 + $0x450] sm:$0xff] }
 0x26d   :  { %v8851_v52 = vcombine.low %v559_v27, %v563_v35 }
 0x26e   :  { %3884 = vmatpush1.bf16.msra.mxu0 %v8795_v42  ;;  %v8845_v42 = vcombine.low %v552_v24, %v556_v26 }
 0x26f   :  { %4048 = vmatpush1.bf16.msra.mxu1 %v8797_v44  ;;  %3885 = vmatprep.subr.bf16.mxu0 %v8804_v45  ;;  %v8852_v44 = vcombine.high %v559_v27, %v563_v35  ;;  %v567_v45 = vld [vmem:[#allocation8 + $0x490] sm:$0xff]  ;;  %v612_v27 = vld [vmem:[#allocation8 + $0x5f8] sm:$0xff] }
 0x270   :  { %4049 = vmatprep.subr.bf16.mxu1 %v8806_v47  ;;  %v571_v47 = vld [vmem:[#allocation8 + $0x4b0] sm:$0xff] }
 0x271   :  { %v8859_v2 = vcombine.low %v567_v45, %v571_v47 }
 0x272   :  { %3886 = vmatpush1.bf16.msra.mxu0 %v8803_v55  ;;  %v8853_v55 = vcombine.low %v560_v37, %v564_v39 }
 0x273   :  { %4050 = vmatpush1.bf16.msra.mxu1 %v8805_v57  ;;  %3887 = vmatprep.subr.bf16.mxu0 %v8812_v58  ;;  %v8860_v57 = vcombine.high %v567_v45, %v571_v47  ;;  %v8862_v58 = vcombine.high %v568_v49, %v572_v51  ;;  %v616_v45 = vld [vmem:[#allocation8 + $0x618] sm:$0xff] }
 0x274   :  { %4051 = vmatprep.subr.bf16.mxu1 %v8814_v59  ;;  %v575_v59 = vld [vmem:[#allocation8 + $0x4d0] sm:$0xff]  ;;  %v620_v47 = vld [vmem:[#allocation8 + $0x638] sm:$0xff] }
 0x276   :  { %3888 = vmatpush1.bf16.msra.mxu0 %v8811_v46  ;;  %v8868_v46 = vcombine.high %v575_v59, %v579_v60 }
 0x277   :  { %4052 = vmatpush1.bf16.msra.mxu1 %v8813_v3  ;;  %3889 = vmatprep.subr.bf16.mxu0 %v8820_v4  ;;  %v8870_v3 = vcombine.high %v576_v0, %v580_v1  ;;  %v583_v4 = vld [vmem:[#allocation8 + $0x510] sm:$0xff]  ;;  %v8909_v0 = vcombine.low %v616_v45, %v620_v47 }
 0x278   :  { %4053 = vmatprep.subr.bf16.mxu1 %v8822_v6  ;;  %v587_v6 = vld [vmem:[#allocation8 + $0x530] sm:$0xff] }
 0x279   :  { %v8876_v62 = vcombine.high %v583_v4, %v587_v6  ;;  %v8875_v14 = vcombine.low %v583_v4, %v587_v6  ;;  %v636_v4 = vld [vmem:[#allocation8 + $0x6b8] sm:$0xff] }
 0x27a   :  { %3890 = vmatpush1.bf16.msra.mxu0 %v8819_v9  ;;  %v8878_v9 = vcombine.high %v584_v7, %v588_v29 }
 0x27b   :  { %4054 = vmatpush1.bf16.msra.mxu1 %v8821_v10  ;;  %3891 = vmatprep.subr.bf16.mxu0 %v8828_v11  ;;  %v591_v10 = vld [vmem:[#allocation8 + $0x550] sm:$0xff] }
 0x27c   :  { %4055 = vmatprep.subr.bf16.mxu1 %v8830_v12  ;;  %v595_v11 = vld [vmem:[#allocation8 + $0x570] sm:$0xff]  ;;  %v592_v12 = vld [vmem:[#allocation8 + $0x558] sm:$0xff] }
 0x27d   :  { %v8884_v50 = vcombine.high %v591_v10, %v595_v11  ;;  %v8883_v23 = vcombine.low %v591_v10, %v595_v11  ;;  %v8885_v24 = vcombine.low %v592_v12, %v596_v13  ;;  %v644_v10 = vld [vmem:[#allocation8 + $0x6f8] sm:$0xff] }
 0x27e   :  { %3892 = vmatpush1.bf16.msra.mxu0 %v8827_v18  ;;  %v8886_v18 = vcombine.high %v592_v12, %v596_v13 }
 0x27f   :  { %4056 = vmatpush1.bf16.msra.mxu1 %v8829_v19  ;;  %3893 = vmatprep.subr.bf16.mxu0 %v8836_v20  ;;  %v599_v19 = vld [vmem:[#allocation8 + $0x590] sm:$0xff] }
 0x280   :  { %4057 = vmatprep.subr.bf16.mxu1 %v8838_v38  ;;  %v603_v20 = vld [vmem:[#allocation8 + $0x5b0] sm:$0xff]  ;;  %v600_v38 = vld [vmem:[#allocation8 + $0x598] sm:$0xff] }
 0x281   :  { %v8892_v26 = vcombine.high %v599_v19, %v603_v20  ;;  %v8891_v35 = vcombine.low %v599_v19, %v603_v20  ;;  %v652_v19 = vld [vmem:[#allocation8 + $0x738] sm:$0xff] }
 0x282   :  { %3894 = vmatpush1.bf16.msra.mxu0 %v8835_v53  ;;  %v8894_v53 = vcombine.high %v600_v38, %v604_v21 }
 0x283   :  { %4058 = vmatpush1.bf16.msra.mxu1 %v8837_v33  ;;  %3904 = vmatprep.subr.bf16.mxu0 %v8844_v63  ;;  %v607_v33 = vld [vmem:[#allocation8 + $0x5d0] sm:$0xff] }
 0x284   :  { %4068 = vmatprep.subr.bf16.mxu1 %v8846_v34  ;;  %v611_v63 = vld [vmem:[#allocation8 + $0x5f0] sm:$0xff]  ;;  %v608_v34 = vld [vmem:[#allocation8 + $0x5d8] sm:$0xff] }
 0x285   :  { %3896 = vmatmul.mubr.bf16.vlgmr.msra.gmra.mrb[12].mxu0 %v10527_v54  ;;  %v8900_v37 = vcombine.high %v607_v33, %v611_v63  ;;  %v8902_v39 = vcombine.high %v608_v34, %v612_v27 }
 0x286   :  { %4060 = vmatmul.mubr.bf16.vlgmr.msra.gmra.mrb[12].mxu1 %v10527_v54  ;;  %3905 = vmatpush1.bf16.msra.mxu0 %v8843_v36  ;;  %v8861_v54 = vcombine.low %v568_v49, %v572_v51  ;;  %v8893_v36 = vcombine.low %v600_v38, %v604_v21  ;;  %v8901_v49 = vcombine.low %v608_v34, %v612_v27 }
 0x287   :  { %3936 = vmatprep.mubr.bf16.mxu0 %v10531_v61  ;;  %4069 = vmatpush1.bf16.msra.mxu1 %v8845_v42  ;;  %v615_v42 = vld [vmem:[#allocation8 + $0x610] sm:$0xff] }
 0x288   :  { %4100 = vmatprep.mubr.bf16.mxu1 %v10531_v61  ;;  %3906 = vmatprep.subr.bf16.mxu0 %v8852_v44  ;;  %v8867_v61 = vcombine.low %v575_v59, %v579_v60  ;;  %v619_v44 = vld [vmem:[#allocation8 + $0x630] sm:$0xff]  ;;  %v628_v59 = vld [vmem:[#allocation8 + $0x678] sm:$0xff] }
 0x289   :  { %4070 = vmatprep.subr.bf16.mxu1 %v8854_v48  ;;  %v8899_v48 = vcombine.low %v607_v33, %v611_v63  ;;  %v8908_v51 = vcombine.high %v615_v42, %v619_v44  ;;  %v8907_v60 = vcombine.low %v615_v42, %v619_v44  ;;  %v660_v33 = vld [vmem:[#allocation8 + $0x778] sm:$0xff] }
 0x28a   :  { %3907 = vmatpush1.bf16.msra.mxu0 %v8851_v52  ;;  %v8910_v52 = vcombine.high %v616_v45, %v620_v47  ;;  %v668_v42 = vld [vmem:[#allocation8 + $0x7b8] sm:$0xff] }
 0x28b   :  { %4071 = vmatpush1.bf16.msra.mxu1 %v8853_v55  ;;  %3908 = vmatprep.subr.bf16.mxu0 %v8860_v57  ;;  %v623_v55 = vld [vmem:[#allocation8 + $0x650] sm:$0xff] }
 0x28c   :  { %4072 = vmatprep.subr.bf16.mxu1 %v8862_v58  ;;  %v627_v57 = vld [vmem:[#allocation8 + $0x670] sm:$0xff]  ;;  %v624_v58 = vld [vmem:[#allocation8 + $0x658] sm:$0xff] }
 0x28d   :  { %v8916_v1 = vcombine.high %v623_v55, %v627_v57  ;;  %v8915_v6 = vcombine.low %v623_v55, %v627_v57  ;;  %v8917_v7 = vcombine.low %v624_v58, %v628_v59  ;;  %v676_v55 = vld [vmem:[#allocation8 + $0x7f8] sm:$0xff] }
 0x28e   :  { %3909 = vmatpush1.bf16.msra.mxu0 %v8859_v2  ;;  %v8918_v2 = vcombine.high %v624_v58, %v628_v59 }
 0x28f   :  { %4073 = vmatpush1.bf16.msra.mxu1 %v8861_v54  ;;  %3910 = vmatprep.subr.bf16.mxu0 %v8868_v46  ;;  %v631_v54 = vld [vmem:[#allocation8 + $0x690] sm:$0xff] }
 0x290   :  { %4074 = vmatprep.subr.bf16.mxu1 %v8870_v3  ;;  %v635_v46 = vld [vmem:[#allocation8 + $0x6b0] sm:$0xff]  ;;  %v632_v3 = vld [vmem:[#allocation8 + $0x698] sm:$0xff] }
 0x291   :  { %v8924_v29 = vcombine.high %v631_v54, %v635_v46  ;;  %v8923_v11 = vcombine.low %v631_v54, %v635_v46  ;;  %v8925_v12 = vcombine.low %v632_v3, %v636_v4  ;;  %v684_v54 = vld [vmem:[#allocation8 + $0x838] sm:$0xff] }
 0x292   :  { %3911 = vmatpush1.bf16.msra.mxu0 %v8867_v61  ;;  %v8926_v61 = vcombine.high %v632_v3, %v636_v4 }
 0x293   :  { %4075 = vmatpush1.bf16.msra.mxu1 %v8869_v8  ;;  %3912 = vmatprep.subr.bf16.mxu0 %v8876_v62  ;;  %v639_v8 = vld [vmem:[#allocation8 + $0x6d0] sm:$0xff] }
 0x294   :  { %4076 = vmatprep.subr.bf16.mxu1 %v8878_v9  ;;  %v643_v62 = vld [vmem:[#allocation8 + $0x6f0] sm:$0xff]  ;;  %v640_v9 = vld [vmem:[#allocation8 + $0x6d8] sm:$0xff] }
 0x295   :  { %v8932_v13 = vcombine.high %v639_v8, %v643_v62  ;;  %v8931_v20 = vcombine.low %v639_v8, %v643_v62  ;;  %v8933_v38 = vcombine.low %v640_v9, %v644_v10  ;;  %v688_v8 = vld [vmem:[#allocation8 + $0x858] sm:$0xff] }
 0x296   :  { %3913 = vmatpush1.bf16.msra.mxu0 %v8875_v14  ;;  %v8934_v14 = vcombine.high %v640_v9, %v644_v10  ;;  %v692_v62 = vld [vmem:[#allocation8 + $0x878] sm:$0xff] }
 0x297   :  { %4077 = vmatpush1.bf16.msra.mxu1 %v8877_v16  ;;  %3914 = vmatprep.subr.bf16.mxu0 %v8884_v50  ;;  %v647_v16 = vld [vmem:[#allocation8 + $0x710] sm:$0xff] }
 0x298   :  { %4078 = vmatprep.subr.bf16.mxu1 %v8886_v18  ;;  %v651_v50 = vld [vmem:[#allocation8 + $0x730] sm:$0xff]  ;;  %v648_v18 = vld [vmem:[#allocation8 + $0x718] sm:$0xff] }
 0x299   :  { %v8940_v21 = vcombine.high %v647_v16, %v651_v50  ;;  %v8939_v63 = vcombine.low %v647_v16, %v651_v50  ;;  %v8941_v34 = vcombine.low %v648_v18, %v652_v19  ;;  %v700_v16 = vld [vmem:[#allocation8 + $0x8b8] sm:$0xff] }
 0x29a   :  { %3915 = vmatpush1.bf16.msra.mxu0 %v8883_v23  ;;  %v8942_v23 = vcombine.high %v648_v18, %v652_v19  ;;  %v8981_v18 = vcombine.low %v688_v8, %v692_v62 }
 0x29b   :  { %4079 = vmatpush1.bf16.msra.mxu1 %v8885_v24  ;;  %3916 = vmatprep.subr.bf16.mxu0 %v8892_v26  ;;  %v655_v24 = vld [vmem:[#allocation8 + $0x750] sm:$0xff] }
 0x29c   :  { %4080 = vmatprep.subr.bf16.mxu1 %v8894_v53  ;;  %v659_v26 = vld [vmem:[#allocation8 + $0x770] sm:$0xff]  ;;  %v656_v53 = vld [vmem:[#allocation8 + $0x758] sm:$0xff] }
 0x29d   :  { %v8948_v27 = vcombine.high %v655_v24, %v659_v26  ;;  %v8947_v44 = vcombine.low %v655_v24, %v659_v26  ;;  %v8949_v45 = vcombine.low %v656_v53, %v660_v33  ;;  %v708_v24 = vld [vmem:[#allocation8 + $0x8f8] sm:$0xff] }
 0x29e   :  { %3917 = vmatpush1.bf16.msra.mxu0 %v8891_v35  ;;  %v8950_v35 = vcombine.high %v656_v53, %v660_v33 }
 0x29f   :  { %4081 = vmatpush1.bf16.msra.mxu1 %v8893_v36  ;;  %3918 = vmatprep.subr.bf16.mxu0 %v8900_v37  ;;  %v663_v36 = vld [vmem:[#allocation8 + $0x790] sm:$0xff] }
 0x2a0   :  { %4082 = vmatprep.subr.bf16.mxu1 %v8902_v39  ;;  %v667_v37 = vld [vmem:[#allocation8 + $0x7b0] sm:$0xff]  ;;  %v664_v39 = vld [vmem:[#allocation8 + $0x798] sm:$0xff] }
 0x2a1   :  { %v8956_v47 = vcombine.high %v663_v36, %v667_v37  ;;  %v8955_v57 = vcombine.low %v663_v36, %v667_v37  ;;  %v8957_v58 = vcombine.low %v664_v39, %v668_v42 }
 0x2a2   :  { %3919 = vmatpush1.bf16.msra.mxu0 %v8899_v48  ;;  %v8958_v48 = vcombine.high %v664_v39, %v668_v42  ;;  %v719_v42 = vld [vmem:[#allocation8 + $0x950] sm:$0xff] }
 0x2a3   :  { %4083 = vmatpush1.bf16.msra.mxu1 %v8901_v49  ;;  %3920 = vmatprep.subr.bf16.mxu0 %v8908_v51  ;;  %v671_v49 = vld [vmem:[#allocation8 + $0x7d0] sm:$0xff] }
 0x2a4   :  { %4084 = vmatprep.subr.bf16.mxu1 %v8910_v52  ;;  %v675_v51 = vld [vmem:[#allocation8 + $0x7f0] sm:$0xff]  ;;  %v672_v52 = vld [vmem:[#allocation8 + $0x7d8] sm:$0xff] }
 0x2a5   :  { %v8964_v59 = vcombine.high %v671_v49, %v675_v51  ;;  %v8963_v46 = vcombine.low %v671_v49, %v675_v51  ;;  %v8965_v3 = vcombine.low %v672_v52, %v676_v55 }
 0x2a6   :  { %3921 = vmatpush1.bf16.msra.mxu0 %v8907_v60  ;;  %v8966_v60 = vcombine.high %v672_v52, %v676_v55  ;;  %v727_v55 = vld [vmem:[#allocation8 + $0x990] sm:$0xff] }
 0x2a7   :  { %4085 = vmatpush1.bf16.msra.mxu1 %v8909_v0  ;;  %3922 = vmatprep.subr.bf16.mxu0 %v8916_v1  ;;  %v679_v0 = vld [vmem:[#allocation8 + $0x810] sm:$0xff] }
 0x2a8   :  { %4086 = vmatprep.subr.bf16.mxu1 %v8918_v2  ;;  %v683_v1 = vld [vmem:[#allocation8 + $0x830] sm:$0xff]  ;;  %v680_v2 = vld [vmem:[#allocation8 + $0x818] sm:$0xff] }
 0x2a9   :  { %v8972_v4 = vcombine.high %v679_v0, %v683_v1  ;;  %v8973_v9 = vcombine.low %v680_v2, %v684_v54 }
 0x2aa   :  { %3923 = vmatpush1.bf16.msra.mxu0 %v8915_v6  ;;  %v8974_v6 = vcombine.high %v680_v2, %v684_v54  ;;  %v735_v54 = vld [vmem:[#allocation8 + $0x9d0] sm:$0xff] }
 0x2ab   :  { %4087 = vmatpush1.bf16.msra.mxu1 %v8917_v7  ;;  %3924 = vmatprep.subr.bf16.mxu0 %v8924_v29  ;;  %v687_v7 = vld [vmem:[#allocation8 + $0x850] sm:$0xff] }
 0x2ac   :  { %4088 = vmatprep.subr.bf16.mxu1 %v8926_v61  ;;  %v691_v29 = vld [vmem:[#allocation8 + $0x870] sm:$0xff]  ;;  %v8971_v61 = vcombine.low %v679_v0, %v683_v1 }
 0x2ad   :  { %v8980_v10 = vcombine.high %v687_v7, %v691_v29  ;;  %v8979_v50 = vcombine.low %v687_v7, %v691_v29 }
 0x2ae   :  { %3925 = vmatpush1.bf16.msra.mxu0 %v8923_v11  ;;  %v695_v11 = vld [vmem:[#allocation8 + $0x890] sm:$0xff] }
 0x2af   :  { %4089 = vmatpush1.bf16.msra.mxu1 %v8925_v12  ;;  %3926 = vmatprep.subr.bf16.mxu0 %v8932_v13  ;;  %v699_v12 = vld [vmem:[#allocation8 + $0x8b0] sm:$0xff]  ;;  %v8982_v13 = vcombine.high %v688_v8, %v692_v62 }
 0x2b0   :  { %4090 = vmatprep.subr.bf16.mxu1 %v8934_v14  ;;  %v696_v14 = vld [vmem:[#allocation8 + $0x898] sm:$0xff]  ;;  %v8988_v19 = vcombine.high %v695_v11, %v699_v12  ;;  %v8987_v26 = vcombine.low %v695_v11, %v699_v12  ;;  %v743_v8 = vld [vmem:[#allocation8 + $0xa10] sm:$0xff] }
 0x2b1   :  { %v747_v62 = vld [vmem:[#allocation8 + $0xa30] sm:$0xff] }
 0x2b2   :  { %3927 = vmatpush1.bf16.msra.mxu0 %v8931_v20  ;;  %v8990_v20 = vcombine.high %v696_v14, %v700_v16 }
 0x2b3   :  { %4091 = vmatpush1.bf16.msra.mxu1 %v8933_v38  ;;  %3928 = vmatprep.subr.bf16.mxu0 %v8940_v21  ;;  %v703_v38 = vld [vmem:[#allocation8 + $0x8d0] sm:$0xff] }
 0x2b4   :  { %4092 = vmatprep.subr.bf16.mxu1 %v8942_v23  ;;  %v707_v21 = vld [vmem:[#allocation8 + $0x8f0] sm:$0xff]  ;;  %v704_v23 = vld [vmem:[#allocation8 + $0x8d8] sm:$0xff] }
 0x2b5   :  { %v8996_v53 = vcombine.high %v703_v38, %v707_v21  ;;  %v8998_v33 = vcombine.high %v704_v23, %v708_v24  ;;  %v8997_v36 = vcombine.low %v704_v23, %v708_v24  ;;  %v759_v24 = vld [vmem:[#allocation8 + $0xa90] sm:$0xff] }
 0x2b6   :  { %3929 = vmatpush1.bf16.msra.mxu0 %v8939_v63  ;;  %v711_v63 = vld [vmem:[#allocation8 + $0x910] sm:$0xff] }
 0x2b7   :  { %4093 = vmatpush1.bf16.msra.mxu1 %v8941_v34  ;;  %3930 = vmatprep.subr.bf16.mxu0 %v8948_v27  ;;  %v715_v34 = vld [vmem:[#allocation8 + $0x930] sm:$0xff]  ;;  %v712_v27 = vld [vmem:[#allocation8 + $0x918] sm:$0xff] }
 0x2b8   :  { %4094 = vmatprep.subr.bf16.mxu1 %v8950_v35  ;;  %v716_v35 = vld [vmem:[#allocation8 + $0x938] sm:$0xff]  ;;  %v9004_v37 = vcombine.high %v711_v63, %v715_v34 }
 0x2b9   :  { %v9006_v39 = vcombine.high %v712_v27, %v716_v35  ;;  %v9005_v49 = vcombine.low %v712_v27, %v716_v35  ;;  %v767_v35 = vld [vmem:[#allocation8 + $0xad0] sm:$0xff] }
 0x2ba   :  { %3931 = vmatpush1.bf16.msra.mxu0 %v8947_v44  ;;  %v723_v44 = vld [vmem:[#allocation8 + $0x970] sm:$0xff] }
 0x2bb   :  { %4095 = vmatpush1.bf16.msra.mxu1 %v8949_v45  ;;  %3932 = vmatprep.subr.bf16.mxu0 %v8956_v47  ;;  %v720_v45 = vld [vmem:[#allocation8 + $0x958] sm:$0xff]  ;;  %v9012_v51 = vcombine.high %v719_v42, %v723_v44 }
 0x2bc   :  { %4096 = vmatprep.subr.bf16.mxu1 %v8958_v48  ;;  %v724_v47 = vld [vmem:[#allocation8 + $0x978] sm:$0xff]  ;;  %v9003_v48 = vcombine.low %v711_v63, %v715_v34 }
 0x2bd   :  { %v9014_v52 = vcombine.high %v720_v45, %v724_v47  ;;  %v9013_v0 = vcombine.low %v720_v45, %v724_v47  ;;  %v775_v47 = vld [vmem:[#allocation8 + $0xb10] sm:$0xff] }
 0x2be   :  { %3933 = vmatpush1.bf16.msra.mxu0 %v8955_v57  ;;  %v731_v57 = vld [vmem:[#allocation8 + $0x9b0] sm:$0xff] }
 0x2bf   :  { %4097 = vmatpush1.bf16.msra.mxu1 %v8957_v58  ;;  %3934 = vmatprep.subr.bf16.mxu0 %v8964_v59  ;;  %v728_v58 = vld [vmem:[#allocation8 + $0x998] sm:$0xff]  ;;  %v9020_v1 = vcombine.high %v727_v55, %v731_v57 }
 0x2c0   :  { %4098 = vmatprep.subr.bf16.mxu1 %v8966_v60  ;;  %v732_v59 = vld [vmem:[#allocation8 + $0x9b8] sm:$0xff]  ;;  %v9011_v60 = vcombine.low %v719_v42, %v723_v44 }
 0x2c1   :  { %v9022_v2 = vcombine.high %v728_v58, %v732_v59  ;;  %v9021_v7 = vcombine.low %v728_v58, %v732_v59  ;;  %v783_v59 = vld [vmem:[#allocation8 + $0xb50] sm:$0xff] }
 0x2c2   :  { %3935 = vmatpush1.bf16.msra.mxu0 %v8963_v46  ;;  %v739_v46 = vld [vmem:[#allocation8 + $0x9f0] sm:$0xff] }
 0x2c3   :  { %4099 = vmatpush1.bf16.msra.mxu1 %v8965_v3  ;;  %3945 = vmatprep.subr.bf16.mxu0 %v8972_v4  ;;  %v736_v3 = vld [vmem:[#allocation8 + $0x9d8] sm:$0xff]  ;;  %v9028_v29 = vcombine.high %v735_v54, %v739_v46  ;;  %v9027_v11 = vcombine.low %v735_v54, %v739_v46 }
 0x2c4   :  { %4109 = vmatprep.subr.bf16.mxu1 %v8974_v6  ;;  %v740_v4 = vld [vmem:[#allocation8 + $0x9f8] sm:$0xff]  ;;  %v9019_v6 = vcombine.low %v727_v55, %v731_v57 }
 0x2c5   :  { %3937 = vmatmul.mubr.bf16.vlgmr.msra.gmra.mrb[12].mxu0 %v10557_v32  ;;  %v9029_v12 = vcombine.low %v736_v3, %v740_v4 }
 0x2c6   :  { %4101 = vmatmul.mubr.bf16.vlgmr.msra.gmra.mrb[12].mxu1 %v10557_v32  ;;  %3946 = vmatpush1.bf16.msra.mxu0 %v8971_v61  ;;  %v8989_v32 = vcombine.low %v696_v14, %v700_v16  ;;  %v9030_v61 = vcombine.high %v736_v3, %v740_v4  ;;  %v751_v16 = vld [vmem:[#allocation8 + $0xa50] sm:$0xff] }
 0x2c7   :  { %3977 = vmatprep.mubr.bf16.mxu0 %v10559_v41  ;;  %4110 = vmatpush1.bf16.msra.mxu1 %v8973_v9  ;;  %v744_v9 = vld [vmem:[#allocation8 + $0xa18] sm:$0xff]  ;;  %v791_v4 = vld [vmem:[#allocation8 + $0xb90] sm:$0xff] }
 0x2c8   :  { %4141 = vmatprep.mubr.bf16.mxu1 %v10559_v41  ;;  %3947 = vmatprep.subr.bf16.mxu0 %v8980_v10  ;;  %v8995_v41 = vcombine.low %v703_v38, %v707_v21  ;;  %v748_v10 = vld [vmem:[#allocation8 + $0xa38] sm:$0xff] }
 0x2c9   :  { %4111 = vmatprep.subr.bf16.mxu1 %v8982_v13  ;;  %v9036_v13 = vcombine.high %v743_v8, %v747_v62  ;;  %v9038_v14 = vcombine.high %v744_v9, %v748_v10  ;;  %v9037_v38 = vcombine.low %v744_v9, %v748_v10  ;;  %v799_v10 = vld [vmem:[#allocation8 + $0xbd0] sm:$0xff] }
 0x2ca   :  { %3948 = vmatpush1.bf16.msra.mxu0 %v8979_v50  ;;  %v755_v50 = vld [vmem:[#allocation8 + $0xa70] sm:$0xff] }
 0x2cb   :  { %4112 = vmatpush1.bf16.msra.mxu1 %v8981_v18  ;;  %3949 = vmatprep.subr.bf16.mxu0 %v8988_v19  ;;  %v752_v18 = vld [vmem:[#allocation8 + $0xa58] sm:$0xff]  ;;  %v9044_v21 = vcombine.high %v751_v16, %v755_v50 }
 0x2cc   :  { %4113 = vmatprep.subr.bf16.mxu1 %v8990_v20  ;;  %v756_v19 = vld [vmem:[#allocation8 + $0xa78] sm:$0xff]  ;;  %v9035_v20 = vcombine.low %v743_v8, %v747_v62 }
 0x2cd   :  { %v9046_v23 = vcombine.high %v752_v18, %v756_v19  ;;  %v9045_v63 = vcombine.low %v752_v18, %v756_v19  ;;  %v807_v19 = vld [vmem:[#allocation8 + $0xc10] sm:$0xff] }
 0x2ce   :  { %3950 = vmatpush1.bf16.msra.mxu0 %v8987_v26  ;;  %v763_v26 = vld [vmem:[#allocation8 + $0xab0] sm:$0xff] }
 0x2cf   :  { %4114 = vmatpush1.bf16.msra.mxu1 %v8989_v32  ;;  %3951 = vmatprep.subr.bf16.mxu0 %v8996_v53  ;;  %v760_v32 = vld [vmem:[#allocation8 + $0xa98] sm:$0xff]  ;;  %v9052_v34 = vcombine.high %v759_v24, %v763_v26 }
 0x2d0   :  { %4115 = vmatprep.subr.bf16.mxu1 %v8998_v33  ;;  %v764_v53 = vld [vmem:[#allocation8 + $0xab8] sm:$0xff]  ;;  %v9043_v33 = vcombine.low %v751_v16, %v755_v50 }
 0x2d1   :  { %v9054_v27 = vcombine.high %v760_v32, %v764_v53  ;;  %v9053_v42 = vcombine.low %v760_v32, %v764_v53  ;;  %v815_v53 = vld [vmem:[#allocation8 + $0xc50] sm:$0xff] }
 0x2d2   :  { %3952 = vmatpush1.bf16.msra.mxu0 %v8995_v41  ;;  %v771_v41 = vld [vmem:[#allocation8 + $0xaf0] sm:$0xff] }
 0x2d3   :  { %4116 = vmatpush1.bf16.msra.mxu1 %v8997_v36  ;;  %3953 = vmatprep.subr.bf16.mxu0 %v9004_v37  ;;  %v768_v36 = vld [vmem:[#allocation8 + $0xad8] sm:$0xff]  ;;  %v9060_v44 = vcombine.high %v767_v35, %v771_v41 }
 0x2d4   :  { %4117 = vmatprep.subr.bf16.mxu1 %v9006_v39  ;;  %v772_v37 = vld [vmem:[#allocation8 + $0xaf8] sm:$0xff]  ;;  %v9051_v39 = vcombine.low %v759_v24, %v763_v26 }
 0x2d5   :  { %v9062_v45 = vcombine.high %v768_v36, %v772_v37  ;;  %v9061_v55 = vcombine.low %v768_v36, %v772_v37  ;;  %v823_v36 = vld [vmem:[#allocation8 + $0xc90] sm:$0xff] }
 0x2d6   :  { %3954 = vmatpush1.bf16.msra.mxu0 %v9003_v48  ;;  %v779_v48 = vld [vmem:[#allocation8 + $0xb30] sm:$0xff] }
 0x2d7   :  { %4118 = vmatpush1.bf16.msra.mxu1 %v9005_v49  ;;  %3955 = vmatprep.subr.bf16.mxu0 %v9012_v51  ;;  %v776_v49 = vld [vmem:[#allocation8 + $0xb18] sm:$0xff]  ;;  %v9068_v57 = vcombine.high %v775_v47, %v779_v48  ;;  %v827_v37 = vld [vmem:[#allocation8 + $0xcb0] sm:$0xff] }
 0x2d8   :  { %4119 = vmatprep.subr.bf16.mxu1 %v9014_v52  ;;  %v780_v51 = vld [vmem:[#allocation8 + $0xb38] sm:$0xff]  ;;  %v9059_v52 = vcombine.low %v767_v35, %v771_v41 }
 0x2d9   :  { %v9070_v58 = vcombine.high %v776_v49, %v780_v51  ;;  %v9069_v54 = vcombine.low %v776_v49, %v780_v51  ;;  %v831_v51 = vld [vmem:[#allocation8 + $0xcd0] sm:$0xff] }
 0x2da   :  { %3956 = vmatpush1.bf16.msra.mxu0 %v9011_v60  ;;  %v787_v60 = vld [vmem:[#allocation8 + $0xb70] sm:$0xff] }
 0x2db   :  { %4120 = vmatpush1.bf16.msra.mxu1 %v9013_v0  ;;  %3957 = vmatprep.subr.bf16.mxu0 %v9020_v1  ;;  %v784_v0 = vld [vmem:[#allocation8 + $0xb58] sm:$0xff]  ;;  %v9076_v46 = vcombine.high %v783_v59, %v787_v60 }
 0x2dc   :  { %4121 = vmatprep.subr.bf16.mxu1 %v9022_v2  ;;  %v788_v1 = vld [vmem:[#allocation8 + $0xb78] sm:$0xff]  ;;  %v9067_v2 = vcombine.low %v775_v47, %v779_v48  ;;  %v9116_v48 = vcombine.high %v823_v36, %v827_v37 }
 0x2dd   :  { %v9078_v3 = vcombine.high %v784_v0, %v788_v1  ;;  %v9077_v8 = vcombine.low %v784_v0, %v788_v1  ;;  %v839_v0 = vld [vmem:[#allocation8 + $0xd10] sm:$0xff] }
 0x2de   :  { %3958 = vmatpush1.bf16.msra.mxu0 %v9019_v6  ;;  %v795_v6 = vld [vmem:[#allocation8 + $0xbb0] sm:$0xff] }
 0x2df   :  { %4122 = vmatpush1.bf16.msra.mxu1 %v9021_v7  ;;  %3959 = vmatprep.subr.bf16.mxu0 %v9028_v29  ;;  %v792_v7 = vld [vmem:[#allocation8 + $0xb98] sm:$0xff]  ;;  %v9084_v62 = vcombine.high %v791_v4, %v795_v6  ;;  %v843_v1 = vld [vmem:[#allocation8 + $0xd30] sm:$0xff] }
 0x2e0   :  { %4123 = vmatprep.subr.bf16.mxu1 %v9030_v61  ;;  %v796_v29 = vld [vmem:[#allocation8 + $0xbb8] sm:$0xff]  ;;  %v9075_v61 = vcombine.low %v783_v59, %v787_v60 }
 0x2e1   :  { %v9086_v9 = vcombine.high %v792_v7, %v796_v29  ;;  %v9085_v16 = vcombine.low %v792_v7, %v796_v29  ;;  %v851_v7 = vld [vmem:[#allocation8 + $0xd70] sm:$0xff]  ;;  %v848_v29 = vld [vmem:[#allocation8 + $0xd58] sm:$0xff] }
 0x2e2   :  { %3960 = vmatpush1.bf16.msra.mxu0 %v9027_v11  ;;  %v803_v11 = vld [vmem:[#allocation8 + $0xbf0] sm:$0xff] }
 0x2e3   :  { %4124 = vmatpush1.bf16.msra.mxu1 %v9029_v12  ;;  %3961 = vmatprep.subr.bf16.mxu0 %v9036_v13  ;;  %v800_v12 = vld [vmem:[#allocation8 + $0xbd8] sm:$0xff]  ;;  %v9092_v50 = vcombine.high %v799_v10, %v803_v11 }
 0x2e4   :  { %4125 = vmatprep.subr.bf16.mxu1 %v9038_v14  ;;  %v804_v13 = vld [vmem:[#allocation8 + $0xbf8] sm:$0xff]  ;;  %v9083_v14 = vcombine.low %v791_v4, %v795_v6  ;;  %v847_v6 = vld [vmem:[#allocation8 + $0xd50] sm:$0xff] }
 0x2e5   :  { %v9094_v18 = vcombine.high %v800_v12, %v804_v13  ;;  %v9093_v24 = vcombine.low %v800_v12, %v804_v13  ;;  %v859_v12 = vld [vmem:[#allocation8 + $0xdb0] sm:$0xff]  ;;  %v856_v13 = vld [vmem:[#allocation8 + $0xd98] sm:$0xff] }
 0x2e6   :  { %3962 = vmatpush1.bf16.msra.mxu0 %v9035_v20  ;;  %v811_v20 = vld [vmem:[#allocation8 + $0xc30] sm:$0xff] }
 0x2e7   :  { %4126 = vmatpush1.bf16.msra.mxu1 %v9037_v38  ;;  %3963 = vmatprep.subr.bf16.mxu0 %v9044_v21  ;;  %v808_v38 = vld [vmem:[#allocation8 + $0xc18] sm:$0xff]  ;;  %v9100_v26 = vcombine.high %v807_v19, %v811_v20 }
 0x2e8   :  { %4127 = vmatprep.subr.bf16.mxu1 %v9046_v23  ;;  %v812_v21 = vld [vmem:[#allocation8 + $0xc38] sm:$0xff]  ;;  %v9091_v23 = vcombine.low %v799_v10, %v803_v11  ;;  %v855_v11 = vld [vmem:[#allocation8 + $0xd90] sm:$0xff] }
 0x2e9   :  { %v9102_v32 = vcombine.high %v808_v38, %v812_v21  ;;  %v9101_v35 = vcombine.low %v808_v38, %v812_v21  ;;  %v863_v21 = vld [vmem:[#allocation8 + $0xdd0] sm:$0xff] }
 0x2ea   :  { %3964 = vmatpush1.bf16.msra.mxu0 %v9043_v33  ;;  %v819_v33 = vld [vmem:[#allocation8 + $0xc70] sm:$0xff] }
 0x2eb   :  { %4128 = vmatpush1.bf16.msra.mxu1 %v9045_v63  ;;  %3965 = vmatprep.subr.bf16.mxu0 %v9052_v34  ;;  %v9099_v63 = vcombine.low %v807_v19, %v811_v20  ;;  %v816_v34 = vld [vmem:[#allocation8 + $0xc58] sm:$0xff]  ;;  %v9108_v41 = vcombine.high %v815_v53, %v819_v33 }
 0x2ec   :  { %4129 = vmatprep.subr.bf16.mxu1 %v9054_v27  ;;  %v820_v27 = vld [vmem:[#allocation8 + $0xc78] sm:$0xff] }
 0x2ed   :  { %v9109_v47 = vcombine.low %v816_v34, %v820_v27 }
 0x2ee   :  { %3966 = vmatpush1.bf16.msra.mxu0 %v9051_v39  ;;  %v9110_v39 = vcombine.high %v816_v34, %v820_v27  ;;  %v9147_v34 = vcombine.low %v855_v11, %v859_v12 }
 0x2ef   :  { %4130 = vmatpush1.bf16.msra.mxu1 %v9053_v42  ;;  %3967 = vmatprep.subr.bf16.mxu0 %v9060_v44  ;;  %v824_v42 = vld [vmem:[#allocation8 + $0xc98] sm:$0xff] }
 0x2f0   :  { %4131 = vmatprep.subr.bf16.mxu1 %v9062_v45  ;;  %v828_v44 = vld [vmem:[#allocation8 + $0xcb8] sm:$0xff]  ;;  %v9107_v45 = vcombine.low %v815_v53, %v819_v33 }
 0x2f1   :  { %v9118_v49 = vcombine.high %v824_v42, %v828_v44  ;;  %v868_v53 = vld [vmem:[#allocation8 + $0xdf8] sm:$0xff] }
 0x2f2   :  { %3968 = vmatpush1.bf16.msra.mxu0 %v9059_v52  ;;  %v835_v52 = vld [vmem:[#allocation8 + $0xcf0] sm:$0xff] }
 0x2f3   :  { %4132 = vmatpush1.bf16.msra.mxu1 %v9061_v55  ;;  %3969 = vmatprep.subr.bf16.mxu0 %v9068_v57  ;;  %v832_v55 = vld [vmem:[#allocation8 + $0xcd8] sm:$0xff]  ;;  %v9124_v59 = vcombine.high %v831_v51, %v835_v52 }
 0x2f4   :  { %4133 = vmatprep.subr.bf16.mxu1 %v9070_v58  ;;  %v836_v57 = vld [vmem:[#allocation8 + $0xcf8] sm:$0xff]  ;;  %v9115_v58 = vcombine.low %v823_v36, %v827_v37 }
 0x2f5   :  { %v9126_v60 = vcombine.high %v832_v55, %v836_v57 }
 0x2f6   :  { %3970 = vmatpush1.bf16.msra.mxu0 %v9067_v2  ;;  %v840_v2 = vld [vmem:[#allocation8 + $0xd18] sm:$0xff] }
 0x2f7   :  { %4134 = vmatpush1.bf16.msra.mxu1 %v9069_v54  ;;  %3971 = vmatprep.subr.bf16.mxu0 %v9076_v46  ;;  %v844_v54 = vld [vmem:[#allocation8 + $0xd38] sm:$0xff]  ;;  %v9125_v46 = vcombine.low %v832_v55, %v836_v57  ;;  %v883_v55 = vld [vmem:[#allocation8 + $0xe70] sm:$0xff] }
 0x2f8   :  { %4135 = vmatprep.subr.bf16.mxu1 %v9078_v3  ;;  %v9132_v3 = vcombine.high %v839_v0, %v843_v1  ;;  %v9134_v4 = vcombine.high %v840_v2, %v844_v54  ;;  %v880_v57 = vld [vmem:[#allocation8 + $0xe58] sm:$0xff] }
 0x2fa   :  { %3972 = vmatpush1.bf16.msra.mxu0 %v9075_v61  ;;  %v852_v61 = vld [vmem:[#allocation8 + $0xd78] sm:$0xff] }
 0x2fb   :  { %4136 = vmatpush1.bf16.msra.mxu1 %v9077_v8  ;;  %3973 = vmatprep.subr.bf16.mxu0 %v9084_v62  ;;  %v9131_v8 = vcombine.low %v839_v0, %v843_v1  ;;  %v9133_v62 = vcombine.low %v840_v2, %v844_v54  ;;  %v9142_v10 = vcombine.high %v848_v29, %v852_v61  ;;  %v887_v1 = vld [vmem:[#allocation8 + $0xe90] sm:$0xff]  ;;  %v888_v54 = vld [vmem:[#allocation8 + $0xe98] sm:$0xff] }
 0x2fc   :  { %4137 = vmatprep.subr.bf16.mxu1 %v9086_v9  ;;  %v9140_v9 = vcombine.high %v847_v6, %v851_v7  ;;  %v891_v2 = vld [vmem:[#allocation8 + $0xeb0] sm:$0xff] }
 0x2fe   :  { %3974 = vmatpush1.bf16.msra.mxu0 %v9083_v14  ;;  %v860_v14 = vld [vmem:[#allocation8 + $0xdb8] sm:$0xff] }
 0x2ff   :  { %4138 = vmatpush1.bf16.msra.mxu1 %v9085_v16  ;;  %3975 = vmatprep.subr.bf16.mxu0 %v9092_v50  ;;  %v9139_v16 = vcombine.low %v847_v6, %v851_v7  ;;  %v9141_v50 = vcombine.low %v848_v29, %v852_v61  ;;  %v9150_v38 = vcombine.high %v856_v13, %v860_v14  ;;  %v895_v7 = vld [vmem:[#allocation8 + $0xed0] sm:$0xff]  ;;  %v896_v61 = vld [vmem:[#allocation8 + $0xed8] sm:$0xff] }
 0x300   :  { %4139 = vmatprep.subr.bf16.mxu1 %v9094_v18  ;;  %v9148_v18 = vcombine.high %v855_v11, %v859_v12  ;;  %v899_v29 = vld [vmem:[#allocation8 + $0xef0] sm:$0xff] }
 0x301   :  { %v903_v12 = vld [vmem:[#allocation8 + $0xf10] sm:$0xff] }
 0x302   :  { %3976 = vmatpush1.bf16.msra.mxu0 %v9091_v23  ;;  %v867_v23 = vld [vmem:[#allocation8 + $0xdf0] sm:$0xff] }
 0x303   :  { %4140 = vmatpush1.bf16.msra.mxu1 %v9093_v24  ;;  %3986 = vmatprep.subr.bf16.mxu0 %v9100_v26  ;;  %v9156_v36 = vcombine.high %v863_v21, %v867_v23 }
 0x304   :  { %4150 = vmatprep.subr.bf16.mxu1 %v9102_v32  ;;  %v864_v32 = vld [vmem:[#allocation8 + $0xdd8] sm:$0xff] }
 0x305   :  { %3978 = vmatmul.mubr.bf16.vlgmr.msra.gmra.mrb[12].mxu0 %v10577_v15  ;;  %v9158_v37 = vcombine.high %v864_v32, %v868_v53 }
 0x306   :  { %4142 = vmatmul.mubr.bf16.vlgmr.msra.gmra.mrb[12].mxu1 %v10577_v15  ;;  %3987 = vmatpush1.bf16.msra.mxu0 %v9099_v63  ;;  %v9117_v15 = vcombine.low %v824_v42, %v828_v44  ;;  %v875_v42 = vld [vmem:[#allocation8 + $0xe30] sm:$0xff]  ;;  %v872_v44 = vld [vmem:[#allocation8 + $0xe18] sm:$0xff] }
 0x307   :  { %4018 = vmatprep.mubr.bf16.mxu0 %v10579_v22  ;;  %4151 = vmatpush1.bf16.msra.mxu1 %v9101_v35 }
 0x308   :  { %4182 = vmatprep.mubr.bf16.mxu1 %v10579_v22  ;;  %3988 = vmatprep.subr.bf16.mxu0 %v9108_v41  ;;  %v9123_v22 = vcombine.low %v831_v51, %v835_v52  ;;  %v9149_v41 = vcombine.low %v856_v13, %v860_v14  ;;  %v879_v52 = vld [vmem:[#allocation8 + $0xe50] sm:$0xff]  ;;  %v904_v14 = vld [vmem:[#allocation8 + $0xf18] sm:$0xff] }
 0x309   :  { %4152 = vmatprep.subr.bf16.mxu1 %v9110_v39  ;;  %v871_v39 = vld [vmem:[#allocation8 + $0xe10] sm:$0xff] }
 0x30a   :  { %3989 = vmatpush1.bf16.msra.mxu0 %v9107_v45  ;;  %v876_v45 = vld [vmem:[#allocation8 + $0xe38] sm:$0xff]  ;;  %v907_v13 = vld [vmem:[#allocation8 + $0xf30] sm:$0xff] }
 0x30b   :  { %4153 = vmatpush1.bf16.msra.mxu1 %v9109_v47  ;;  %3990 = vmatprep.subr.bf16.mxu0 %v9116_v48  ;;  %v9155_v47 = vcombine.low %v863_v21, %v867_v23  ;;  %v9157_v48 = vcombine.low %v864_v32, %v868_v53  ;;  %v9166_v51 = vcombine.high %v872_v44, %v876_v45  ;;  %v911_v23 = vld [vmem:[#allocation8 + $0xf50] sm:$0xff]  ;;  %v912_v53 = vld [vmem:[#allocation8 + $0xf58] sm:$0xff] }
 0x30c   :  { %4154 = vmatprep.subr.bf16.mxu1 %v9118_v49  ;;  %v9164_v49 = vcombine.high %v871_v39, %v875_v42  ;;  %v915_v32 = vld [vmem:[#allocation8 + $0xf70] sm:$0xff] }
 0x30e   :  { %3991 = vmatpush1.bf16.msra.mxu0 %v9115_v58  ;;  %v884_v58 = vld [vmem:[#allocation8 + $0xe78] sm:$0xff] }
 0x30f   :  { %4155 = vmatpush1.bf16.msra.mxu1 %v9117_v15  ;;  %3992 = vmatprep.subr.bf16.mxu0 %v9124_v59  ;;  %v9163_v15 = vcombine.low %v871_v39, %v875_v42  ;;  %v9165_v59 = vcombine.low %v872_v44, %v876_v45  ;;  %v9174_v0 = vcombine.high %v880_v57, %v884_v58  ;;  %v924_v39 = vld [vmem:[#allocation8 + $0xfb8] sm:$0xff]  ;;  %v10616_v42 = vld [vmem:[#allocation10] sm:$0xff] }
 0x310   :  { %4156 = vmatprep.subr.bf16.mxu1 %v9126_v60  ;;  %v9172_v60 = vcombine.high %v879_v52, %v883_v55  ;;  %v9203_v44 = vcombine.low %v911_v23, %v915_v32 }
 0x312   :  { %3993 = vmatpush1.bf16.msra.mxu0 %v9123_v22  ;;  %v892_v22 = vld [vmem:[#allocation8 + $0xeb8] sm:$0xff] }
 0x313   :  { %4157 = vmatpush1.bf16.msra.mxu1 %v9125_v46  ;;  %3994 = vmatprep.subr.bf16.mxu0 %v9132_v3  ;;  %v9171_v46 = vcombine.low %v879_v52, %v883_v55  ;;  %v9173_v3 = vcombine.low %v880_v57, %v884_v58  ;;  %v9182_v6 = vcombine.high %v888_v54, %v892_v22  ;;  %v928_v55 = vld [vmem:[#allocation8 + $0xfd8] sm:$0xff] }
 0x314   :  { %4158 = vmatprep.subr.bf16.mxu1 %v9134_v4  ;;  %v9180_v4 = vcombine.high %v887_v1, %v891_v2  ;;  %v942_v52 = vrot.slane %v10616_v42, %v10512_v30  ;;  %v932_v57 = vld [vmem:[#allocation8 + $0xff8] sm:$0xff] }
 0x316   :  { %3995 = vmatpush1.bf16.msra.mxu0 %v9131_v8  ;;  %v900_v8 = vld [vmem:[#allocation8 + $0xef8] sm:$0xff] }
 0x317   :  { %4159 = vmatpush1.bf16.msra.mxu1 %v9133_v62  ;;  %3996 = vmatprep.subr.bf16.mxu0 %v9140_v9  ;;  %v9179_v62 = vcombine.low %v887_v1, %v891_v2  ;;  %v9181_v9 = vcombine.low %v888_v54, %v892_v22  ;;  %v9190_v11 = vcombine.high %v896_v61, %v900_v8  ;;  %v4211_v1 = vld [vmem:[#allocation11 + $0x20] sm:$0xff]  ;;  %v4208_v54 = vld [vmem:[#allocation11 + $0x8] sm:$0xff] }
 0x318   :  { %v10608_v19 = vpop.f32.mrb[8].mxu0  ;;  %v10610_v20 = vpop.f32.mrb[8].mxu1  ;;  %4160 = vmatprep.subr.bf16.mxu1 %v9142_v10  ;;  %v9188_v10 = vcombine.high %v895_v7, %v899_v29  ;;  %v4212_v22 = vld [vmem:[#allocation11 + $0x28] sm:$0xff] }
 0x319   :  { %v10612_v24 = vpop.f32.mrb[9].mxu0  ;;  %v10614_v26 = vpop.f32.mrb[9].mxu1 }
 0x31a   :  { %v3696_v33 = vpop.f32.mrb[10].mxu0  ;;  %v3860_v63 = vpop.f32.mrb[10].mxu1  ;;  %3997 = vmatpush1.bf16.msra.mxu0 %v9139_v16  ;;  %v908_v16 = vld [vmem:[#allocation8 + $0xf38] sm:$0xff]  ;;  %v9890_v2 = vadd.f32 %v10612_v24, %v942_v52  ;;  %v9225_v24 = vcombine.low %v4208_v54, %v4212_v22  ;;  %v4248_v52 = vld [vmem:[#allocation11 + $0x148] sm:$0xff] }
 0x31b   :  { %4161 = vmatpush1.bf16.msra.mxu1 %v9141_v50  ;;  %v3697_v27 = vpop.f32.mrb[11].mxu0  ;;  %v3861_v35 = vpop.f32.mrb[11].mxu1  ;;  %3998 = vmatprep.subr.bf16.mxu0 %v9148_v18  ;;  %v9187_v50 = vcombine.low %v895_v7, %v899_v29  ;;  %v9189_v18 = vcombine.low %v896_v61, %v900_v8  ;;  %v9198_v21 = vcombine.high %v904_v14, %v908_v16  ;;  %v916_v33 = vld [vmem:[#allocation8 + $0xf78] sm:$0xff]  ;;  %v4215_v29 = vld [vmem:[#allocation11 + $0x40] sm:$0xff] }
 0x31c   :  { %4162 = vmatprep.subr.bf16.mxu1 %v9150_v38  ;;  %v9196_v38 = vcombine.high %v903_v12, %v907_v13  ;;  %v9195_v63 = vcombine.low %v903_v12, %v907_v13  ;;  %v9204_v27 = vcombine.high %v911_v23, %v915_v32  ;;  %v9206_v35 = vcombine.high %v912_v53, %v916_v33  ;;  %v4219_v61 = vld [vmem:[#allocation11 + $0x60] sm:$0xff] }
 0x31d   :  { %v9205_v45 = vcombine.low %v912_v53, %v916_v33  ;;  %v4192_v7 = vmax.f32 %v9890_v2, 0.0  ;;  %v4227_v12 = vld [vmem:[#allocation11 + $0xa0] sm:$0xff]  ;;  %v4232_v33 = vld [vmem:[#allocation11 + $0xc8] sm:$0xff] }
 0x31e   :  { %3999 = vmatpush1.bf16.msra.mxu0 %v9147_v34  ;;  %v9197_v34 = vcombine.low %v904_v14, %v908_v16  ;;  %v4224_v16 = vld [vmem:[#allocation11 + $0x88] sm:$0xff]  ;;  %v4231_v32 = vld [vmem:[#allocation11 + $0xc0] sm:$0xff] }
 0x31f   :  { %4163 = vmatpush1.bf16.msra.mxu1 %v9149_v41  ;;  %4000 = vmatprep.subr.bf16.mxu0 %v9156_v36  ;;  %v919_v41 = vld [vmem:[#allocation8 + $0xf90] sm:$0xff]  ;;  %v10621_v13 = vpack.c.bf16 %v4192_v7, %v4192_v7  ;;  %v4235_v53 = vld [vmem:[#allocation11 + $0xe0] sm:$0xff] }
 0x320   :  { %4164 = vmatprep.subr.bf16.mxu1 %v9158_v37  ;;  %v923_v36 = vld [vmem:[#allocation8 + $0xfb0] sm:$0xff]  ;;  %v920_v37 = vld [vmem:[#allocation8 + $0xf98] sm:$0xff] }
 0x321   :  { %v9211_v58 = vcombine.low %v919_v41, %v923_v36  ;;  %v4260_v2 = vld [vmem:[#allocation11 + $0x1a8] sm:$0xff] }
 0x322   :  { %4001 = vmatpush1.bf16.msra.mxu0 %v9155_v47  ;;  %v9212_v47 = vcombine.high %v919_v41, %v923_v36  ;;  %v4239_v41 = vld [vmem:[#allocation11 + $0x100] sm:$0xff]  ;;  %v4264_v7 = vld [vmem:[#allocation11 + $0x1c8] sm:$0xff] }
 0x323   :  { %4165 = vmatpush1.bf16.msra.mxu1 %v9157_v48  ;;  %4002 = vmatprep.subr.bf16.mxu0 %v9164_v49  ;;  %v9214_v48 = vcombine.high %v920_v37, %v924_v39  ;;  %v927_v49 = vld [vmem:[#allocation8 + $0xfd0] sm:$0xff]  ;;  %v4243_v36 = vld [vmem:[#allocation11 + $0x120] sm:$0xff] }
 0x324   :  { %4166 = vmatprep.subr.bf16.mxu1 %v9166_v51  ;;  %v931_v51 = vld [vmem:[#allocation8 + $0xff0] sm:$0xff] }
 0x326   :  { %4003 = vmatpush1.bf16.msra.mxu0 %v9163_v15  ;;  %v9213_v15 = vcombine.low %v920_v37, %v924_v39  ;;  %v4240_v37 = vld [vmem:[#allocation11 + $0x108] sm:$0xff] }
 0x327   :  { %4167 = vmatpush1.bf16.msra.mxu1 %v9165_v59  ;;  %4004 = vmatprep.subr.bf16.mxu0 %v9172_v60  ;;  %v9220_v59 = vcombine.high %v927_v49, %v931_v51  ;;  %v9222_v60 = vcombine.high %v928_v55, %v932_v57  ;;  %v4244_v39 = vld [vmem:[#allocation11 + $0x128] sm:$0xff] }
 0x328   :  { %4168 = vmatprep.subr.bf16.mxu1 %v9174_v0  ;;  %v4207_v0 = vld [vmem:[#allocation11] sm:$0xff] }
 0x329   :  { %v9223_v8 = vcombine.low %v4207_v0, %v4211_v1 }
 0x32a   :  { %4005 = vmatpush1.bf16.msra.mxu0 %v9171_v46  ;;  %v9219_v46 = vcombine.low %v927_v49, %v931_v51  ;;  %v4247_v49 = vld [vmem:[#allocation11 + $0x140] sm:$0xff] }
 0x32b   :  { %4169 = vmatpush1.bf16.msra.mxu1 %v9173_v3  ;;  %4006 = vmatprep.subr.bf16.mxu0 %v9180_v4  ;;  %v9221_v3 = vcombine.low %v928_v55, %v932_v57  ;;  %v9224_v4 = vcombine.high %v4207_v0, %v4211_v1  ;;  %v4251_v51 = vld [vmem:[#allocation11 + $0x160] sm:$0xff]  ;;  %v4252_v55 = vld [vmem:[#allocation11 + $0x168] sm:$0xff]  ;;  %v9255_v57 = vcombine.low %v4239_v41, %v4243_v36 }
 0x32c   :  { %4170 = vmatprep.subr.bf16.mxu1 %v9182_v6  ;;  %v9226_v6 = vcombine.high %v4208_v54, %v4212_v22  ;;  %v4259_v0 = vld [vmem:[#allocation11 + $0x1a0] sm:$0xff]  ;;  %v4256_v1 = vld [vmem:[#allocation11 + $0x188] sm:$0xff]  ;;  %v9263_v54 = vcombine.low %v4247_v49, %v4251_v51  ;;  %v9265_v22 = vcombine.low %v4248_v52, %v4252_v55 }
 0x32e   :  { %4007 = vmatpush1.bf16.msra.mxu0 %v9179_v62  ;;  %v4216_v62 = vld [vmem:[#allocation11 + $0x48] sm:$0xff] }
 0x32f   :  { %4171 = vmatpush1.bf16.msra.mxu1 %v9181_v9  ;;  %4008 = vmatprep.subr.bf16.mxu0 %v9188_v10  ;;  %v4220_v9 = vld [vmem:[#allocation11 + $0x68] sm:$0xff]  ;;  %v9232_v10 = vcombine.high %v4215_v29, %v4219_v61 }
 0x330   :  { %4172 = vmatprep.subr.bf16.mxu1 %v9190_v11  ;;  %v4223_v11 = vld [vmem:[#allocation11 + $0x80] sm:$0xff]  ;;  %v9234_v14 = vcombine.high %v4216_v62, %v4220_v9 }
 0x332   :  { %4009 = vmatpush1.bf16.msra.mxu0 %v9187_v50  ;;  %v4228_v50 = vld [vmem:[#allocation11 + $0xa8] sm:$0xff] }
 0x333   :  { %4173 = vmatpush1.bf16.msra.mxu1 %v9189_v18  ;;  %4010 = vmatprep.subr.bf16.mxu0 %v9196_v38  ;;  %v9231_v18 = vcombine.low %v4215_v29, %v4219_v61  ;;  %v9233_v38 = vcombine.low %v4216_v62, %v4220_v9  ;;  %v9242_v23 = vcombine.high %v4224_v16, %v4228_v50  ;;  %v4268_v29 = vld [vmem:[#allocation11 + $0x1e8] sm:$0xff] }
 0x334   :  { %4174 = vmatprep.subr.bf16.mxu1 %v9198_v21  ;;  %v9240_v21 = vcombine.high %v4223_v11, %v4227_v12  ;;  %v9282_v9 = vcombine.high %v4264_v7, %v4268_v29 }
 0x336   :  { %4011 = vmatpush1.bf16.msra.mxu0 %v9195_v63  ;;  %v4236_v63 = vld [vmem:[#allocation11 + $0xe8] sm:$0xff] }
 0x337   :  { %4175 = vmatpush1.bf16.msra.mxu1 %v9197_v34  ;;  %4012 = vmatprep.subr.bf16.mxu0 %v9204_v27  ;;  %v9239_v34 = vcombine.low %v4223_v11, %v4227_v12  ;;  %v9248_v27 = vcombine.high %v4231_v32, %v4235_v53  ;;  %v4272_v11 = vld [vmem:[#allocation11 + $0x208] sm:$0xff] }
 0x338   :  { %4176 = vmatprep.subr.bf16.mxu1 %v9206_v35  ;;  %v9250_v35 = vcombine.high %v4232_v33, %v4236_v63  ;;  %v4276_v12 = vld [vmem:[#allocation11 + $0x228] sm:$0xff] }
 0x33a   :  { %4013 = vmatpush1.bf16.msra.mxu0 %v9203_v44  ;;  %v9247_v44 = vcombine.low %v4231_v32, %v4235_v53  ;;  %v4284_v32 = vld [vmem:[#allocation11 + $0x268] sm:$0xff] }
 0x33b   :  { %4177 = vmatpush1.bf16.msra.mxu1 %v9205_v45  ;;  %4014 = vmatprep.subr.bf16.mxu0 %v9212_v47  ;;  %v9249_v45 = vcombine.low %v4232_v33, %v4236_v63  ;;  %v9256_v47 = vcombine.high %v4239_v41, %v4243_v36  ;;  %v9289_v33 = vcombine.low %v4272_v11, %v4276_v12  ;;  %v4292_v41 = vld [vmem:[#allocation11 + $0x2a8] sm:$0xff] }
 0x33c   :  { %4178 = vmatprep.subr.bf16.mxu1 %v9214_v48  ;;  %v9258_v48 = vcombine.high %v4240_v37, %v4244_v39 }
 0x33e   :  { %4015 = vmatpush1.bf16.msra.mxu0 %v9211_v58  ;;  %v9257_v58 = vcombine.low %v4240_v37, %v4244_v39 }
 0x33f   :  { %4179 = vmatpush1.bf16.msra.mxu1 %v9213_v15  ;;  %4016 = vmatprep.subr.bf16.mxu0 %v9220_v59  ;;  %v9264_v15 = vcombine.high %v4247_v49, %v4251_v51  ;;  %v9266_v59 = vcombine.high %v4248_v52, %v4252_v55  ;;  %v4300_v49 = vld [vmem:[#allocation11 + $0x2e8] sm:$0xff] }
 0x340   :  { %4180 = vmatprep.subr.bf16.mxu1 %v9222_v60  ;;  %v4255_v60 = vld [vmem:[#allocation11 + $0x180] sm:$0xff] }
 0x341   :  { %v9271_v61 = vcombine.low %v4255_v60, %v4259_v0 }
 0x342   :  { %4017 = vmatpush1.bf16.msra.mxu0 %v9219_v46  ;;  %v9272_v46 = vcombine.high %v4255_v60, %v4259_v0  ;;  %v4308_v60 = vld [vmem:[#allocation11 + $0x328] sm:$0xff] }
 0x343   :  { %4181 = vmatpush1.bf16.msra.mxu1 %v9221_v3  ;;  %7321 = vmatprep.subr.bf16.mxu0 %v9224_v4  ;;  %v9274_v3 = vcombine.high %v4256_v1, %v4260_v2  ;;  %v4263_v4 = vld [vmem:[#allocation11 + $0x1c0] sm:$0xff] }
 0x344   :  { %7485 = vmatprep.subr.bf16.mxu1 %v9226_v6  ;;  %v4267_v6 = vld [vmem:[#allocation11 + $0x1e0] sm:$0xff] }
 0x345   :  { %4019 = vmatmul.mubr.bf16.vlgmr.msra.gmra.mrb[12].mxu0 %v10590_v5  ;;  %v9280_v62 = vcombine.high %v4263_v4, %v4267_v6 }
 0x346   :  { %4183 = vmatmul.mubr.bf16.vlgmr.msra.gmra.mrb[12].mxu1 %v10590_v5  ;;  %7322 = vmatpush1.bf16.msra.mxu0 %v9223_v8  ;;  %v9241_v5 = vcombine.low %v4224_v16, %v4228_v50  ;;  %v9273_v8 = vcombine.low %v4256_v1, %v4260_v2  ;;  %v9281_v16 = vcombine.low %v4264_v7, %v4268_v29 }
 0x347   :  { %7353 = vmatprep.mubr.bf16.mxu0 %v10621_v13  ;;  %7486 = vmatpush1.bf16.msra.mxu1 %v9225_v24  ;;  %v4271_v24 = vld [vmem:[#allocation11 + $0x200] sm:$0xff] }
 0x348   :  { %7517 = vmatprep.mubr.bf16.mxu1 %v10621_v13  ;;  %7323 = vmatprep.subr.bf16.mxu0 %v9232_v10  ;;  %v4275_v10 = vld [vmem:[#allocation11 + $0x220] sm:$0xff] }
 0x349   :  { %7487 = vmatprep.subr.bf16.mxu1 %v9234_v14  ;;  %v9279_v14 = vcombine.low %v4263_v4, %v4267_v6  ;;  %v9288_v50 = vcombine.high %v4271_v24, %v4275_v10  ;;  %v9287_v53 = vcombine.low %v4271_v24, %v4275_v10  ;;  %v4316_v4 = vld [vmem:[#allocation11 + $0x368] sm:$0xff] }
 0x34a   :  { %7324 = vmatpush1.bf16.msra.mxu0 %v9231_v18  ;;  %v9290_v18 = vcombine.high %v4272_v11, %v4276_v12  ;;  %v4324_v24 = vld [vmem:[#allocation11 + $0x3a8] sm:$0xff]  ;;  %v938_v11 = vrot.slane %v10616_v42, %v10507_v28 }
 0x34b   :  { %7488 = vmatpush1.bf16.msra.mxu1 %v9233_v38  ;;  %7325 = vmatprep.subr.bf16.mxu0 %v9240_v21  ;;  %v4279_v38 = vld [vmem:[#allocation11 + $0x240] sm:$0xff] }
 0x34c   :  { %7489 = vmatprep.subr.bf16.mxu1 %v9242_v23  ;;  %v4283_v21 = vld [vmem:[#allocation11 + $0x260] sm:$0xff]  ;;  %v4280_v23 = vld [vmem:[#allocation11 + $0x248] sm:$0xff] }
 0x34d   :  { %v9296_v63 = vcombine.high %v4279_v38, %v4283_v21  ;;  %v9295_v36 = vcombine.low %v4279_v38, %v4283_v21  ;;  %v9297_v37 = vcombine.low %v4280_v23, %v4284_v32  ;;  %v950_v38 = vrot.slane %v10616_v42, %v10515_v31  ;;  %v4328_v21 = vld [vmem:[#allocation11 + $0x3c8] sm:$0xff] }
 0x34e   :  { %7326 = vmatpush1.bf16.msra.mxu0 %v9239_v34  ;;  %v9298_v34 = vcombine.high %v4280_v23, %v4284_v32  ;;  %v4332_v23 = vld [vmem:[#allocation11 + $0x3e8] sm:$0xff] }
 0x34f   :  { %7490 = vmatpush1.bf16.msra.mxu1 %v9241_v5  ;;  %7327 = vmatprep.subr.bf16.mxu0 %v9248_v27  ;;  %v4287_v5 = vld [vmem:[#allocation11 + $0x280] sm:$0xff] }
 0x350   :  { %7491 = vmatprep.subr.bf16.mxu1 %v9250_v35  ;;  %v4291_v27 = vld [vmem:[#allocation11 + $0x2a0] sm:$0xff]  ;;  %v4288_v35 = vld [vmem:[#allocation11 + $0x288] sm:$0xff] }
 0x351   :  { %v9304_v39 = vcombine.high %v4287_v5, %v4291_v27  ;;  %v9303_v51 = vcombine.low %v4287_v5, %v4291_v27  ;;  %v9305_v52 = vcombine.low %v4288_v35, %v4292_v41  ;;  %v4335_v5 = vld [vmem:[#allocation11 + $0x400] sm:$0xff] }
 0x352   :  { %7328 = vmatpush1.bf16.msra.mxu0 %v9247_v44  ;;  %v9306_v44 = vcombine.high %v4288_v35, %v4292_v41  ;;  %v4339_v27 = vld [vmem:[#allocation11 + $0x420] sm:$0xff]  ;;  %v9892_v35 = vadd.f32 %v10614_v26, %v950_v38  ;;  %v4336_v41 = vld [vmem:[#allocation11 + $0x408] sm:$0xff] }
 0x353   :  { %7492 = vmatpush1.bf16.msra.mxu1 %v9249_v45  ;;  %7329 = vmatprep.subr.bf16.mxu0 %v9256_v47  ;;  %v4295_v45 = vld [vmem:[#allocation11 + $0x2c0] sm:$0xff] }
 0x354   :  { %7493 = vmatprep.subr.bf16.mxu1 %v9258_v48  ;;  %v4299_v47 = vld [vmem:[#allocation11 + $0x2e0] sm:$0xff]  ;;  %v4296_v48 = vld [vmem:[#allocation11 + $0x2c8] sm:$0xff] }
 0x355   :  { %v9312_v55 = vcombine.high %v4295_v45, %v4299_v47  ;;  %v9311_v0 = vcombine.low %v4295_v45, %v4299_v47  ;;  %v9313_v1 = vcombine.low %v4296_v48, %v4300_v49  ;;  %v9352_v45 = vcombine.high %v4335_v5, %v4339_v27  ;;  %v4375_v38 = vld [vmem:[#allocation11 + $0x540] sm:$0xff] }
 0x356   :  { %7330 = vmatpush1.bf16.msra.mxu0 %v9255_v57  ;;  %v9314_v57 = vcombine.high %v4296_v48, %v4300_v49  ;;  %v4194_v47 = vmax.f32 %v9892_v35, 0.0  ;;  %v4343_v48 = vld [vmem:[#allocation11 + $0x440] sm:$0xff]  ;;  %v4384_v35 = vld [vmem:[#allocation11 + $0x588] sm:$0xff] }
 0x357   :  { %7494 = vmatpush1.bf16.msra.mxu1 %v9257_v58  ;;  %7331 = vmatprep.subr.bf16.mxu0 %v9264_v15  ;;  %v4303_v58 = vld [vmem:[#allocation11 + $0x300] sm:$0xff] }
 0x358   :  { %7495 = vmatprep.subr.bf16.mxu1 %v9266_v59  ;;  %v4307_v15 = vld [vmem:[#allocation11 + $0x320] sm:$0xff]  ;;  %v4304_v59 = vld [vmem:[#allocation11 + $0x308] sm:$0xff] }
 0x359   :  { %v9320_v2 = vcombine.high %v4303_v58, %v4307_v15  ;;  %v9319_v6 = vcombine.low %v4303_v58, %v4307_v15  ;;  %v9321_v7 = vcombine.low %v4304_v59, %v4308_v60  ;;  %v4347_v49 = vld [vmem:[#allocation11 + $0x460] sm:$0xff] }
 0x35a   :  { %7332 = vmatpush1.bf16.msra.mxu0 %v9263_v54  ;;  %v9322_v54 = vcombine.high %v4304_v59, %v4308_v60  ;;  %v9360_v58 = vcombine.high %v4343_v48, %v4347_v49  ;;  %v4351_v15 = vld [vmem:[#allocation11 + $0x480] sm:$0xff]  ;;  %v10635_v60 = vpack.c.bf16 %v4194_v47, %v4194_v47  ;;  %v4392_v47 = vld [vmem:[#allocation11 + $0x5c8] sm:$0xff] }
 0x35b   :  { %7496 = vmatpush1.bf16.msra.mxu1 %v9265_v22  ;;  %7333 = vmatprep.subr.bf16.mxu0 %v9272_v46  ;;  %v4311_v22 = vld [vmem:[#allocation11 + $0x340] sm:$0xff] }
 0x35c   :  { %7497 = vmatprep.subr.bf16.mxu1 %v9274_v3  ;;  %v4315_v46 = vld [vmem:[#allocation11 + $0x360] sm:$0xff]  ;;  %v4312_v3 = vld [vmem:[#allocation11 + $0x348] sm:$0xff] }
 0x35d   :  { %v9328_v29 = vcombine.high %v4311_v22, %v4315_v46  ;;  %v9327_v10 = vcombine.low %v4311_v22, %v4315_v46  ;;  %v9329_v12 = vcombine.low %v4312_v3, %v4316_v4  ;;  %v4355_v59 = vld [vmem:[#allocation11 + $0x4a0] sm:$0xff] }
 0x35e   :  { %7334 = vmatpush1.bf16.msra.mxu0 %v9271_v61  ;;  %v9330_v61 = vcombine.high %v4312_v3, %v4316_v4  ;;  %v9368_v46 = vcombine.high %v4351_v15, %v4355_v59  ;;  %v4359_v4 = vld [vmem:[#allocation11 + $0x4c0] sm:$0xff] }
 0x35f   :  { %7498 = vmatpush1.bf16.msra.mxu1 %v9273_v8  ;;  %7335 = vmatprep.subr.bf16.mxu0 %v9280_v62  ;;  %v4319_v8 = vld [vmem:[#allocation11 + $0x380] sm:$0xff] }
 0x360   :  { %7499 = vmatprep.subr.bf16.mxu1 %v9282_v9  ;;  %v4323_v62 = vld [vmem:[#allocation11 + $0x3a0] sm:$0xff]  ;;  %v4320_v9 = vld [vmem:[#allocation11 + $0x388] sm:$0xff] }
 0x361   :  { %v9335_v32 = vcombine.low %v4319_v8, %v4323_v62 }
 0x362   :  { %7336 = vmatpush1.bf16.msra.mxu0 %v9279_v14  ;;  %v9336_v14 = vcombine.high %v4319_v8, %v4323_v62 }
 0x363   :  { %7500 = vmatpush1.bf16.msra.mxu1 %v9281_v16  ;;  %7337 = vmatprep.subr.bf16.mxu0 %v9288_v50  ;;  %v9338_v16 = vcombine.high %v4320_v9, %v4324_v24  ;;  %v4327_v50 = vld [vmem:[#allocation11 + $0x3c0] sm:$0xff] }
 0x364   :  { %7501 = vmatprep.subr.bf16.mxu1 %v9290_v18  ;;  %v4331_v18 = vld [vmem:[#allocation11 + $0x3e0] sm:$0xff] }
 0x366   :  { %7338 = vmatpush1.bf16.msra.mxu0 %v9287_v53  ;;  %v9889_v53 = vadd.f32 %v10608_v19, %v938_v11  ;;  %v4368_v11 = vld [vmem:[#allocation11 + $0x508] sm:$0xff] }
 0x367   :  { %7502 = vmatpush1.bf16.msra.mxu1 %v9289_v33  ;;  %7339 = vmatprep.subr.bf16.mxu0 %v9296_v63  ;;  %v9337_v33 = vcombine.low %v4320_v9, %v4324_v24  ;;  %v9344_v63 = vcombine.high %v4327_v50, %v4331_v18  ;;  %v4367_v24 = vld [vmem:[#allocation11 + $0x500] sm:$0xff] }
 0x368   :  { %7503 = vmatprep.subr.bf16.mxu1 %v9298_v34  ;;  %v9346_v34 = vcombine.high %v4328_v21, %v4332_v23 }
 0x36a   :  { %7340 = vmatpush1.bf16.msra.mxu0 %v9295_v36  ;;  %v4340_v36 = vld [vmem:[#allocation11 + $0x428] sm:$0xff] }
 0x36b   :  { %7504 = vmatpush1.bf16.msra.mxu1 %v9297_v37  ;;  %7341 = vmatprep.subr.bf16.mxu0 %v9304_v39  ;;  %v9343_v37 = vcombine.low %v4327_v50, %v4331_v18  ;;  %v4191_v39 = vmax.f32 %v9889_v53, 0.0  ;;  %v9354_v19 = vcombine.high %v4336_v41, %v4340_v36  ;;  %v9353_v26 = vcombine.low %v4336_v41, %v4340_v36  ;;  %v4388_v41 = vld [vmem:[#allocation11 + $0x5a8] sm:$0xff] }
 0x36c   :  { %7505 = vmatprep.subr.bf16.mxu1 %v9306_v44  ;;  %v9345_v44 = vcombine.low %v4328_v21, %v4332_v23  ;;  %v4379_v21 = vld [vmem:[#allocation11 + $0x560] sm:$0xff]  ;;  %v4376_v23 = vld [vmem:[#allocation11 + $0x548] sm:$0xff] }
 0x36d   :  { %v9391_v36 = vcombine.low %v4375_v38, %v4379_v21 }
 0x36e   :  { %7342 = vmatpush1.bf16.msra.mxu0 %v9303_v51  ;;  %v9351_v51 = vcombine.low %v4335_v5, %v4339_v27  ;;  %v4383_v5 = vld [vmem:[#allocation11 + $0x580] sm:$0xff] }
 0x36f   :  { %7506 = vmatpush1.bf16.msra.mxu1 %v9305_v52  ;;  %7343 = vmatprep.subr.bf16.mxu0 %v9312_v55  ;;  %v4344_v52 = vld [vmem:[#allocation11 + $0x448] sm:$0xff]  ;;  %v4387_v27 = vld [vmem:[#allocation11 + $0x5a0] sm:$0xff] }
 0x370   :  { %7507 = vmatprep.subr.bf16.mxu1 %v9314_v57  ;;  %v4348_v55 = vld [vmem:[#allocation11 + $0x468] sm:$0xff]  ;;  %v10633_v57 = vpack.c.bf16 %v4191_v39, %v4191_v39  ;;  %v9400_v39 = vcombine.high %v4383_v5, %v4387_v27 }
 0x371   :  { %v9361_v22 = vcombine.low %v4344_v52, %v4348_v55 }
 0x372   :  { %7344 = vmatpush1.bf16.msra.mxu0 %v9311_v0  ;;  %v9362_v0 = vcombine.high %v4344_v52, %v4348_v55 }
 0x373   :  { %7508 = vmatpush1.bf16.msra.mxu1 %v9313_v1  ;;  %7345 = vmatprep.subr.bf16.mxu0 %v9320_v2  ;;  %v4352_v1 = vld [vmem:[#allocation11 + $0x488] sm:$0xff] }
 0x374   :  { %7509 = vmatprep.subr.bf16.mxu1 %v9322_v54  ;;  %v4356_v2 = vld [vmem:[#allocation11 + $0x4a8] sm:$0xff]  ;;  %v9359_v54 = vcombine.low %v4343_v48, %v4347_v49  ;;  %v9399_v49 = vcombine.low %v4383_v5, %v4387_v27 }
 0x375   :  { %v9370_v3 = vcombine.high %v4352_v1, %v4356_v2  ;;  %v9369_v8 = vcombine.low %v4352_v1, %v4356_v2  ;;  %v4396_v48 = vld [vmem:[#allocation11 + $0x5e8] sm:$0xff] }
 0x376   :  { %7346 = vmatpush1.bf16.msra.mxu0 %v9319_v6  ;;  %v4363_v6 = vld [vmem:[#allocation11 + $0x4e0] sm:$0xff]  ;;  %v9410_v55 = vcombine.high %v4392_v47, %v4396_v48  ;;  %v9409_v1 = vcombine.low %v4392_v47, %v4396_v48  ;;  %v4436_v5 = vld [vmem:[#allocation11 + $0x728] sm:$0xff] }
 0x377   :  { %7510 = vmatpush1.bf16.msra.mxu1 %v9321_v7  ;;  %7347 = vmatprep.subr.bf16.mxu0 %v9328_v29  ;;  %v4360_v7 = vld [vmem:[#allocation11 + $0x4c8] sm:$0xff]  ;;  %v9376_v62 = vcombine.high %v4359_v4, %v4363_v6 }
 0x378   :  { %7511 = vmatprep.subr.bf16.mxu1 %v9330_v61  ;;  %v4364_v29 = vld [vmem:[#allocation11 + $0x4e8] sm:$0xff]  ;;  %v9367_v61 = vcombine.low %v4351_v15, %v4355_v59 }
 0x379   :  { %v9378_v9 = vcombine.high %v4360_v7, %v4364_v29  ;;  %v4400_v15 = vld [vmem:[#allocation11 + $0x608] sm:$0xff] }
 0x37a   :  { %7348 = vmatpush1.bf16.msra.mxu0 %v9327_v10  ;;  %v4371_v10 = vld [vmem:[#allocation11 + $0x520] sm:$0xff]  ;;  %v4404_v59 = vld [vmem:[#allocation11 + $0x628] sm:$0xff] }
 0x37b   :  { %7512 = vmatpush1.bf16.msra.mxu1 %v9329_v12  ;;  %7349 = vmatprep.subr.bf16.mxu0 %v9336_v14  ;;  %v4372_v12 = vld [vmem:[#allocation11 + $0x528] sm:$0xff]  ;;  %v9375_v14 = vcombine.low %v4359_v4, %v4363_v6  ;;  %v9384_v50 = vcombine.high %v4367_v24, %v4371_v10  ;;  %v9383_v53 = vcombine.low %v4367_v24, %v4371_v10 }
 0x37c   :  { %7513 = vmatprep.subr.bf16.mxu1 %v9338_v16  ;;  %v9377_v16 = vcombine.low %v4360_v7, %v4364_v29  ;;  %v9386_v18 = vcombine.high %v4368_v11, %v4372_v12  ;;  %v4412_v4 = vld [vmem:[#allocation11 + $0x668] sm:$0xff]  ;;  %v9417_v7 = vcombine.low %v4400_v15, %v4404_v59 }
 0x37d   :  { %v4420_v24 = vld [vmem:[#allocation11 + $0x6a8] sm:$0xff] }
 0x37e   :  { %7350 = vmatpush1.bf16.msra.mxu0 %v9335_v32  ;;  %v4380_v32 = vld [vmem:[#allocation11 + $0x568] sm:$0xff] }
 0x37f   :  { %7514 = vmatpush1.bf16.msra.mxu1 %v9337_v33  ;;  %7351 = vmatprep.subr.bf16.mxu0 %v9344_v63  ;;  %v9385_v33 = vcombine.low %v4368_v11, %v4372_v12  ;;  %v9392_v63 = vcombine.high %v4375_v38, %v4379_v21  ;;  %v4428_v38 = vld [vmem:[#allocation11 + $0x6e8] sm:$0xff] }
 0x380   :  { %7515 = vmatprep.subr.bf16.mxu1 %v9346_v34  ;;  %v9394_v34 = vcombine.high %v4376_v23, %v4380_v32 }
 0x382   :  { %7352 = vmatpush1.bf16.msra.mxu0 %v9343_v37  ;;  %v9393_v37 = vcombine.low %v4376_v23, %v4380_v32 }
 0x383   :  { %7516 = vmatpush1.bf16.msra.mxu1 %v9345_v44  ;;  %7362 = vmatprep.subr.bf16.mxu0 %v9352_v45  ;;  %v9402_v44 = vcombine.high %v4384_v35, %v4388_v41  ;;  %v4391_v45 = vld [vmem:[#allocation11 + $0x5c0] sm:$0xff] }
 0x384   :  { %7526 = vmatprep.subr.bf16.mxu1 %v9354_v19  ;;  %v4395_v19 = vld [vmem:[#allocation11 + $0x5e0] sm:$0xff] }
 0x385   :  { %7354 = vmatmul.mubr.bf16.vlgmr.msra.gmra.mrb[16].mxu0 %v10633_v57  ;;  %v9408_v52 = vcombine.high %v4391_v45, %v4395_v19 }
 0x386   :  { %7518 = vmatmul.mubr.bf16.vlgmr.msra.gmra.mrb[16].mxu1 %v10633_v57  ;;  %7363 = vmatpush1.bf16.msra.mxu0 %v9351_v51  ;;  %v9401_v51 = vcombine.low %v4384_v35, %v4388_v41 }
 0x387   :  { %7394 = vmatprep.mubr.bf16.mxu0 %v10635_v60  ;;  %7527 = vmatpush1.bf16.msra.mxu1 %v9353_v26  ;;  %v4399_v26 = vld [vmem:[#allocation11 + $0x600] sm:$0xff] }
 0x388   :  { %7558 = vmatprep.mubr.bf16.mxu1 %v10635_v60  ;;  %7364 = vmatprep.subr.bf16.mxu0 %v9360_v58  ;;  %v4403_v58 = vld [vmem:[#allocation11 + $0x620] sm:$0xff] }
 0x389   :  { %7528 = vmatprep.subr.bf16.mxu1 %v9362_v0  ;;  %v9407_v0 = vcombine.low %v4391_v45, %v4395_v19  ;;  %v9416_v2 = vcombine.high %v4399_v26, %v4403_v58  ;;  %v9415_v6 = vcombine.low %v4399_v26, %v4403_v58  ;;  %v4444_v45 = vld [vmem:[#allocation11 + $0x768] sm:$0xff] }
 0x38a   :  { %7365 = vmatpush1.bf16.msra.mxu0 %v9359_v54  ;;  %v9418_v54 = vcombine.high %v4400_v15, %v4404_v59  ;;  %v4452_v26 = vld [vmem:[#allocation11 + $0x7a8] sm:$0xff]  ;;  %v946_v15 = vrot.slane %v10616_v42, %v10542_v43 }
 0x38b   :  { %7529 = vmatpush1.bf16.msra.mxu1 %v9361_v22  ;;  %7366 = vmatprep.subr.bf16.mxu0 %v9368_v46  ;;  %v4407_v22 = vld [vmem:[#allocation11 + $0x640] sm:$0xff] }
 0x38c   :  { %7530 = vmatprep.subr.bf16.mxu1 %v9370_v3  ;;  %v4411_v46 = vld [vmem:[#allocation11 + $0x660] sm:$0xff]  ;;  %v4408_v3 = vld [vmem:[#allocation11 + $0x648] sm:$0xff] }
 0x38d   :  { %v9424_v29 = vcombine.high %v4407_v22, %v4411_v46  ;;  %v9423_v10 = vcombine.low %v4407_v22, %v4411_v46  ;;  %v9425_v11 = vcombine.low %v4408_v3, %v4412_v4  ;;  %v4456_v22 = vld [vmem:[#allocation11 + $0x7c8] sm:$0xff] }
 0x38e   :  { %7367 = vmatpush1.bf16.msra.mxu0 %v9367_v61  ;;  %v9426_v61 = vcombine.high %v4408_v3, %v4412_v4  ;;  %v4460_v46 = vld [vmem:[#allocation11 + $0x7e8] sm:$0xff]  ;;  %v9891_v4 = vadd.f32 %v10610_v20, %v946_v15  ;;  %v4471_v20 = vld [vmem:[#allocation11 + $0x840] sm:$0xff] }
 0x38f   :  { %7531 = vmatpush1.bf16.msra.mxu1 %v9369_v8  ;;  %7368 = vmatprep.subr.bf16.mxu0 %v9376_v62  ;;  %v4415_v8 = vld [vmem:[#allocation11 + $0x680] sm:$0xff]  ;;  %v9474_v42 = vcombine.high %v4456_v22, %v4460_v46 }
 0x390   :  { %7532 = vmatprep.subr.bf16.mxu1 %v9378_v9  ;;  %v4419_v62 = vld [vmem:[#allocation11 + $0x6a0] sm:$0xff]  ;;  %v4416_v9 = vld [vmem:[#allocation11 + $0x688] sm:$0xff] }
 0x391   :  { %v9432_v12 = vcombine.high %v4415_v8, %v4419_v62  ;;  %v9431_v21 = vcombine.low %v4415_v8, %v4419_v62  ;;  %v9433_v23 = vcombine.low %v4416_v9, %v4420_v24  ;;  %v4464_v8 = vld [vmem:[#allocation11 + $0x808] sm:$0xff] }
 0x392   :  { %7369 = vmatpush1.bf16.msra.mxu0 %v9375_v14  ;;  %v9434_v14 = vcombine.high %v4416_v9, %v4420_v24  ;;  %v4468_v62 = vld [vmem:[#allocation11 + $0x828] sm:$0xff]  ;;  %v4193_v24 = vmax.f32 %v9891_v4, 0.0 }
 0x393   :  { %7533 = vmatpush1.bf16.msra.mxu1 %v9377_v16  ;;  %7370 = vmatprep.subr.bf16.mxu0 %v9384_v50  ;;  %v4423_v16 = vld [vmem:[#allocation11 + $0x6c0] sm:$0xff] }
 0x394   :  { %7534 = vmatprep.subr.bf16.mxu1 %v9386_v18  ;;  %v4427_v50 = vld [vmem:[#allocation11 + $0x6e0] sm:$0xff]  ;;  %v4424_v18 = vld [vmem:[#allocation11 + $0x6c8] sm:$0xff] }
 0x395   :  { %v9440_v32 = vcombine.high %v4423_v16, %v4427_v50  ;;  %v9439_v27 = vcombine.low %v4423_v16, %v4427_v50  ;;  %v9441_v35 = vcombine.low %v4424_v18, %v4428_v38  ;;  %v4472_v16 = vld [vmem:[#allocation11 + $0x848] sm:$0xff] }
 0x396   :  { %7371 = vmatpush1.bf16.msra.mxu0 %v9383_v53  ;;  %v9442_v53 = vcombine.high %v4424_v18, %v4428_v38  ;;  %v4476_v50 = vld [vmem:[#allocation11 + $0x868] sm:$0xff]  ;;  %v10644_v38 = vpack.c.bf16 %v4193_v24, %v4193_v24  ;;  %v4519_v24 = vld [vmem:[#allocation11 + $0x9c0] sm:$0xff] }
 0x397   :  { %7535 = vmatpush1.bf16.msra.mxu1 %v9385_v33  ;;  %7372 = vmatprep.subr.bf16.mxu0 %v9392_v63  ;;  %v4431_v33 = vld [vmem:[#allocation11 + $0x700] sm:$0xff] }
 0x398   :  { %7536 = vmatprep.subr.bf16.mxu1 %v9394_v34  ;;  %v4435_v63 = vld [vmem:[#allocation11 + $0x720] sm:$0xff]  ;;  %v4432_v34 = vld [vmem:[#allocation11 + $0x708] sm:$0xff] }
 0x399   :  { %v9448_v41 = vcombine.high %v4431_v33, %v4435_v63  ;;  %v9447_v19 = vcombine.low %v4431_v33, %v4435_v63  ;;  %v9449_v47 = vcombine.low %v4432_v34, %v4436_v5  ;;  %v4483_v33 = vld [vmem:[#allocation11 + $0x8a0] sm:$0xff]  ;;  %v4480_v63 = vld [vmem:[#allocation11 + $0x888] sm:$0xff] }
 0x39a   :  { %7373 = vmatpush1.bf16.msra.mxu0 %v9391_v36  ;;  %v9450_v36 = vcombine.high %v4432_v34, %v4436_v5  ;;  %v4484_v34 = vld [vmem:[#allocation11 + $0x8a8] sm:$0xff] }
 0x39b   :  { %7537 = vmatpush1.bf16.msra.mxu1 %v9393_v37  ;;  %7374 = vmatprep.subr.bf16.mxu0 %v9400_v39  ;;  %v4439_v37 = vld [vmem:[#allocation11 + $0x740] sm:$0xff] }
 0x39c   :  { %7538 = vmatprep.subr.bf16.mxu1 %v9402_v44  ;;  %v4443_v39 = vld [vmem:[#allocation11 + $0x760] sm:$0xff]  ;;  %v4440_v44 = vld [vmem:[#allocation11 + $0x748] sm:$0xff] }
 0x39d   :  { %v9456_v48 = vcombine.high %v4439_v37, %v4443_v39  ;;  %v9455_v58 = vcombine.low %v4439_v37, %v4443_v39  ;;  %v9457_v59 = vcombine.low %v4440_v44, %v4444_v45  ;;  %v4491_v37 = vld [vmem:[#allocation11 + $0x8e0] sm:$0xff]  ;;  %v4488_v39 = vld [vmem:[#allocation11 + $0x8c8] sm:$0xff] }
 0x39e   :  { %7375 = vmatpush1.bf16.msra.mxu0 %v9399_v49  ;;  %v9458_v49 = vcombine.high %v4440_v44, %v4444_v45  ;;  %v4492_v44 = vld [vmem:[#allocation11 + $0x8e8] sm:$0xff] }
 0x39f   :  { %7539 = vmatpush1.bf16.msra.mxu1 %v9401_v51  ;;  %7376 = vmatprep.subr.bf16.mxu0 %v9408_v52  ;;  %v4447_v51 = vld [vmem:[#allocation11 + $0x780] sm:$0xff] }
 0x3a0   :  { %7540 = vmatprep.subr.bf16.mxu1 %v9410_v55  ;;  %v4451_v52 = vld [vmem:[#allocation11 + $0x7a0] sm:$0xff]  ;;  %v4448_v55 = vld [vmem:[#allocation11 + $0x788] sm:$0xff] }
 0x3a1   :  { %v9463_v3 = vcombine.low %v4447_v51, %v4451_v52 }
 0x3a2   :  { %7377 = vmatpush1.bf16.msra.mxu0 %v9407_v0  ;;  %v9464_v0 = vcombine.high %v4447_v51, %v4451_v52  ;;  %v4499_v51 = vld [vmem:[#allocation11 + $0x920] sm:$0xff]  ;;  %v4496_v52 = vld [vmem:[#allocation11 + $0x908] sm:$0xff] }
 0x3a3   :  { %7541 = vmatpush1.bf16.msra.mxu1 %v9409_v1  ;;  %7378 = vmatprep.subr.bf16.mxu0 %v9416_v2  ;;  %v9466_v1 = vcombine.high %v4448_v55, %v4452_v26  ;;  %v4455_v2 = vld [vmem:[#allocation11 + $0x7c0] sm:$0xff] }
 0x3a4   :  { %7542 = vmatprep.subr.bf16.mxu1 %v9418_v54  ;;  %v4459_v54 = vld [vmem:[#allocation11 + $0x7e0] sm:$0xff] }
 0x3a5   :  { %v9471_v9 = vcombine.low %v4455_v2, %v4459_v54 }
 0x3a6   :  { %7379 = vmatpush1.bf16.msra.mxu0 %v9415_v6  ;;  %v9465_v6 = vcombine.low %v4448_v55, %v4452_v26  ;;  %v4500_v55 = vld [vmem:[#allocation11 + $0x928] sm:$0xff] }
 0x3a7   :  { %7543 = vmatpush1.bf16.msra.mxu1 %v9417_v7  ;;  %7380 = vmatprep.subr.bf16.mxu0 %v9424_v29  ;;  %v9472_v7 = vcombine.high %v4455_v2, %v4459_v54  ;;  %v4463_v29 = vld [vmem:[#allocation11 + $0x800] sm:$0xff]  ;;  %v4504_v2 = vld [vmem:[#allocation11 + $0x948] sm:$0xff] }
 0x3a8   :  { %7544 = vmatprep.subr.bf16.mxu1 %v9426_v61  ;;  %v4467_v61 = vld [vmem:[#allocation11 + $0x820] sm:$0xff]  ;;  %v4508_v54 = vld [vmem:[#allocation11 + $0x968] sm:$0xff] }
 0x3a9   :  { %v9479_v18 = vcombine.low %v4463_v29, %v4467_v61  ;;  %v9522_v4 = vcombine.high %v4504_v2, %v4508_v54 }
 0x3aa   :  { %7381 = vmatpush1.bf16.msra.mxu0 %v9423_v10  ;;  %v9473_v10 = vcombine.low %v4456_v22, %v4460_v46  ;;  %v9513_v46 = vcombine.low %v4496_v52, %v4500_v55 }
 0x3ab   :  { %7545 = vmatpush1.bf16.msra.mxu1 %v9425_v11  ;;  %7382 = vmatprep.subr.bf16.mxu0 %v9432_v12  ;;  %v9480_v11 = vcombine.high %v4463_v29, %v4467_v61  ;;  %v9482_v12 = vcombine.high %v4464_v8, %v4468_v62  ;;  %v4516_v29 = vld [vmem:[#allocation11 + $0x9a8] sm:$0xff] }
 0x3ac   :  { %7546 = vmatprep.subr.bf16.mxu1 %v9434_v14  ;;  %v4475_v14 = vld [vmem:[#allocation11 + $0x860] sm:$0xff] }
 0x3ad   :  { %v9487_v5 = vcombine.low %v4471_v20, %v4475_v14 }
 0x3ae   :  { %7383 = vmatpush1.bf16.msra.mxu0 %v9431_v21  ;;  %v9481_v21 = vcombine.low %v4464_v8, %v4468_v62  ;;  %v9521_v8 = vcombine.low %v4504_v2, %v4508_v54 }
 0x3af   :  { %7547 = vmatpush1.bf16.msra.mxu1 %v9433_v23  ;;  %7384 = vmatprep.subr.bf16.mxu0 %v9440_v32  ;;  %v9488_v23 = vcombine.high %v4471_v20, %v4475_v14  ;;  %v9490_v32 = vcombine.high %v4472_v16, %v4476_v50 }
 0x3b0   :  { %7548 = vmatprep.subr.bf16.mxu1 %v9442_v53  ;;  %v4479_v53 = vld [vmem:[#allocation11 + $0x880] sm:$0xff] }
 0x3b1   :  { %v9495_v45 = vcombine.low %v4479_v53, %v4483_v33 }
 0x3b2   :  { %7385 = vmatpush1.bf16.msra.mxu0 %v9439_v27  ;;  %v9489_v27 = vcombine.low %v4472_v16, %v4476_v50 }
 0x3b3   :  { %7549 = vmatpush1.bf16.msra.mxu1 %v9441_v35  ;;  %7386 = vmatprep.subr.bf16.mxu0 %v9448_v41  ;;  %v9496_v35 = vcombine.high %v4479_v53, %v4483_v33  ;;  %v9498_v41 = vcombine.high %v4480_v63, %v4484_v34 }
 0x3b4   :  { %7550 = vmatprep.subr.bf16.mxu1 %v9450_v36  ;;  %v4487_v36 = vld [vmem:[#allocation11 + $0x8c0] sm:$0xff] }
 0x3b5   :  { %v9503_v26 = vcombine.low %v4487_v36, %v4491_v37 }
 0x3b6   :  { %7387 = vmatpush1.bf16.msra.mxu0 %v9447_v19  ;;  %v9497_v19 = vcombine.low %v4480_v63, %v4484_v34 }
 0x3b7   :  { %7551 = vmatpush1.bf16.msra.mxu1 %v9449_v47  ;;  %7388 = vmatprep.subr.bf16.mxu0 %v9456_v48  ;;  %v9504_v47 = vcombine.high %v4487_v36, %v4491_v37  ;;  %v9506_v48 = vcombine.high %v4488_v39, %v4492_v44 }
 0x3b8   :  { %7552 = vmatprep.subr.bf16.mxu1 %v9458_v49  ;;  %v4495_v49 = vld [vmem:[#allocation11 + $0x900] sm:$0xff] }
 0x3b9   :  { %v9512_v15 = vcombine.high %v4495_v49, %v4499_v51  ;;  %v9511_v22 = vcombine.low %v4495_v49, %v4499_v51 }
 0x3ba   :  { %7389 = vmatpush1.bf16.msra.mxu0 %v9455_v58  ;;  %v9505_v58 = vcombine.low %v4488_v39, %v4492_v44 }
 0x3bb   :  { %7553 = vmatpush1.bf16.msra.mxu1 %v9457_v59  ;;  %7390 = vmatprep.subr.bf16.mxu0 %v9464_v0  ;;  %v9514_v59 = vcombine.high %v4496_v52, %v4500_v55  ;;  %v4503_v0 = vld [vmem:[#allocation11 + $0x940] sm:$0xff] }
 0x3bc   :  { %7554 = vmatprep.subr.bf16.mxu1 %v9466_v1  ;;  %v4507_v1 = vld [vmem:[#allocation11 + $0x960] sm:$0xff] }
 0x3bd   :  { %v9519_v61 = vcombine.low %v4503_v0, %v4507_v1 }
 0x3be   :  { %7391 = vmatpush1.bf16.msra.mxu0 %v9463_v3  ;;  %v9520_v3 = vcombine.high %v4503_v0, %v4507_v1 }
 0x3bf   :  { %7555 = vmatpush1.bf16.msra.mxu1 %v9465_v6  ;;  %7392 = vmatprep.subr.bf16.mxu0 %v9472_v7  ;;  %v4511_v6 = vld [vmem:[#allocation11 + $0x980] sm:$0xff] }
 0x3c0   :  { %7556 = vmatprep.subr.bf16.mxu1 %v9474_v42  ;;  %v4515_v7 = vld [vmem:[#allocation11 + $0x9a0] sm:$0xff]  ;;  %v4512_v42 = vld [vmem:[#allocation11 + $0x988] sm:$0xff] }
 0x3c1   :  { %v9528_v62 = vcombine.high %v4511_v6, %v4515_v7  ;;  %v9527_v20 = vcombine.low %v4511_v6, %v4515_v7  ;;  %v9529_v14 = vcombine.low %v4512_v42, %v4516_v29 }
 0x3c2   :  { %7393 = vmatpush1.bf16.msra.mxu0 %v9471_v9  ;;  %v9530_v9 = vcombine.high %v4512_v42, %v4516_v29 }
 0x3c3   :  { %7557 = vmatpush1.bf16.msra.mxu1 %v9473_v10  ;;  %7403 = vmatprep.subr.bf16.mxu0 %v9480_v11  ;;  %v4523_v10 = vld [vmem:[#allocation11 + $0x9e0] sm:$0xff]  ;;  %v4520_v11 = vld [vmem:[#allocation11 + $0x9c8] sm:$0xff] }
 0x3c4   :  { %7567 = vmatprep.subr.bf16.mxu1 %v9482_v12  ;;  %v4524_v12 = vld [vmem:[#allocation11 + $0x9e8] sm:$0xff]  ;;  %v9536_v16 = vcombine.high %v4519_v24, %v4523_v10  ;;  %v9535_v53 = vcombine.low %v4519_v24, %v4523_v10 }
 0x3c5   :  { %7395 = vmatmul.mubr.bf16.vlgmr.msra.gmra.mrb[16].mxu0 %v10644_v38  ;;  %v9538_v50 = vcombine.high %v4520_v11, %v4524_v12  ;;  %v9537_v33 = vcombine.low %v4520_v11, %v4524_v12 }
 0x3c6   :  { %7559 = vmatmul.mubr.bf16.vlgmr.msra.gmra.mrb[16].mxu1 %v10644_v38  ;;  %7404 = vmatpush1.bf16.msra.mxu0 %v9479_v18  ;;  %v4527_v18 = vld [vmem:[#allocation11 + $0xa00] sm:$0xff] }
 0x3c7   :  { %7568 = vmatpush1.bf16.msra.mxu1 %v9481_v21  ;;  %7405 = vmatprep.subr.bf16.mxu0 %v9488_v23  ;;  %v4531_v21 = vld [vmem:[#allocation11 + $0xa20] sm:$0xff]  ;;  %v4528_v23 = vld [vmem:[#allocation11 + $0xa08] sm:$0xff] }
 0x3c8   :  { %7569 = vmatprep.subr.bf16.mxu1 %v9490_v32  ;;  %v4532_v32 = vld [vmem:[#allocation11 + $0xa28] sm:$0xff]  ;;  %v9544_v63 = vcombine.high %v4527_v18, %v4531_v21  ;;  %v9543_v36 = vcombine.low %v4527_v18, %v4531_v21 }
 0x3c9   :  { %v9546_v34 = vcombine.high %v4528_v23, %v4532_v32  ;;  %v9545_v37 = vcombine.low %v4528_v23, %v4532_v32 }
 0x3ca   :  { %7406 = vmatpush1.bf16.msra.mxu0 %v9487_v5  ;;  %v4535_v5 = vld [vmem:[#allocation11 + $0xa40] sm:$0xff] }
 0x3cb   :  { %7570 = vmatpush1.bf16.msra.mxu1 %v9489_v27  ;;  %7407 = vmatprep.subr.bf16.mxu0 %v9496_v35  ;;  %v4539_v27 = vld [vmem:[#allocation11 + $0xa60] sm:$0xff]  ;;  %v4536_v35 = vld [vmem:[#allocation11 + $0xa48] sm:$0xff] }
 0x3cc   :  { %7571 = vmatprep.subr.bf16.mxu1 %v9498_v41  ;;  %v4540_v41 = vld [vmem:[#allocation11 + $0xa68] sm:$0xff]  ;;  %v9552_v39 = vcombine.high %v4535_v5, %v4539_v27  ;;  %v9551_v49 = vcombine.low %v4535_v5, %v4539_v27 }
 0x3cd   :  { %v9554_v44 = vcombine.high %v4536_v35, %v4540_v41  ;;  %v9553_v51 = vcombine.low %v4536_v35, %v4540_v41 }
 0x3ce   :  { %7408 = vmatpush1.bf16.msra.mxu0 %v9495_v45  ;;  %v4543_v45 = vld [vmem:[#allocation11 + $0xa80] sm:$0xff] }
 0x3cf   :  { %7572 = vmatpush1.bf16.msra.mxu1 %v9497_v19  ;;  %7409 = vmatprep.subr.bf16.mxu0 %v9504_v47  ;;  %v4547_v19 = vld [vmem:[#allocation11 + $0xaa0] sm:$0xff]  ;;  %v4544_v47 = vld [vmem:[#allocation11 + $0xa88] sm:$0xff] }
 0x3d0   :  { %7573 = vmatprep.subr.bf16.mxu1 %v9506_v48  ;;  %v4548_v48 = vld [vmem:[#allocation11 + $0xaa8] sm:$0xff]  ;;  %v9560_v52 = vcombine.high %v4543_v45, %v4547_v19  ;;  %v9559_v0 = vcombine.low %v4543_v45, %v4547_v19 }
 0x3d1   :  { %v9562_v55 = vcombine.high %v4544_v47, %v4548_v48  ;;  %v9561_v1 = vcombine.low %v4544_v47, %v4548_v48 }
 0x3d2   :  { %7410 = vmatpush1.bf16.msra.mxu0 %v9503_v26  ;;  %v4551_v26 = vld [vmem:[#allocation11 + $0xac0] sm:$0xff] }
 0x3d3   :  { %7574 = vmatpush1.bf16.msra.mxu1 %v9505_v58  ;;  %7411 = vmatprep.subr.bf16.mxu0 %v9512_v15  ;;  %v4555_v58 = vld [vmem:[#allocation11 + $0xae0] sm:$0xff]  ;;  %v4552_v15 = vld [vmem:[#allocation11 + $0xac8] sm:$0xff] }
 0x3d4   :  { %7575 = vmatprep.subr.bf16.mxu1 %v9514_v59  ;;  %v4556_v59 = vld [vmem:[#allocation11 + $0xae8] sm:$0xff]  ;;  %v9568_v2 = vcombine.high %v4551_v26, %v4555_v58  ;;  %v9567_v6 = vcombine.low %v4551_v26, %v4555_v58 }
 0x3d5   :  { %v9570_v54 = vcombine.high %v4552_v15, %v4556_v59  ;;  %v9569_v7 = vcombine.low %v4552_v15, %v4556_v59 }
 0x3d6   :  { %7412 = vmatpush1.bf16.msra.mxu0 %v9511_v22  ;;  %v4559_v22 = vld [vmem:[#allocation11 + $0xb00] sm:$0xff] }
 0x3d7   :  { %7576 = vmatpush1.bf16.msra.mxu1 %v9513_v46  ;;  %7413 = vmatprep.subr.bf16.mxu0 %v9520_v3  ;;  %v4563_v46 = vld [vmem:[#allocation11 + $0xb20] sm:$0xff]  ;;  %v4560_v3 = vld [vmem:[#allocation11 + $0xb08] sm:$0xff] }
 0x3d8   :  { %7577 = vmatprep.subr.bf16.mxu1 %v9522_v4  ;;  %v4564_v4 = vld [vmem:[#allocation11 + $0xb28] sm:$0xff]  ;;  %v9576_v42 = vcombine.high %v4559_v22, %v4563_v46  ;;  %v9575_v24 = vcombine.low %v4559_v22, %v4563_v46 }
 0x3d9   :  { %v9578_v29 = vcombine.high %v4560_v3, %v4564_v4  ;;  %v9577_v10 = vcombine.low %v4560_v3, %v4564_v4 }
 0x3da   :  { %7414 = vmatpush1.bf16.msra.mxu0 %v9519_v61  ;;  %v4567_v61 = vld [vmem:[#allocation11 + $0xb40] sm:$0xff] }
 0x3db   :  { %7578 = vmatpush1.bf16.msra.mxu1 %v9521_v8  ;;  %7415 = vmatprep.subr.bf16.mxu0 %v9528_v62  ;;  %v4571_v8 = vld [vmem:[#allocation11 + $0xb60] sm:$0xff]  ;;  %v4568_v62 = vld [vmem:[#allocation11 + $0xb48] sm:$0xff] }
 0x3dc   :  { %7579 = vmatprep.subr.bf16.mxu1 %v9530_v9  ;;  %v4572_v9 = vld [vmem:[#allocation11 + $0xb68] sm:$0xff]  ;;  %v9584_v11 = vcombine.high %v4567_v61, %v4571_v8  ;;  %v9583_v18 = vcombine.low %v4567_v61, %v4571_v8 }
 0x3dd   :  { %v9586_v12 = vcombine.high %v4568_v62, %v4572_v9  ;;  %v9585_v21 = vcombine.low %v4568_v62, %v4572_v9  ;;  %v4600_v61 = vld [vmem:[#allocation11 + $0xc48] sm:$0xff] }
 0x3de   :  { %7416 = vmatpush1.bf16.msra.mxu0 %v9527_v20  ;;  %v4575_v20 = vld [vmem:[#allocation11 + $0xb80] sm:$0xff]  ;;  %v4604_v8 = vld [vmem:[#allocation11 + $0xc68] sm:$0xff] }
 0x3df   :  { %7580 = vmatpush1.bf16.msra.mxu1 %v9529_v14  ;;  %7417 = vmatprep.subr.bf16.mxu0 %v9536_v16  ;;  %v4579_v14 = vld [vmem:[#allocation11 + $0xba0] sm:$0xff]  ;;  %v4576_v16 = vld [vmem:[#allocation11 + $0xb88] sm:$0xff] }
 0x3e0   :  { %7581 = vmatprep.subr.bf16.mxu1 %v9538_v50  ;;  %v4580_v50 = vld [vmem:[#allocation11 + $0xba8] sm:$0xff]  ;;  %v9592_v23 = vcombine.high %v4575_v20, %v4579_v14  ;;  %v9591_v5 = vcombine.low %v4575_v20, %v4579_v14  ;;  %v9618_v20 = vcombine.high %v4600_v61, %v4604_v8  ;;  %v4611_v14 = vld [vmem:[#allocation11 + $0xca0] sm:$0xff] }
 0x3e1   :  { %v9594_v32 = vcombine.high %v4576_v16, %v4580_v50  ;;  %v9593_v27 = vcombine.low %v4576_v16, %v4580_v50  ;;  %v4608_v16 = vld [vmem:[#allocation11 + $0xc88] sm:$0xff] }
 0x3e2   :  { %7418 = vmatpush1.bf16.msra.mxu0 %v9535_v53  ;;  %v4583_v53 = vld [vmem:[#allocation11 + $0xbc0] sm:$0xff]  ;;  %v4612_v50 = vld [vmem:[#allocation11 + $0xca8] sm:$0xff] }
 0x3e3   :  { %7582 = vmatpush1.bf16.msra.mxu1 %v9537_v33  ;;  %7419 = vmatprep.subr.bf16.mxu0 %v9544_v63  ;;  %v4587_v33 = vld [vmem:[#allocation11 + $0xbe0] sm:$0xff]  ;;  %v4584_v63 = vld [vmem:[#allocation11 + $0xbc8] sm:$0xff] }
 0x3e4   :  { %7583 = vmatprep.subr.bf16.mxu1 %v9546_v34  ;;  %v4588_v34 = vld [vmem:[#allocation11 + $0xbe8] sm:$0xff]  ;;  %v9600_v35 = vcombine.high %v4583_v53, %v4587_v33  ;;  %v9599_v45 = vcombine.low %v4583_v53, %v4587_v33  ;;  %v9626_v53 = vcombine.high %v4608_v16, %v4612_v50  ;;  %v4615_v33 = vld [vmem:[#allocation11 + $0xcc0] sm:$0xff] }
 0x3e5   :  { %v9602_v41 = vcombine.high %v4584_v63, %v4588_v34  ;;  %v9601_v19 = vcombine.low %v4584_v63, %v4588_v34  ;;  %v4619_v63 = vld [vmem:[#allocation11 + $0xce0] sm:$0xff]  ;;  %v4616_v34 = vld [vmem:[#allocation11 + $0xcc8] sm:$0xff] }
 0x3e6   :  { %7420 = vmatpush1.bf16.msra.mxu0 %v9543_v36  ;;  %v4591_v36 = vld [vmem:[#allocation11 + $0xc00] sm:$0xff] }
 0x3e7   :  { %7584 = vmatpush1.bf16.msra.mxu1 %v9545_v37  ;;  %7421 = vmatprep.subr.bf16.mxu0 %v9552_v39  ;;  %v4595_v37 = vld [vmem:[#allocation11 + $0xc20] sm:$0xff]  ;;  %v4592_v39 = vld [vmem:[#allocation11 + $0xc08] sm:$0xff] }
 0x3e8   :  { %7585 = vmatprep.subr.bf16.mxu1 %v9554_v44  ;;  %v4596_v44 = vld [vmem:[#allocation11 + $0xc28] sm:$0xff]  ;;  %v9608_v47 = vcombine.high %v4591_v36, %v4595_v37  ;;  %v9607_v9 = vcombine.low %v4591_v36, %v4595_v37  ;;  %v4623_v37 = vld [vmem:[#allocation11 + $0xd00] sm:$0xff] }
 0x3e9   :  { %v9610_v48 = vcombine.high %v4592_v39, %v4596_v44 }
 0x3ea   :  { %7422 = vmatpush1.bf16.msra.mxu0 %v9551_v49  ;;  %v10648_v49 = vld [vmem:[#allocation10] sm:$0xff] }
 0x3eb   :  { %7586 = vmatpush1.bf16.msra.mxu1 %v9553_v51  ;;  %7423 = vmatprep.subr.bf16.mxu0 %v9560_v52  ;;  %v954_v51 = vrot.slane %v10648_v49, %v10566_v25  ;;  %v958_v52 = vrot.slane %v10648_v49, %v10549_v56 }
 0x3ec   :  { %7587 = vmatprep.subr.bf16.mxu1 %v9562_v55  ;;  %v966_v55 = vrot.slane %v10648_v49, %v10569_v40 }
 0x3ee   :  { %7424 = vmatpush1.bf16.msra.mxu0 %v9559_v0 }
 0x3ef   :  { %7588 = vmatpush1.bf16.msra.mxu1 %v9561_v1  ;;  %7425 = vmatprep.subr.bf16.mxu0 %v9568_v2 }
 0x3f0   :  { %7589 = vmatprep.subr.bf16.mxu1 %v9570_v54 }
 0x3f2   :  { %7426 = vmatpush1.bf16.msra.mxu0 %v9567_v6 }
 0x3f3   :  { %7590 = vmatpush1.bf16.msra.mxu1 %v9569_v7  ;;  %7427 = vmatprep.subr.bf16.mxu0 %v9576_v42  ;;  %v4599_v7 = vld [vmem:[#allocation11 + $0xc40] sm:$0xff] }
 0x3f4   :  { %7591 = vmatprep.subr.bf16.mxu1 %v9578_v29  ;;  %v4603_v29 = vld [vmem:[#allocation11 + $0xc60] sm:$0xff] }
 0x3f6   :  { %7428 = vmatpush1.bf16.msra.mxu0 %v9575_v24  ;;  %v9609_v24 = vcombine.low %v4592_v39, %v4596_v44  ;;  %v4627_v39 = vld [vmem:[#allocation11 + $0xd20] sm:$0xff]  ;;  %v4624_v44 = vld [vmem:[#allocation11 + $0xd08] sm:$0xff] }
 0x3f7   :  { %7592 = vmatpush1.bf16.msra.mxu1 %v9577_v10  ;;  %7429 = vmatprep.subr.bf16.mxu0 %v9584_v11  ;;  %v4607_v11 = vld [vmem:[#allocation11 + $0xc80] sm:$0xff] }
 0x3f8   :  { %7593 = vmatprep.subr.bf16.mxu1 %v9586_v12  ;;  %v9616_v12 = vcombine.high %v4599_v7, %v4603_v29 }
 0x3fa   :  { %7430 = vmatpush1.bf16.msra.mxu0 %v9583_v18 }
 0x3fb   :  { %7594 = vmatpush1.bf16.msra.mxu1 %v9585_v21  ;;  %7431 = vmatprep.subr.bf16.mxu0 %v9592_v23  ;;  %v9615_v21 = vcombine.low %v4599_v7, %v4603_v29  ;;  %v9617_v23 = vcombine.low %v4600_v61, %v4604_v8  ;;  %v4647_v29 = vld [vmem:[#allocation11 + $0xdc0] sm:$0xff]  ;;  %v4648_v8 = vld [vmem:[#allocation11 + $0xdc8] sm:$0xff] }
 0x3fc   :  { %7595 = vmatprep.subr.bf16.mxu1 %v9594_v32  ;;  %v9624_v32 = vcombine.high %v4607_v11, %v4611_v14  ;;  %v4651_v61 = vld [vmem:[#allocation11 + $0xde0] sm:$0xff] }
 0x3fe   :  { %7432 = vmatpush1.bf16.msra.mxu0 %v9591_v5  ;;  %v4620_v5 = vld [vmem:[#allocation11 + $0xce8] sm:$0xff] }
 0x3ff   :  { %7596 = vmatpush1.bf16.msra.mxu1 %v9593_v27  ;;  %7433 = vmatprep.subr.bf16.mxu0 %v9600_v35  ;;  %v9623_v27 = vcombine.low %v4607_v11, %v4611_v14  ;;  %v9625_v35 = vcombine.low %v4608_v16, %v4612_v50  ;;  %v9634_v36 = vcombine.high %v4616_v34, %v4620_v5  ;;  %v4655_v14 = vld [vmem:[#allocation11 + $0xe00] sm:$0xff]  ;;  %v4656_v50 = vld [vmem:[#allocation11 + $0xe08] sm:$0xff] }
 0x400   :  { %7597 = vmatprep.subr.bf16.mxu1 %v9602_v41  ;;  %v9632_v41 = vcombine.high %v4615_v33, %v4619_v63  ;;  %v4659_v16 = vld [vmem:[#allocation11 + $0xe20] sm:$0xff] }
 0x402   :  { %7434 = vmatpush1.bf16.msra.mxu0 %v9599_v45  ;;  %v4628_v45 = vld [vmem:[#allocation11 + $0xd28] sm:$0xff] }
 0x403   :  { %7598 = vmatpush1.bf16.msra.mxu1 %v9601_v19  ;;  %7444 = vmatprep.subr.bf16.mxu0 %v9608_v47  ;;  %v9631_v19 = vcombine.low %v4615_v33, %v4619_v63  ;;  %v9633_v47 = vcombine.low %v4616_v34, %v4620_v5  ;;  %v4663_v63 = vld [vmem:[#allocation11 + $0xe40] sm:$0xff]  ;;  %v4664_v5 = vld [vmem:[#allocation11 + $0xe48] sm:$0xff] }
 0x404   :  { %7608 = vmatprep.subr.bf16.mxu1 %v9610_v48  ;;  %v9640_v48 = vcombine.high %v4623_v37, %v4627_v39  ;;  %v4667_v34 = vld [vmem:[#allocation11 + $0xe60] sm:$0xff] }
 0x418   :  { %v4020_v26 = vpop.f32.mrb[12].mxu0 }
 0x419   :  { %v9893_v58 = vadd.f32 %v4020_v26, %v954_v51  ;;  %v10656_v15 = vpop.f32.mrb[12].mxu1  ;;  %v4022_v59 = vpop.f32.mrb[13].mxu0  ;;  %v9642_v51 = vcombine.high %v4624_v44, %v4628_v45  ;;  %v4632_v26 = vld [vmem:[#allocation11 + $0xd48] sm:$0xff] }
 0x41a   :  { %v9894_v0 = vadd.f32 %v4022_v59, %v958_v52  ;;  %v4186_v1 = vpop.f32.mrb[13].mxu1  ;;  %v4024_v2 = vpop.f32.mrb[14].mxu0  ;;  %v4631_v52 = vld [vmem:[#allocation11 + $0xd40] sm:$0xff]  ;;  %v9639_v59 = vcombine.low %v4623_v37, %v4627_v39 }
 0x41b   :  { %v4195_v54 = vmax.f32 %v9893_v58, 0.0  ;;  %v9896_v22 = vadd.f32 %v4186_v1, %v966_v55  ;;  %v4188_v46 = vpop.f32.mrb[14].mxu1  ;;  %v4025_v3 = vpop.f32.mrb[15].mxu0  ;;  %v4635_v55 = vld [vmem:[#allocation11 + $0xd60] sm:$0xff]  ;;  %v4636_v58 = vld [vmem:[#allocation11 + $0xd68] sm:$0xff] }
 0x41c   :  { %v4196_v4 = vmax.f32 %v9894_v0, 0.0  ;;  %v4189_v6 = vpop.f32.mrb[15].mxu1  ;;  %v9641_v0 = vcombine.low %v4624_v44, %v4628_v45  ;;  %v9648_v1 = vcombine.high %v4631_v52, %v4635_v55  ;;  %v9650_v2 = vcombine.high %v4632_v26, %v4636_v58  ;;  %v4640_v46 = vld [vmem:[#allocation11 + $0xd88] sm:$0xff]  ;;  %v4671_v39 = vld [vmem:[#allocation11 + $0xe80] sm:$0xff] }
 0x41d   :  { %v4198_v42 = vmax.f32 %v9896_v22, 0.0  ;;  %v10660_v10 = vpack.c.bf16 %v4195_v54, %v4195_v54  ;;  %v4639_v54 = vld [vmem:[#allocation11 + $0xd80] sm:$0xff]  ;;  %v4644_v3 = vld [vmem:[#allocation11 + $0xda8] sm:$0xff]  ;;  %v9649_v6 = vcombine.low %v4632_v26, %v4636_v58 }
 0x41e   :  { %v10658_v62 = vpack.c.bf16 %v4196_v4, %v4196_v4  ;;  %v4643_v22 = vld [vmem:[#allocation11 + $0xda0] sm:$0xff]  ;;  %v9647_v4 = vcombine.low %v4631_v52, %v4635_v55  ;;  %v9657_v11 = vcombine.low %v4640_v46, %v4644_v3  ;;  %v4672_v45 = vld [vmem:[#allocation11 + $0xe88] sm:$0xff] }
 0x41f   :  { %v10664_v18 = vpack.c.bf16 %v4198_v42, %v4198_v42  ;;  %v9656_v7 = vcombine.high %v4639_v54, %v4643_v22  ;;  %v9658_v42 = vcombine.high %v4640_v46, %v4644_v3  ;;  %v4675_v44 = vld [vmem:[#allocation11 + $0xea0] sm:$0xff]  ;;  %v4680_v58 = vld [vmem:[#allocation11 + $0xec8] sm:$0xff] }
 0x420   :  { %7435 = vmatprep.mubr.bf16.mxu0 %v10658_v62  ;;  %7599 = vmatprep.mubr.bf16.mxu1 %v10658_v62  ;;  %v4679_v55 = vld [vmem:[#allocation11 + $0xec0] sm:$0xff]  ;;  %v4688_v3 = vld [vmem:[#allocation11 + $0xf08] sm:$0xff] }
 0x421   :  { %7436 = vmatmul.mubr.bf16.vlgmr.msra.gmra.mrb[16].mxu0 %v10660_v10  ;;  %7600 = vmatmul.mubr.bf16.vlgmr.msra.gmra.mrb[16].mxu1 %v10660_v10  ;;  %v4683_v26 = vld [vmem:[#allocation11 + $0xee0] sm:$0xff] }
 0x422   :  { %7445 = vmatpush1.bf16.msra.mxu0 %v9607_v9  ;;  %7609 = vmatpush1.bf16.msra.mxu1 %v9609_v24  ;;  %v4652_v9 = vld [vmem:[#allocation11 + $0xde8] sm:$0xff]  ;;  %v9655_v24 = vcombine.low %v4639_v54, %v4643_v22  ;;  %v4687_v22 = vld [vmem:[#allocation11 + $0xf00] sm:$0xff] }
 0x423   :  { %7476 = vmatprep.mubr.bf16.mxu0 %v10664_v18  ;;  %7640 = vmatprep.mubr.bf16.mxu1 %v10664_v18  ;;  %v4691_v46 = vld [vmem:[#allocation11 + $0xf20] sm:$0xff] }
 0x424   :  { %7446 = vmatprep.subr.bf16.mxu0 %v9616_v12  ;;  %7610 = vmatprep.subr.bf16.mxu1 %v9618_v20  ;;  %v9664_v12 = vcombine.high %v4647_v29, %v4651_v61  ;;  %v9666_v20 = vcombine.high %v4648_v8, %v4652_v9 }
 0x426   :  { %7447 = vmatpush1.bf16.msra.mxu0 %v9615_v21  ;;  %7611 = vmatpush1.bf16.msra.mxu1 %v9617_v23  ;;  %v4660_v21 = vld [vmem:[#allocation11 + $0xe28] sm:$0xff]  ;;  %v9663_v23 = vcombine.low %v4647_v29, %v4651_v61  ;;  %v4695_v61 = vld [vmem:[#allocation11 + $0xf40] sm:$0xff] }
 0x427   :  { %7448 = vmatprep.subr.bf16.mxu0 %v9624_v32  ;;  %7612 = vmatprep.subr.bf16.mxu1 %v9626_v53  ;;  %v9665_v32 = vcombine.low %v4648_v8, %v4652_v9  ;;  %v9672_v53 = vcombine.high %v4655_v14, %v4659_v16  ;;  %v9674_v33 = vcombine.high %v4656_v50, %v4660_v21  ;;  %v4699_v8 = vld [vmem:[#allocation11 + $0xf60] sm:$0xff]  ;;  %v4696_v9 = vld [vmem:[#allocation11 + $0xf48] sm:$0xff] }
 0x42a   :  { %7449 = vmatpush1.bf16.msra.mxu0 %v9623_v27  ;;  %7613 = vmatpush1.bf16.msra.mxu1 %v9625_v35  ;;  %v4668_v27 = vld [vmem:[#allocation11 + $0xe68] sm:$0xff]  ;;  %v9671_v35 = vcombine.low %v4655_v14, %v4659_v16  ;;  %v4703_v16 = vld [vmem:[#allocation11 + $0xf80] sm:$0xff] }
 0x42b   :  { %7450 = vmatprep.subr.bf16.mxu0 %v9632_v41  ;;  %7614 = vmatprep.subr.bf16.mxu1 %v9634_v36  ;;  %v9673_v41 = vcombine.low %v4656_v50, %v4660_v21  ;;  %v9680_v36 = vcombine.high %v4663_v63, %v4667_v34  ;;  %v9682_v37 = vcombine.high %v4664_v5, %v4668_v27  ;;  %v4707_v50 = vld [vmem:[#allocation11 + $0xfa0] sm:$0xff]  ;;  %v4704_v21 = vld [vmem:[#allocation11 + $0xf88] sm:$0xff] }
 0x42e   :  { %7451 = vmatpush1.bf16.msra.mxu0 %v9631_v19  ;;  %7615 = vmatpush1.bf16.msra.mxu1 %v9633_v47  ;;  %v4676_v19 = vld [vmem:[#allocation11 + $0xea8] sm:$0xff]  ;;  %v9679_v47 = vcombine.low %v4663_v63, %v4667_v34  ;;  %v9720_v63 = vcombine.high %v4703_v16, %v4707_v50 }
 0x42f   :  { %7452 = vmatprep.subr.bf16.mxu0 %v9640_v48  ;;  %7616 = vmatprep.subr.bf16.mxu1 %v9642_v51  ;;  %v9681_v48 = vcombine.low %v4664_v5, %v4668_v27  ;;  %v9688_v51 = vcombine.high %v4671_v39, %v4675_v44  ;;  %v9690_v52 = vcombine.high %v4672_v45, %v4676_v19  ;;  %v4711_v5 = vld [vmem:[#allocation11 + $0xfc0] sm:$0xff] }
 0x430   :  { %v4715_v27 = vld [vmem:[#allocation11 + $0xfe0] sm:$0xff] }
 0x432   :  { %7453 = vmatpush1.bf16.msra.mxu0 %v9639_v59  ;;  %7617 = vmatpush1.bf16.msra.mxu1 %v9641_v0  ;;  %v4684_v59 = vld [vmem:[#allocation11 + $0xee8] sm:$0xff]  ;;  %v9687_v0 = vcombine.low %v4671_v39, %v4675_v44  ;;  %v9728_v44 = vcombine.high %v4711_v5, %v4715_v27 }
 0x433   :  { %7454 = vmatprep.subr.bf16.mxu0 %v9648_v1  ;;  %7618 = vmatprep.subr.bf16.mxu1 %v9650_v2  ;;  %v9689_v1 = vcombine.low %v4672_v45, %v4676_v19  ;;  %v9696_v2 = vcombine.high %v4679_v55, %v4683_v26  ;;  %v9698_v54 = vcombine.high %v4680_v58, %v4684_v59  ;;  %v4209_v19 = vld [vmem:[#allocation11 + $0x10] sm:$0xff] }
 0x436   :  { %7455 = vmatpush1.bf16.msra.mxu0 %v9647_v4  ;;  %7619 = vmatpush1.bf16.msra.mxu1 %v9649_v6  ;;  %v4692_v4 = vld [vmem:[#allocation11 + $0xf28] sm:$0xff]  ;;  %v9695_v6 = vcombine.low %v4679_v55, %v4683_v26 }
 0x437   :  { %7456 = vmatprep.subr.bf16.mxu0 %v9656_v7  ;;  %7620 = vmatprep.subr.bf16.mxu1 %v9658_v42  ;;  %v9697_v7 = vcombine.low %v4680_v58, %v4684_v59  ;;  %v9704_v42 = vcombine.high %v4687_v22, %v4691_v46  ;;  %v9706_v29 = vcombine.high %v4688_v3, %v4692_v4  ;;  %v4217_v59 = vld [vmem:[#allocation11 + $0x50] sm:$0xff] }
 0x43a   :  { %7457 = vmatpush1.bf16.msra.mxu0 %v9655_v24  ;;  %7621 = vmatpush1.bf16.msra.mxu1 %v9657_v11  ;;  %v4700_v24 = vld [vmem:[#allocation11 + $0xf68] sm:$0xff]  ;;  %v9703_v11 = vcombine.low %v4687_v22, %v4691_v46 }
 0x43b   :  { %7458 = vmatprep.subr.bf16.mxu0 %v9664_v12  ;;  %7622 = vmatprep.subr.bf16.mxu1 %v9666_v20  ;;  %v9705_v12 = vcombine.low %v4688_v3, %v4692_v4  ;;  %v9712_v20 = vcombine.high %v4695_v61, %v4699_v8  ;;  %v9714_v14 = vcombine.high %v4696_v9, %v4700_v24  ;;  %v4225_v4 = vld [vmem:[#allocation11 + $0x90] sm:$0xff] }
 0x43e   :  { %7459 = vmatpush1.bf16.msra.mxu0 %v9663_v23  ;;  %7623 = vmatpush1.bf16.msra.mxu1 %v9665_v32  ;;  %v4708_v23 = vld [vmem:[#allocation11 + $0xfa8] sm:$0xff]  ;;  %v9711_v32 = vcombine.low %v4695_v61, %v4699_v8 }
 0x43f   :  { %7460 = vmatprep.subr.bf16.mxu0 %v9672_v53  ;;  %7624 = vmatprep.subr.bf16.mxu1 %v9674_v33  ;;  %v9713_v53 = vcombine.low %v4696_v9, %v4700_v24  ;;  %v962_v33 = vrot.slane %v10648_v49, %v10586_v17  ;;  %v9722_v34 = vcombine.high %v4704_v21, %v4708_v23  ;;  %v4213_v49 = vld [vmem:[#allocation11 + $0x30] sm:$0xff] }
 0x440   :  { %v9228_v26 = vcombine.high %v4209_v19, %v4213_v49  ;;  %v4233_v24 = vld [vmem:[#allocation11 + $0xd0] sm:$0xff] }
 0x441   :  { %v9895_v39 = vadd.f32 %v10656_v15, %v962_v33  ;;  %v4218_v15 = vld [vmem:[#allocation11 + $0x58] sm:$0xff] }
 0x442   :  { %7461 = vmatpush1.bf16.msra.mxu0 %v9671_v35  ;;  %7625 = vmatpush1.bf16.msra.mxu1 %v9673_v41  ;;  %v4712_v35 = vld [vmem:[#allocation11 + $0xfc8] sm:$0xff] }
 0x443   :  { %7462 = vmatprep.subr.bf16.mxu0 %v9680_v36  ;;  %7626 = vmatprep.subr.bf16.mxu1 %v9682_v37  ;;  %v4716_v41 = vld [vmem:[#allocation11 + $0xfe8] sm:$0xff]  ;;  %v9719_v36 = vcombine.low %v4703_v16, %v4707_v50  ;;  %v9721_v37 = vcombine.low %v4704_v21, %v4708_v23  ;;  %v4197_v55 = vmax.f32 %v9895_v39, 0.0  ;;  %v4241_v23 = vld [vmem:[#allocation11 + $0x110] sm:$0xff] }
 0x444   :  { %v9730_v45 = vcombine.high %v4712_v35, %v4716_v41 }
 0x446   :  { %7463 = vmatpush1.bf16.msra.mxu0 %v9679_v47  ;;  %7627 = vmatpush1.bf16.msra.mxu1 %v9681_v48  ;;  %v4210_v47 = vld [vmem:[#allocation11 + $0x18] sm:$0xff] }
 0x447   :  { %7464 = vmatprep.subr.bf16.mxu0 %v9688_v51  ;;  %7628 = vmatprep.subr.bf16.mxu1 %v9690_v52  ;;  %v4214_v48 = vld [vmem:[#allocation11 + $0x38] sm:$0xff]  ;;  %v9727_v51 = vcombine.low %v4711_v5, %v4715_v27  ;;  %v9729_v52 = vcombine.low %v4712_v35, %v4716_v41  ;;  %v4249_v27 = vld [vmem:[#allocation11 + $0x150] sm:$0xff] }
 0x448   :  { %v9230_v58 = vcombine.high %v4210_v47, %v4214_v48  ;;  %v9229_v22 = vcombine.low %v4210_v47, %v4214_v48  ;;  %v4253_v35 = vld [vmem:[#allocation11 + $0x170] sm:$0xff]  ;;  %v4250_v41 = vld [vmem:[#allocation11 + $0x158] sm:$0xff] }
 0x449   :  { %v4258_v47 = vld [vmem:[#allocation11 + $0x198] sm:$0xff] }
 0x44a   :  { %7465 = vmatpush1.bf16.msra.mxu0 %v9687_v0  ;;  %7629 = vmatpush1.bf16.msra.mxu1 %v9689_v1  ;;  %v4221_v0 = vld [vmem:[#allocation11 + $0x70] sm:$0xff]  ;;  %v4222_v1 = vld [vmem:[#allocation11 + $0x78] sm:$0xff] }
 0x44b   :  { %7466 = vmatprep.subr.bf16.mxu0 %v9696_v2  ;;  %7630 = vmatprep.subr.bf16.mxu1 %v9698_v54  ;;  %v9227_v2 = vcombine.low %v4209_v19, %v4213_v49  ;;  %v10673_v54 = vpack.c.bf16 %v4197_v55, %v4197_v55  ;;  %v9236_v46 = vcombine.high %v4217_v59, %v4221_v0  ;;  %v4257_v19 = vld [vmem:[#allocation11 + $0x190] sm:$0xff]  ;;  %v4262_v48 = vld [vmem:[#allocation11 + $0x1b8] sm:$0xff] }
 0x44c   :  { %v9238_v3 = vcombine.high %v4218_v15, %v4222_v1  ;;  %v9237_v61 = vcombine.low %v4218_v15, %v4222_v1  ;;  %v4261_v49 = vld [vmem:[#allocation11 + $0x1b0] sm:$0xff]  ;;  %v4270_v15 = vld [vmem:[#allocation11 + $0x1f8] sm:$0xff] }
 0x44d   :  { %v9276_v55 = vcombine.high %v4257_v19, %v4261_v49  ;;  %v9275_v1 = vcombine.low %v4257_v19, %v4261_v49  ;;  %v4309_v19 = vld [vmem:[#allocation11 + $0x330] sm:$0xff]  ;;  %v4306_v49 = vld [vmem:[#allocation11 + $0x318] sm:$0xff] }
 0x44e   :  { %7467 = vmatpush1.bf16.msra.mxu0 %v9695_v6  ;;  %7631 = vmatpush1.bf16.msra.mxu1 %v9697_v7  ;;  %v4229_v6 = vld [vmem:[#allocation11 + $0xb0] sm:$0xff]  ;;  %v4226_v7 = vld [vmem:[#allocation11 + $0x98] sm:$0xff] }
 0x44f   :  { %7468 = vmatprep.subr.bf16.mxu0 %v9704_v42  ;;  %7632 = vmatprep.subr.bf16.mxu1 %v9706_v29  ;;  %v4230_v42 = vld [vmem:[#allocation11 + $0xb8] sm:$0xff]  ;;  %v9235_v29 = vcombine.low %v4217_v59, %v4221_v0  ;;  %v9244_v8 = vcombine.high %v4225_v4, %v4229_v6  ;;  %v4269_v59 = vld [vmem:[#allocation11 + $0x1f0] sm:$0xff] }
 0x450   :  { %v9246_v9 = vcombine.high %v4226_v7, %v4230_v42  ;;  %v9245_v16 = vcombine.low %v4226_v7, %v4230_v42  ;;  %v4266_v0 = vld [vmem:[#allocation11 + $0x1d8] sm:$0xff] }
 0x451   :  { %v4278_v7 = vld [vmem:[#allocation11 + $0x238] sm:$0xff] }
 0x452   :  { %7469 = vmatpush1.bf16.msra.mxu0 %v9703_v11  ;;  %7633 = vmatpush1.bf16.msra.mxu1 %v9705_v12  ;;  %v4237_v11 = vld [vmem:[#allocation11 + $0xf0] sm:$0xff]  ;;  %v4234_v12 = vld [vmem:[#allocation11 + $0xd8] sm:$0xff] }
 0x453   :  { %7470 = vmatprep.subr.bf16.mxu0 %v9712_v20  ;;  %7634 = vmatprep.subr.bf16.mxu1 %v9714_v14  ;;  %v4238_v20 = vld [vmem:[#allocation11 + $0xf8] sm:$0xff]  ;;  %v9243_v14 = vcombine.low %v4225_v4, %v4229_v6  ;;  %v9252_v50 = vcombine.high %v4233_v24, %v4237_v11  ;;  %v9251_v33 = vcombine.low %v4233_v24, %v4237_v11  ;;  %v4277_v4 = vld [vmem:[#allocation11 + $0x230] sm:$0xff] }
 0x454   :  { %v9254_v21 = vcombine.high %v4234_v12, %v4238_v20  ;;  %v4274_v6 = vld [vmem:[#allocation11 + $0x218] sm:$0xff]  ;;  %v4285_v24 = vld [vmem:[#allocation11 + $0x270] sm:$0xff] }
 0x455   :  { %v4282_v11 = vld [vmem:[#allocation11 + $0x258] sm:$0xff] }
 0x456   :  { %7471 = vmatpush1.bf16.msra.mxu0 %v9711_v32  ;;  %7635 = vmatpush1.bf16.msra.mxu1 %v9713_v53  ;;  %v4245_v32 = vld [vmem:[#allocation11 + $0x130] sm:$0xff]  ;;  %v4246_v53 = vld [vmem:[#allocation11 + $0x138] sm:$0xff] }
 0x457   :  { %7472 = vmatprep.subr.bf16.mxu0 %v9720_v63  ;;  %7636 = vmatprep.subr.bf16.mxu1 %v9722_v34  ;;  %v9253_v63 = vcombine.low %v4234_v12, %v4238_v20  ;;  %v9260_v34 = vcombine.high %v4241_v23, %v4245_v32  ;;  %v4286_v12 = vld [vmem:[#allocation11 + $0x278] sm:$0xff] }
 0x45a   :  { %7473 = vmatpush1.bf16.msra.mxu0 %v9719_v36  ;;  %7637 = vmatpush1.bf16.msra.mxu1 %v9721_v37  ;;  %v4254_v36 = vld [vmem:[#allocation11 + $0x178] sm:$0xff]  ;;  %v9259_v37 = vcombine.low %v4241_v23, %v4245_v32  ;;  %v4293_v23 = vld [vmem:[#allocation11 + $0x2b0] sm:$0xff] }
 0x45b   :  { %7474 = vmatprep.subr.bf16.mxu0 %v9728_v44  ;;  %7638 = vmatprep.subr.bf16.mxu1 %v9730_v45  ;;  %v9268_v44 = vcombine.high %v4249_v27, %v4253_v35  ;;  %v9270_v45 = vcombine.high %v4250_v41, %v4254_v36  ;;  %v4290_v32 = vld [vmem:[#allocation11 + $0x298] sm:$0xff] }
 0x45e   :  { %7475 = vmatpush1.bf16.msra.mxu0 %v9727_v51  ;;  %7639 = vmatpush1.bf16.msra.mxu1 %v9729_v52  ;;  %v9267_v51 = vcombine.low %v4249_v27, %v4253_v35  ;;  %v9269_v52 = vcombine.low %v4250_v41, %v4254_v36  ;;  %v4301_v27 = vld [vmem:[#allocation11 + $0x2f0] sm:$0xff]  ;;  %v4298_v35 = vld [vmem:[#allocation11 + $0x2d8] sm:$0xff] }
 0x45f   :  { %7649 = vmatprep.subr.bf16.mxu0 %v9228_v26  ;;  %7813 = vmatprep.subr.bf16.mxu1 %v9230_v58  ;;  %v9278_v26 = vcombine.high %v4258_v47, %v4262_v48  ;;  %v4265_v58 = vld [vmem:[#allocation11 + $0x1d0] sm:$0xff]  ;;  %v4302_v41 = vld [vmem:[#allocation11 + $0x2f8] sm:$0xff] }
 0x460   :  { %v9283_v42 = vcombine.low %v4265_v58, %v4269_v59 }
 0x461   :  { %7477 = vmatmul.mubr.bf16.vlgmr.msra.gmra.mrb[16].mxu0 %v10673_v54  ;;  %7641 = vmatmul.mubr.bf16.vlgmr.msra.gmra.mrb[16].mxu1 %v10673_v54 }
 0x462   :  { %7650 = vmatpush1.bf16.msra.mxu0 %v9227_v2  ;;  %7681 = vmatprep.mubr.bf16.mxu0 %v10621_v13  ;;  %v9277_v2 = vcombine.low %v4258_v47, %v4262_v48  ;;  %v4310_v47 = vld [vmem:[#allocation11 + $0x338] sm:$0xff] }
 0x463   :  { %7814 = vmatpush1.bf16.msra.mxu1 %v9229_v22  ;;  %7845 = vmatprep.mubr.bf16.mxu1 %v10621_v13  ;;  %v4242_v13 = vld [vmem:[#allocation11 + $0x118] sm:$0xff]  ;;  %v9284_v22 = vcombine.high %v4265_v58, %v4269_v59  ;;  %v4317_v58 = vld [vmem:[#allocation11 + $0x370] sm:$0xff] }
 0x464   :  { %7651 = vmatprep.subr.bf16.mxu0 %v9236_v46  ;;  %7815 = vmatprep.subr.bf16.mxu1 %v9238_v3  ;;  %v9262_v5 = vcombine.high %v4242_v13, %v4246_v53  ;;  %v9261_v39 = vcombine.low %v4242_v13, %v4246_v53  ;;  %v9286_v46 = vcombine.high %v4266_v0, %v4270_v15  ;;  %v4273_v3 = vld [vmem:[#allocation11 + $0x210] sm:$0xff]  ;;  %v4294_v13 = vld [vmem:[#allocation11 + $0x2b8] sm:$0xff] }
 0x465   :  { %v9291_v20 = vcombine.low %v4273_v3, %v4277_v4  ;;  %v4314_v59 = vld [vmem:[#allocation11 + $0x358] sm:$0xff] }
 0x466   :  { %7652 = vmatpush1.bf16.msra.mxu0 %v9235_v29  ;;  %v9285_v29 = vcombine.low %v4266_v0, %v4270_v15  ;;  %v4318_v0 = vld [vmem:[#allocation11 + $0x378] sm:$0xff] }
 0x467   :  { %7816 = vmatpush1.bf16.msra.mxu1 %v9237_v61  ;;  %7653 = vmatprep.subr.bf16.mxu0 %v9244_v8  ;;  %v9292_v61 = vcombine.high %v4273_v3, %v4277_v4  ;;  %v9294_v8 = vcombine.high %v4274_v6, %v4278_v7  ;;  %v4325_v3 = vld [vmem:[#allocation11 + $0x3b0] sm:$0xff]  ;;  %v4322_v4 = vld [vmem:[#allocation11 + $0x398] sm:$0xff] }
 0x468   :  { %7817 = vmatprep.subr.bf16.mxu1 %v9246_v9  ;;  %v4281_v9 = vld [vmem:[#allocation11 + $0x250] sm:$0xff] }
 0x469   :  { %v9299_v53 = vcombine.low %v4281_v9, %v4285_v24 }
 0x46a   :  { %7654 = vmatpush1.bf16.msra.mxu0 %v9243_v14  ;;  %v9293_v14 = vcombine.low %v4274_v6, %v4278_v7  ;;  %v4326_v6 = vld [vmem:[#allocation11 + $0x3b8] sm:$0xff] }
 0x46b   :  { %7818 = vmatpush1.bf16.msra.mxu1 %v9245_v16  ;;  %7655 = vmatprep.subr.bf16.mxu0 %v9252_v50  ;;  %v9300_v16 = vcombine.high %v4281_v9, %v4285_v24  ;;  %v9302_v50 = vcombine.high %v4282_v11, %v4286_v12  ;;  %v4333_v9 = vld [vmem:[#allocation11 + $0x3f0] sm:$0xff]  ;;  %v4330_v24 = vld [vmem:[#allocation11 + $0x3d8] sm:$0xff] }
 0x46c   :  { %7819 = vmatprep.subr.bf16.mxu1 %v9254_v21  ;;  %v4289_v21 = vld [vmem:[#allocation11 + $0x290] sm:$0xff] }
 0x46d   :  { %v9307_v36 = vcombine.low %v4289_v21, %v4293_v23 }
 0x46e   :  { %7656 = vmatpush1.bf16.msra.mxu0 %v9251_v33  ;;  %v9301_v33 = vcombine.low %v4282_v11, %v4286_v12  ;;  %v4334_v11 = vld [vmem:[#allocation11 + $0x3f8] sm:$0xff] }
 0x46f   :  { %7820 = vmatpush1.bf16.msra.mxu1 %v9253_v63  ;;  %7657 = vmatprep.subr.bf16.mxu0 %v9260_v34  ;;  %v9308_v63 = vcombine.high %v4289_v21, %v4293_v23  ;;  %v9310_v34 = vcombine.high %v4290_v32, %v4294_v13  ;;  %v4341_v21 = vld [vmem:[#allocation11 + $0x430] sm:$0xff]  ;;  %v4338_v23 = vld [vmem:[#allocation11 + $0x418] sm:$0xff] }
 0x470   :  { %7821 = vmatprep.subr.bf16.mxu1 %v9262_v5  ;;  %v4297_v5 = vld [vmem:[#allocation11 + $0x2d0] sm:$0xff] }
 0x471   :  { %v9315_v48 = vcombine.low %v4297_v5, %v4301_v27 }
 0x472   :  { %7658 = vmatpush1.bf16.msra.mxu0 %v9259_v37  ;;  %v9309_v37 = vcombine.low %v4290_v32, %v4294_v13  ;;  %v4342_v32 = vld [vmem:[#allocation11 + $0x438] sm:$0xff] }
 0x473   :  { %7822 = vmatpush1.bf16.msra.mxu1 %v9261_v39  ;;  %7659 = vmatprep.subr.bf16.mxu0 %v9268_v44  ;;  %v9316_v39 = vcombine.high %v4297_v5, %v4301_v27  ;;  %v9318_v44 = vcombine.high %v4298_v35, %v4302_v41  ;;  %v4349_v5 = vld [vmem:[#allocation11 + $0x470] sm:$0xff] }
 0x474   :  { %7823 = vmatprep.subr.bf16.mxu1 %v9270_v45  ;;  %v4305_v45 = vld [vmem:[#allocation11 + $0x310] sm:$0xff] }
 0x475   :  { %v9323_v15 = vcombine.low %v4305_v45, %v4309_v19 }
 0x476   :  { %7660 = vmatpush1.bf16.msra.mxu0 %v9267_v51  ;;  %v9317_v51 = vcombine.low %v4298_v35, %v4302_v41  ;;  %v4346_v35 = vld [vmem:[#allocation11 + $0x458] sm:$0xff] }
 0x477   :  { %7824 = vmatpush1.bf16.msra.mxu1 %v9269_v52  ;;  %7661 = vmatprep.subr.bf16.mxu0 %v9276_v55  ;;  %v9324_v52 = vcombine.high %v4305_v45, %v4309_v19  ;;  %v9326_v55 = vcombine.high %v4306_v49, %v4310_v47  ;;  %v4350_v41 = vld [vmem:[#allocation11 + $0x478] sm:$0xff] }
 0x478   :  { %7825 = vmatprep.subr.bf16.mxu1 %v9278_v26  ;;  %v4313_v26 = vld [vmem:[#allocation11 + $0x350] sm:$0xff]  ;;  %v9366_v45 = vcombine.high %v4346_v35, %v4350_v41  ;;  %v4354_v19 = vld [vmem:[#allocation11 + $0x498] sm:$0xff] }
 0x479   :  { %v9331_v7 = vcombine.low %v4313_v26, %v4317_v58 }
 0x47a   :  { %7662 = vmatpush1.bf16.msra.mxu0 %v9275_v1  ;;  %v9325_v1 = vcombine.low %v4306_v49, %v4310_v47  ;;  %v4358_v49 = vld [vmem:[#allocation11 + $0x4b8] sm:$0xff] }
 0x47b   :  { %7826 = vmatpush1.bf16.msra.mxu1 %v9277_v2  ;;  %7663 = vmatprep.subr.bf16.mxu0 %v9284_v22  ;;  %v9332_v2 = vcombine.high %v4313_v26, %v4317_v58  ;;  %v9334_v22 = vcombine.high %v4314_v59, %v4318_v0  ;;  %v4365_v26 = vld [vmem:[#allocation11 + $0x4f0] sm:$0xff]  ;;  %v4362_v58 = vld [vmem:[#allocation11 + $0x4d8] sm:$0xff] }
 0x47c   :  { %7827 = vmatprep.subr.bf16.mxu1 %v9286_v46  ;;  %v4321_v46 = vld [vmem:[#allocation11 + $0x390] sm:$0xff] }
 0x47d   :  { %v9339_v12 = vcombine.low %v4321_v46, %v4325_v3 }
 0x47e   :  { %7664 = vmatpush1.bf16.msra.mxu0 %v9283_v42  ;;  %v9333_v42 = vcombine.low %v4314_v59, %v4318_v0  ;;  %v4366_v59 = vld [vmem:[#allocation11 + $0x4f8] sm:$0xff] }
 0x47f   :  { %7828 = vmatpush1.bf16.msra.mxu1 %v9285_v29  ;;  %7665 = vmatprep.subr.bf16.mxu0 %v9292_v61  ;;  %v9340_v29 = vcombine.high %v4321_v46, %v4325_v3  ;;  %v9342_v61 = vcombine.high %v4322_v4, %v4326_v6  ;;  %v4370_v46 = vld [vmem:[#allocation11 + $0x518] sm:$0xff] }
 0x480   :  { %7829 = vmatprep.subr.bf16.mxu1 %v9294_v8  ;;  %v4329_v8 = vld [vmem:[#allocation11 + $0x3d0] sm:$0xff]  ;;  %v4374_v3 = vld [vmem:[#allocation11 + $0x538] sm:$0xff] }
 0x481   :  { %v9347_v13 = vcombine.low %v4329_v8, %v4333_v9 }
 0x482   :  { %7666 = vmatpush1.bf16.msra.mxu0 %v9291_v20  ;;  %v9341_v20 = vcombine.low %v4322_v4, %v4326_v6  ;;  %v9381_v4 = vcombine.low %v4362_v58, %v4366_v59 }
 0x483   :  { %7830 = vmatpush1.bf16.msra.mxu1 %v9293_v14  ;;  %7667 = vmatprep.subr.bf16.mxu0 %v9300_v16  ;;  %v9348_v14 = vcombine.high %v4329_v8, %v4333_v9  ;;  %v9350_v16 = vcombine.high %v4330_v24, %v4334_v11  ;;  %v4382_v8 = vld [vmem:[#allocation11 + $0x578] sm:$0xff] }
 0x484   :  { %7831 = vmatprep.subr.bf16.mxu1 %v9302_v50  ;;  %v4337_v50 = vld [vmem:[#allocation11 + $0x410] sm:$0xff] }
 0x485   :  { %v9355_v27 = vcombine.low %v4337_v50, %v4341_v21 }
 0x486   :  { %7668 = vmatpush1.bf16.msra.mxu0 %v9299_v53  ;;  %v9349_v53 = vcombine.low %v4330_v24, %v4334_v11  ;;  %v9389_v24 = vcombine.low %v4370_v46, %v4374_v3 }
 0x487   :  { %7832 = vmatpush1.bf16.msra.mxu1 %v9301_v33  ;;  %7669 = vmatprep.subr.bf16.mxu0 %v9308_v63  ;;  %v9356_v33 = vcombine.high %v4337_v50, %v4341_v21  ;;  %v9358_v63 = vcombine.high %v4338_v23, %v4342_v32  ;;  %v4390_v50 = vld [vmem:[#allocation11 + $0x5b8] sm:$0xff] }
 0x488   :  { %7833 = vmatprep.subr.bf16.mxu1 %v9310_v34  ;;  %v4345_v34 = vld [vmem:[#allocation11 + $0x450] sm:$0xff] }
 0x489   :  { %v9363_v47 = vcombine.low %v4345_v34, %v4349_v5 }
 0x48a   :  { %7670 = vmatpush1.bf16.msra.mxu0 %v9307_v36  ;;  %v9357_v36 = vcombine.low %v4338_v23, %v4342_v32 }
 0x48b   :  { %7834 = vmatpush1.bf16.msra.mxu1 %v9309_v37  ;;  %7671 = vmatprep.subr.bf16.mxu0 %v9316_v39  ;;  %v9364_v37 = vcombine.high %v4345_v34, %v4349_v5  ;;  %v4353_v39 = vld [vmem:[#allocation11 + $0x490] sm:$0xff]  ;;  %v4398_v34 = vld [vmem:[#allocation11 + $0x5f8] sm:$0xff] }
 0x48c   :  { %7835 = vmatprep.subr.bf16.mxu1 %v9318_v44  ;;  %v4357_v44 = vld [vmem:[#allocation11 + $0x4b0] sm:$0xff] }
 0x48d   :  { %v9371_v0 = vcombine.low %v4353_v39, %v4357_v44 }
 0x48e   :  { %7672 = vmatpush1.bf16.msra.mxu0 %v9315_v48  ;;  %v9365_v48 = vcombine.low %v4346_v35, %v4350_v41 }
 0x48f   :  { %7836 = vmatpush1.bf16.msra.mxu1 %v9317_v51  ;;  %7673 = vmatprep.subr.bf16.mxu0 %v9324_v52  ;;  %v9372_v51 = vcombine.high %v4353_v39, %v4357_v44  ;;  %v9374_v52 = vcombine.high %v4354_v19, %v4358_v49  ;;  %v4402_v39 = vld [vmem:[#allocation11 + $0x618] sm:$0xff] }
 0x490   :  { %7837 = vmatprep.subr.bf16.mxu1 %v9326_v55  ;;  %v4361_v55 = vld [vmem:[#allocation11 + $0x4d0] sm:$0xff]  ;;  %v4406_v44 = vld [vmem:[#allocation11 + $0x638] sm:$0xff] }
 0x492   :  { %7674 = vmatpush1.bf16.msra.mxu0 %v9323_v15  ;;  %v9380_v15 = vcombine.high %v4361_v55, %v4365_v26 }
 0x493   :  { %7838 = vmatpush1.bf16.msra.mxu1 %v9325_v1  ;;  %7675 = vmatprep.subr.bf16.mxu0 %v9332_v2  ;;  %v9382_v1 = vcombine.high %v4362_v58, %v4366_v59  ;;  %v4369_v2 = vld [vmem:[#allocation11 + $0x510] sm:$0xff]  ;;  %v9421_v58 = vcombine.low %v4402_v39, %v4406_v44 }
 0x494   :  { %7839 = vmatprep.subr.bf16.mxu1 %v9334_v22  ;;  %v4373_v22 = vld [vmem:[#allocation11 + $0x530] sm:$0xff] }
 0x495   :  { %v9388_v6 = vcombine.high %v4369_v2, %v4373_v22  ;;  %v9387_v9 = vcombine.low %v4369_v2, %v4373_v22  ;;  %v4422_v2 = vld [vmem:[#allocation11 + $0x6b8] sm:$0xff] }
 0x496   :  { %7676 = vmatpush1.bf16.msra.mxu0 %v9331_v7  ;;  %v9390_v7 = vcombine.high %v4370_v46, %v4374_v3 }
 0x497   :  { %7840 = vmatpush1.bf16.msra.mxu1 %v9333_v42  ;;  %7677 = vmatprep.subr.bf16.mxu0 %v9340_v29  ;;  %v4377_v42 = vld [vmem:[#allocation11 + $0x550] sm:$0xff] }
 0x498   :  { %7841 = vmatprep.subr.bf16.mxu1 %v9342_v61  ;;  %v4381_v29 = vld [vmem:[#allocation11 + $0x570] sm:$0xff]  ;;  %v4378_v61 = vld [vmem:[#allocation11 + $0x558] sm:$0xff] }
 0x499   :  { %v9396_v11 = vcombine.high %v4377_v42, %v4381_v29  ;;  %v9395_v21 = vcombine.low %v4377_v42, %v4381_v29  ;;  %v9397_v23 = vcombine.low %v4378_v61, %v4382_v8  ;;  %v4430_v42 = vld [vmem:[#allocation11 + $0x6f8] sm:$0xff] }
 0x49a   :  { %7678 = vmatpush1.bf16.msra.mxu0 %v9339_v12  ;;  %v9398_v12 = vcombine.high %v4378_v61, %v4382_v8 }
 0x49b   :  { %7842 = vmatpush1.bf16.msra.mxu1 %v9341_v20  ;;  %7679 = vmatprep.subr.bf16.mxu0 %v9348_v14  ;;  %v4385_v20 = vld [vmem:[#allocation11 + $0x590] sm:$0xff] }
 0x49c   :  { %7843 = vmatprep.subr.bf16.mxu1 %v9350_v16  ;;  %v4389_v14 = vld [vmem:[#allocation11 + $0x5b0] sm:$0xff]  ;;  %v4386_v16 = vld [vmem:[#allocation11 + $0x598] sm:$0xff] }
 0x49d   :  { %v9404_v32 = vcombine.high %v4385_v20, %v4389_v14  ;;  %v9403_v5 = vcombine.low %v4385_v20, %v4389_v14  ;;  %v4438_v20 = vld [vmem:[#allocation11 + $0x738] sm:$0xff] }
 0x49e   :  { %7680 = vmatpush1.bf16.msra.mxu0 %v9347_v13  ;;  %v9406_v13 = vcombine.high %v4386_v16, %v4390_v50 }
 0x49f   :  { %7844 = vmatpush1.bf16.msra.mxu1 %v9349_v53  ;;  %7690 = vmatprep.subr.bf16.mxu0 %v9356_v33  ;;  %v4393_v53 = vld [vmem:[#allocation11 + $0x5d0] sm:$0xff] }
 0x4a0   :  { %7854 = vmatprep.subr.bf16.mxu1 %v9358_v63  ;;  %v4397_v33 = vld [vmem:[#allocation11 + $0x5f0] sm:$0xff]  ;;  %v4394_v63 = vld [vmem:[#allocation11 + $0x5d8] sm:$0xff] }
 0x4a1   :  { %7682 = vmatmul.mubr.bf16.vlgmr.msra.gmra.mrb[20].mxu0 %v10633_v57  ;;  %v9412_v35 = vcombine.high %v4393_v53, %v4397_v33  ;;  %v9414_v41 = vcombine.high %v4394_v63, %v4398_v34 }
 0x4a2   :  { %7846 = vmatmul.mubr.bf16.vlgmr.msra.gmra.mrb[20].mxu1 %v10633_v57  ;;  %7691 = vmatpush1.bf16.msra.mxu0 %v9355_v27  ;;  %v9373_v57 = vcombine.low %v4354_v19, %v4358_v49  ;;  %v9405_v27 = vcombine.low %v4386_v16, %v4390_v50  ;;  %v9413_v19 = vcombine.low %v4394_v63, %v4398_v34 }
 0x4a3   :  { %7722 = vmatprep.mubr.bf16.mxu0 %v10635_v60  ;;  %7855 = vmatpush1.bf16.msra.mxu1 %v9357_v36  ;;  %v4401_v36 = vld [vmem:[#allocation11 + $0x610] sm:$0xff] }
 0x4a4   :  { %7886 = vmatprep.mubr.bf16.mxu1 %v10635_v60  ;;  %7692 = vmatprep.subr.bf16.mxu0 %v9364_v37  ;;  %v9379_v60 = vcombine.low %v4361_v55, %v4365_v26  ;;  %v4405_v37 = vld [vmem:[#allocation11 + $0x630] sm:$0xff]  ;;  %v4414_v55 = vld [vmem:[#allocation11 + $0x678] sm:$0xff] }
 0x4a5   :  { %7856 = vmatprep.subr.bf16.mxu1 %v9366_v45  ;;  %v9411_v45 = vcombine.low %v4393_v53, %v4397_v33  ;;  %v9420_v49 = vcombine.high %v4401_v36, %v4405_v37  ;;  %v9419_v26 = vcombine.low %v4401_v36, %v4405_v37  ;;  %v4446_v53 = vld [vmem:[#allocation11 + $0x778] sm:$0xff] }
 0x4a6   :  { %7693 = vmatpush1.bf16.msra.mxu0 %v9363_v47  ;;  %v9422_v47 = vcombine.high %v4402_v39, %v4406_v44  ;;  %v4454_v36 = vld [vmem:[#allocation11 + $0x7b8] sm:$0xff] }
 0x4a7   :  { %7857 = vmatpush1.bf16.msra.mxu1 %v9365_v48  ;;  %7694 = vmatprep.subr.bf16.mxu0 %v9372_v51  ;;  %v4409_v48 = vld [vmem:[#allocation11 + $0x650] sm:$0xff] }
 0x4a8   :  { %7858 = vmatprep.subr.bf16.mxu1 %v9374_v52  ;;  %v4413_v51 = vld [vmem:[#allocation11 + $0x670] sm:$0xff]  ;;  %v4410_v52 = vld [vmem:[#allocation11 + $0x658] sm:$0xff] }
 0x4a9   :  { %v9428_v59 = vcombine.high %v4409_v48, %v4413_v51  ;;  %v9427_v22 = vcombine.low %v4409_v48, %v4413_v51  ;;  %v9429_v46 = vcombine.low %v4410_v52, %v4414_v55  ;;  %v4462_v48 = vld [vmem:[#allocation11 + $0x7f8] sm:$0xff] }
 0x4aa   :  { %7695 = vmatpush1.bf16.msra.mxu0 %v9371_v0  ;;  %v9430_v0 = vcombine.high %v4410_v52, %v4414_v55 }
 0x4ab   :  { %7859 = vmatpush1.bf16.msra.mxu1 %v9373_v57  ;;  %7696 = vmatprep.subr.bf16.mxu0 %v9380_v15  ;;  %v4417_v57 = vld [vmem:[#allocation11 + $0x690] sm:$0xff] }
 0x4ac   :  { %7860 = vmatprep.subr.bf16.mxu1 %v9382_v1  ;;  %v4421_v15 = vld [vmem:[#allocation11 + $0x6b0] sm:$0xff]  ;;  %v4418_v1 = vld [vmem:[#allocation11 + $0x698] sm:$0xff] }
 0x4ad   :  { %v9436_v3 = vcombine.high %v4417_v57, %v4421_v15  ;;  %v9435_v29 = vcombine.low %v4417_v57, %v4421_v15  ;;  %v9437_v61 = vcombine.low %v4418_v1, %v4422_v2  ;;  %v4470_v57 = vld [vmem:[#allocation11 + $0x838] sm:$0xff] }
 0x4ae   :  { %7697 = vmatpush1.bf16.msra.mxu0 %v9379_v60  ;;  %v9438_v60 = vcombine.high %v4418_v1, %v4422_v2 }
 0x4af   :  { %7861 = vmatpush1.bf16.msra.mxu1 %v9381_v4  ;;  %7698 = vmatprep.subr.bf16.mxu0 %v9388_v6  ;;  %v4425_v4 = vld [vmem:[#allocation11 + $0x6d0] sm:$0xff] }
 0x4b0   :  { %7862 = vmatprep.subr.bf16.mxu1 %v9390_v7  ;;  %v4429_v6 = vld [vmem:[#allocation11 + $0x6f0] sm:$0xff]  ;;  %v4426_v7 = vld [vmem:[#allocation11 + $0x6d8] sm:$0xff] }
 0x4b1   :  { %v9444_v8 = vcombine.high %v4425_v4, %v4429_v6  ;;  %v9443_v14 = vcombine.low %v4425_v4, %v4429_v6  ;;  %v9445_v16 = vcombine.low %v4426_v7, %v4430_v42  ;;  %v4474_v4 = vld [vmem:[#allocation11 + $0x858] sm:$0xff] }
 0x4b2   :  { %7699 = vmatpush1.bf16.msra.mxu0 %v9387_v9  ;;  %v9446_v9 = vcombine.high %v4426_v7, %v4430_v42  ;;  %v4478_v6 = vld [vmem:[#allocation11 + $0x878] sm:$0xff] }
 0x4b3   :  { %7863 = vmatpush1.bf16.msra.mxu1 %v9389_v24  ;;  %7700 = vmatprep.subr.bf16.mxu0 %v9396_v11  ;;  %v4433_v24 = vld [vmem:[#allocation11 + $0x710] sm:$0xff] }
 0x4b4   :  { %7864 = vmatprep.subr.bf16.mxu1 %v9398_v12  ;;  %v4437_v11 = vld [vmem:[#allocation11 + $0x730] sm:$0xff]  ;;  %v4434_v12 = vld [vmem:[#allocation11 + $0x718] sm:$0xff] }
 0x4b5   :  { %v9452_v50 = vcombine.high %v4433_v24, %v4437_v11  ;;  %v9451_v33 = vcombine.low %v4433_v24, %v4437_v11  ;;  %v9453_v63 = vcombine.low %v4434_v12, %v4438_v20  ;;  %v4486_v24 = vld [vmem:[#allocation11 + $0x8b8] sm:$0xff] }
 0x4b6   :  { %7701 = vmatpush1.bf16.msra.mxu0 %v9395_v21  ;;  %v9454_v21 = vcombine.high %v4434_v12, %v4438_v20  ;;  %v9493_v12 = vcombine.low %v4474_v4, %v4478_v6 }
 0x4b7   :  { %7865 = vmatpush1.bf16.msra.mxu1 %v9397_v23  ;;  %7702 = vmatprep.subr.bf16.mxu0 %v9404_v32  ;;  %v4441_v23 = vld [vmem:[#allocation11 + $0x750] sm:$0xff] }
 0x4b8   :  { %7866 = vmatprep.subr.bf16.mxu1 %v9406_v13  ;;  %v4445_v32 = vld [vmem:[#allocation11 + $0x770] sm:$0xff]  ;;  %v4442_v13 = vld [vmem:[#allocation11 + $0x758] sm:$0xff] }
 0x4b9   :  { %v9460_v34 = vcombine.high %v4441_v23, %v4445_v32  ;;  %v9459_v37 = vcombine.low %v4441_v23, %v4445_v32  ;;  %v9461_v39 = vcombine.low %v4442_v13, %v4446_v53  ;;  %v4494_v23 = vld [vmem:[#allocation11 + $0x8f8] sm:$0xff] }
 0x4ba   :  { %7703 = vmatpush1.bf16.msra.mxu0 %v9403_v5  ;;  %v9462_v5 = vcombine.high %v4442_v13, %v4446_v53 }
 0x4bb   :  { %7867 = vmatpush1.bf16.msra.mxu1 %v9405_v27  ;;  %7704 = vmatprep.subr.bf16.mxu0 %v9412_v35  ;;  %v4449_v27 = vld [vmem:[#allocation11 + $0x790] sm:$0xff] }
 0x4bc   :  { %7868 = vmatprep.subr.bf16.mxu1 %v9414_v41  ;;  %v4453_v35 = vld [vmem:[#allocation11 + $0x7b0] sm:$0xff]  ;;  %v4450_v41 = vld [vmem:[#allocation11 + $0x798] sm:$0xff] }
 0x4bd   :  { %v9468_v44 = vcombine.high %v4449_v27, %v4453_v35  ;;  %v9467_v51 = vcombine.low %v4449_v27, %v4453_v35  ;;  %v9469_v52 = vcombine.low %v4450_v41, %v4454_v36 }
 0x4be   :  { %7705 = vmatpush1.bf16.msra.mxu0 %v9411_v45  ;;  %v9470_v45 = vcombine.high %v4450_v41, %v4454_v36  ;;  %v4505_v36 = vld [vmem:[#allocation11 + $0x950] sm:$0xff] }
 0x4bf   :  { %7869 = vmatpush1.bf16.msra.mxu1 %v9413_v19  ;;  %7706 = vmatprep.subr.bf16.mxu0 %v9420_v49  ;;  %v4457_v19 = vld [vmem:[#allocation11 + $0x7d0] sm:$0xff] }
 0x4c0   :  { %7870 = vmatprep.subr.bf16.mxu1 %v9422_v47  ;;  %v4461_v49 = vld [vmem:[#allocation11 + $0x7f0] sm:$0xff]  ;;  %v4458_v47 = vld [vmem:[#allocation11 + $0x7d8] sm:$0xff] }
 0x4c1   :  { %v9476_v55 = vcombine.high %v4457_v19, %v4461_v49  ;;  %v9475_v15 = vcombine.low %v4457_v19, %v4461_v49  ;;  %v9477_v1 = vcombine.low %v4458_v47, %v4462_v48 }
 0x4c2   :  { %7707 = vmatpush1.bf16.msra.mxu0 %v9419_v26  ;;  %v9478_v26 = vcombine.high %v4458_v47, %v4462_v48  ;;  %v4513_v48 = vld [vmem:[#allocation11 + $0x990] sm:$0xff] }
 0x4c3   :  { %7871 = vmatpush1.bf16.msra.mxu1 %v9421_v58  ;;  %7708 = vmatprep.subr.bf16.mxu0 %v9428_v59  ;;  %v4465_v58 = vld [vmem:[#allocation11 + $0x810] sm:$0xff] }
 0x4c4   :  { %7872 = vmatprep.subr.bf16.mxu1 %v9430_v0  ;;  %v4469_v59 = vld [vmem:[#allocation11 + $0x830] sm:$0xff]  ;;  %v4466_v0 = vld [vmem:[#allocation11 + $0x818] sm:$0xff] }
 0x4c5   :  { %v9484_v2 = vcombine.high %v4465_v58, %v4469_v59  ;;  %v9485_v7 = vcombine.low %v4466_v0, %v4470_v57 }
 0x4c6   :  { %7709 = vmatpush1.bf16.msra.mxu0 %v9427_v22  ;;  %v9486_v22 = vcombine.high %v4466_v0, %v4470_v57  ;;  %v4521_v57 = vld [vmem:[#allocation11 + $0x9d0] sm:$0xff] }
 0x4c7   :  { %7873 = vmatpush1.bf16.msra.mxu1 %v9429_v46  ;;  %7710 = vmatprep.subr.bf16.mxu0 %v9436_v3  ;;  %v4473_v46 = vld [vmem:[#allocation11 + $0x850] sm:$0xff] }
 0x4c8   :  { %7874 = vmatprep.subr.bf16.mxu1 %v9438_v60  ;;  %v4477_v3 = vld [vmem:[#allocation11 + $0x870] sm:$0xff]  ;;  %v9483_v60 = vcombine.low %v4465_v58, %v4469_v59 }
 0x4c9   :  { %v9492_v42 = vcombine.high %v4473_v46, %v4477_v3  ;;  %v9491_v11 = vcombine.low %v4473_v46, %v4477_v3 }
 0x4ca   :  { %7711 = vmatpush1.bf16.msra.mxu0 %v9435_v29  ;;  %v4481_v29 = vld [vmem:[#allocation11 + $0x890] sm:$0xff] }
 0x4cb   :  { %7875 = vmatpush1.bf16.msra.mxu1 %v9437_v61  ;;  %7712 = vmatprep.subr.bf16.mxu0 %v9444_v8  ;;  %v4485_v61 = vld [vmem:[#allocation11 + $0x8b0] sm:$0xff]  ;;  %v9494_v8 = vcombine.high %v4474_v4, %v4478_v6 }
 0x4cc   :  { %7876 = vmatprep.subr.bf16.mxu1 %v9446_v9  ;;  %v4482_v9 = vld [vmem:[#allocation11 + $0x898] sm:$0xff]  ;;  %v9500_v20 = vcombine.high %v4481_v29, %v4485_v61  ;;  %v9499_v32 = vcombine.low %v4481_v29, %v4485_v61  ;;  %v4529_v4 = vld [vmem:[#allocation11 + $0xa10] sm:$0xff] }
 0x4cd   :  { %v4533_v6 = vld [vmem:[#allocation11 + $0xa30] sm:$0xff] }
 0x4ce   :  { %7713 = vmatpush1.bf16.msra.mxu0 %v9443_v14  ;;  %v9502_v14 = vcombine.high %v4482_v9, %v4486_v24 }
 0x4cf   :  { %7877 = vmatpush1.bf16.msra.mxu1 %v9445_v16  ;;  %7714 = vmatprep.subr.bf16.mxu0 %v9452_v50  ;;  %v4489_v16 = vld [vmem:[#allocation11 + $0x8d0] sm:$0xff] }
 0x4d0   :  { %7878 = vmatprep.subr.bf16.mxu1 %v9454_v21  ;;  %v4493_v50 = vld [vmem:[#allocation11 + $0x8f0] sm:$0xff]  ;;  %v4490_v21 = vld [vmem:[#allocation11 + $0x8d8] sm:$0xff] }
 0x4d1   :  { %v9508_v13 = vcombine.high %v4489_v16, %v4493_v50  ;;  %v9510_v53 = vcombine.high %v4490_v21, %v4494_v23  ;;  %v9509_v27 = vcombine.low %v4490_v21, %v4494_v23  ;;  %v4545_v23 = vld [vmem:[#allocation11 + $0xa90] sm:$0xff] }
 0x4d2   :  { %7715 = vmatpush1.bf16.msra.mxu0 %v9451_v33  ;;  %v4497_v33 = vld [vmem:[#allocation11 + $0x910] sm:$0xff] }
 0x4d3   :  { %7879 = vmatpush1.bf16.msra.mxu1 %v9453_v63  ;;  %7716 = vmatprep.subr.bf16.mxu0 %v9460_v34  ;;  %v4501_v63 = vld [vmem:[#allocation11 + $0x930] sm:$0xff]  ;;  %v4498_v34 = vld [vmem:[#allocation11 + $0x918] sm:$0xff] }
 0x4d4   :  { %7880 = vmatprep.subr.bf16.mxu1 %v9462_v5  ;;  %v4502_v5 = vld [vmem:[#allocation11 + $0x938] sm:$0xff]  ;;  %v9516_v35 = vcombine.high %v4497_v33, %v4501_v63 }
 0x4d5   :  { %v9518_v41 = vcombine.high %v4498_v34, %v4502_v5  ;;  %v9517_v19 = vcombine.low %v4498_v34, %v4502_v5  ;;  %v4553_v5 = vld [vmem:[#allocation11 + $0xad0] sm:$0xff] }
 0x4d6   :  { %7717 = vmatpush1.bf16.msra.mxu0 %v9459_v37  ;;  %v4509_v37 = vld [vmem:[#allocation11 + $0x970] sm:$0xff] }
 0x4d7   :  { %7881 = vmatpush1.bf16.msra.mxu1 %v9461_v39  ;;  %7718 = vmatprep.subr.bf16.mxu0 %v9468_v44  ;;  %v4506_v39 = vld [vmem:[#allocation11 + $0x958] sm:$0xff]  ;;  %v9524_v49 = vcombine.high %v4505_v36, %v4509_v37 }
 0x4d8   :  { %7882 = vmatprep.subr.bf16.mxu1 %v9470_v45  ;;  %v4510_v44 = vld [vmem:[#allocation11 + $0x978] sm:$0xff]  ;;  %v9515_v45 = vcombine.low %v4497_v33, %v4501_v63 }
 0x4d9   :  { %v9526_v47 = vcombine.high %v4506_v39, %v4510_v44  ;;  %v9525_v58 = vcombine.low %v4506_v39, %v4510_v44  ;;  %v4561_v44 = vld [vmem:[#allocation11 + $0xb10] sm:$0xff] }
 0x4da   :  { %7719 = vmatpush1.bf16.msra.mxu0 %v9467_v51  ;;  %v4517_v51 = vld [vmem:[#allocation11 + $0x9b0] sm:$0xff] }
 0x4db   :  { %7883 = vmatpush1.bf16.msra.mxu1 %v9469_v52  ;;  %7720 = vmatprep.subr.bf16.mxu0 %v9476_v55  ;;  %v4514_v52 = vld [vmem:[#allocation11 + $0x998] sm:$0xff]  ;;  %v9532_v59 = vcombine.high %v4513_v48, %v4517_v51 }
 0x4dc   :  { %7884 = vmatprep.subr.bf16.mxu1 %v9478_v26  ;;  %v4518_v55 = vld [vmem:[#allocation11 + $0x9b8] sm:$0xff]  ;;  %v9523_v26 = vcombine.low %v4505_v36, %v4509_v37 }
 0x4dd   :  { %v9534_v0 = vcombine.high %v4514_v52, %v4518_v55  ;;  %v9533_v46 = vcombine.low %v4514_v52, %v4518_v55  ;;  %v4569_v55 = vld [vmem:[#allocation11 + $0xb50] sm:$0xff] }
 0x4de   :  { %7721 = vmatpush1.bf16.msra.mxu0 %v9475_v15  ;;  %v4525_v15 = vld [vmem:[#allocation11 + $0x9f0] sm:$0xff] }
 0x4df   :  { %7885 = vmatpush1.bf16.msra.mxu1 %v9477_v1  ;;  %7731 = vmatprep.subr.bf16.mxu0 %v9484_v2  ;;  %v4522_v1 = vld [vmem:[#allocation11 + $0x9d8] sm:$0xff]  ;;  %v9540_v3 = vcombine.high %v4521_v57, %v4525_v15  ;;  %v9539_v29 = vcombine.low %v4521_v57, %v4525_v15 }
 0x4e0   :  { %7895 = vmatprep.subr.bf16.mxu1 %v9486_v22  ;;  %v4526_v2 = vld [vmem:[#allocation11 + $0x9f8] sm:$0xff]  ;;  %v9531_v22 = vcombine.low %v4513_v48, %v4517_v51 }
 0x4e1   :  { %7723 = vmatmul.mubr.bf16.vlgmr.msra.gmra.mrb[20].mxu0 %v10644_v38  ;;  %v9541_v61 = vcombine.low %v4522_v1, %v4526_v2 }
 0x4e2   :  { %7887 = vmatmul.mubr.bf16.vlgmr.msra.gmra.mrb[20].mxu1 %v10644_v38  ;;  %7732 = vmatpush1.bf16.msra.mxu0 %v9483_v60  ;;  %v9501_v38 = vcombine.low %v4482_v9, %v4486_v24  ;;  %v9542_v60 = vcombine.high %v4522_v1, %v4526_v2  ;;  %v4537_v24 = vld [vmem:[#allocation11 + $0xa50] sm:$0xff] }
 0x4e3   :  { %7763 = vmatprep.mubr.bf16.mxu0 %v10658_v62  ;;  %7896 = vmatpush1.bf16.msra.mxu1 %v9485_v7  ;;  %v4530_v7 = vld [vmem:[#allocation11 + $0xa18] sm:$0xff]  ;;  %v4577_v2 = vld [vmem:[#allocation11 + $0xb90] sm:$0xff] }
 0x4e4   :  { %7927 = vmatprep.mubr.bf16.mxu1 %v10658_v62  ;;  %7733 = vmatprep.subr.bf16.mxu0 %v9492_v42  ;;  %v9507_v62 = vcombine.low %v4489_v16, %v4493_v50  ;;  %v4534_v42 = vld [vmem:[#allocation11 + $0xa38] sm:$0xff] }
 0x4e5   :  { %7897 = vmatprep.subr.bf16.mxu1 %v9494_v8  ;;  %v9548_v8 = vcombine.high %v4529_v4, %v4533_v6  ;;  %v9550_v9 = vcombine.high %v4530_v7, %v4534_v42  ;;  %v9549_v16 = vcombine.low %v4530_v7, %v4534_v42  ;;  %v4585_v42 = vld [vmem:[#allocation11 + $0xbd0] sm:$0xff] }
 0x4e6   :  { %7734 = vmatpush1.bf16.msra.mxu0 %v9491_v11  ;;  %v4541_v11 = vld [vmem:[#allocation11 + $0xa70] sm:$0xff] }
 0x4e7   :  { %7898 = vmatpush1.bf16.msra.mxu1 %v9493_v12  ;;  %7735 = vmatprep.subr.bf16.mxu0 %v9500_v20  ;;  %v4538_v12 = vld [vmem:[#allocation11 + $0xa58] sm:$0xff]  ;;  %v9556_v50 = vcombine.high %v4537_v24, %v4541_v11 }
 0x4e8   :  { %7899 = vmatprep.subr.bf16.mxu1 %v9502_v14  ;;  %v4542_v20 = vld [vmem:[#allocation11 + $0xa78] sm:$0xff]  ;;  %v9547_v14 = vcombine.low %v4529_v4, %v4533_v6 }
 0x4e9   :  { %v9558_v21 = vcombine.high %v4538_v12, %v4542_v20  ;;  %v9557_v33 = vcombine.low %v4538_v12, %v4542_v20  ;;  %v4593_v20 = vld [vmem:[#allocation11 + $0xc10] sm:$0xff] }
 0x4ea   :  { %7736 = vmatpush1.bf16.msra.mxu0 %v9499_v32  ;;  %v4549_v32 = vld [vmem:[#allocation11 + $0xab0] sm:$0xff] }
 0x4eb   :  { %7900 = vmatpush1.bf16.msra.mxu1 %v9501_v38  ;;  %7737 = vmatprep.subr.bf16.mxu0 %v9508_v13  ;;  %v4546_v38 = vld [vmem:[#allocation11 + $0xa98] sm:$0xff]  ;;  %v9564_v63 = vcombine.high %v4545_v23, %v4549_v32 }
 0x4ec   :  { %7901 = vmatprep.subr.bf16.mxu1 %v9510_v53  ;;  %v4550_v13 = vld [vmem:[#allocation11 + $0xab8] sm:$0xff]  ;;  %v9555_v53 = vcombine.low %v4537_v24, %v4541_v11 }
 0x4ed   :  { %v9566_v34 = vcombine.high %v4546_v38, %v4550_v13  ;;  %v9565_v36 = vcombine.low %v4546_v38, %v4550_v13  ;;  %v4601_v13 = vld [vmem:[#allocation11 + $0xc50] sm:$0xff] }
 0x4ee   :  { %7738 = vmatpush1.bf16.msra.mxu0 %v9507_v62  ;;  %v4557_v62 = vld [vmem:[#allocation11 + $0xaf0] sm:$0xff] }
 0x4ef   :  { %7902 = vmatpush1.bf16.msra.mxu1 %v9509_v27  ;;  %7739 = vmatprep.subr.bf16.mxu0 %v9516_v35  ;;  %v4554_v27 = vld [vmem:[#allocation11 + $0xad8] sm:$0xff]  ;;  %v9572_v37 = vcombine.high %v4553_v5, %v4557_v62 }
 0x4f0   :  { %7903 = vmatprep.subr.bf16.mxu1 %v9518_v41  ;;  %v4558_v35 = vld [vmem:[#allocation11 + $0xaf8] sm:$0xff]  ;;  %v9563_v41 = vcombine.low %v4545_v23, %v4549_v32 }
 0x4f1   :  { %v9574_v39 = vcombine.high %v4554_v27, %v4558_v35  ;;  %v9573_v48 = vcombine.low %v4554_v27, %v4558_v35  ;;  %v4609_v27 = vld [vmem:[#allocation11 + $0xc90] sm:$0xff] }
 0x4f2   :  { %7740 = vmatpush1.bf16.msra.mxu0 %v9515_v45  ;;  %v4565_v45 = vld [vmem:[#allocation11 + $0xb30] sm:$0xff] }
 0x4f3   :  { %7904 = vmatpush1.bf16.msra.mxu1 %v9517_v19  ;;  %7741 = vmatprep.subr.bf16.mxu0 %v9524_v49  ;;  %v4562_v19 = vld [vmem:[#allocation11 + $0xb18] sm:$0xff]  ;;  %v9580_v51 = vcombine.high %v4561_v44, %v4565_v45  ;;  %v4613_v35 = vld [vmem:[#allocation11 + $0xcb0] sm:$0xff] }
 0x4f4   :  { %7905 = vmatprep.subr.bf16.mxu1 %v9526_v47  ;;  %v4566_v49 = vld [vmem:[#allocation11 + $0xb38] sm:$0xff]  ;;  %v9571_v47 = vcombine.low %v4553_v5, %v4557_v62 }
 0x4f5   :  { %v9582_v52 = vcombine.high %v4562_v19, %v4566_v49  ;;  %v9581_v57 = vcombine.low %v4562_v19, %v4566_v49  ;;  %v4617_v49 = vld [vmem:[#allocation11 + $0xcd0] sm:$0xff] }
 0x4f6   :  { %7742 = vmatpush1.bf16.msra.mxu0 %v9523_v26  ;;  %v4573_v26 = vld [vmem:[#allocation11 + $0xb70] sm:$0xff] }
 0x4f7   :  { %7906 = vmatpush1.bf16.msra.mxu1 %v9525_v58  ;;  %7743 = vmatprep.subr.bf16.mxu0 %v9532_v59  ;;  %v4570_v58 = vld [vmem:[#allocation11 + $0xb58] sm:$0xff]  ;;  %v9588_v15 = vcombine.high %v4569_v55, %v4573_v26 }
 0x4f8   :  { %7907 = vmatprep.subr.bf16.mxu1 %v9534_v0  ;;  %v4574_v59 = vld [vmem:[#allocation11 + $0xb78] sm:$0xff]  ;;  %v9579_v0 = vcombine.low %v4561_v44, %v4565_v45  ;;  %v9628_v45 = vcombine.high %v4609_v27, %v4613_v35 }
 0x4f9   :  { %v9590_v1 = vcombine.high %v4570_v58, %v4574_v59  ;;  %v9589_v4 = vcombine.low %v4570_v58, %v4574_v59  ;;  %v4625_v58 = vld [vmem:[#allocation11 + $0xd10] sm:$0xff] }
 0x4fa   :  { %7744 = vmatpush1.bf16.msra.mxu0 %v9531_v22  ;;  %v4581_v22 = vld [vmem:[#allocation11 + $0xbb0] sm:$0xff] }
 0x4fb   :  { %7908 = vmatpush1.bf16.msra.mxu1 %v9533_v46  ;;  %7745 = vmatprep.subr.bf16.mxu0 %v9540_v3  ;;  %v4578_v46 = vld [vmem:[#allocation11 + $0xb98] sm:$0xff]  ;;  %v9596_v6 = vcombine.high %v4577_v2, %v4581_v22  ;;  %v4629_v59 = vld [vmem:[#allocation11 + $0xd30] sm:$0xff] }
 0x4fc   :  { %7909 = vmatprep.subr.bf16.mxu1 %v9542_v60  ;;  %v4582_v3 = vld [vmem:[#allocation11 + $0xbb8] sm:$0xff]  ;;  %v9587_v60 = vcombine.low %v4569_v55, %v4573_v26 }
 0x4fd   :  { %v9598_v7 = vcombine.high %v4578_v46, %v4582_v3  ;;  %v9597_v24 = vcombine.low %v4578_v46, %v4582_v3  ;;  %v4637_v46 = vld [vmem:[#allocation11 + $0xd70] sm:$0xff]  ;;  %v4634_v3 = vld [vmem:[#allocation11 + $0xd58] sm:$0xff] }
 0x4fe   :  { %7746 = vmatpush1.bf16.msra.mxu0 %v9539_v29  ;;  %v4589_v29 = vld [vmem:[#allocation11 + $0xbf0] sm:$0xff] }
 0x4ff   :  { %7910 = vmatpush1.bf16.msra.mxu1 %v9541_v61  ;;  %7747 = vmatprep.subr.bf16.mxu0 %v9548_v8  ;;  %v4586_v61 = vld [vmem:[#allocation11 + $0xbd8] sm:$0xff]  ;;  %v9604_v11 = vcombine.high %v4585_v42, %v4589_v29 }
 0x500   :  { %7911 = vmatprep.subr.bf16.mxu1 %v9550_v9  ;;  %v4590_v8 = vld [vmem:[#allocation11 + $0xbf8] sm:$0xff]  ;;  %v9595_v9 = vcombine.low %v4577_v2, %v4581_v22  ;;  %v4633_v22 = vld [vmem:[#allocation11 + $0xd50] sm:$0xff] }
 0x501   :  { %v9606_v12 = vcombine.high %v4586_v61, %v4590_v8  ;;  %v9605_v23 = vcombine.low %v4586_v61, %v4590_v8  ;;  %v4645_v61 = vld [vmem:[#allocation11 + $0xdb0] sm:$0xff]  ;;  %v4642_v8 = vld [vmem:[#allocation11 + $0xd98] sm:$0xff] }
 0x502   :  { %7748 = vmatpush1.bf16.msra.mxu0 %v9547_v14  ;;  %v4597_v14 = vld [vmem:[#allocation11 + $0xc30] sm:$0xff] }
 0x503   :  { %7912 = vmatpush1.bf16.msra.mxu1 %v9549_v16  ;;  %7749 = vmatprep.subr.bf16.mxu0 %v9556_v50  ;;  %v4594_v16 = vld [vmem:[#allocation11 + $0xc18] sm:$0xff]  ;;  %v9612_v32 = vcombine.high %v4593_v20, %v4597_v14 }
 0x504   :  { %7913 = vmatprep.subr.bf16.mxu1 %v9558_v21  ;;  %v4598_v50 = vld [vmem:[#allocation11 + $0xc38] sm:$0xff]  ;;  %v9603_v21 = vcombine.low %v4585_v42, %v4589_v29  ;;  %v4641_v29 = vld [vmem:[#allocation11 + $0xd90] sm:$0xff] }
 0x505   :  { %v9614_v38 = vcombine.high %v4594_v16, %v4598_v50  ;;  %v9613_v5 = vcombine.low %v4594_v16, %v4598_v50  ;;  %v4649_v50 = vld [vmem:[#allocation11 + $0xdd0] sm:$0xff] }
 0x506   :  { %7750 = vmatpush1.bf16.msra.mxu0 %v9555_v53  ;;  %v4605_v53 = vld [vmem:[#allocation11 + $0xc70] sm:$0xff] }
 0x507   :  { %7914 = vmatpush1.bf16.msra.mxu1 %v9557_v33  ;;  %7751 = vmatprep.subr.bf16.mxu0 %v9564_v63  ;;  %v9611_v33 = vcombine.low %v4593_v20, %v4597_v14  ;;  %v4602_v63 = vld [vmem:[#allocation11 + $0xc58] sm:$0xff]  ;;  %v9620_v62 = vcombine.high %v4601_v13, %v4605_v53 }
 0x508   :  { %7915 = vmatprep.subr.bf16.mxu1 %v9566_v34  ;;  %v4606_v34 = vld [vmem:[#allocation11 + $0xc78] sm:$0xff] }
 0x509   :  { %v9621_v44 = vcombine.low %v4602_v63, %v4606_v34 }
 0x50a   :  { %7752 = vmatpush1.bf16.msra.mxu0 %v9563_v41  ;;  %v9622_v41 = vcombine.high %v4602_v63, %v4606_v34  ;;  %v9659_v63 = vcombine.low %v4641_v29, %v4645_v61 }
 0x50b   :  { %7916 = vmatpush1.bf16.msra.mxu1 %v9565_v36  ;;  %7753 = vmatprep.subr.bf16.mxu0 %v9572_v37  ;;  %v4610_v36 = vld [vmem:[#allocation11 + $0xc98] sm:$0xff] }
 0x50c   :  { %7917 = vmatprep.subr.bf16.mxu1 %v9574_v39  ;;  %v4614_v37 = vld [vmem:[#allocation11 + $0xcb8] sm:$0xff]  ;;  %v9619_v39 = vcombine.low %v4601_v13, %v4605_v53 }
 0x50d   :  { %v9630_v19 = vcombine.high %v4610_v36, %v4614_v37  ;;  %v4654_v13 = vld [vmem:[#allocation11 + $0xdf8] sm:$0xff] }
 0x50e   :  { %7754 = vmatpush1.bf16.msra.mxu0 %v9571_v47  ;;  %v4621_v47 = vld [vmem:[#allocation11 + $0xcf0] sm:$0xff] }
 0x50f   :  { %7918 = vmatpush1.bf16.msra.mxu1 %v9573_v48  ;;  %7755 = vmatprep.subr.bf16.mxu0 %v9580_v51  ;;  %v4618_v48 = vld [vmem:[#allocation11 + $0xcd8] sm:$0xff]  ;;  %v9636_v55 = vcombine.high %v4617_v49, %v4621_v47 }
 0x510   :  { %7919 = vmatprep.subr.bf16.mxu1 %v9582_v52  ;;  %v4622_v51 = vld [vmem:[#allocation11 + $0xcf8] sm:$0xff]  ;;  %v9627_v52 = vcombine.low %v4609_v27, %v4613_v35 }
 0x511   :  { %v9638_v26 = vcombine.high %v4618_v48, %v4622_v51 }
 0x512   :  { %7756 = vmatpush1.bf16.msra.mxu0 %v9579_v0  ;;  %v4626_v0 = vld [vmem:[#allocation11 + $0xd18] sm:$0xff] }
 0x513   :  { %7920 = vmatpush1.bf16.msra.mxu1 %v9581_v57  ;;  %7757 = vmatprep.subr.bf16.mxu0 %v9588_v15  ;;  %v4630_v57 = vld [vmem:[#allocation11 + $0xd38] sm:$0xff]  ;;  %v9637_v15 = vcombine.low %v4618_v48, %v4622_v51  ;;  %v4669_v48 = vld [vmem:[#allocation11 + $0xe70] sm:$0xff] }
 0x514   :  { %7921 = vmatprep.subr.bf16.mxu1 %v9590_v1  ;;  %v9644_v1 = vcombine.high %v4625_v58, %v4629_v59  ;;  %v9646_v2 = vcombine.high %v4626_v0, %v4630_v57  ;;  %v4666_v51 = vld [vmem:[#allocation11 + $0xe58] sm:$0xff] }
 0x516   :  { %7758 = vmatpush1.bf16.msra.mxu0 %v9587_v60  ;;  %v4638_v60 = vld [vmem:[#allocation11 + $0xd78] sm:$0xff] }
 0x517   :  { %7922 = vmatpush1.bf16.msra.mxu1 %v9589_v4  ;;  %7759 = vmatprep.subr.bf16.mxu0 %v9596_v6  ;;  %v9643_v4 = vcombine.low %v4625_v58, %v4629_v59  ;;  %v9645_v6 = vcombine.low %v4626_v0, %v4630_v57  ;;  %v9654_v42 = vcombine.high %v4634_v3, %v4638_v60  ;;  %v4673_v59 = vld [vmem:[#allocation11 + $0xe90] sm:$0xff]  ;;  %v4674_v57 = vld [vmem:[#allocation11 + $0xe98] sm:$0xff] }
 0x518   :  { %7923 = vmatprep.subr.bf16.mxu1 %v9598_v7  ;;  %v9652_v7 = vcombine.high %v4633_v22, %v4637_v46  ;;  %v4677_v0 = vld [vmem:[#allocation11 + $0xeb0] sm:$0xff] }
 0x51a   :  { %7760 = vmatpush1.bf16.msra.mxu0 %v9595_v9  ;;  %v4646_v9 = vld [vmem:[#allocation11 + $0xdb8] sm:$0xff] }
 0x51b   :  { %7924 = vmatpush1.bf16.msra.mxu1 %v9597_v24  ;;  %7761 = vmatprep.subr.bf16.mxu0 %v9604_v11  ;;  %v9651_v24 = vcombine.low %v4633_v22, %v4637_v46  ;;  %v9653_v11 = vcombine.low %v4634_v3, %v4638_v60  ;;  %v9662_v16 = vcombine.high %v4642_v8, %v4646_v9  ;;  %v4681_v46 = vld [vmem:[#allocation11 + $0xed0] sm:$0xff]  ;;  %v4682_v60 = vld [vmem:[#allocation11 + $0xed8] sm:$0xff] }
 0x51c   :  { %7925 = vmatprep.subr.bf16.mxu1 %v9606_v12  ;;  %v9660_v12 = vcombine.high %v4641_v29, %v4645_v61  ;;  %v4685_v3 = vld [vmem:[#allocation11 + $0xef0] sm:$0xff] }
 0x51d   :  { %v4689_v61 = vld [vmem:[#allocation11 + $0xf10] sm:$0xff] }
 0x51e   :  { %7762 = vmatpush1.bf16.msra.mxu0 %v9603_v21  ;;  %v4653_v21 = vld [vmem:[#allocation11 + $0xdf0] sm:$0xff] }
 0x51f   :  { %7926 = vmatpush1.bf16.msra.mxu1 %v9605_v23  ;;  %7772 = vmatprep.subr.bf16.mxu0 %v9612_v32  ;;  %v9668_v27 = vcombine.high %v4649_v50, %v4653_v21 }
 0x520   :  { %7936 = vmatprep.subr.bf16.mxu1 %v9614_v38  ;;  %v4650_v38 = vld [vmem:[#allocation11 + $0xdd8] sm:$0xff] }
 0x521   :  { %7764 = vmatmul.mubr.bf16.vlgmr.msra.gmra.mrb[20].mxu0 %v10660_v10  ;;  %v9670_v35 = vcombine.high %v4650_v38, %v4654_v13 }
 0x522   :  { %7928 = vmatmul.mubr.bf16.vlgmr.msra.gmra.mrb[20].mxu1 %v10660_v10  ;;  %7773 = vmatpush1.bf16.msra.mxu0 %v9611_v33  ;;  %v9629_v10 = vcombine.low %v4610_v36, %v4614_v37  ;;  %v4661_v36 = vld [vmem:[#allocation11 + $0xe30] sm:$0xff]  ;;  %v4658_v37 = vld [vmem:[#allocation11 + $0xe18] sm:$0xff] }
 0x523   :  { %7804 = vmatprep.mubr.bf16.mxu0 %v10664_v18  ;;  %7937 = vmatpush1.bf16.msra.mxu1 %v9613_v5 }
 0x524   :  { %7968 = vmatprep.mubr.bf16.mxu1 %v10664_v18  ;;  %7774 = vmatprep.subr.bf16.mxu0 %v9620_v62  ;;  %v9635_v18 = vcombine.low %v4617_v49, %v4621_v47  ;;  %v9661_v62 = vcombine.low %v4642_v8, %v4646_v9  ;;  %v4665_v47 = vld [vmem:[#allocation11 + $0xe50] sm:$0xff]  ;;  %v4690_v9 = vld [vmem:[#allocation11 + $0xf18] sm:$0xff] }
 0x525   :  { %7938 = vmatprep.subr.bf16.mxu1 %v9622_v41  ;;  %v4657_v41 = vld [vmem:[#allocation11 + $0xe10] sm:$0xff] }
 0x526   :  { %7775 = vmatpush1.bf16.msra.mxu0 %v9619_v39  ;;  %v4662_v39 = vld [vmem:[#allocation11 + $0xe38] sm:$0xff]  ;;  %v4693_v8 = vld [vmem:[#allocation11 + $0xf30] sm:$0xff] }
 0x527   :  { %7939 = vmatpush1.bf16.msra.mxu1 %v9621_v44  ;;  %7776 = vmatprep.subr.bf16.mxu0 %v9628_v45  ;;  %v9667_v44 = vcombine.low %v4649_v50, %v4653_v21  ;;  %v9669_v45 = vcombine.low %v4650_v38, %v4654_v13  ;;  %v9678_v49 = vcombine.high %v4658_v37, %v4662_v39  ;;  %v4697_v21 = vld [vmem:[#allocation11 + $0xf50] sm:$0xff]  ;;  %v4698_v13 = vld [vmem:[#allocation11 + $0xf58] sm:$0xff] }
 0x528   :  { %7940 = vmatprep.subr.bf16.mxu1 %v9630_v19  ;;  %v9676_v19 = vcombine.high %v4657_v41, %v4661_v36  ;;  %v4701_v38 = vld [vmem:[#allocation11 + $0xf70] sm:$0xff] }
 0x52a   :  { %7777 = vmatpush1.bf16.msra.mxu0 %v9627_v52  ;;  %v4670_v52 = vld [vmem:[#allocation11 + $0xe78] sm:$0xff] }
 0x52b   :  { %7941 = vmatpush1.bf16.msra.mxu1 %v9629_v10  ;;  %7778 = vmatprep.subr.bf16.mxu0 %v9636_v55  ;;  %v9675_v10 = vcombine.low %v4657_v41, %v4661_v36  ;;  %v9677_v55 = vcombine.low %v4658_v37, %v4662_v39  ;;  %v9686_v58 = vcombine.high %v4666_v51, %v4670_v52  ;;  %v4710_v41 = vld [vmem:[#allocation11 + $0xfb8] sm:$0xff]  ;;  %v10699_v36 = vld [vmem:[#allocation13] sm:$0xff] }
 0x52c   :  { %7942 = vmatprep.subr.bf16.mxu1 %v9638_v26  ;;  %v9684_v26 = vcombine.high %v4665_v47, %v4669_v48  ;;  %v9715_v37 = vcombine.low %v4697_v21, %v4701_v38 }
 0x52e   :  { %7779 = vmatpush1.bf16.msra.mxu0 %v9635_v18  ;;  %v4678_v18 = vld [vmem:[#allocation11 + $0xeb8] sm:$0xff] }
 0x52f   :  { %7943 = vmatpush1.bf16.msra.mxu1 %v9637_v15  ;;  %7780 = vmatprep.subr.bf16.mxu0 %v9644_v1  ;;  %v9683_v15 = vcombine.low %v4665_v47, %v4669_v48  ;;  %v9685_v1 = vcombine.low %v4666_v51, %v4670_v52  ;;  %v9694_v22 = vcombine.high %v4674_v57, %v4678_v18  ;;  %v4714_v48 = vld [vmem:[#allocation11 + $0xfd8] sm:$0xff] }
 0x530   :  { %7944 = vmatprep.subr.bf16.mxu1 %v9646_v2  ;;  %v9692_v2 = vcombine.high %v4673_v59, %v4677_v0  ;;  %v4728_v47 = vrot.slane %v10699_v36, %v10512_v30  ;;  %v4718_v51 = vld [vmem:[#allocation11 + $0xff8] sm:$0xff]  ;;  %v4736_v52 = vrot.slane %v10699_v36, %v10515_v31  ;;  %v10017_v31 = vld [vmem:[#allocation14 + $0xc0] sm:$0xff]  }
 0x531   :  { %v9733_v30 = vcombine.low %v4714_v48, %v4718_v51 }
 0x532   :  { %7781 = vmatpush1.bf16.msra.mxu0 %v9643_v4  ;;  %v4686_v4 = vld [vmem:[#allocation11 + $0xef8] sm:$0xff] }
 0x533   :  { %7945 = vmatpush1.bf16.msra.mxu1 %v9645_v6  ;;  %7782 = vmatprep.subr.bf16.mxu0 %v9652_v7  ;;  %v9691_v6 = vcombine.low %v4673_v59, %v4677_v0  ;;  %v9693_v7 = vcombine.low %v4674_v57, %v4678_v18  ;;  %v9702_v29 = vcombine.high %v4682_v60, %v4686_v4  ;;  %v10016_v18 = vld [vmem:[#allocation14 + $0x40] sm:$0xff]  }
 0x534   :  { %v10691_v20 = vpop.f32.mrb[16].mxu0  ;;  %v10693_v14 = vpop.f32.mrb[16].mxu1  ;;  %7946 = vmatprep.subr.bf16.mxu1 %v9654_v42  ;;  %v9700_v42 = vcombine.high %v4681_v46, %v4685_v3 }
 0x535   :  { %v10695_v23 = vpop.f32.mrb[17].mxu0  ;;  %v10697_v32 = vpop.f32.mrb[17].mxu1 }
 0x536   :  { %v7482_v53 = vpop.f32.mrb[18].mxu0  ;;  %v7646_v33 = vpop.f32.mrb[18].mxu1  ;;  %7783 = vmatpush1.bf16.msra.mxu0 %v9651_v24  ;;  %v4694_v24 = vld [vmem:[#allocation11 + $0xf38] sm:$0xff]  ;;  %v9898_v59 = vadd.f32 %v10695_v23, %v4728_v47  ;;  %v9900_v0 = vadd.f32 %v10697_v32, %v4736_v52  ;;  %v10021_v32 = vld [vmem:[#allocation14 + $0xc8] sm:$0xff]   ;;  %v10051_v47 = vld [vmem:[#allocation14 + $0x180] sm:$0xff]  }
 0x537   :  { %7947 = vmatpush1.bf16.msra.mxu1 %v9653_v11  ;;  %v7483_v34 = vpop.f32.mrb[19].mxu0  ;;  %v7647_v5 = vpop.f32.mrb[19].mxu1  ;;  %7784 = vmatprep.subr.bf16.mxu0 %v9660_v12  ;;  %v9699_v11 = vcombine.low %v4681_v46, %v4685_v3  ;;  %v9701_v12 = vcombine.low %v4682_v60, %v4686_v4  ;;  %v9710_v50 = vcombine.high %v4690_v9, %v4694_v24  ;;  %v4702_v53 = vld [vmem:[#allocation11 + $0xf78] sm:$0xff]  ;;  %v10020_v46 = vld [vmem:[#allocation14 + $0x48] sm:$0xff]  }
 0x538   :  { %7948 = vmatprep.subr.bf16.mxu1 %v9662_v16  ;;  %v9708_v16 = vcombine.high %v4689_v61, %v4693_v8  ;;  %v9707_v33 = vcombine.low %v4689_v61, %v4693_v8  ;;  %v9716_v34 = vcombine.high %v4697_v21, %v4701_v38  ;;  %v9718_v5 = vcombine.high %v4698_v13, %v4702_v53  ;;  %v10022_v60 = vld [vmem:[#allocation14 + $0x8] sm:$0xff]   ;;  %v10028_v61 = vld [vmem:[#allocation14 + $0x58] sm:$0xff]  }
 0x539   :  { %v9717_v39 = vcombine.low %v4698_v13, %v4702_v53  ;;  %v10023_v4 = vld [vmem:[#allocation14 + $0x88] sm:$0xff]   ;;  %v10029_v8 = vld [vmem:[#allocation14 + $0xd8] sm:$0xff]   ;;  %v4724_v13 = vrot.slane %v10699_v36, %v10507_v28 }
 0x53a   :  { %7785 = vmatpush1.bf16.msra.mxu0 %v9659_v63  ;;  %v9709_v63 = vcombine.low %v4690_v9, %v4694_v24  ;;  %v10031_v9 = vld [vmem:[#allocation14 + $0x98] sm:$0xff]   ;;  %v10032_v24 = vld [vmem:[#allocation14 + $0x60] sm:$0xff]   ;;  %v10037_v21 = vld [vmem:[#allocation14 + $0xe8] sm:$0xff]  }
 0x53b   :  { %7949 = vmatpush1.bf16.msra.mxu1 %v9661_v62  ;;  %7786 = vmatprep.subr.bf16.mxu0 %v9668_v27  ;;  %v4705_v62 = vld [vmem:[#allocation11 + $0xf90] sm:$0xff]  ;;  %v10045_v28 = vld [vmem:[#allocation14 + $0xf8] sm:$0xff]  }
 0x53c   :  { %7950 = vmatprep.subr.bf16.mxu1 %v9670_v35  ;;  %v4709_v27 = vld [vmem:[#allocation11 + $0xfb0] sm:$0xff]  ;;  %v4706_v35 = vld [vmem:[#allocation11 + $0xf98] sm:$0xff] }
 0x53d   :  { %v10038_v38 = vld [vmem:[#allocation14 + $0x28] sm:$0xff]  }
 0x53e   :  { %7787 = vmatpush1.bf16.msra.mxu0 %v9667_v44  ;;  %v9724_v44 = vcombine.high %v4705_v62, %v4709_v27  ;;  %v10039_v53 = vld [vmem:[#allocation14 + $0xa8] sm:$0xff]  }
 0x53f   :  { %7951 = vmatpush1.bf16.msra.mxu1 %v9669_v45  ;;  %7788 = vmatprep.subr.bf16.mxu0 %v9676_v19  ;;  %v9726_v45 = vcombine.high %v4706_v35, %v4710_v41  ;;  %v4713_v19 = vld [vmem:[#allocation11 + $0xfd0] sm:$0xff] }
 0x540   :  { %7952 = vmatprep.subr.bf16.mxu1 %v9678_v49  ;;  %v4717_v49 = vld [vmem:[#allocation11 + $0xff0] sm:$0xff] }
 0x541   :  { %v9731_v57 = vcombine.low %v4713_v19, %v4717_v49  ;;  %v10054_v52 = vld [vmem:[#allocation14 + $0x108] sm:$0xff]  }
 0x542   :  { %7789 = vmatpush1.bf16.msra.mxu0 %v9675_v10  ;;  %v9723_v10 = vcombine.low %v4705_v62, %v4709_v27  ;;  %v9897_v62 = vadd.f32 %v10691_v20, %v4724_v13  ;;  %v10043_v27 = vld [vmem:[#allocation14 + $0xb0] sm:$0xff]   ;;  %v10050_v20 = vld [vmem:[#allocation14 + $0x100] sm:$0xff]  }
 0x543   :  { %7953 = vmatpush1.bf16.msra.mxu1 %v9677_v55  ;;  %7790 = vmatprep.subr.bf16.mxu0 %v9684_v26  ;;  %v9725_v55 = vcombine.low %v4706_v35, %v4710_v41  ;;  %v9732_v26 = vcombine.high %v4713_v19, %v4717_v49  ;;  %v10044_v35 = vld [vmem:[#allocation14 + $0x78] sm:$0xff]   ;;  %v10049_v19 = vld [vmem:[#allocation14 + $0x1c0] sm:$0xff]  }
 0x544   :  { %7954 = vmatprep.subr.bf16.mxu1 %v9686_v58  ;;  %v9734_v58 = vcombine.high %v4714_v48, %v4718_v51  ;;  %v10052_v48 = vld [vmem:[#allocation14 + $0x148] sm:$0xff]  }
 0x545   :  { %v10053_v51 = vld [vmem:[#allocation14 + $0x1c8] sm:$0xff]  }
 0x546   :  { %7791 = vmatpush1.bf16.msra.mxu0 %v9683_v15  ;;  %v7978_v15 = vmax.f32 %v9898_v59, 0.0  ;;  %v10059_v59 = vld [vmem:[#allocation14 + $0x190] sm:$0xff]  }
 0x547   :  { %7955 = vmatpush1.bf16.msra.mxu1 %v9685_v1  ;;  %7792 = vmatprep.subr.bf16.mxu0 %v9692_v2  ;;  %v7980_v1 = vmax.f32 %v9900_v0, 0.0  ;;  %v10018_v2 = vld [vmem:[#allocation14] sm:$0xff]   ;;  %v10060_v0 = vld [vmem:[#allocation14 + $0x158] sm:$0xff]  }
 0x548   :  { %7956 = vmatprep.subr.bf16.mxu1 %v9694_v22  ;;  %v10019_v22 = vld [vmem:[#allocation14 + $0x80] sm:$0xff]   ;;  %v7986_v23 = vpack.c.bf16 %v7978_v15, %v7978_v15 }
 0x549   :  { %v7988_v3 = vpack.c.bf16 %v7980_v1, %v7980_v1  ;;  %v10065_v15 = vld [vmem:[#allocation14 + $0x1e0] sm:$0xff]  }
 0x54a   :  { %7793 = vmatpush1.bf16.msra.mxu0 %v9691_v6  ;;  %v10024_v6 = vld [vmem:[#allocation14 + $0x50] sm:$0xff]   ;;  %v10066_v1 = vld [vmem:[#allocation14 + $0x120] sm:$0xff]  }
 0x54b   :  { %7957 = vmatpush1.bf16.msra.mxu1 %v9693_v7  ;;  %7794 = vmatprep.subr.bf16.mxu0 %v9700_v42  ;;  %v10025_v7 = vld [vmem:[#allocation14 + $0xd0] sm:$0xff]  }
 0x54c   :  { %7958 = vmatprep.subr.bf16.mxu1 %v9702_v29  ;;  %v10026_v42 = vld [vmem:[#allocation14 + $0x10] sm:$0xff]  }
 0x54d   :  { %v10027_v29 = vld [vmem:[#allocation14 + $0x90] sm:$0xff]  }
 0x54e   :  { %7795 = vmatpush1.bf16.msra.mxu0 %v9699_v11  ;;  %v10033_v11 = vld [vmem:[#allocation14 + $0xe0] sm:$0xff]  }
 0x54f   :  { %7959 = vmatpush1.bf16.msra.mxu1 %v9701_v12  ;;  %7796 = vmatprep.subr.bf16.mxu0 %v9708_v16  ;;  %v10034_v12 = vld [vmem:[#allocation14 + $0x20] sm:$0xff]  }
 0x550   :  { %7960 = vmatprep.subr.bf16.mxu1 %v9710_v50  ;;  %v10035_v16 = vld [vmem:[#allocation14 + $0xa0] sm:$0xff]   ;;  %v10036_v50 = vld [vmem:[#allocation14 + $0x68] sm:$0xff]  }
 0x552   :  { %7797 = vmatpush1.bf16.msra.mxu0 %v9707_v33  ;;  %v10040_v33 = vld [vmem:[#allocation14 + $0x70] sm:$0xff]  }
 0x553   :  { %7961 = vmatpush1.bf16.msra.mxu1 %v9709_v63  ;;  %7798 = vmatprep.subr.bf16.mxu0 %v9716_v34  ;;  %v4732_v63 = vrot.slane %v10699_v36, %v10542_v43  ;;  %v10041_v34 = vld [vmem:[#allocation14 + $0xf0] sm:$0xff]   ;;  %v10047_v43 = vld [vmem:[#allocation14 + $0xb8] sm:$0xff]  }
 0x554   :  { %7962 = vmatprep.subr.bf16.mxu1 %v9718_v5  ;;  %v10042_v5 = vld [vmem:[#allocation14 + $0x30] sm:$0xff]  }
 0x555   :  { %v9899_v41 = vadd.f32 %v10693_v14, %v4732_v63 }
 0x556   :  { %7799 = vmatpush1.bf16.msra.mxu0 %v9715_v37  ;;  %v10046_v37 = vld [vmem:[#allocation14 + $0x38] sm:$0xff]  }
 0x557   :  { %7963 = vmatpush1.bf16.msra.mxu1 %v9717_v39  ;;  %7800 = vmatprep.subr.bf16.mxu0 %v9724_v44  ;;  %v7977_v39 = vmax.f32 %v9897_v62, 0.0  ;;  %v10048_v44 = vld [vmem:[#allocation14 + $0x140] sm:$0xff]  }
 0x558   :  { %7964 = vmatprep.subr.bf16.mxu1 %v9726_v45  ;;  %v7979_v45 = vmax.f32 %v9899_v41, 0.0 }
 0x559   :  { %v7985_v49 = vpack.c.bf16 %v7977_v39, %v7977_v39 }
 0x55a   :  { %7801 = vmatpush1.bf16.msra.mxu0 %v9723_v10  ;;  %v7987_v14 = vpack.c.bf16 %v7979_v45, %v7979_v45  ;;  %v10055_v10 = vld [vmem:[#allocation14 + $0x188] sm:$0xff]  }
 0x55b   :  { %7965 = vmatpush1.bf16.msra.mxu1 %v9725_v55  ;;  %7802 = vmatprep.subr.bf16.mxu0 %v9732_v26  ;;  %v10056_v55 = vld [vmem:[#allocation14 + $0x150] sm:$0xff]  }
 0x55c   :  { %7966 = vmatprep.subr.bf16.mxu1 %v9734_v58  ;;  %v10057_v26 = vld [vmem:[#allocation14 + $0x1d0] sm:$0xff]  }
 0x55d   :  { %v10058_v58 = vld [vmem:[#allocation14 + $0x110] sm:$0xff]  }
 0x55e   :  { %7803 = vmatpush1.bf16.msra.mxu0 %v9731_v57  ;;  %v10061_v57 = vld [vmem:[#allocation14 + $0x1d8] sm:$0xff]  }
 0x55f   :  { %7967 = vmatpush1.bf16.msra.mxu1 %v9733_v30  ;;  %9801 = vmatprep.subr.bf16.mxu0 %v10016_v18  ;;  %v10062_v30 = vld [vmem:[#allocation14 + $0x118] sm:$0xff]  }
 0x560   :  { %9823 = vmatprep.subr.bf16.mxu1 %v10017_v31  ;;  %v10063_v18 = vld [vmem:[#allocation14 + $0x198] sm:$0xff]   ;;  %v10064_v31 = vld [vmem:[#allocation14 + $0x160] sm:$0xff]  }
 0x561   :  { %7805 = vmatmul.mubr.bf16.vlgmr.msra.gmra.mrb[20].mxu0 %v10673_v54 }
 0x562   :  { %7969 = vmatmul.mubr.bf16.vlgmr.msra.gmra.mrb[20].mxu1 %v10673_v54  ;;  %9802 = vmatpush3.bf16.msra.mxu0 %v10018_v2  ;;  %v10030_v54 = vld [vmem:[#allocation14 + $0x18] sm:$0xff]   ;;  %v10067_v2 = vld [vmem:[#allocation14 + $0x1a0] sm:$0xff]  }
 0x563   :  { %8544 = vmatprep.mubr.bf16.mxu0 %v7986_v23  ;;  %9824 = vmatpush3.bf16.msra.mxu1 %v10019_v22  ;;  %v10068_v22 = vld [vmem:[#allocation14 + $0x168] sm:$0xff]  }
 0x564   :  { %8584 = vmatprep.mubr.bf16.mxu1 %v7988_v3  ;;  %9803 = vmatprep.subr.bf16.mxu0 %v10020_v46  ;;  %v10069_v46 = vld [vmem:[#allocation14 + $0x1e8] sm:$0xff]   ;;  %v10072_v3 = vld [vmem:[#allocation14 + $0x170] sm:$0xff]  }
 0x565   :  { %9825 = vmatprep.subr.bf16.mxu1 %v10021_v32  ;;  %v10070_v23 = vld [vmem:[#allocation14 + $0x128] sm:$0xff]  }
 0x566   :  { %9804 = vmatpush3.bf16.msra.mxu0 %v10022_v60  ;;  %v10071_v32 = vld [vmem:[#allocation14 + $0x1a8] sm:$0xff]   ;;  %v10073_v60 = vld [vmem:[#allocation14 + $0x1f0] sm:$0xff]  }
 0x567   :  { %9826 = vmatpush3.bf16.msra.mxu1 %v10023_v4  ;;  %9805 = vmatprep.subr.bf16.mxu0 %v10024_v6  ;;  %v10074_v4 = vld [vmem:[#allocation14 + $0x130] sm:$0xff]  }
 0x568   :  { %9827 = vmatprep.subr.bf16.mxu1 %v10025_v7  ;;  %v10075_v6 = vld [vmem:[#allocation14 + $0x1b0] sm:$0xff]   ;;  %v10076_v7 = vld [vmem:[#allocation14 + $0x178] sm:$0xff]  }
 0x56a   :  { %9806 = vmatpush3.bf16.msra.mxu0 %v10026_v42  ;;  %v10077_v42 = vld [vmem:[#allocation14 + $0x1f8] sm:$0xff]  }
 0x56b   :  { %9828 = vmatpush3.bf16.msra.mxu1 %v10027_v29  ;;  %9807 = vmatprep.subr.bf16.mxu0 %v10028_v61  ;;  %v10078_v29 = vld [vmem:[#allocation14 + $0x138] sm:$0xff]  }
 0x56c   :  { %9829 = vmatprep.subr.bf16.mxu1 %v10029_v8  ;;  %v10079_v61 = vld [vmem:[#allocation14 + $0x1b8] sm:$0xff]   ;;  %v4740_v8 = vrot.slane %v10699_v36, %v10566_v25 }
 0x56e   :  { %9808 = vmatpush3.bf16.msra.mxu0 %v10030_v54  ;;  %v4748_v54 = vrot.slane %v10699_v36, %v10586_v17 }
 0x56f   :  { %9830 = vmatpush3.bf16.msra.mxu1 %v10031_v9  ;;  %9809 = vmatprep.subr.bf16.mxu0 %v10032_v24  ;;  %v4744_v9 = vrot.slane %v10699_v36, %v10549_v56  ;;  %v4752_v24 = vrot.slane %v10699_v36, %v10569_v40 }
 0x570   :  { %9831 = vmatprep.subr.bf16.mxu1 %v10033_v11 }
 0x572   :  { %9810 = vmatpush3.bf16.msra.mxu0 %v10034_v12 }
 0x573   :  { %9832 = vmatpush3.bf16.msra.mxu1 %v10035_v16  ;;  %9811 = vmatprep.subr.bf16.mxu0 %v10036_v50 }
 0x574   :  { %9833 = vmatprep.subr.bf16.mxu1 %v10037_v21 }
 0x576   :  { %9812 = vmatpush3.bf16.msra.mxu0 %v10038_v38 }
 0x577   :  { %9834 = vmatpush3.bf16.msra.mxu1 %v10039_v53  ;;  %9813 = vmatprep.subr.bf16.mxu0 %v10040_v33 }
 0x578   :  { %9835 = vmatprep.subr.bf16.mxu1 %v10041_v34 }
 0x57a   :  { %9814 = vmatpush3.bf16.msra.mxu0 %v10042_v5 }
 0x57b   :  { %9836 = vmatpush3.bf16.msra.mxu1 %v10043_v27  ;;  %9815 = vmatprep.subr.bf16.mxu0 %v10044_v35 }
 0x57c   :  { %9837 = vmatprep.subr.bf16.mxu1 %v10045_v28 }
 0x57e   :  { %9816 = vmatpush3.bf16.msra.mxu0 %v10046_v37  ;;  %v9735_v37 = vld [vmem:[#allocation16] ss:$0 sm:$0xff] }
 0x57f   :  { %9838 = vmatpush3.bf16.msra.mxu1 %v10047_v43  ;;  %9845 = vmatprep.subr.bf16.mxu0 %v10048_v44 }
 0x580   :  { %9867 = vmatprep.subr.bf16.mxu1 %v10049_v19 }
 0x581   :  { %8545 = vmatmul.mubr.bf16.vlgmr.msra.gmra.mrb[24].mxu0 %v7985_v49 }
 0x582   :  { %8585 = vmatmul.mubr.bf16.vlgmr.msra.gmra.mrb[24].mxu1 %v7987_v14  ;;  %9846 = vmatpush3.bf16.msra.mxu0 %v10050_v20 }
 0x583   :  { %9868 = vmatpush3.bf16.msra.mxu1 %v10051_v47  ;;  %9847 = vmatprep.subr.bf16.mxu0 %v10052_v48 }
 0x584   :  { %9869 = vmatprep.subr.bf16.mxu1 %v10053_v51 }
 0x586   :  { %9848 = vmatpush3.bf16.msra.mxu0 %v10054_v52 }
 0x587   :  { %9870 = vmatpush3.bf16.msra.mxu1 %v10055_v10  ;;  %9849 = vmatprep.subr.bf16.mxu0 %v10056_v55 }
 0x588   :  { %9871 = vmatprep.subr.bf16.mxu1 %v10057_v26 }
 0x58a   :  { %9850 = vmatpush3.bf16.msra.mxu0 %v10058_v58 }
 0x58b   :  { %9872 = vmatpush3.bf16.msra.mxu1 %v10059_v59  ;;  %9851 = vmatprep.subr.bf16.mxu0 %v10060_v0 }
 0x58c   :  { %9873 = vmatprep.subr.bf16.mxu1 %v10061_v57 }
 0x58e   :  { %9852 = vmatpush3.bf16.msra.mxu0 %v10062_v30 }
 0x58f   :  { %9874 = vmatpush3.bf16.msra.mxu1 %v10063_v18  ;;  %9853 = vmatprep.subr.bf16.mxu0 %v10064_v31 }
 0x590   :  { %9875 = vmatprep.subr.bf16.mxu1 %v10065_v15 }
 0x592   :  { %9854 = vmatpush3.bf16.msra.mxu0 %v10066_v1 }
 0x593   :  { %9876 = vmatpush3.bf16.msra.mxu1 %v10067_v2  ;;  %9855 = vmatprep.subr.bf16.mxu0 %v10068_v22 }
 0x594   :  { %9877 = vmatprep.subr.bf16.mxu1 %v10069_v46 }
 0x596   :  { %9856 = vmatpush3.bf16.msra.mxu0 %v10070_v23 }
 0x597   :  { %9878 = vmatpush3.bf16.msra.mxu1 %v10071_v32  ;;  %9857 = vmatprep.subr.bf16.mxu0 %v10072_v3 }
 0x598   :  { %9879 = vmatprep.subr.bf16.mxu1 %v10073_v60 }
 0x59a   :  { %9858 = vmatpush3.bf16.msra.mxu0 %v10074_v4 }
 0x59b   :  { %9880 = vmatpush3.bf16.msra.mxu1 %v10075_v6  ;;  %9859 = vmatprep.subr.bf16.mxu0 %v10076_v7 }
 0x59c   :  { %9881 = vmatprep.subr.bf16.mxu1 %v10077_v42 }
 0x59e   :  { %9860 = vmatpush3.bf16.msra.mxu0 %v10078_v29 }
 0x59f   :  { %9882 = vmatpush3.bf16.msra.mxu1 %v10079_v61 }
 0x634   :  { %v7806_v11 = vpop.f32.mrb[20].mxu0 }
 0x635   :  { %v9901_v12 = vadd.f32 %v7806_v11, %v4740_v8  ;;  %v7970_v16 = vpop.f32.mrb[20].mxu1  ;;  %v7808_v50 = vpop.f32.mrb[21].mxu0 }
 0x636   :  { %v9903_v21 = vadd.f32 %v7970_v16, %v4748_v54  ;;  %v9902_v38 = vadd.f32 %v7808_v50, %v4744_v9  ;;  %v7972_v13 = vpop.f32.mrb[21].mxu1  ;;  %v7810_v53 = vpop.f32.mrb[22].mxu0 }
 0x637   :  { %v7981_v33 = vmax.f32 %v9901_v12, 0.0  ;;  %v9904_v63 = vadd.f32 %v7972_v13, %v4752_v24  ;;  %v7974_v25 = vpop.f32.mrb[22].mxu1  ;;  %v7811_v34 = vpop.f32.mrb[23].mxu0 }
 0x638   :  { %v7983_v5 = vmax.f32 %v9903_v21, 0.0  ;;  %v7982_v17 = vmax.f32 %v9902_v38, 0.0  ;;  %v7975_v62 = vpop.f32.mrb[23].mxu1 }
 0x639   :  { %v7984_v27 = vmax.f32 %v9904_v63, 0.0  ;;  %v7989_v35 = vpack.c.bf16 %v7981_v33, %v7981_v33 }
 0x63a   :  { %v7990_v56 = vpack.c.bf16 %v7982_v17, %v7982_v17  ;;  %v7991_v40 = vpack.c.bf16 %v7983_v5, %v7983_v5 }
 0x63b   :  { %v7992_v41 = vpack.c.bf16 %v7984_v27, %v7984_v27 }
 0x63c   :  { %8624 = vmatprep.mubr.bf16.mxu0 %v7990_v56 }
 0x63d   :  { %8664 = vmatprep.mubr.bf16.mxu1 %v7992_v41  ;;  %8625 = vmatmul.mubr.bf16.vlgmr.msra.gmra.mrb[28].mxu0 %v7989_v35 }
 0x63e   :  { %8665 = vmatmul.mubr.bf16.vlgmr.msra.gmra.mrb[28].mxu1 %v7991_v40 }
 0x654   :  { %v9817_v36 = vpop.f32.mrb[24].mxu0 }
 0x655   :  { %v9839_v28 = vpop.f32.mrb[24].mxu1  ;;  %v9818_v39 = vpop.f32.mrb[25].mxu0 }
 0x656   :  { %v9819_v43 = vadd.f32 %v9818_v39, %v9817_v36  ;;  %v9840_v44 = vpop.f32.mrb[25].mxu1  ;;  %v9820_v45 = vpop.f32.mrb[26].mxu0 }
 0x657   :  { %v9841_v19 = vadd.f32 %v9840_v44, %v9839_v28  ;;  %v9842_v20 = vpop.f32.mrb[26].mxu1  ;;  %v9821_v49 = vpop.f32.mrb[27].mxu0 }
 0x658   :  { %v8547_v47 = vadd.f32 %v9819_v43, %v9735_v37  ;;  %v9843_v48 = vpop.f32.mrb[27].mxu1 }
 0x65a   :  { %v8587_v14 = vadd.f32 %v9841_v19, %v8547_v47 }
 0x710   :  { %v9861_v51 = vpop.f32.mrb[28].mxu0 }
 0x711   :  { %v9883_v52 = vpop.f32.mrb[28].mxu1  ;;  %v9862_v10 = vpop.f32.mrb[29].mxu0 }
 0x712   :  { %v9863_v55 = vadd.f32 %v9862_v10, %v9861_v51  ;;  %v9884_v26 = vpop.f32.mrb[29].mxu1  ;;  %v9864_v58 = vpop.f32.mrb[30].mxu0 }
 0x713   :  { %v9885_v59 = vadd.f32 %v9884_v26, %v9883_v52  ;;  %v9886_v0 = vpop.f32.mrb[30].mxu1  ;;  %v9865_v57 = vpop.f32.mrb[31].mxu0 }
 0x714   :  { %v8627_v30 = vadd.f32 %v9863_v55, %v8587_v14  ;;  %v9887_v18 = vpop.f32.mrb[31].mxu1 }
 0x716   :  { %v8667_v31 = vadd.f32 %v9885_v59, %v8627_v30 }
 0x718   :  { %v9800_v15 = vmul.f32 -1.442695, %v8667_v31 }
 0x71a   :  { %10080 = vpow2.f32 %v9800_v15 }
 0x724   :  { %v10081_v1 = vpop.eup %10080 }
 0x725   :  { %v8675_v2 = vadd.f32 1.0, %v10081_v1 }
 0x727   :  { %10082 = vrcp.f32 %v8675_v2 }
 0x731   :  { %v10083_v22 = vpop.eup %10082 }
 0x732   :  { %v8678_v46 = vpack.c.bf16 %v10083_v22, %v10083_v22 }
 0x734   :  { %8679 = vst [vmem:[#allocation17] sm:$0xf] %v8678_v46 }
 0x735   :  { %10295 = shalt.err (!%p10292_p6)
}
 0x736   :  { %s10296_s18 = scalar_lea.hbm %s10744_s9, 64 }
 0x737   :  { %p10297_p7 = scmp.ne.s32.totalorder %s10744_s9, %s10296_s18  ;;  %p10300_p8 = scmp.lt.u32.totalorder %s10296_s18, %s10744_s9 }
 0x739   :  { %p10302_p9 = pnand %p10300_p8, %p10297_p7 }
 0x73b   :  { %10305 = shalt.err (!%p10302_p9)
}
 0x73c   :  { %8689 = dma.vmem_to_hbm [thread:$0]  %s8687_s25, 64, %s10744_s9, [#allocation4]  }
 0x73d   :  { %10316 = dma.done.wait [#allocation4], 64  }
 0x73e   :  { %10317 = vsyncadd [#allocation4], 4294967232 }
 0x73f   :  { %8693 = vsyncpa [#allocation3], 1 }
 0x740   :  { %8694 = vsyncpa [#allocation6], 1 }
 0x741   :  { %8695 = vsyncpa [#allocation9], 1 }
 0x742   :  { %8696 = vsyncpa [#allocation12], 1 }
 0x743   :  { %8697 = vsyncpa [#allocation15], 1 }
 0x744   :  { %8698 = vsyncpa [#allocation4], 1 }

// kernel: tpu_custom_call.1
= control target key start
LH: loop header
LB: loop body
LE: loop exit
PB: predicated region body
PF: predicated region fallthrough
CT: control target
= control target key end

     0   :  { %14 = vsyncpa [#allocation3], 0  ;;  %s10735_s0 = inlined_call_operand.hbm [shape: bf16[8,16], index: 0, kind: input, shape index: {}]   ;;  %s10736_s1 = inlined_call_operand.hbm [shape: bf16[16,1024], index: 1, kind: input, shape index: {}]   ;;  %s10737_s2 = inlined_call_operand.hbm [shape: f32[1,1024], index: 2, kind: input, shape index: {}]   ;;  %s10738_s3 = inlined_call_operand.hbm [shape: bf16[1024,1024], index: 3, kind: input, shape index: {}]   ;;  %s10739_s4 = inlined_call_operand.hbm [shape: f32[1,1024], index: 4, kind: input, shape index: {}]   ;;  %s10740_s5 = inlined_call_operand.hbm [shape: bf16[1024,1024], index: 5, kind: input, shape index: {}]   ;;  %s10741_s6 = inlined_call_operand.hbm [shape: f32[1,1024], index: 6, kind: input, shape index: {}]   ;;  %s10742_s7 = inlined_call_operand.hbm [shape: bf16[1024,128], index: 7, kind: input, shape index: {}]   ;;  %s10743_s8 = inlined_call_operand.hbm [shape: f32[1,128], index: 8, kind: input, shape index: {}]   ;;  %s10744_s9 = inlined_call_operand.hbm [shape: bf16[8,128], index: 9, kind: output, shape index: {}]  }
   0x1   :  { %15 = vsyncpa [#allocation6], 0 }
   0x2   :  { %16 = vsyncpa [#allocation9], 0 }
   0x3   :  { %17 = vsyncpa [#allocation12], 0 }
   0x4   :  { %18 = vsyncpa [#allocation15], 0 }
   0x5   :  { %19 = vsyncpa [#allocation4], 0  ;;  %s10318_s30 = smov [#allocation5]   ;;  %s10086_s13 = scalar_lea.hbm %s10736_s1, 1024 }
   0x6   :  { %s35_s10 = sshll.u32 %s10318_s30, 4  ;;  %p10087_p0 = scmp.ne.s32.totalorder %s10736_s1, %s10086_s13  ;;  %s36_s10 = int_to_ptr.vmem [resolvable:$true] %s35_s10 }
   0x7   :  { %p10090_p1 = scmp.lt.u32.totalorder %s10086_s13, %s10736_s1 }
   0x9   :  { %p10092_p2 = pnand %p10090_p1, %p10087_p0 }
   0xb   :  { %10095 = shalt.err (!%p10092_p2)
}
   0xc   :  { %s10096_s18 = scalar_lea.vmem %s36_s10, 1024  ;;  %p10101_p4 = scmp.lt.s32.totalorder %s36_s10, %s36_s10 }
   0xd   :  { %p10097_p3 = scmp.ne.s32.totalorder %s36_s10, %s10096_s18  ;;  %p10102_p5 = scmp.lt.s32.totalorder %s10096_s18, %s10096_s18 }
   0xf   :  { %p10103_p6 = por %p10102_p5, %p10101_p4 }
  0x11   :  { %p10104_p7 = pnand %p10103_p6, %p10097_p3 }
  0x13   :  { %10107 = shalt.err (!%p10104_p7)
}
  0x14   :  { %s10319_s19 = smov 512   ;;  %s10320_s20 = smov 32  }
  0x15   :  { %41 = dma.hbm_to_vmem [thread:$0]  %s10736_s1, 1024, %s36_s10, [#allocation6], %s10319_s19, %s10319_s19, %s10320_s20  }
  0x16   :  { %s10321_s23 = smov [#allocation8]   ;;  %s10322_s25 = smov [#allocation11]  }
  0x17   :  { %s57_s24 = sshll.u32 %s10321_s23, 4  ;;  %s79_s26 = sshll.u32 %s10322_s25, 4  ;;  %s58_s24 = int_to_ptr.vmem [resolvable:$true] %s57_s24  ;;  %s80_s26 = int_to_ptr.vmem [resolvable:$true] %s79_s26 }
  0x18   :  { %s10108_s29 = scalar_lea.hbm %s10738_s3, 65536 }
  0x19   :  { %p10109_p8 = scmp.ne.s32.totalorder %s10738_s3, %s10108_s29  ;;  %p10112_p9 = scmp.lt.u32.totalorder %s10108_s29, %s10738_s3 }
  0x1b   :  { %p10114_p10 = pnand %p10112_p9, %p10109_p8 }
  0x1d   :  { %10117 = shalt.err (!%p10114_p10)
}
  0x1e   :  { %s10118_s1 = scalar_lea.vmem %s58_s24, 65536  ;;  %p10123_p12 = scmp.lt.s32.totalorder %s58_s24, %s58_s24 }
  0x1f   :  { %p10119_p11 = scmp.ne.s32.totalorder %s58_s24, %s10118_s1  ;;  %p10124_p13 = scmp.lt.s32.totalorder %s10118_s1, %s10118_s1 }
  0x21   :  { %p10125_p0 = por %p10124_p13, %p10123_p12 }
  0x23   :  { %p10126_p1 = pnand %p10125_p0, %p10119_p11 }
  0x25   :  { %10129 = shalt.err (!%p10126_p1)
}
  0x26   :  { %63 = dma.hbm_to_vmem [thread:$0]  %s10738_s3, 65536, %s58_s24, [#allocation9], %s10319_s19, %s10319_s19, %s10320_s20  }
  0x27   :  { %s10130_s17 = scalar_lea.hbm %s10740_s5, 65536 }
  0x28   :  { %p10131_p2 = scmp.ne.s32.totalorder %s10740_s5, %s10130_s17  ;;  %p10134_p3 = scmp.lt.u32.totalorder %s10130_s17, %s10740_s5 }
  0x2a   :  { %p10136_p4 = pnand %p10134_p3, %p10131_p2 }
  0x2c   :  { %10139 = shalt.err (!%p10136_p4)
}
  0x2d   :  { %s10140_s25 = scalar_lea.vmem %s80_s26, 65536  ;;  %p10145_p6 = scmp.lt.s32.totalorder %s80_s26, %s80_s26 }
  0x2e   :  { %p10141_p5 = scmp.ne.s32.totalorder %s80_s26, %s10140_s25  ;;  %p10146_p7 = scmp.lt.s32.totalorder %s10140_s25, %s10140_s25 }
  0x30   :  { %p10147_p8 = por %p10146_p7, %p10145_p6 }
  0x32   :  { %p10148_p9 = pnand %p10147_p8, %p10141_p5 }
  0x34   :  { %10151 = shalt.err (!%p10148_p9)
}
  0x35   :  { %85 = dma.hbm_to_vmem [thread:$0]  %s10740_s5, 65536, %s80_s26, [#allocation12], %s10319_s19, %s10319_s19, %s10320_s20  }
  0x36   :  { %s10323_s27 = smov [#allocation14]   ;;  %s10152_s11 = scalar_lea.hbm %s10742_s7, 8192 }
  0x37   :  { %s101_s28 = sshll.u32 %s10323_s27, 4  ;;  %p10153_p10 = scmp.ne.s32.totalorder %s10742_s7, %s10152_s11  ;;  %s102_s28 = int_to_ptr.vmem [resolvable:$true] %s101_s28 }
  0x38   :  { %p10156_p11 = scmp.lt.u32.totalorder %s10152_s11, %s10742_s7 }
  0x3a   :  { %p10158_p12 = pnand %p10156_p11, %p10153_p10 }
  0x3c   :  { %10161 = shalt.err (!%p10158_p12)
}
  0x3d   :  { %s10162_s14 = scalar_lea.vmem %s102_s28, 8192  ;;  %p10167_p0 = scmp.lt.s32.totalorder %s102_s28, %s102_s28 }
  0x3e   :  { %p10163_p13 = scmp.ne.s32.totalorder %s102_s28, %s10162_s14  ;;  %p10168_p1 = scmp.lt.s32.totalorder %s10162_s14, %s10162_s14 }
  0x40   :  { %p10169_p2 = por %p10168_p1, %p10167_p0 }
  0x42   :  { %p10170_p3 = pnand %p10169_p2, %p10163_p13 }
  0x44   :  { %10173 = shalt.err (!%p10170_p3)
}
  0x45   :  { %s10324_s5 = smov 64   ;;  %s10325_s19 = smov 4  }
  0x46   :  { %107 = dma.hbm_to_vmem [thread:$0]  %s10742_s7, 8192, %s102_s28, [#allocation15], %s10324_s5, %s10324_s5, %s10325_s19  }
  0x47   :  { %s10326_s15 = smov [#allocation2]   ;;  %s10327_s17 = smov [#allocation7]  }
  0x48   :  { %s26_s16 = sshll.u32 %s10326_s15, 4  ;;  %s48_s18 = sshll.u32 %s10327_s17, 4  ;;  %s27_s16 = int_to_ptr.vmem [resolvable:$true] %s26_s16  ;;  %s49_s18 = int_to_ptr.vmem [resolvable:$true] %s48_s18 }
  0x49   :  { %s10174_s23 = scalar_lea.hbm %s10735_s0, 64 }
  0x4a   :  { %p10175_p4 = scmp.ne.s32.totalorder %s10735_s0, %s10174_s23  ;;  %p10178_p5 = scmp.lt.u32.totalorder %s10174_s23, %s10735_s0 }
  0x4c   :  { %p10180_p6 = pnand %p10178_p5, %p10175_p4 }
  0x4e   :  { %10183 = shalt.err (!%p10180_p6)
}
  0x4f   :  { %s10184_s7 = scalar_lea.vmem %s27_s16, 64  ;;  %p10189_p8 = scmp.lt.s32.totalorder %s27_s16, %s27_s16 }
  0x50   :  { %p10185_p7 = scmp.ne.s32.totalorder %s27_s16, %s10184_s7  ;;  %p10190_p9 = scmp.lt.s32.totalorder %s10184_s7, %s10184_s7 }
  0x52   :  { %p10191_p10 = por %p10190_p9, %p10189_p8 }
  0x54   :  { %p10192_p11 = pnand %p10191_p10, %p10185_p7 }
  0x56   :  { %10195 = shalt.err (!%p10192_p11)
}
  0x57   :  { %29 = dma.hbm_to_vmem [thread:$0]  %s10735_s0, 64, %s27_s16, [#allocation3]  }
  0x58   :  { %s10196_s12 = scalar_lea.hbm %s10737_s2, 128 }
  0x59   :  { %p10197_p12 = scmp.ne.s32.totalorder %s10737_s2, %s10196_s12  ;;  %p10200_p13 = scmp.lt.u32.totalorder %s10196_s12, %s10737_s2 }
  0x5b   :  { %p10202_p0 = pnand %p10200_p13, %p10197_p12 }
  0x5d   :  { %10205 = shalt.err (!%p10202_p0)
}
  0x5e   :  { %s10206_s5 = scalar_lea.vmem %s49_s18, 128  ;;  %p10211_p2 = scmp.lt.s32.totalorder %s49_s18, %s49_s18 }
  0x5f   :  { %p10207_p1 = scmp.ne.s32.totalorder %s49_s18, %s10206_s5  ;;  %p10212_p3 = scmp.lt.s32.totalorder %s10206_s5, %s10206_s5 }
  0x61   :  { %p10213_p4 = por %p10212_p3, %p10211_p2 }
  0x63   :  { %p10214_p5 = pnand %p10213_p4, %p10207_p1 }
  0x65   :  { %10217 = shalt.err (!%p10214_p5)
}
  0x66   :  { %51 = dma.hbm_to_vmem [thread:$0]  %s10737_s2, 128, %s49_s18, [#allocation6]  }
  0x67   :  { %s10328_s20 = smov [#allocation10]   ;;  %s10329_s15 = smov [#allocation13]  }
  0x68   :  { %s70_s26 = sshll.u32 %s10328_s20, 4  ;;  %s92_s16 = sshll.u32 %s10329_s15, 4  ;;  %s71_s26 = int_to_ptr.vmem [resolvable:$true] %s70_s26  ;;  %s93_s16 = int_to_ptr.vmem [resolvable:$true] %s92_s16 }
  0x69   :  { %s10218_s22 = scalar_lea.hbm %s10739_s4, 128 }
  0x6a   :  { %p10219_p6 = scmp.ne.s32.totalorder %s10739_s4, %s10218_s22  ;;  %p10222_p7 = scmp.lt.u32.totalorder %s10218_s22, %s10739_s4 }
  0x6c   :  { %p10224_p8 = pnand %p10222_p7, %p10219_p6 }
  0x6e   :  { %10227 = shalt.err (!%p10224_p8)
}
  0x6f   :  { %s10228_s2 = scalar_lea.vmem %s71_s26, 128  ;;  %p10233_p10 = scmp.lt.s32.totalorder %s71_s26, %s71_s26 }
  0x70   :  { %p10229_p9 = scmp.ne.s32.totalorder %s71_s26, %s10228_s2  ;;  %p10234_p11 = scmp.lt.s32.totalorder %s10228_s2, %s10228_s2 }
  0x72   :  { %p10235_p12 = por %p10234_p11, %p10233_p10 }
  0x74   :  { %p10236_p13 = pnand %p10235_p12, %p10229_p9 }
  0x76   :  { %10239 = shalt.err (!%p10236_p13)
}
  0x77   :  { %73 = dma.hbm_to_vmem [thread:$0]  %s10739_s4, 128, %s71_s26, [#allocation9]  }
  0x78   :  { %s10240_s29 = scalar_lea.hbm %s10741_s6, 128 }
  0x79   :  { %p10241_p0 = scmp.ne.s32.totalorder %s10741_s6, %s10240_s29  ;;  %p10244_p1 = scmp.lt.u32.totalorder %s10240_s29, %s10741_s6 }
  0x7b   :  { %p10246_p2 = pnand %p10244_p1, %p10241_p0 }
  0x7d   :  { %10249 = shalt.err (!%p10246_p2)
}
  0x7e   :  { %s10250_s1 = scalar_lea.vmem %s93_s16, 128  ;;  %p10255_p4 = scmp.lt.s32.totalorder %s93_s16, %s93_s16 }
  0x7f   :  { %p10251_p3 = scmp.ne.s32.totalorder %s93_s16, %s10250_s1  ;;  %p10256_p5 = scmp.lt.s32.totalorder %s10250_s1, %s10250_s1 }
  0x81   :  { %p10257_p6 = por %p10256_p5, %p10255_p4 }
  0x83   :  { %p10258_p7 = pnand %p10257_p6, %p10251_p3 }
  0x85   :  { %10261 = shalt.err (!%p10258_p7)
}
  0x86   :  { %95 = dma.hbm_to_vmem [thread:$0]  %s10741_s6, 128, %s93_s16, [#allocation12]  }
  0x87   :  { %s10330_s14 = smov [#allocation16]   ;;  %s10262_s20 = scalar_lea.hbm %s10743_s8, 16 }
  0x88   :  { %s114_s5 = sshll.u32 %s10330_s14, 4  ;;  %p10263_p8 = scmp.ne.s32.totalorder %s10743_s8, %s10262_s20  ;;  %s115_s5 = int_to_ptr.vmem [resolvable:$true] %s114_s5 }
  0x89   :  { %p10266_p9 = scmp.lt.u32.totalorder %s10262_s20, %s10743_s8 }
  0x8b   :  { %p10268_p10 = pnand %p10266_p9, %p10263_p8 }
  0x8d   :  { %10271 = shalt.err (!%p10268_p10)
}
  0x8e   :  { %s10272_s22 = scalar_lea.vmem %s115_s5, 16  ;;  %s10276_s6 = scalar_lea.vmem %s115_s5, 32 }
  0x8f   :  { %p10273_p11 = scmp.ne.s32.totalorder %s115_s5, %s10272_s22  ;;  %p10277_p12 = scmp.lt.s32.totalorder %s115_s5, %s115_s5 }
  0x90   :  { %p10278_p13 = scmp.lt.s32.totalorder %s10276_s6, %s10272_s22 }
  0x92   :  { %p10279_p0 = por %p10278_p13, %p10277_p12 }
  0x94   :  { %p10280_p1 = pnand %p10279_p0, %p10273_p11 }
  0x96   :  { %10283 = shalt.err (!%p10280_p1)
}
  0x97   :  { %117 = dma.hbm_to_vmem [thread:$0]  %s10743_s8, 16, %s115_s5, [#allocation15]  }
  0x98   :  { %10306 = dma.done.wait [#allocation3], 64  }
  0x99   :  { %10307 = vsyncadd [#allocation3], 4294967232 }
  0x9a   :  { %10308 = dma.done.wait [#allocation6], 1152  }
  0x9b   :  { %10309 = vsyncadd [#allocation6], 4294966144 }
  0x9c   :  { %10310 = dma.done.wait [#allocation9], 65664  }
  0x9d   :  { %10311 = vsyncadd [#allocation9], 4294901632 }
  0x9e   :  { %10312 = dma.done.wait [#allocation12], 65664  }
  0x9f   :  { %10313 = vsyncadd [#allocation12], 4294901632 }
  0xa0   :  { %10314 = dma.done.wait [#allocation15], 8208  }
  0xa1   :  { %10315 = vsyncadd [#allocation15], 4294959088  ;;  %v10331_v0 = vmov 0   ;;  %v147_v1 = vld [vmem:[#allocation5] sm:$0xff]  ;;  %v148_v5 = vld [vmem:[#allocation5 + $0x8] sm:$0xff]  ;;  %vm237_vm0 = vcmask 130048  }
  0xa2   :  { %273 = vmatprep.mubr.bf16.mxu0 %v10331_v0  ;;  %314 = vmatprep.mubr.bf16.mxu1 %v10331_v0  ;;  %v151_v2 = vld [vmem:[#allocation5 + $0x20] sm:$0xff]  ;;  %v152_v6 = vld [vmem:[#allocation5 + $0x28] sm:$0xff]  ;;  %v149_v7 = vld [vmem:[#allocation5 + $0x10] sm:$0xff]  ;;  %s10332_s8 = smov [#allocation17]  }
  0xa3   :  { %v8700_v3 = vcombine.high %v147_v1, %v151_v2  ;;  %v8699_v4 = vcombine.low %v147_v1, %v151_v2  ;;  %v8702_v8 = vcombine.high %v148_v5, %v152_v6  ;;  %v8701_v9 = vcombine.low %v148_v5, %v152_v6  ;;  %v153_v10 = vld [vmem:[#allocation5 + $0x30] sm:$0xff]  ;;  %v150_v11 = vld [vmem:[#allocation5 + $0x18] sm:$0xff]  ;;  %v421_v15 = vld [vmem:[#allocation8] sm:$0xff]  ;;  %s8686_s25 = sshll.u32 %s10332_s8, 4  ;;  %s8687_s25 = int_to_ptr.vmem [resolvable:$true] %s8686_s25 }
  0xa4   :  { %v154_v12 = vld [vmem:[#allocation5 + $0x38] sm:$0xff]  ;;  %v8704_v13 = vcombine.high %v149_v7, %v153_v10  ;;  %v425_v16 = vld [vmem:[#allocation8 + $0x20] sm:$0xff]  ;;  %v8703_v18 = vcombine.low %v149_v7, %v153_v10  ;;  %v422_v19 = vld [vmem:[#allocation8 + $0x8] sm:$0xff]  ;;  %s10284_s3 = scalar_lea.vmem %s8687_s25, 64  ;;  %p10289_p3 = scmp.lt.s32.totalorder %s8687_s25, %s8687_s25 }
  0xa5   :  { %241 = vmatprep.subr.bf16.mxu0 %v8700_v3  ;;  %v8706_v14 = vcombine.high %v150_v11, %v154_v12  ;;  %v146_v17 = vld [vmem:[#allocation2] sm:$0xf]  ;;  %282 = vmatprep.subr.bf16.mxu1 %v8702_v8  ;;  %v426_v20 = vld [vmem:[#allocation8 + $0x28] sm:$0xff]  ;;  %v8705_v21 = vcombine.low %v150_v11, %v154_v12  ;;  %v8712_v22 = vcombine.high %v421_v15, %v425_v16  ;;  %v429_v24 = vld [vmem:[#allocation8 + $0x40] sm:$0xff]  ;;  %p10285_p2 = scmp.ne.s32.totalorder %s8687_s25, %s10284_s3  ;;  %p10290_p4 = scmp.lt.s32.totalorder %s10284_s3, %s10284_s3 }
  0xa6   :  { %242 = vmatpush1.bf16.msra.mxu0 %v8699_v4  ;;  %283 = vmatpush1.bf16.msra.mxu1 %v8701_v9  ;;  %v8714_v23 = vcombine.high %v422_v19, %v426_v20  ;;  %v433_v25 = vld [vmem:[#allocation8 + $0x60] sm:$0xff]  ;;  %v430_v26 = vld [vmem:[#allocation8 + $0x48] sm:$0xff]  ;;  %v8711_v28 = vcombine.low %v421_v15, %v425_v16  ;;  %v8713_v29 = vcombine.low %v422_v19, %v426_v20 }
  0xa7   :  { %323 = vmatprep.subr.bf16.mxu0 %v8704_v13  ;;  %364 = vmatprep.subr.bf16.mxu1 %v8706_v14  ;;  %v434_v27 = vld [vmem:[#allocation8 + $0x68] sm:$0xff]  ;;  %v8720_v30 = vcombine.high %v429_v24, %v433_v25  ;;  %v437_v32 = vld [vmem:[#allocation8 + $0x80] sm:$0xff]  ;;  %v8719_v36 = vcombine.low %v429_v24, %v433_v25  ;;  %p10291_p5 = por %p10290_p4, %p10289_p3 }
  0xa8   :  { %v8722_v31 = vcombine.high %v430_v26, %v434_v27  ;;  %v441_v33 = vld [vmem:[#allocation8 + $0xa0] sm:$0xff]  ;;  %v438_v34 = vld [vmem:[#allocation8 + $0x88] sm:$0xff]  ;;  %v8721_v37 = vcombine.low %v430_v26, %v434_v27 }
  0xa9   :  { %8707 = vmatmul.mubr.msk.bf16.vlgmr.msra.gmra.mrb[0].mxu0 %vm237_vm0, %v146_v17  ;;  %8708 = vmatmul.mubr.msk.bf16.vlgmr.msra.gmra.mrb[0].mxu1 %vm237_vm0, %v146_v17  ;;  %v442_v35 = vld [vmem:[#allocation8 + $0xa8] sm:$0xff]  ;;  %v8728_v38 = vcombine.high %v437_v32, %v441_v33  ;;  %v445_v40 = vld [vmem:[#allocation8 + $0xc0] sm:$0xff]  ;;  %v8727_v44 = vcombine.low %v437_v32, %v441_v33  ;;  %p10292_p6 = pnand %p10291_p5, %p10285_p2 }
  0xaa   :  { %324 = vmatpush1.bf16.msra.mxu0 %v8703_v18  ;;  %355 = vmatprep.mubr.bf16.mxu0 %v10331_v0  ;;  %v8730_v39 = vcombine.high %v438_v34, %v442_v35  ;;  %v449_v41 = vld [vmem:[#allocation8 + $0xe0] sm:$0xff]  ;;  %v446_v42 = vld [vmem:[#allocation8 + $0xc8] sm:$0xff]  ;;  %v8729_v46 = vcombine.low %v438_v34, %v442_v35 }
  0xab   :  { %365 = vmatpush1.bf16.msra.mxu1 %v8705_v21  ;;  %396 = vmatprep.mubr.bf16.mxu1 %v10331_v0  ;;  %v450_v43 = vld [vmem:[#allocation8 + $0xe8] sm:$0xff]  ;;  %v453_v45 = vld [vmem:[#allocation8 + $0x100] sm:$0xff]  ;;  %v8736_v47 = vcombine.high %v445_v40, %v449_v41  ;;  %v8735_v52 = vcombine.low %v445_v40, %v449_v41 }
  0xac   :  { %3535 = vmatprep.subr.bf16.mxu0 %v8712_v22  ;;  %3699 = vmatprep.subr.bf16.mxu1 %v8714_v23  ;;  %v457_v48 = vld [vmem:[#allocation8 + $0x120] sm:$0xff]  ;;  %v454_v49 = vld [vmem:[#allocation8 + $0x108] sm:$0xff]  ;;  %v8738_v51 = vcombine.high %v446_v42, %v450_v43  ;;  %v8737_v55 = vcombine.low %v446_v42, %v450_v43 }
  0xad   :  { %v458_v50 = vld [vmem:[#allocation8 + $0x128] sm:$0xff]  ;;  %v461_v53 = vld [vmem:[#allocation8 + $0x140] sm:$0xff]  ;;  %v8744_v56 = vcombine.high %v453_v45, %v457_v48  ;;  %v8743_v60 = vcombine.low %v453_v45, %v457_v48 }
  0xae   :  { %v465_v54 = vld [vmem:[#allocation8 + $0x160] sm:$0xff]  ;;  %v462_v57 = vld [vmem:[#allocation8 + $0x148] sm:$0xff]  ;;  %v8746_v59 = vcombine.high %v454_v49, %v458_v50  ;;  %v8745_v63 = vcombine.low %v454_v49, %v458_v50 }
  0xaf   :  { %v466_v58 = vld [vmem:[#allocation8 + $0x168] sm:$0xff]  ;;  %v469_v61 = vld [vmem:[#allocation8 + $0x180] sm:$0xff]  ;;  %v8752_v0 = vcombine.high %v461_v53, %v465_v54  ;;  %v8751_v4 = vcombine.low %v461_v53, %v465_v54 }
  0xb0   :  { %v473_v62 = vld [vmem:[#allocation8 + $0x1a0] sm:$0xff]  ;;  %v470_v1 = vld [vmem:[#allocation8 + $0x188] sm:$0xff]  ;;  %v8754_v3 = vcombine.high %v462_v57, %v466_v58  ;;  %v8753_v7 = vcombine.low %v462_v57, %v466_v58 }
  0xb1   :  { %8709 = vmatmul.mubr.msk.bf16.vlgmr.msra.gmra.mrb[4].mxu0 %vm237_vm0, %v146_v17  ;;  %8710 = vmatmul.mubr.msk.bf16.vlgmr.msra.gmra.mrb[4].mxu1 %vm237_vm0, %v146_v17  ;;  %v474_v2 = vld [vmem:[#allocation8 + $0x1a8] sm:$0xff]  ;;  %v477_v5 = vld [vmem:[#allocation8 + $0x1c0] sm:$0xff]  ;;  %v8760_v8 = vcombine.high %v469_v61, %v473_v62  ;;  %v8759_v12 = vcombine.low %v469_v61, %v473_v62 }
  0xb2   :  { %3536 = vmatpush1.bf16.msra.mxu0 %v8711_v28  ;;  %3700 = vmatpush1.bf16.msra.mxu1 %v8713_v29  ;;  %v481_v6 = vld [vmem:[#allocation8 + $0x1e0] sm:$0xff]  ;;  %v478_v9 = vld [vmem:[#allocation8 + $0x1c8] sm:$0xff]  ;;  %v8762_v11 = vcombine.high %v470_v1, %v474_v2  ;;  %v8761_v15 = vcombine.low %v470_v1, %v474_v2 }
  0xb3   :  { %3537 = vmatprep.subr.bf16.mxu0 %v8720_v30  ;;  %3701 = vmatprep.subr.bf16.mxu1 %v8722_v31  ;;  %v482_v10 = vld [vmem:[#allocation8 + $0x1e8] sm:$0xff]  ;;  %v485_v13 = vld [vmem:[#allocation8 + $0x200] sm:$0xff]  ;;  %v8768_v16 = vcombine.high %v477_v5, %v481_v6  ;;  %v8767_v20 = vcombine.low %v477_v5, %v481_v6 }
  0xb4   :  { %v489_v14 = vld [vmem:[#allocation8 + $0x220] sm:$0xff]  ;;  %v486_v17 = vld [vmem:[#allocation8 + $0x208] sm:$0xff]  ;;  %v8770_v19 = vcombine.high %v478_v9, %v482_v10  ;;  %v8769_v23 = vcombine.low %v478_v9, %v482_v10 }
  0xb5   :  { %v490_v18 = vld [vmem:[#allocation8 + $0x228] sm:$0xff]  ;;  %v493_v21 = vld [vmem:[#allocation8 + $0x240] sm:$0xff]  ;;  %v8776_v24 = vcombine.high %v485_v13, %v489_v14  ;;  %v8775_v28 = vcombine.low %v485_v13, %v489_v14 }
  0xb6   :  { %3538 = vmatpush1.bf16.msra.mxu0 %v8719_v36  ;;  %3702 = vmatpush1.bf16.msra.mxu1 %v8721_v37  ;;  %v497_v22 = vld [vmem:[#allocation8 + $0x260] sm:$0xff]  ;;  %v494_v25 = vld [vmem:[#allocation8 + $0x248] sm:$0xff]  ;;  %v8778_v27 = vcombine.high %v486_v17, %v490_v18  ;;  %v8777_v31 = vcombine.low %v486_v17, %v490_v18 }
  0xb7   :  { %3539 = vmatprep.subr.bf16.mxu0 %v8728_v38  ;;  %3703 = vmatprep.subr.bf16.mxu1 %v8730_v39  ;;  %v498_v26 = vld [vmem:[#allocation8 + $0x268] sm:$0xff]  ;;  %v501_v29 = vld [vmem:[#allocation8 + $0x280] sm:$0xff]  ;;  %v8784_v32 = vcombine.high %v493_v21, %v497_v22  ;;  %v8783_v36 = vcombine.low %v493_v21, %v497_v22 }
  0xb8   :  { %v505_v30 = vld [vmem:[#allocation8 + $0x2a0] sm:$0xff]  ;;  %v502_v33 = vld [vmem:[#allocation8 + $0x288] sm:$0xff]  ;;  %v8786_v35 = vcombine.high %v494_v25, %v498_v26  ;;  %v8785_v39 = vcombine.low %v494_v25, %v498_v26  ;;  %v157_v26 = vlaneseq }
  0xb9   :  { %v506_v34 = vld [vmem:[#allocation8 + $0x2a8] sm:$0xff]  ;;  %v509_v37 = vld [vmem:[#allocation8 + $0x2c0] sm:$0xff]  ;;  %v8792_v40 = vcombine.high %v501_v29, %v505_v30 }
  0xba   :  { %3540 = vmatpush1.bf16.msra.mxu0 %v8727_v44  ;;  %3704 = vmatpush1.bf16.msra.mxu1 %v8729_v46  ;;  %v513_v38 = vld [vmem:[#allocation8 + $0x2e0] sm:$0xff]  ;;  %v510_v41 = vld [vmem:[#allocation8 + $0x2c8] sm:$0xff]  ;;  %v8794_v43 = vcombine.high %v502_v33, %v506_v34  ;;  %v8791_v44 = vcombine.low %v501_v29, %v505_v30  ;;  %v10509_v29 = vld [vmem:[#allocation7] sm:$0xff] }
  0xbb   :  { %3541 = vmatprep.subr.bf16.mxu0 %v8736_v47  ;;  %3705 = vmatprep.subr.bf16.mxu1 %v8738_v51  ;;  %v514_v42 = vld [vmem:[#allocation8 + $0x2e8] sm:$0xff]  ;;  %v517_v45 = vld [vmem:[#allocation8 + $0x300] sm:$0xff]  ;;  %v8793_v47 = vcombine.low %v502_v33, %v506_v34  ;;  %v8800_v48 = vcombine.high %v509_v37, %v513_v38 }
  0xbc   :  { %v521_v46 = vld [vmem:[#allocation8 + $0x320] sm:$0xff]  ;;  %v518_v49 = vld [vmem:[#allocation8 + $0x308] sm:$0xff]  ;;  %v8802_v51 = vcombine.high %v510_v41, %v514_v42 }
  0xbd   :  { %v522_v50 = vld [vmem:[#allocation8 + $0x328] sm:$0xff]  ;;  %v525_v53 = vld [vmem:[#allocation8 + $0x340] sm:$0xff] }
  0xbe   :  { %3542 = vmatpush1.bf16.msra.mxu0 %v8735_v52  ;;  %3706 = vmatpush1.bf16.msra.mxu1 %v8737_v55  ;;  %v8799_v52 = vcombine.low %v509_v37, %v513_v38  ;;  %v529_v54 = vld [vmem:[#allocation8 + $0x360] sm:$0xff]  ;;  %v8801_v55 = vcombine.low %v510_v41, %v514_v42  ;;  %v526_v57 = vld [vmem:[#allocation8 + $0x348] sm:$0xff]  ;;  %v8809_v61 = vcombine.low %v518_v49, %v522_v50 }
  0xbf   :  { %3543 = vmatprep.subr.bf16.mxu0 %v8744_v56  ;;  %3707 = vmatprep.subr.bf16.mxu1 %v8746_v59  ;;  %v8808_v56 = vcombine.high %v517_v45, %v521_v46  ;;  %v530_v58 = vld [vmem:[#allocation8 + $0x368] sm:$0xff]  ;;  %v8810_v59 = vcombine.high %v518_v49, %v522_v50  ;;  %v8816_v62 = vcombine.high %v525_v53, %v529_v54  ;;  %v533_v2 = vld [vmem:[#allocation8 + $0x380] sm:$0xff] }
  0xc0   :  { %v8817_v1 = vcombine.low %v526_v57, %v530_v58  ;;  %v538_v6 = vld [vmem:[#allocation8 + $0x3a8] sm:$0xff]  ;;  %v541_v10 = vld [vmem:[#allocation8 + $0x3c0] sm:$0xff] }
  0xc1   :  { %v546_v14 = vld [vmem:[#allocation8 + $0x3e8] sm:$0xff]  ;;  %v549_v18 = vld [vmem:[#allocation8 + $0x400] sm:$0xff] }
  0xc2   :  { %3544 = vmatpush1.bf16.msra.mxu0 %v8743_v60  ;;  %3708 = vmatpush1.bf16.msra.mxu1 %v8745_v63  ;;  %v8807_v60 = vcombine.low %v517_v45, %v521_v46  ;;  %v8818_v63 = vcombine.high %v526_v57, %v530_v58  ;;  %v554_v22 = vld [vmem:[#allocation8 + $0x428] sm:$0xff]  ;;  %v565_v57 = vld [vmem:[#allocation8 + $0x480] sm:$0xff] }
  0xc3   :  { %3545 = vmatprep.subr.bf16.mxu0 %v8752_v0  ;;  %3709 = vmatprep.subr.bf16.mxu1 %v8754_v3  ;;  %v8815_v0 = vcombine.low %v525_v53, %v529_v54  ;;  %v537_v3 = vld [vmem:[#allocation8 + $0x3a0] sm:$0xff]  ;;  %v558_v49 = vld [vmem:[#allocation8 + $0x448] sm:$0xff] }
  0xc4   :  { %v8824_v5 = vcombine.high %v533_v2, %v537_v3  ;;  %v562_v50 = vld [vmem:[#allocation8 + $0x468] sm:$0xff]  ;;  %v569_v58 = vld [vmem:[#allocation8 + $0x4a0] sm:$0xff] }
  0xc6   :  { %3546 = vmatpush1.bf16.msra.mxu0 %v8751_v4  ;;  %3710 = vmatpush1.bf16.msra.mxu1 %v8753_v7  ;;  %v534_v4 = vld [vmem:[#allocation8 + $0x388] sm:$0xff]  ;;  %v8823_v7 = vcombine.low %v533_v2, %v537_v3  ;;  %v8856_v3 = vcombine.high %v565_v57, %v569_v58 }
  0xc7   :  { %3547 = vmatprep.subr.bf16.mxu0 %v8760_v8  ;;  %3711 = vmatprep.subr.bf16.mxu1 %v8762_v11  ;;  %v8825_v8 = vcombine.low %v534_v4, %v538_v6  ;;  %v8826_v9 = vcombine.high %v534_v4, %v538_v6  ;;  %v545_v11 = vld [vmem:[#allocation8 + $0x3e0] sm:$0xff] }
  0xc8   :  { %v8832_v13 = vcombine.high %v541_v10, %v545_v11 }
  0xca   :  { %3548 = vmatpush1.bf16.msra.mxu0 %v8759_v12  ;;  %3712 = vmatpush1.bf16.msra.mxu1 %v8761_v15  ;;  %v542_v12 = vld [vmem:[#allocation8 + $0x3c8] sm:$0xff]  ;;  %v8831_v15 = vcombine.low %v541_v10, %v545_v11  ;;  %v8855_v10 = vcombine.low %v565_v57, %v569_v58 }
  0xcb   :  { %3549 = vmatprep.subr.bf16.mxu0 %v8768_v16  ;;  %3713 = vmatprep.subr.bf16.mxu1 %v8770_v19  ;;  %v8833_v16 = vcombine.low %v542_v12, %v546_v14  ;;  %v8834_v17 = vcombine.high %v542_v12, %v546_v14  ;;  %v553_v19 = vld [vmem:[#allocation8 + $0x420] sm:$0xff]  ;;  %v618_v57 = vld [vmem:[#allocation8 + $0x628] sm:$0xff] }
  0xcc   :  { %v8840_v21 = vcombine.high %v549_v18, %v553_v19  ;;  %v581_v14 = vld [vmem:[#allocation8 + $0x500] sm:$0xff] }
  0xce   :  { %3550 = vmatpush1.bf16.msra.mxu0 %v8767_v20  ;;  %3714 = vmatpush1.bf16.msra.mxu1 %v8769_v23  ;;  %v550_v20 = vld [vmem:[#allocation8 + $0x408] sm:$0xff]  ;;  %v8839_v23 = vcombine.low %v549_v18, %v553_v19 }
  0xcf   :  { %3551 = vmatprep.subr.bf16.mxu0 %v8776_v24  ;;  %3715 = vmatprep.subr.bf16.mxu1 %v8778_v27  ;;  %v8841_v24 = vcombine.low %v550_v20, %v554_v22  ;;  %v8842_v25 = vcombine.high %v550_v20, %v554_v22  ;;  %v10504_v27 = vshrl.u32 %v157_v26, 7  ;;  %v589_v22 = vld [vmem:[#allocation8 + $0x540] sm:$0xff] }
  0xd1   :  { %v10512_v30 = vsub.s32 1, %v10504_v27 }
  0xd2   :  { %3552 = vmatpush1.bf16.msra.mxu0 %v8775_v28  ;;  %3716 = vmatpush1.bf16.msra.mxu1 %v8777_v31  ;;  %v10507_v28 = vsub.s32 0, %v10504_v27  ;;  %v10515_v31 = vsub.s32 3, %v10504_v27 }
  0xd3   :  { %3553 = vmatprep.subr.bf16.mxu0 %v8784_v32  ;;  %3717 = vmatprep.subr.bf16.mxu1 %v8786_v35  ;;  %v164_v33 = vrot.slane %v10509_v29, %v10512_v30 }
  0xd4   :  { %v160_v32 = vrot.slane %v10509_v29, %v10507_v28  ;;  %v172_v34 = vrot.slane %v10509_v29, %v10515_v31 }
  0xd6   :  { %3554 = vmatpush1.bf16.msra.mxu0 %v8783_v36  ;;  %3718 = vmatpush1.bf16.msra.mxu1 %v8785_v39 }
  0xd7   :  { %3555 = vmatprep.subr.bf16.mxu0 %v8792_v40  ;;  %3719 = vmatprep.subr.bf16.mxu1 %v8794_v43 }
  0xda   :  { %3556 = vmatpush1.bf16.msra.mxu0 %v8791_v44  ;;  %3720 = vmatpush1.bf16.msra.mxu1 %v8793_v47  ;;  %v557_v44 = vld [vmem:[#allocation8 + $0x440] sm:$0xff] }
  0xdb   :  { %3557 = vmatprep.subr.bf16.mxu0 %v8800_v48  ;;  %3721 = vmatprep.subr.bf16.mxu1 %v8802_v51  ;;  %v561_v48 = vld [vmem:[#allocation8 + $0x460] sm:$0xff] }
  0xde   :  { %3558 = vmatpush1.bf16.msra.mxu0 %v8799_v52  ;;  %3722 = vmatpush1.bf16.msra.mxu1 %v8801_v55  ;;  %v8848_v55 = vcombine.high %v557_v44, %v561_v48 }
  0xdf   :  { %3559 = vmatprep.subr.bf16.mxu0 %v8808_v56  ;;  %3723 = vmatprep.subr.bf16.mxu1 %v8810_v59  ;;  %v8850_v56 = vcombine.high %v558_v49, %v562_v50  ;;  %v566_v59 = vld [vmem:[#allocation8 + $0x488] sm:$0xff] }
  0xe2   :  { %3560 = vmatpush1.bf16.msra.mxu0 %v8807_v60  ;;  %3724 = vmatpush1.bf16.msra.mxu1 %v8809_v61  ;;  %v570_v60 = vld [vmem:[#allocation8 + $0x4a8] sm:$0xff] }
  0xe3   :  { %3561 = vmatprep.subr.bf16.mxu0 %v8816_v62  ;;  %3725 = vmatprep.subr.bf16.mxu1 %v8818_v63  ;;  %v8858_v4 = vcombine.high %v566_v59, %v570_v60  ;;  %v8857_v11 = vcombine.low %v566_v59, %v570_v60 }
  0xe6   :  { %3562 = vmatpush1.bf16.msra.mxu0 %v8815_v0  ;;  %3726 = vmatpush1.bf16.msra.mxu1 %v8817_v1  ;;  %v8847_v0 = vcombine.low %v557_v44, %v561_v48  ;;  %v8849_v1 = vcombine.low %v558_v49, %v562_v50  ;;  %v605_v44 = vld [vmem:[#allocation8 + $0x5c0] sm:$0xff] }
  0xe7   :  { %3563 = vmatprep.subr.bf16.mxu0 %v8824_v5  ;;  %3727 = vmatprep.subr.bf16.mxu1 %v8826_v9  ;;  %v573_v5 = vld [vmem:[#allocation8 + $0x4c0] sm:$0xff]  ;;  %v578_v9 = vld [vmem:[#allocation8 + $0x4e8] sm:$0xff] }
  0xea   :  { %3564 = vmatpush1.bf16.msra.mxu0 %v8823_v7  ;;  %3728 = vmatpush1.bf16.msra.mxu1 %v8825_v8  ;;  %v577_v7 = vld [vmem:[#allocation8 + $0x4e0] sm:$0xff]  ;;  %v574_v8 = vld [vmem:[#allocation8 + $0x4c8] sm:$0xff] }
  0xeb   :  { %3565 = vmatprep.subr.bf16.mxu0 %v8832_v13  ;;  %3729 = vmatprep.subr.bf16.mxu1 %v8834_v17  ;;  %v8864_v12 = vcombine.high %v573_v5, %v577_v7  ;;  %v8866_v13 = vcombine.high %v574_v8, %v578_v9  ;;  %v586_v17 = vld [vmem:[#allocation8 + $0x528] sm:$0xff]  ;;  %v8863_v18 = vcombine.low %v573_v5, %v577_v7 }
  0xec   :  { %v8865_v19 = vcombine.low %v574_v8, %v578_v9  ;;  %v629_v9 = vld [vmem:[#allocation8 + $0x680] sm:$0xff] }
  0xee   :  { %3566 = vmatpush1.bf16.msra.mxu0 %v8831_v15  ;;  %3730 = vmatpush1.bf16.msra.mxu1 %v8833_v16  ;;  %v585_v15 = vld [vmem:[#allocation8 + $0x520] sm:$0xff]  ;;  %v582_v16 = vld [vmem:[#allocation8 + $0x508] sm:$0xff] }
  0xef   :  { %3576 = vmatprep.subr.bf16.mxu0 %v8840_v21  ;;  %3740 = vmatprep.subr.bf16.mxu1 %v8842_v25  ;;  %v8872_v20 = vcombine.high %v581_v14, %v585_v15  ;;  %v8874_v21 = vcombine.high %v582_v16, %v586_v17  ;;  %v594_v25 = vld [vmem:[#allocation8 + $0x568] sm:$0xff]  ;;  %v8871_v26 = vcombine.low %v581_v14, %v585_v15 }
 0x17c   :  { %v275_v35 = vpop.f32.mrb[0].mxu0  ;;  %v10523_v38 = vpop.f32.mrb[0].mxu1 }
 0x17d   :  { %v276_v36 = vadd.f32 %v275_v35, %v160_v32  ;;  %v277_v37 = vpop.f32.mrb[1].mxu0  ;;  %v318_v41 = vpop.f32.mrb[1].mxu1  ;;  %v8873_v32 = vcombine.low %v582_v16, %v586_v17  ;;  %v597_v35 = vld [vmem:[#allocation8 + $0x580] sm:$0xff] }
 0x17e   :  { %v278_v39 = vadd.f32 %v277_v37, %v164_v33  ;;  %v279_v40 = vpop.f32.mrb[2].mxu0  ;;  %v319_v45 = vadd.f32 %v318_v41, %v172_v34  ;;  %v320_v46 = vpop.f32.mrb[2].mxu1  ;;  %v598_v37 = vld [vmem:[#allocation8 + $0x588] sm:$0xff]  ;;  %v637_v17 = vld [vmem:[#allocation8 + $0x6c0] sm:$0xff] }
 0x17f   :  { %v405_v42 = vmax.f32 %v276_v36, 0.0  ;;  %v280_v43 = vpop.f32.mrb[3].mxu0  ;;  %v321_v51 = vpop.f32.mrb[3].mxu1  ;;  %v601_v36 = vld [vmem:[#allocation8 + $0x5a0] sm:$0xff]  ;;  %v606_v46 = vld [vmem:[#allocation8 + $0x5c8] sm:$0xff] }
 0x180   :  { %v406_v47 = vmax.f32 %v278_v39, 0.0  ;;  %v408_v52 = vmax.f32 %v319_v45, 0.0  ;;  %v602_v39 = vld [vmem:[#allocation8 + $0x5a8] sm:$0xff]  ;;  %v609_v45 = vld [vmem:[#allocation8 + $0x5e0] sm:$0xff]  ;;  %v8887_v48 = vcombine.low %v597_v35, %v601_v36 }
 0x181   :  { %v10527_v54 = vpack.c.bf16 %v405_v42, %v405_v42  ;;  %v8888_v42 = vcombine.high %v597_v35, %v601_v36  ;;  %v8890_v43 = vcombine.high %v598_v37, %v602_v39  ;;  %v8889_v49 = vcombine.low %v598_v37, %v602_v39  ;;  %v653_v39 = vld [vmem:[#allocation8 + $0x740] sm:$0xff] }
 0x182   :  { %v10525_v53 = vpack.c.bf16 %v406_v47, %v406_v47  ;;  %v10531_v61 = vpack.c.bf16 %v408_v52, %v408_v52  ;;  %v610_v47 = vld [vmem:[#allocation8 + $0x5e8] sm:$0xff]  ;;  %v8896_v50 = vcombine.high %v605_v44, %v609_v45  ;;  %v613_v52 = vld [vmem:[#allocation8 + $0x600] sm:$0xff]  ;;  %v8895_v58 = vcombine.low %v605_v44, %v609_v45 }
 0x183   :  { %v8898_v51 = vcombine.high %v606_v46, %v610_v47  ;;  %v8897_v59 = vcombine.low %v606_v46, %v610_v47 }
 0x184   :  { %3567 = vmatprep.mubr.bf16.mxu0 %v10525_v53  ;;  %3731 = vmatprep.mubr.bf16.mxu1 %v10525_v53  ;;  %v10533_v62 = vpop.f32.mrb[4].mxu0  ;;  %v10544_v46 = vpop.f32.mrb[4].mxu1 }
 0x185   :  { %3568 = vmatmul.mubr.bf16.vlgmr.msra.gmra.mrb[8].mxu0 %v10527_v54  ;;  %3732 = vmatmul.mubr.bf16.vlgmr.msra.gmra.mrb[8].mxu1 %v10527_v54  ;;  %v10537_v63 = vpop.f32.mrb[5].mxu0 }
 0x186   :  { %3577 = vmatpush1.bf16.msra.mxu0 %v8839_v23  ;;  %3741 = vmatpush1.bf16.msra.mxu1 %v8841_v24  ;;  %v361_v2 = vpop.f32.mrb[6].mxu0  ;;  %v593_v23 = vld [vmem:[#allocation8 + $0x560] sm:$0xff]  ;;  %v590_v24 = vld [vmem:[#allocation8 + $0x548] sm:$0xff] }
 0x187   :  { %3578 = vmatprep.subr.bf16.mxu0 %v8848_v55  ;;  %3742 = vmatprep.subr.bf16.mxu1 %v8850_v56  ;;  %v362_v6 = vpop.f32.mrb[7].mxu0  ;;  %v8880_v33 = vcombine.high %v589_v22, %v593_v23  ;;  %v8882_v34 = vcombine.high %v590_v24, %v594_v25  ;;  %v8879_v40 = vcombine.low %v589_v22, %v593_v23  ;;  %v617_v55 = vld [vmem:[#allocation8 + $0x620] sm:$0xff]  ;;  %v614_v56 = vld [vmem:[#allocation8 + $0x608] sm:$0xff] }
 0x188   :  { %3608 = vmatprep.mubr.bf16.mxu0 %v10531_v61  ;;  %3772 = vmatprep.mubr.bf16.mxu1 %v10531_v61  ;;  %v8881_v41 = vcombine.low %v590_v24, %v594_v25  ;;  %v8904_v60 = vcombine.high %v613_v52, %v617_v55  ;;  %v625_v2 = vld [vmem:[#allocation8 + $0x660] sm:$0xff]  ;;  %v8903_v5 = vcombine.low %v613_v52, %v617_v55  ;;  %v662_v52 = vld [vmem:[#allocation8 + $0x788] sm:$0xff] }
 0x189   :  { %v8905_v6 = vcombine.low %v614_v56, %v618_v57  ;;  %v645_v25 = vld [vmem:[#allocation8 + $0x700] sm:$0xff]  ;;  %v666_v55 = vld [vmem:[#allocation8 + $0x7a8] sm:$0xff] }
 0x18a   :  { %3579 = vmatpush1.bf16.msra.mxu0 %v8847_v0  ;;  %3743 = vmatpush1.bf16.msra.mxu1 %v8849_v1  ;;  %v8906_v0 = vcombine.high %v614_v56, %v618_v57  ;;  %v621_v1 = vld [vmem:[#allocation8 + $0x640] sm:$0xff]  ;;  %v10549_v56 = vsub.s32 5, %v10504_v27 }
 0x18b   :  { %3580 = vmatprep.subr.bf16.mxu0 %v8856_v3  ;;  %3744 = vmatprep.subr.bf16.mxu1 %v8858_v4  ;;  %v622_v3 = vld [vmem:[#allocation8 + $0x648] sm:$0xff]  ;;  %v8912_v7 = vcombine.high %v621_v1, %v625_v2 }
 0x18c   :  { %v626_v4 = vld [vmem:[#allocation8 + $0x668] sm:$0xff] }
 0x18d   :  { %v8914_v8 = vcombine.high %v622_v3, %v626_v4  ;;  %v8913_v14 = vcombine.low %v622_v3, %v626_v4  ;;  %v669_v3 = vld [vmem:[#allocation8 + $0x7c0] sm:$0xff] }
 0x18e   :  { %3581 = vmatpush1.bf16.msra.mxu0 %v8855_v10  ;;  %3745 = vmatpush1.bf16.msra.mxu1 %v8857_v11  ;;  %v633_v10 = vld [vmem:[#allocation8 + $0x6a0] sm:$0xff]  ;;  %v630_v11 = vld [vmem:[#allocation8 + $0x688] sm:$0xff] }
 0x18f   :  { %3582 = vmatprep.subr.bf16.mxu0 %v8864_v12  ;;  %3746 = vmatprep.subr.bf16.mxu1 %v8866_v13  ;;  %v634_v12 = vld [vmem:[#allocation8 + $0x6a8] sm:$0xff]  ;;  %v8911_v13 = vcombine.low %v621_v1, %v625_v2  ;;  %v8920_v15 = vcombine.high %v629_v9, %v633_v10  ;;  %v8954_v2 = vcombine.high %v662_v52, %v666_v55  ;;  %v673_v4 = vld [vmem:[#allocation8 + $0x7e0] sm:$0xff] }
 0x190   :  { %v8922_v16 = vcombine.high %v630_v11, %v634_v12  ;;  %v8921_v22 = vcombine.low %v630_v11, %v634_v12  ;;  %v8960_v11 = vcombine.high %v669_v3, %v673_v4 }
 0x192   :  { %3583 = vmatpush1.bf16.msra.mxu0 %v8863_v18  ;;  %3747 = vmatpush1.bf16.msra.mxu1 %v8865_v19  ;;  %v641_v18 = vld [vmem:[#allocation8 + $0x6e0] sm:$0xff]  ;;  %v638_v19 = vld [vmem:[#allocation8 + $0x6c8] sm:$0xff] }
 0x193   :  { %3584 = vmatprep.subr.bf16.mxu0 %v8872_v20  ;;  %3748 = vmatprep.subr.bf16.mxu1 %v8874_v21  ;;  %v642_v20 = vld [vmem:[#allocation8 + $0x6e8] sm:$0xff]  ;;  %v8919_v21 = vcombine.low %v629_v9, %v633_v10  ;;  %v8928_v23 = vcombine.high %v637_v17, %v641_v18  ;;  %v8953_v10 = vcombine.low %v662_v52, %v666_v55 }
 0x194   :  { %v8930_v24 = vcombine.high %v638_v19, %v642_v20  ;;  %v8929_v35 = vcombine.low %v638_v19, %v642_v20  ;;  %v8959_v19 = vcombine.low %v669_v3, %v673_v4  ;;  %v706_v52 = vld [vmem:[#allocation8 + $0x8e8] sm:$0xff] }
 0x196   :  { %3585 = vmatpush1.bf16.msra.mxu0 %v8871_v26  ;;  %3749 = vmatpush1.bf16.msra.mxu1 %v8873_v32  ;;  %v649_v26 = vld [vmem:[#allocation8 + $0x720] sm:$0xff]  ;;  %v646_v32 = vld [vmem:[#allocation8 + $0x708] sm:$0xff] }
 0x197   :  { %3586 = vmatprep.subr.bf16.mxu0 %v8880_v33  ;;  %3750 = vmatprep.subr.bf16.mxu1 %v8882_v34  ;;  %v650_v33 = vld [vmem:[#allocation8 + $0x728] sm:$0xff]  ;;  %v8927_v34 = vcombine.low %v637_v17, %v641_v18  ;;  %v8936_v36 = vcombine.high %v645_v25, %v649_v26  ;;  %v8935_v44 = vcombine.low %v645_v25, %v649_v26 }
 0x198   :  { %v8938_v37 = vcombine.high %v646_v32, %v650_v33  ;;  %v8937_v45 = vcombine.low %v646_v32, %v650_v33  ;;  %v690_v25 = vld [vmem:[#allocation8 + $0x868] sm:$0xff] }
 0x19a   :  { %3587 = vmatpush1.bf16.msra.mxu0 %v8879_v40  ;;  %3751 = vmatpush1.bf16.msra.mxu1 %v8881_v41  ;;  %v657_v40 = vld [vmem:[#allocation8 + $0x760] sm:$0xff]  ;;  %v654_v41 = vld [vmem:[#allocation8 + $0x748] sm:$0xff] }
 0x19b   :  { %3588 = vmatprep.subr.bf16.mxu0 %v8888_v42  ;;  %3752 = vmatprep.subr.bf16.mxu1 %v8890_v43  ;;  %v658_v42 = vld [vmem:[#allocation8 + $0x768] sm:$0xff]  ;;  %v10542_v43 = vsub.s32 2, %v10504_v27  ;;  %v8944_v47 = vcombine.high %v653_v39, %v657_v40 }
 0x19e   :  { %3589 = vmatpush1.bf16.msra.mxu0 %v8887_v48  ;;  %3753 = vmatpush1.bf16.msra.mxu1 %v8889_v49  ;;  %v8946_v48 = vcombine.high %v654_v41, %v658_v42  ;;  %v661_v49 = vld [vmem:[#allocation8 + $0x780] sm:$0xff] }
 0x19f   :  { %3590 = vmatprep.subr.bf16.mxu0 %v8896_v50  ;;  %3754 = vmatprep.subr.bf16.mxu1 %v8898_v51  ;;  %v10546_v50 = vpop.f32.mrb[5].mxu1  ;;  %v665_v51 = vld [vmem:[#allocation8 + $0x7a0] sm:$0xff] }
 0x1a0   :  { %v402_v57 = vpop.f32.mrb[6].mxu1  ;;  %v8952_v1 = vcombine.high %v661_v49, %v665_v51  ;;  %v8951_v9 = vcombine.low %v661_v49, %v665_v51  ;;  %v705_v49 = vld [vmem:[#allocation8 + $0x8e0] sm:$0xff]  ;;  %v702_v51 = vld [vmem:[#allocation8 + $0x8c8] sm:$0xff] }
 0x1a1   :  { %v8993_v4 = vcombine.low %v702_v51, %v706_v52 }
 0x1a2   :  { %3591 = vmatpush1.bf16.msra.mxu0 %v8895_v58  ;;  %3755 = vmatpush1.bf16.msra.mxu1 %v8897_v59  ;;  %v168_v58 = vrot.slane %v10509_v29, %v10542_v43  ;;  %v403_v59 = vpop.f32.mrb[7].mxu1 }
 0x1a3   :  { %3592 = vmatprep.subr.bf16.mxu0 %v8904_v60  ;;  %3756 = vmatprep.subr.bf16.mxu1 %v8906_v0  ;;  %v8943_v60 = vcombine.low %v653_v39, %v657_v40  ;;  %v8945_v0 = vcombine.low %v654_v41, %v658_v42  ;;  %v694_v39 = vld [vmem:[#allocation8 + $0x888] sm:$0xff]  ;;  %v8994_v59 = vcombine.high %v702_v51, %v706_v52 }
 0x1a4   :  { %v698_v40 = vld [vmem:[#allocation8 + $0x8a8] sm:$0xff] }
 0x1a5   :  { %v8985_v57 = vcombine.low %v694_v39, %v698_v40  ;;  %v754_v51 = vld [vmem:[#allocation8 + $0xa68] sm:$0xff] }
 0x1a6   :  { %3593 = vmatpush1.bf16.msra.mxu0 %v8903_v5  ;;  %3757 = vmatpush1.bf16.msra.mxu1 %v8905_v6  ;;  %v670_v5 = vld [vmem:[#allocation8 + $0x7c8] sm:$0xff] }
 0x1a7   :  { %3594 = vmatprep.subr.bf16.mxu0 %v8912_v7  ;;  %3758 = vmatprep.subr.bf16.mxu1 %v8914_v8  ;;  %v674_v6 = vld [vmem:[#allocation8 + $0x7e8] sm:$0xff]  ;;  %v180_v7 = vrot.slane %v10509_v29, %v10549_v56  ;;  %v317_v8 = vadd.f32 %v10523_v38, %v168_v58 }
 0x1a8   :  { %v8962_v12 = vcombine.high %v670_v5, %v674_v6  ;;  %v8961_v20 = vcombine.low %v670_v5, %v674_v6 }
 0x1a9   :  { %v360_v17 = vadd.f32 %v10537_v63, %v180_v7  ;;  %v407_v18 = vmax.f32 %v317_v8, 0.0  ;;  %v717_v7 = vld [vmem:[#allocation8 + $0x940] sm:$0xff] }
 0x1aa   :  { %3595 = vmatpush1.bf16.msra.mxu0 %v8911_v13  ;;  %3759 = vmatpush1.bf16.msra.mxu1 %v8913_v14  ;;  %v677_v13 = vld [vmem:[#allocation8 + $0x800] sm:$0xff] }
 0x1ab   :  { %3596 = vmatprep.subr.bf16.mxu0 %v8920_v15  ;;  %3760 = vmatprep.subr.bf16.mxu1 %v8922_v16  ;;  %v681_v14 = vld [vmem:[#allocation8 + $0x820] sm:$0xff]  ;;  %v678_v15 = vld [vmem:[#allocation8 + $0x808] sm:$0xff]  ;;  %v410_v26 = vmax.f32 %v360_v17, 0.0  ;;  %v10557_v32 = vpack.c.bf16 %v407_v18, %v407_v18 }
 0x1ac   :  { %v682_v16 = vld [vmem:[#allocation8 + $0x828] sm:$0xff]  ;;  %v8968_v38 = vcombine.high %v677_v13, %v681_v14  ;;  %v8967_v33 = vcombine.low %v677_v13, %v681_v14  ;;  %v721_v8 = vld [vmem:[#allocation8 + $0x960] sm:$0xff] }
 0x1ad   :  { %v8969_v63 = vcombine.low %v678_v15, %v682_v16  ;;  %v10559_v41 = vpack.c.bf16 %v410_v26, %v410_v26  ;;  %v9008_v13 = vcombine.high %v717_v7, %v721_v8  ;;  %v726_v17 = vld [vmem:[#allocation8 + $0x988] sm:$0xff] }
 0x1ae   :  { %3597 = vmatpush1.bf16.msra.mxu0 %v8919_v21  ;;  %3761 = vmatpush1.bf16.msra.mxu1 %v8921_v22  ;;  %v8970_v21 = vcombine.high %v678_v15, %v682_v16  ;;  %v685_v22 = vld [vmem:[#allocation8 + $0x840] sm:$0xff]  ;;  %v730_v18 = vld [vmem:[#allocation8 + $0x9a8] sm:$0xff] }
 0x1af   :  { %3598 = vmatprep.subr.bf16.mxu0 %v8928_v23  ;;  %3762 = vmatprep.subr.bf16.mxu1 %v8930_v24  ;;  %v689_v23 = vld [vmem:[#allocation8 + $0x860] sm:$0xff]  ;;  %v686_v24 = vld [vmem:[#allocation8 + $0x848] sm:$0xff] }
 0x1b0   :  { %v8975_v42 = vcombine.low %v685_v22, %v689_v23  ;;  %v725_v15 = vld [vmem:[#allocation8 + $0x980] sm:$0xff] }
 0x1b1   :  { %v729_v16 = vld [vmem:[#allocation8 + $0x9a0] sm:$0xff] }
 0x1b2   :  { %3599 = vmatpush1.bf16.msra.mxu0 %v8927_v34  ;;  %3763 = vmatpush1.bf16.msra.mxu1 %v8929_v35  ;;  %v8976_v34 = vcombine.high %v685_v22, %v689_v23  ;;  %v8978_v35 = vcombine.high %v686_v24, %v690_v25  ;;  %v733_v22 = vld [vmem:[#allocation8 + $0x9c0] sm:$0xff]  ;;  %v9015_v26 = vcombine.low %v725_v15, %v729_v16 }
 0x1b3   :  { %3600 = vmatprep.subr.bf16.mxu0 %v8936_v36  ;;  %3764 = vmatprep.subr.bf16.mxu1 %v8938_v37  ;;  %v693_v36 = vld [vmem:[#allocation8 + $0x880] sm:$0xff] }
 0x1b4   :  { %v697_v37 = vld [vmem:[#allocation8 + $0x8a0] sm:$0xff] }
 0x1b5   :  { %v8983_v55 = vcombine.low %v693_v36, %v697_v37  ;;  %v737_v23 = vld [vmem:[#allocation8 + $0x9e0] sm:$0xff] }
 0x1b6   :  { %3601 = vmatpush1.bf16.msra.mxu0 %v8935_v44  ;;  %3765 = vmatpush1.bf16.msra.mxu1 %v8937_v45  ;;  %v8977_v44 = vcombine.low %v686_v24, %v690_v25  ;;  %v8984_v45 = vcombine.high %v693_v36, %v697_v37  ;;  %v734_v24 = vld [vmem:[#allocation8 + $0x9c8] sm:$0xff]  ;;  %v745_v36 = vld [vmem:[#allocation8 + $0xa20] sm:$0xff] }
 0x1b7   :  { %3602 = vmatprep.subr.bf16.mxu0 %v8944_v47  ;;  %3766 = vmatprep.subr.bf16.mxu1 %v8946_v48  ;;  %v8986_v47 = vcombine.high %v694_v39, %v698_v40  ;;  %v701_v48 = vld [vmem:[#allocation8 + $0x8c0] sm:$0xff]  ;;  %v738_v25 = vld [vmem:[#allocation8 + $0x9e8] sm:$0xff]  ;;  %v9023_v40 = vcombine.low %v733_v22, %v737_v23 }
 0x1b8   :  { %v8992_v58 = vcombine.high %v701_v48, %v705_v49  ;;  %v8991_v3 = vcombine.low %v701_v48, %v705_v49  ;;  %v742_v37 = vld [vmem:[#allocation8 + $0xa08] sm:$0xff]  ;;  %v753_v48 = vld [vmem:[#allocation8 + $0xa60] sm:$0xff] }
 0x1b9   :  { %v746_v39 = vld [vmem:[#allocation8 + $0xa28] sm:$0xff] }
 0x1ba   :  { %3603 = vmatpush1.bf16.msra.mxu0 %v8943_v60  ;;  %3767 = vmatpush1.bf16.msra.mxu1 %v8945_v0  ;;  %v709_v60 = vld [vmem:[#allocation8 + $0x900] sm:$0xff]  ;;  %v750_v49 = vld [vmem:[#allocation8 + $0xa48] sm:$0xff] }
 0x1bb   :  { %3604 = vmatprep.subr.bf16.mxu0 %v8952_v1  ;;  %3768 = vmatprep.subr.bf16.mxu1 %v8954_v2  ;;  %v713_v0 = vld [vmem:[#allocation8 + $0x920] sm:$0xff]  ;;  %v710_v1 = vld [vmem:[#allocation8 + $0x908] sm:$0xff] }
 0x1bc   :  { %v714_v2 = vld [vmem:[#allocation8 + $0x928] sm:$0xff]  ;;  %v9000_v5 = vcombine.high %v709_v60, %v713_v0 }
 0x1bd   :  { %v9002_v6 = vcombine.high %v710_v1, %v714_v2 }
 0x1be   :  { %3605 = vmatpush1.bf16.msra.mxu0 %v8951_v9  ;;  %3769 = vmatpush1.bf16.msra.mxu1 %v8953_v10  ;;  %v718_v9 = vld [vmem:[#allocation8 + $0x948] sm:$0xff] }
 0x1bf   :  { %3606 = vmatprep.subr.bf16.mxu0 %v8960_v11  ;;  %3770 = vmatprep.subr.bf16.mxu1 %v8962_v12  ;;  %v722_v10 = vld [vmem:[#allocation8 + $0x968] sm:$0xff]  ;;  %v8999_v11 = vcombine.low %v709_v60, %v713_v0  ;;  %v9001_v12 = vcombine.low %v710_v1, %v714_v2  ;;  %v761_v60 = vld [vmem:[#allocation8 + $0xaa0] sm:$0xff] }
 0x1c0   :  { %v9010_v14 = vcombine.high %v718_v9, %v722_v10  ;;  %v758_v0 = vld [vmem:[#allocation8 + $0xa88] sm:$0xff] }
 0x1c1   :  { %v762_v1 = vld [vmem:[#allocation8 + $0xaa8] sm:$0xff] }
 0x1c2   :  { %3607 = vmatpush1.bf16.msra.mxu0 %v8959_v19  ;;  %3771 = vmatpush1.bf16.msra.mxu1 %v8961_v20  ;;  %v9007_v19 = vcombine.low %v717_v7, %v721_v8  ;;  %v9009_v20 = vcombine.low %v718_v9, %v722_v10  ;;  %v769_v7 = vld [vmem:[#allocation8 + $0xae0] sm:$0xff]  ;;  %v766_v8 = vld [vmem:[#allocation8 + $0xac8] sm:$0xff] }
 0x1c3   :  { %3617 = vmatprep.subr.bf16.mxu0 %v8968_v38  ;;  %3781 = vmatprep.subr.bf16.mxu1 %v8970_v21  ;;  %v9016_v38 = vcombine.high %v725_v15, %v729_v16  ;;  %v9018_v21 = vcombine.high %v726_v17, %v730_v18  ;;  %v770_v9 = vld [vmem:[#allocation8 + $0xae8] sm:$0xff]  ;;  %v777_v15 = vld [vmem:[#allocation8 + $0xb20] sm:$0xff] }
 0x1c4   :  { %v774_v16 = vld [vmem:[#allocation8 + $0xb08] sm:$0xff] }
 0x1c5   :  { %3609 = vmatmul.mubr.bf16.vlgmr.msra.gmra.mrb[8].mxu0 %v10557_v32  ;;  %3773 = vmatmul.mubr.bf16.vlgmr.msra.gmra.mrb[8].mxu1 %v10557_v32 }
 0x1c6   :  { %3618 = vmatpush1.bf16.msra.mxu0 %v8967_v33  ;;  %3782 = vmatpush1.bf16.msra.mxu1 %v8969_v63  ;;  %v9017_v33 = vcombine.low %v726_v17, %v730_v18  ;;  %v9024_v63 = vcombine.high %v733_v22, %v737_v23  ;;  %v778_v17 = vld [vmem:[#allocation8 + $0xb28] sm:$0xff]  ;;  %v785_v22 = vld [vmem:[#allocation8 + $0xb60] sm:$0xff] }
 0x1c7   :  { %3619 = vmatprep.subr.bf16.mxu0 %v8976_v34  ;;  %3783 = vmatprep.subr.bf16.mxu1 %v8978_v35  ;;  %v9026_v34 = vcombine.high %v734_v24, %v738_v25  ;;  %v741_v35 = vld [vmem:[#allocation8 + $0xa00] sm:$0xff]  ;;  %v782_v23 = vld [vmem:[#allocation8 + $0xb48] sm:$0xff] }
 0x1c8   :  { %3649 = vmatprep.mubr.bf16.mxu0 %v10559_v41  ;;  %3813 = vmatprep.mubr.bf16.mxu1 %v10559_v41  ;;  %v9031_v52 = vcombine.low %v741_v35, %v745_v36 }
 0x1ca   :  { %3620 = vmatpush1.bf16.msra.mxu0 %v8975_v42  ;;  %3784 = vmatpush1.bf16.msra.mxu1 %v8977_v44  ;;  %v9025_v42 = vcombine.low %v734_v24, %v738_v25  ;;  %v9032_v44 = vcombine.high %v741_v35, %v745_v36  ;;  %v786_v24 = vld [vmem:[#allocation8 + $0xb68] sm:$0xff]  ;;  %v10566_v25 = vsub.s32 4, %v10504_v27  ;;  %v789_v35 = vld [vmem:[#allocation8 + $0xb80] sm:$0xff] }
 0x1cb   :  { %3621 = vmatprep.subr.bf16.mxu0 %v8984_v45  ;;  %3785 = vmatprep.subr.bf16.mxu1 %v8986_v47  ;;  %v9034_v45 = vcombine.high %v742_v37, %v746_v39  ;;  %v749_v47 = vld [vmem:[#allocation8 + $0xa40] sm:$0xff] }
 0x1cc   :  { %v9039_v2 = vcombine.low %v749_v47, %v753_v48  ;;  %v793_v36 = vld [vmem:[#allocation8 + $0xba0] sm:$0xff] }
 0x1ce   :  { %3622 = vmatpush1.bf16.msra.mxu0 %v8983_v55  ;;  %3786 = vmatpush1.bf16.msra.mxu1 %v8985_v57  ;;  %v9033_v55 = vcombine.low %v742_v37, %v746_v39  ;;  %v9040_v57 = vcombine.high %v749_v47, %v753_v48  ;;  %v790_v37 = vld [vmem:[#allocation8 + $0xb88] sm:$0xff]  ;;  %v9080_v47 = vcombine.high %v789_v35, %v793_v36 }
 0x1cf   :  { %3623 = vmatprep.subr.bf16.mxu0 %v8992_v58  ;;  %3787 = vmatprep.subr.bf16.mxu1 %v8994_v59  ;;  %v9042_v58 = vcombine.high %v750_v49, %v754_v51  ;;  %v757_v59 = vld [vmem:[#allocation8 + $0xa80] sm:$0xff]  ;;  %v794_v39 = vld [vmem:[#allocation8 + $0xba8] sm:$0xff] }
 0x1d0   :  { %v9047_v10 = vcombine.low %v757_v59, %v761_v60  ;;  %v9082_v48 = vcombine.high %v790_v37, %v794_v39 }
 0x1d2   :  { %3624 = vmatpush1.bf16.msra.mxu0 %v8991_v3  ;;  %3788 = vmatpush1.bf16.msra.mxu1 %v8993_v4  ;;  %v9041_v3 = vcombine.low %v750_v49, %v754_v51  ;;  %v9048_v4 = vcombine.high %v757_v59, %v761_v60  ;;  %v797_v49 = vld [vmem:[#allocation8 + $0xbc0] sm:$0xff]  ;;  %v9079_v59 = vcombine.low %v789_v35, %v793_v36  ;;  %v830_v35 = vld [vmem:[#allocation8 + $0xcc8] sm:$0xff] }
 0x1d3   :  { %3625 = vmatprep.subr.bf16.mxu0 %v9000_v5  ;;  %3789 = vmatprep.subr.bf16.mxu1 %v9002_v6  ;;  %v9050_v5 = vcombine.high %v758_v0, %v762_v1  ;;  %v765_v6 = vld [vmem:[#allocation8 + $0xac0] sm:$0xff]  ;;  %v9081_v60 = vcombine.low %v790_v37, %v794_v39  ;;  %v834_v36 = vld [vmem:[#allocation8 + $0xce8] sm:$0xff] }
 0x1d4   :  { %v9055_v18 = vcombine.low %v765_v6, %v769_v7  ;;  %v801_v51 = vld [vmem:[#allocation8 + $0xbe0] sm:$0xff] }
 0x1d6   :  { %3626 = vmatpush1.bf16.msra.mxu0 %v8999_v11  ;;  %3790 = vmatpush1.bf16.msra.mxu1 %v9001_v12  ;;  %v9049_v11 = vcombine.low %v758_v0, %v762_v1  ;;  %v9056_v12 = vcombine.high %v765_v6, %v769_v7  ;;  %v9088_v0 = vcombine.high %v797_v49, %v801_v51 }
 0x1d7   :  { %3627 = vmatprep.subr.bf16.mxu0 %v9008_v13  ;;  %3791 = vmatprep.subr.bf16.mxu1 %v9010_v14  ;;  %v9058_v13 = vcombine.high %v766_v8, %v770_v9  ;;  %v773_v14 = vld [vmem:[#allocation8 + $0xb00] sm:$0xff] }
 0x1da   :  { %3628 = vmatpush1.bf16.msra.mxu0 %v9007_v19  ;;  %3792 = vmatpush1.bf16.msra.mxu1 %v9009_v20  ;;  %v9057_v19 = vcombine.low %v766_v8, %v770_v9  ;;  %v9064_v20 = vcombine.high %v773_v14, %v777_v15 }
 0x1db   :  { %3629 = vmatprep.subr.bf16.mxu0 %v9016_v38  ;;  %3793 = vmatprep.subr.bf16.mxu1 %v9018_v21  ;;  %v9066_v38 = vcombine.high %v774_v16, %v778_v17  ;;  %v781_v21 = vld [vmem:[#allocation8 + $0xb40] sm:$0xff] }
 0x1de   :  { %3630 = vmatpush1.bf16.msra.mxu0 %v9015_v26  ;;  %3794 = vmatpush1.bf16.msra.mxu1 %v9017_v33  ;;  %v9063_v26 = vcombine.low %v773_v14, %v777_v15  ;;  %v9065_v33 = vcombine.low %v774_v16, %v778_v17 }
 0x1df   :  { %3631 = vmatprep.subr.bf16.mxu0 %v9024_v63  ;;  %3795 = vmatprep.subr.bf16.mxu1 %v9026_v34  ;;  %v9072_v63 = vcombine.high %v781_v21, %v785_v22  ;;  %v9074_v34 = vcombine.high %v782_v23, %v786_v24 }
 0x1e2   :  { %3632 = vmatpush1.bf16.msra.mxu0 %v9023_v40  ;;  %3796 = vmatpush1.bf16.msra.mxu1 %v9025_v42  ;;  %v10569_v40 = vsub.s32 7, %v10504_v27  ;;  %v176_v42 = vrot.slane %v10509_v29, %v10566_v25 }
 0x1e3   :  { %3633 = vmatprep.subr.bf16.mxu0 %v9032_v44  ;;  %3797 = vmatprep.subr.bf16.mxu1 %v9034_v45  ;;  %v9071_v44 = vcombine.low %v781_v21, %v785_v22  ;;  %v9073_v45 = vcombine.low %v782_v23, %v786_v24  ;;  %v826_v21 = vld [vmem:[#allocation8 + $0xca8] sm:$0xff] }
 0x1e6   :  { %3634 = vmatpush1.bf16.msra.mxu0 %v9031_v52  ;;  %3798 = vmatpush1.bf16.msra.mxu1 %v9033_v55  ;;  %v798_v52 = vld [vmem:[#allocation8 + $0xbc8] sm:$0xff] }
 0x1e7   :  { %3635 = vmatprep.subr.bf16.mxu0 %v9040_v57  ;;  %3799 = vmatprep.subr.bf16.mxu1 %v9042_v58  ;;  %v802_v55 = vld [vmem:[#allocation8 + $0xbe8] sm:$0xff]  ;;  %v188_v57 = vrot.slane %v10509_v29, %v10569_v40  ;;  %v358_v58 = vadd.f32 %v10533_v62, %v176_v42  ;;  %v9087_v29 = vcombine.low %v797_v49, %v801_v51 }
 0x1e8   :  { %v9090_v1 = vcombine.high %v798_v52, %v802_v55  ;;  %v9089_v8 = vcombine.low %v798_v52, %v802_v55  ;;  %v842_v49 = vld [vmem:[#allocation8 + $0xd28] sm:$0xff]  ;;  %v9121_v52 = vcombine.low %v830_v35, %v834_v36 }
 0x1e9   :  { %v401_v6 = vadd.f32 %v10546_v50, %v188_v57  ;;  %v409_v7 = vmax.f32 %v358_v58, 0.0  ;;  %v845_v58 = vld [vmem:[#allocation8 + $0xd40] sm:$0xff] }
 0x1ea   :  { %3636 = vmatpush1.bf16.msra.mxu0 %v9039_v2  ;;  %3800 = vmatpush1.bf16.msra.mxu1 %v9041_v3  ;;  %v805_v2 = vld [vmem:[#allocation8 + $0xc00] sm:$0xff] }
 0x1eb   :  { %3637 = vmatprep.subr.bf16.mxu0 %v9048_v4  ;;  %3801 = vmatprep.subr.bf16.mxu1 %v9050_v5  ;;  %v809_v3 = vld [vmem:[#allocation8 + $0xc20] sm:$0xff]  ;;  %v806_v4 = vld [vmem:[#allocation8 + $0xc08] sm:$0xff]  ;;  %v412_v14 = vmax.f32 %v401_v6, 0.0  ;;  %v10577_v15 = vpack.c.bf16 %v409_v7, %v409_v7 }
 0x1ec   :  { %v810_v5 = vld [vmem:[#allocation8 + $0xc28] sm:$0xff]  ;;  %v9096_v62 = vcombine.high %v805_v2, %v809_v3  ;;  %v9095_v16 = vcombine.low %v805_v2, %v809_v3  ;;  %v857_v6 = vld [vmem:[#allocation8 + $0xda0] sm:$0xff] }
 0x1ed   :  { %v9098_v9 = vcombine.high %v806_v4, %v810_v5  ;;  %v9097_v50 = vcombine.low %v806_v4, %v810_v5  ;;  %v10579_v22 = vpack.c.bf16 %v412_v14, %v412_v14  ;;  %v853_v5 = vld [vmem:[#allocation8 + $0xd80] sm:$0xff]  ;;  %v854_v7 = vld [vmem:[#allocation8 + $0xd88] sm:$0xff] }
 0x1ee   :  { %3638 = vmatpush1.bf16.msra.mxu0 %v9047_v10  ;;  %3802 = vmatpush1.bf16.msra.mxu1 %v9049_v11  ;;  %v813_v10 = vld [vmem:[#allocation8 + $0xc40] sm:$0xff]  ;;  %v866_v14 = vld [vmem:[#allocation8 + $0xde8] sm:$0xff] }
 0x1ef   :  { %3639 = vmatprep.subr.bf16.mxu0 %v9056_v12  ;;  %3803 = vmatprep.subr.bf16.mxu1 %v9058_v13  ;;  %v817_v11 = vld [vmem:[#allocation8 + $0xc60] sm:$0xff]  ;;  %v814_v12 = vld [vmem:[#allocation8 + $0xc48] sm:$0xff] }
 0x1f0   :  { %v818_v13 = vld [vmem:[#allocation8 + $0xc68] sm:$0xff]  ;;  %v9104_v17 = vcombine.high %v813_v10, %v817_v11  ;;  %v9103_v23 = vcombine.low %v813_v10, %v817_v11  ;;  %v861_v11 = vld [vmem:[#allocation8 + $0xdc0] sm:$0xff] }
 0x1f1   :  { %v9105_v24 = vcombine.low %v814_v12, %v818_v13 }
 0x1f2   :  { %3640 = vmatpush1.bf16.msra.mxu0 %v9055_v18  ;;  %3804 = vmatpush1.bf16.msra.mxu1 %v9057_v19  ;;  %v9106_v18 = vcombine.high %v814_v12, %v818_v13  ;;  %v821_v19 = vld [vmem:[#allocation8 + $0xc80] sm:$0xff]  ;;  %v862_v13 = vld [vmem:[#allocation8 + $0xdc8] sm:$0xff] }
 0x1f3   :  { %3641 = vmatprep.subr.bf16.mxu0 %v9064_v20  ;;  %3805 = vmatprep.subr.bf16.mxu1 %v9066_v38  ;;  %v825_v20 = vld [vmem:[#allocation8 + $0xca0] sm:$0xff]  ;;  %v822_v38 = vld [vmem:[#allocation8 + $0xc88] sm:$0xff] }
 0x1f4   :  { %v9111_v37 = vcombine.low %v821_v19, %v825_v20  ;;  %v9113_v39 = vcombine.low %v822_v38, %v826_v21  ;;  %v865_v12 = vld [vmem:[#allocation8 + $0xde0] sm:$0xff] }
 0x1f6   :  { %3642 = vmatpush1.bf16.msra.mxu0 %v9063_v26  ;;  %3806 = vmatpush1.bf16.msra.mxu1 %v9065_v33  ;;  %v9112_v26 = vcombine.high %v821_v19, %v825_v20  ;;  %v9114_v33 = vcombine.high %v822_v38, %v826_v21  ;;  %v869_v19 = vld [vmem:[#allocation8 + $0xe00] sm:$0xff]  ;;  %v870_v38 = vld [vmem:[#allocation8 + $0xe08] sm:$0xff] }
 0x1f7   :  { %3643 = vmatprep.subr.bf16.mxu0 %v9072_v63  ;;  %3807 = vmatprep.subr.bf16.mxu1 %v9074_v34  ;;  %v829_v63 = vld [vmem:[#allocation8 + $0xcc0] sm:$0xff]  ;;  %v874_v21 = vld [vmem:[#allocation8 + $0xe28] sm:$0xff] }
 0x1f8   :  { %v833_v34 = vld [vmem:[#allocation8 + $0xce0] sm:$0xff] }
 0x1f9   :  { %v9120_v42 = vcombine.high %v829_v63, %v833_v34  ;;  %v9119_v51 = vcombine.low %v829_v63, %v833_v34  ;;  %v873_v20 = vld [vmem:[#allocation8 + $0xe20] sm:$0xff] }
 0x1fa   :  { %3644 = vmatpush1.bf16.msra.mxu0 %v9071_v44  ;;  %3808 = vmatpush1.bf16.msra.mxu1 %v9073_v45  ;;  %v9122_v44 = vcombine.high %v830_v35, %v834_v36  ;;  %v837_v45 = vld [vmem:[#allocation8 + $0xd00] sm:$0xff]  ;;  %v878_v35 = vld [vmem:[#allocation8 + $0xe48] sm:$0xff] }
 0x1fb   :  { %3645 = vmatprep.subr.bf16.mxu0 %v9080_v47  ;;  %3809 = vmatprep.subr.bf16.mxu1 %v9082_v48  ;;  %v841_v47 = vld [vmem:[#allocation8 + $0xd20] sm:$0xff]  ;;  %v838_v48 = vld [vmem:[#allocation8 + $0xd08] sm:$0xff] }
 0x1fc   :  { %v9128_v55 = vcombine.high %v837_v45, %v841_v47  ;;  %v9130_v57 = vcombine.high %v838_v48, %v842_v49  ;;  %v9129_v2 = vcombine.low %v838_v48, %v842_v49  ;;  %v877_v63 = vld [vmem:[#allocation8 + $0xe40] sm:$0xff]  ;;  %v882_v36 = vld [vmem:[#allocation8 + $0xe68] sm:$0xff] }
 0x1fd   :  { %v881_v34 = vld [vmem:[#allocation8 + $0xe60] sm:$0xff]  ;;  %v886_v48 = vld [vmem:[#allocation8 + $0xe88] sm:$0xff] }
 0x1fe   :  { %3646 = vmatpush1.bf16.msra.mxu0 %v9079_v59  ;;  %3810 = vmatpush1.bf16.msra.mxu1 %v9081_v60  ;;  %v849_v59 = vld [vmem:[#allocation8 + $0xd60] sm:$0xff]  ;;  %v846_v60 = vld [vmem:[#allocation8 + $0xd48] sm:$0xff] }
 0x1ff   :  { %3647 = vmatprep.subr.bf16.mxu0 %v9088_v0  ;;  %3811 = vmatprep.subr.bf16.mxu1 %v9090_v1  ;;  %v850_v0 = vld [vmem:[#allocation8 + $0xd68] sm:$0xff]  ;;  %v9127_v1 = vcombine.low %v837_v45, %v841_v47  ;;  %v9136_v3 = vcombine.high %v845_v58, %v849_v59  ;;  %v885_v45 = vld [vmem:[#allocation8 + $0xe80] sm:$0xff] }
 0x200   :  { %v9138_v4 = vcombine.high %v846_v60, %v850_v0  ;;  %v889_v47 = vld [vmem:[#allocation8 + $0xea0] sm:$0xff]  ;;  %v890_v49 = vld [vmem:[#allocation8 + $0xea8] sm:$0xff] }
 0x202   :  { %3648 = vmatpush1.bf16.msra.mxu0 %v9087_v29  ;;  %3812 = vmatpush1.bf16.msra.mxu1 %v9089_v8  ;;  %v858_v29 = vld [vmem:[#allocation8 + $0xda8] sm:$0xff]  ;;  %v9135_v8 = vcombine.low %v845_v58, %v849_v59  ;;  %v893_v58 = vld [vmem:[#allocation8 + $0xec0] sm:$0xff] }
 0x203   :  { %3658 = vmatprep.subr.bf16.mxu0 %v9096_v62  ;;  %3822 = vmatprep.subr.bf16.mxu1 %v9098_v9  ;;  %v9137_v62 = vcombine.low %v846_v60, %v850_v0  ;;  %v9144_v9 = vcombine.high %v853_v5, %v857_v6  ;;  %v9146_v10 = vcombine.high %v854_v7, %v858_v29  ;;  %v897_v59 = vld [vmem:[#allocation8 + $0xee0] sm:$0xff]  ;;  %v894_v60 = vld [vmem:[#allocation8 + $0xec8] sm:$0xff] }
 0x204   :  { %v898_v0 = vld [vmem:[#allocation8 + $0xee8] sm:$0xff] }
 0x205   :  { %3650 = vmatmul.mubr.bf16.vlgmr.msra.gmra.mrb[8].mxu0 %v10577_v15  ;;  %3814 = vmatmul.mubr.bf16.vlgmr.msra.gmra.mrb[8].mxu1 %v10577_v15 }
 0x206   :  { %3659 = vmatpush1.bf16.msra.mxu0 %v9095_v16  ;;  %3823 = vmatpush1.bf16.msra.mxu1 %v9097_v50  ;;  %v9143_v16 = vcombine.low %v853_v5, %v857_v6  ;;  %v9145_v50 = vcombine.low %v854_v7, %v858_v29  ;;  %v901_v5 = vld [vmem:[#allocation8 + $0xf00] sm:$0xff]  ;;  %v902_v7 = vld [vmem:[#allocation8 + $0xf08] sm:$0xff] }
 0x207   :  { %3660 = vmatprep.subr.bf16.mxu0 %v9104_v17  ;;  %3824 = vmatprep.subr.bf16.mxu1 %v9106_v18  ;;  %v9152_v17 = vcombine.high %v861_v11, %v865_v12  ;;  %v9154_v18 = vcombine.high %v862_v13, %v866_v14  ;;  %v905_v6 = vld [vmem:[#allocation8 + $0xf20] sm:$0xff]  ;;  %v906_v29 = vld [vmem:[#allocation8 + $0xf28] sm:$0xff] }
 0x208   :  { %3690 = vmatprep.mubr.bf16.mxu0 %v10579_v22  ;;  %3854 = vmatprep.mubr.bf16.mxu1 %v10579_v22 }
 0x20a   :  { %3661 = vmatpush1.bf16.msra.mxu0 %v9103_v23  ;;  %3825 = vmatpush1.bf16.msra.mxu1 %v9105_v24  ;;  %v9151_v23 = vcombine.low %v861_v11, %v865_v12  ;;  %v9153_v24 = vcombine.low %v862_v13, %v866_v14  ;;  %v909_v11 = vld [vmem:[#allocation8 + $0xf40] sm:$0xff]  ;;  %v910_v13 = vld [vmem:[#allocation8 + $0xf48] sm:$0xff] }
 0x20b   :  { %3662 = vmatprep.subr.bf16.mxu0 %v9112_v26  ;;  %3826 = vmatprep.subr.bf16.mxu1 %v9114_v33  ;;  %v9160_v26 = vcombine.high %v869_v19, %v873_v20  ;;  %v9162_v33 = vcombine.high %v870_v38, %v874_v21  ;;  %v913_v12 = vld [vmem:[#allocation8 + $0xf60] sm:$0xff]  ;;  %v914_v14 = vld [vmem:[#allocation8 + $0xf68] sm:$0xff] }
 0x20e   :  { %3663 = vmatpush1.bf16.msra.mxu0 %v9111_v37  ;;  %3827 = vmatpush1.bf16.msra.mxu1 %v9113_v39  ;;  %v9159_v37 = vcombine.low %v869_v19, %v873_v20  ;;  %v9161_v39 = vcombine.low %v870_v38, %v874_v21  ;;  %v9202_v19 = vcombine.high %v910_v13, %v914_v14  ;;  %v917_v20 = vld [vmem:[#allocation8 + $0xf80] sm:$0xff]  ;;  %v918_v21 = vld [vmem:[#allocation8 + $0xf88] sm:$0xff] }
 0x20f   :  { %3664 = vmatprep.subr.bf16.mxu0 %v9120_v42  ;;  %3828 = vmatprep.subr.bf16.mxu1 %v9122_v44  ;;  %v9168_v42 = vcombine.high %v877_v63, %v881_v34  ;;  %v9170_v44 = vcombine.high %v878_v35, %v882_v36  ;;  %v921_v38 = vld [vmem:[#allocation8 + $0xfa0] sm:$0xff] }
 0x212   :  { %3665 = vmatpush1.bf16.msra.mxu0 %v9119_v51  ;;  %3829 = vmatpush1.bf16.msra.mxu1 %v9121_v52  ;;  %v9167_v51 = vcombine.low %v877_v63, %v881_v34  ;;  %v9169_v52 = vcombine.low %v878_v35, %v882_v36  ;;  %v9208_v34 = vcombine.high %v917_v20, %v921_v38  ;;  %v925_v35 = vld [vmem:[#allocation8 + $0xfc0] sm:$0xff] }
 0x213   :  { %3666 = vmatprep.subr.bf16.mxu0 %v9128_v55  ;;  %3830 = vmatprep.subr.bf16.mxu1 %v9130_v57  ;;  %v9176_v55 = vcombine.high %v885_v45, %v889_v47  ;;  %v9178_v57 = vcombine.high %v886_v48, %v890_v49  ;;  %v929_v36 = vld [vmem:[#allocation8 + $0xfe0] sm:$0xff] }
 0x216   :  { %3667 = vmatpush1.bf16.msra.mxu0 %v9127_v1  ;;  %3831 = vmatpush1.bf16.msra.mxu1 %v9129_v2  ;;  %v9175_v1 = vcombine.low %v885_v45, %v889_v47  ;;  %v9177_v2 = vcombine.low %v886_v48, %v890_v49  ;;  %v9216_v47 = vcombine.high %v925_v35, %v929_v36  ;;  %v423_v49 = vld [vmem:[#allocation8 + $0x10] sm:$0xff] }
 0x217   :  { %3668 = vmatprep.subr.bf16.mxu0 %v9136_v3  ;;  %3832 = vmatprep.subr.bf16.mxu1 %v9138_v4  ;;  %v9184_v3 = vcombine.high %v893_v58, %v897_v59  ;;  %v9186_v4 = vcombine.high %v894_v60, %v898_v0 }
 0x21a   :  { %3669 = vmatpush1.bf16.msra.mxu0 %v9135_v8  ;;  %3833 = vmatpush1.bf16.msra.mxu1 %v9137_v62  ;;  %v9183_v8 = vcombine.low %v893_v58, %v897_v59  ;;  %v9185_v62 = vcombine.low %v894_v60, %v898_v0 }
 0x21b   :  { %3670 = vmatprep.subr.bf16.mxu0 %v9144_v9  ;;  %3834 = vmatprep.subr.bf16.mxu1 %v9146_v10  ;;  %v9192_v9 = vcombine.high %v901_v5, %v905_v6  ;;  %v9194_v10 = vcombine.high %v902_v7, %v906_v29 }
 0x21e   :  { %3671 = vmatpush1.bf16.msra.mxu0 %v9143_v16  ;;  %3835 = vmatpush1.bf16.msra.mxu1 %v9145_v50  ;;  %v9191_v16 = vcombine.low %v901_v5, %v905_v6  ;;  %v9193_v50 = vcombine.low %v902_v7, %v906_v29 }
 0x21f   :  { %3672 = vmatprep.subr.bf16.mxu0 %v9152_v17  ;;  %3836 = vmatprep.subr.bf16.mxu1 %v9154_v18  ;;  %v10586_v17 = vsub.s32 6, %v10504_v27  ;;  %v9200_v18 = vcombine.high %v909_v11, %v913_v12 }
 0x222   :  { %3673 = vmatpush1.bf16.msra.mxu0 %v9151_v23  ;;  %3837 = vmatpush1.bf16.msra.mxu1 %v9153_v24  ;;  %v922_v23 = vld [vmem:[#allocation8 + $0xfa8] sm:$0xff]  ;;  %v9199_v24 = vcombine.low %v909_v11, %v913_v12 }
 0x223   :  { %3674 = vmatprep.subr.bf16.mxu0 %v9160_v26  ;;  %3838 = vmatprep.subr.bf16.mxu1 %v9162_v33  ;;  %v9201_v26 = vcombine.low %v910_v13, %v914_v14  ;;  %v10084_v33 = vld [vmem:[#allocation7] sm:$0xff]  ;;  %v9210_v27 = vcombine.high %v918_v21, %v922_v23 }
 0x224   :  { %v184_v63 = vrot.slane %v10084_v33, %v10586_v17  ;;  %v460_v33 = vld [vmem:[#allocation8 + $0x138] sm:$0xff] }
 0x226   :  { %3675 = vmatpush1.bf16.msra.mxu0 %v9159_v37  ;;  %3839 = vmatpush1.bf16.msra.mxu1 %v9161_v39  ;;  %v926_v37 = vld [vmem:[#allocation8 + $0xfc8] sm:$0xff]  ;;  %v399_v45 = vadd.f32 %v10544_v46, %v184_v63  ;;  %v432_v46 = vld [vmem:[#allocation8 + $0x58] sm:$0xff] }
 0x227   :  { %3676 = vmatprep.subr.bf16.mxu0 %v9168_v42  ;;  %3840 = vmatprep.subr.bf16.mxu1 %v9170_v44  ;;  %v930_v39 = vld [vmem:[#allocation8 + $0xfe8] sm:$0xff]  ;;  %v9207_v42 = vcombine.low %v917_v20, %v921_v38  ;;  %v9209_v44 = vcombine.low %v918_v21, %v922_v23 }
 0x228   :  { %v9218_v48 = vcombine.high %v926_v37, %v930_v39  ;;  %v9217_v58 = vcombine.low %v926_v37, %v930_v39  ;;  %v411_v59 = vmax.f32 %v399_v45, 0.0  ;;  %v467_v37 = vld [vmem:[#allocation8 + $0x170] sm:$0xff]  ;;  %v464_v39 = vld [vmem:[#allocation8 + $0x158] sm:$0xff] }
 0x22a   :  { %3677 = vmatpush1.bf16.msra.mxu0 %v9167_v51  ;;  %3841 = vmatpush1.bf16.msra.mxu1 %v9169_v52  ;;  %v427_v51 = vld [vmem:[#allocation8 + $0x30] sm:$0xff]  ;;  %v424_v52 = vld [vmem:[#allocation8 + $0x18] sm:$0xff]  ;;  %v10590_v5 = vpack.c.bf16 %v411_v59, %v411_v59 }
 0x22b   :  { %3678 = vmatprep.subr.bf16.mxu0 %v9176_v55  ;;  %3842 = vmatprep.subr.bf16.mxu1 %v9178_v57  ;;  %v428_v55 = vld [vmem:[#allocation8 + $0x38] sm:$0xff]  ;;  %v9215_v57 = vcombine.low %v925_v35, %v929_v36  ;;  %v8716_v60 = vcombine.high %v423_v49, %v427_v51  ;;  %v463_v36 = vld [vmem:[#allocation8 + $0x150] sm:$0xff] }
 0x22c   :  { %v8718_v0 = vcombine.high %v424_v52, %v428_v55  ;;  %v8717_v6 = vcombine.low %v424_v52, %v428_v55  ;;  %v472_v52 = vld [vmem:[#allocation8 + $0x198] sm:$0xff] }
 0x22d   :  { %v476_v55 = vld [vmem:[#allocation8 + $0x1b8] sm:$0xff] }
 0x22e   :  { %3679 = vmatpush1.bf16.msra.mxu0 %v9175_v1  ;;  %3843 = vmatpush1.bf16.msra.mxu1 %v9177_v2  ;;  %v431_v1 = vld [vmem:[#allocation8 + $0x50] sm:$0xff] }
 0x22f   :  { %3680 = vmatprep.subr.bf16.mxu0 %v9184_v3  ;;  %3844 = vmatprep.subr.bf16.mxu1 %v9186_v4  ;;  %v435_v2 = vld [vmem:[#allocation8 + $0x70] sm:$0xff]  ;;  %v436_v3 = vld [vmem:[#allocation8 + $0x78] sm:$0xff]  ;;  %v8715_v4 = vcombine.low %v423_v49, %v427_v51 }
 0x230   :  { %v8724_v7 = vcombine.high %v431_v1, %v435_v2  ;;  %v8726_v29 = vcombine.high %v432_v46, %v436_v3  ;;  %v8723_v11 = vcombine.low %v431_v1, %v435_v2  ;;  %v8725_v12 = vcombine.low %v432_v46, %v436_v3  ;;  %v471_v49 = vld [vmem:[#allocation8 + $0x190] sm:$0xff]  ;;  %v480_v2 = vld [vmem:[#allocation8 + $0x1d8] sm:$0xff] }
 0x231   :  { %v475_v51 = vld [vmem:[#allocation8 + $0x1b0] sm:$0xff]  ;;  %v484_v46 = vld [vmem:[#allocation8 + $0x1f8] sm:$0xff] }
 0x232   :  { %3681 = vmatpush1.bf16.msra.mxu0 %v9183_v8  ;;  %3845 = vmatpush1.bf16.msra.mxu1 %v9185_v62  ;;  %v439_v8 = vld [vmem:[#allocation8 + $0x90] sm:$0xff]  ;;  %v8764_v59 = vcombine.high %v471_v49, %v475_v51  ;;  %v8763_v3 = vcombine.low %v471_v49, %v475_v51  ;;  %v520_v51 = vld [vmem:[#allocation8 + $0x318] sm:$0xff] }
 0x233   :  { %3682 = vmatprep.subr.bf16.mxu0 %v9192_v9  ;;  %3846 = vmatprep.subr.bf16.mxu1 %v9194_v10  ;;  %v443_v62 = vld [vmem:[#allocation8 + $0xb0] sm:$0xff]  ;;  %v440_v9 = vld [vmem:[#allocation8 + $0x98] sm:$0xff] }
 0x234   :  { %v444_v10 = vld [vmem:[#allocation8 + $0xb8] sm:$0xff]  ;;  %v8732_v13 = vcombine.high %v439_v8, %v443_v62  ;;  %v8731_v20 = vcombine.low %v439_v8, %v443_v62  ;;  %v483_v1 = vld [vmem:[#allocation8 + $0x1f0] sm:$0xff] }
 0x235   :  { %v8734_v14 = vcombine.high %v440_v9, %v444_v10  ;;  %v8733_v38 = vcombine.low %v440_v9, %v444_v10  ;;  %v491_v8 = vld [vmem:[#allocation8 + $0x230] sm:$0xff]  ;;  %v488_v62 = vld [vmem:[#allocation8 + $0x218] sm:$0xff] }
 0x236   :  { %3683 = vmatpush1.bf16.msra.mxu0 %v9191_v16  ;;  %3847 = vmatpush1.bf16.msra.mxu1 %v9193_v50  ;;  %v447_v16 = vld [vmem:[#allocation8 + $0xd0] sm:$0xff]  ;;  %v492_v9 = vld [vmem:[#allocation8 + $0x238] sm:$0xff] }
 0x237   :  { %3684 = vmatprep.subr.bf16.mxu0 %v9200_v18  ;;  %3848 = vmatprep.subr.bf16.mxu1 %v9202_v19  ;;  %v451_v50 = vld [vmem:[#allocation8 + $0xf0] sm:$0xff]  ;;  %v448_v18 = vld [vmem:[#allocation8 + $0xd8] sm:$0xff] }
 0x238   :  { %v452_v19 = vld [vmem:[#allocation8 + $0xf8] sm:$0xff]  ;;  %v8740_v21 = vcombine.high %v447_v16, %v451_v50  ;;  %v8739_v63 = vcombine.low %v447_v16, %v451_v50  ;;  %v499_v16 = vld [vmem:[#allocation8 + $0x270] sm:$0xff] }
 0x239   :  { %v8742_v23 = vcombine.high %v448_v18, %v452_v19  ;;  %v496_v50 = vld [vmem:[#allocation8 + $0x258] sm:$0xff]  ;;  %v523_v49 = vld [vmem:[#allocation8 + $0x330] sm:$0xff] }
 0x23a   :  { %3685 = vmatpush1.bf16.msra.mxu0 %v9199_v24  ;;  %3849 = vmatpush1.bf16.msra.mxu1 %v9201_v26  ;;  %v455_v24 = vld [vmem:[#allocation8 + $0x110] sm:$0xff] }
 0x23b   :  { %3686 = vmatprep.subr.bf16.mxu0 %v9208_v34  ;;  %3850 = vmatprep.subr.bf16.mxu1 %v9210_v27  ;;  %v459_v26 = vld [vmem:[#allocation8 + $0x130] sm:$0xff]  ;;  %v8741_v34 = vcombine.low %v448_v18, %v452_v19  ;;  %v500_v18 = vld [vmem:[#allocation8 + $0x278] sm:$0xff] }
 0x23c   :  { %v8748_v27 = vcombine.high %v455_v24, %v459_v26 }
 0x23e   :  { %3687 = vmatpush1.bf16.msra.mxu0 %v9207_v42  ;;  %3851 = vmatpush1.bf16.msra.mxu1 %v9209_v44  ;;  %v468_v42 = vld [vmem:[#allocation8 + $0x178] sm:$0xff]  ;;  %v8747_v44 = vcombine.low %v455_v24, %v459_v26  ;;  %v507_v24 = vld [vmem:[#allocation8 + $0x2b0] sm:$0xff] }
 0x23f   :  { %3688 = vmatprep.subr.bf16.mxu0 %v9216_v47  ;;  %3852 = vmatprep.subr.bf16.mxu1 %v9218_v48  ;;  %v8756_v47 = vcombine.high %v463_v36, %v467_v37  ;;  %v8758_v48 = vcombine.high %v464_v39, %v468_v42  ;;  %v504_v26 = vld [vmem:[#allocation8 + $0x298] sm:$0xff] }
 0x242   :  { %3689 = vmatpush1.bf16.msra.mxu0 %v9215_v57  ;;  %3853 = vmatpush1.bf16.msra.mxu1 %v9217_v58  ;;  %v8755_v57 = vcombine.low %v463_v36, %v467_v37  ;;  %v8757_v58 = vcombine.low %v464_v39, %v468_v42  ;;  %v515_v36 = vld [vmem:[#allocation8 + $0x2f0] sm:$0xff]  ;;  %v512_v37 = vld [vmem:[#allocation8 + $0x2d8] sm:$0xff] }
 0x243   :  { %3863 = vmatprep.subr.bf16.mxu0 %v8716_v60  ;;  %4027 = vmatprep.subr.bf16.mxu1 %v8718_v0  ;;  %v8766_v60 = vcombine.high %v472_v52, %v476_v55  ;;  %v479_v0 = vld [vmem:[#allocation8 + $0x1d0] sm:$0xff]  ;;  %v516_v39 = vld [vmem:[#allocation8 + $0x2f8] sm:$0xff] }
 0x244   :  { %v8771_v10 = vcombine.low %v479_v0, %v483_v1 }
 0x245   :  { %3691 = vmatmul.mubr.bf16.vlgmr.msra.gmra.mrb[8].mxu0 %v10590_v5  ;;  %3855 = vmatmul.mubr.bf16.vlgmr.msra.gmra.mrb[8].mxu1 %v10590_v5 }
 0x246   :  { %3864 = vmatpush1.bf16.msra.mxu0 %v8715_v4  ;;  %3895 = vmatprep.mubr.bf16.mxu0 %v10525_v53  ;;  %v8765_v4 = vcombine.low %v472_v52, %v476_v55  ;;  %v524_v52 = vld [vmem:[#allocation8 + $0x338] sm:$0xff] }
 0x247   :  { %4028 = vmatpush1.bf16.msra.mxu1 %v8717_v6  ;;  %4059 = vmatprep.mubr.bf16.mxu1 %v10525_v53  ;;  %v456_v53 = vld [vmem:[#allocation8 + $0x118] sm:$0xff]  ;;  %v8772_v6 = vcombine.high %v479_v0, %v483_v1  ;;  %v531_v0 = vld [vmem:[#allocation8 + $0x370] sm:$0xff] }
 0x248   :  { %3865 = vmatprep.subr.bf16.mxu0 %v8724_v7  ;;  %4029 = vmatprep.subr.bf16.mxu1 %v8726_v29  ;;  %v8750_v35 = vcombine.high %v456_v53, %v460_v33  ;;  %v8749_v45 = vcombine.low %v456_v53, %v460_v33  ;;  %v8774_v7 = vcombine.high %v480_v2, %v484_v46  ;;  %v487_v29 = vld [vmem:[#allocation8 + $0x210] sm:$0xff]  ;;  %v508_v53 = vld [vmem:[#allocation8 + $0x2b8] sm:$0xff] }
 0x249   :  { %v8779_v19 = vcombine.low %v487_v29, %v491_v8  ;;  %v528_v1 = vld [vmem:[#allocation8 + $0x358] sm:$0xff] }
 0x24a   :  { %3866 = vmatpush1.bf16.msra.mxu0 %v8723_v11  ;;  %v8773_v11 = vcombine.low %v480_v2, %v484_v46  ;;  %v532_v2 = vld [vmem:[#allocation8 + $0x378] sm:$0xff] }
 0x24b   :  { %4030 = vmatpush1.bf16.msra.mxu1 %v8725_v12  ;;  %3867 = vmatprep.subr.bf16.mxu0 %v8732_v13  ;;  %v8780_v12 = vcombine.high %v487_v29, %v491_v8  ;;  %v8782_v13 = vcombine.high %v488_v62, %v492_v9  ;;  %v539_v29 = vld [vmem:[#allocation8 + $0x3b0] sm:$0xff]  ;;  %v536_v8 = vld [vmem:[#allocation8 + $0x398] sm:$0xff] }
 0x24c   :  { %4031 = vmatprep.subr.bf16.mxu1 %v8734_v14  ;;  %v495_v14 = vld [vmem:[#allocation8 + $0x250] sm:$0xff] }
 0x24d   :  { %v8787_v33 = vcombine.low %v495_v14, %v499_v16 }
 0x24e   :  { %3868 = vmatpush1.bf16.msra.mxu0 %v8731_v20  ;;  %v8781_v20 = vcombine.low %v488_v62, %v492_v9  ;;  %v540_v62 = vld [vmem:[#allocation8 + $0x3b8] sm:$0xff] }
 0x24f   :  { %4032 = vmatpush1.bf16.msra.mxu1 %v8733_v38  ;;  %3869 = vmatprep.subr.bf16.mxu0 %v8740_v21  ;;  %v8788_v38 = vcombine.high %v495_v14, %v499_v16  ;;  %v8790_v21 = vcombine.high %v496_v50, %v500_v18  ;;  %v547_v14 = vld [vmem:[#allocation8 + $0x3f0] sm:$0xff]  ;;  %v544_v16 = vld [vmem:[#allocation8 + $0x3d8] sm:$0xff] }
 0x250   :  { %4033 = vmatprep.subr.bf16.mxu1 %v8742_v23  ;;  %v503_v23 = vld [vmem:[#allocation8 + $0x290] sm:$0xff] }
 0x251   :  { %v8795_v42 = vcombine.low %v503_v23, %v507_v24 }
 0x252   :  { %3870 = vmatpush1.bf16.msra.mxu0 %v8739_v63  ;;  %v8789_v63 = vcombine.low %v496_v50, %v500_v18  ;;  %v548_v50 = vld [vmem:[#allocation8 + $0x3f8] sm:$0xff] }
 0x253   :  { %4034 = vmatpush1.bf16.msra.mxu1 %v8741_v34  ;;  %3871 = vmatprep.subr.bf16.mxu0 %v8748_v27  ;;  %v8796_v34 = vcombine.high %v503_v23, %v507_v24  ;;  %v8798_v27 = vcombine.high %v504_v26, %v508_v53  ;;  %v555_v23 = vld [vmem:[#allocation8 + $0x430] sm:$0xff]  ;;  %v552_v24 = vld [vmem:[#allocation8 + $0x418] sm:$0xff] }
 0x254   :  { %4035 = vmatprep.subr.bf16.mxu1 %v8750_v35  ;;  %v511_v35 = vld [vmem:[#allocation8 + $0x2d0] sm:$0xff] }
 0x255   :  { %v8803_v55 = vcombine.low %v511_v35, %v515_v36 }
 0x256   :  { %3872 = vmatpush1.bf16.msra.mxu0 %v8747_v44  ;;  %v8797_v44 = vcombine.low %v504_v26, %v508_v53  ;;  %v556_v26 = vld [vmem:[#allocation8 + $0x438] sm:$0xff] }
 0x257   :  { %4036 = vmatpush1.bf16.msra.mxu1 %v8749_v45  ;;  %3873 = vmatprep.subr.bf16.mxu0 %v8756_v47  ;;  %v8804_v45 = vcombine.high %v511_v35, %v515_v36  ;;  %v8806_v47 = vcombine.high %v512_v37, %v516_v39  ;;  %v563_v35 = vld [vmem:[#allocation8 + $0x470] sm:$0xff] }
 0x258   :  { %4037 = vmatprep.subr.bf16.mxu1 %v8758_v48  ;;  %v519_v48 = vld [vmem:[#allocation8 + $0x310] sm:$0xff] }
 0x259   :  { %v8811_v46 = vcombine.low %v519_v48, %v523_v49 }
 0x25a   :  { %3874 = vmatpush1.bf16.msra.mxu0 %v8755_v57  ;;  %v8805_v57 = vcombine.low %v512_v37, %v516_v39  ;;  %v560_v37 = vld [vmem:[#allocation8 + $0x458] sm:$0xff] }
 0x25b   :  { %4038 = vmatpush1.bf16.msra.mxu1 %v8757_v58  ;;  %3875 = vmatprep.subr.bf16.mxu0 %v8764_v59  ;;  %v8812_v58 = vcombine.high %v519_v48, %v523_v49  ;;  %v8814_v59 = vcombine.high %v520_v51, %v524_v52  ;;  %v564_v39 = vld [vmem:[#allocation8 + $0x478] sm:$0xff] }
 0x25c   :  { %4039 = vmatprep.subr.bf16.mxu1 %v8766_v60  ;;  %v527_v60 = vld [vmem:[#allocation8 + $0x350] sm:$0xff]  ;;  %v8854_v48 = vcombine.high %v560_v37, %v564_v39  ;;  %v568_v49 = vld [vmem:[#allocation8 + $0x498] sm:$0xff] }
 0x25d   :  { %v8819_v9 = vcombine.low %v527_v60, %v531_v0 }
 0x25e   :  { %3876 = vmatpush1.bf16.msra.mxu0 %v8763_v3  ;;  %v8813_v3 = vcombine.low %v520_v51, %v524_v52  ;;  %v572_v51 = vld [vmem:[#allocation8 + $0x4b8] sm:$0xff] }
 0x25f   :  { %4040 = vmatpush1.bf16.msra.mxu1 %v8765_v4  ;;  %3877 = vmatprep.subr.bf16.mxu0 %v8772_v6  ;;  %v8820_v4 = vcombine.high %v527_v60, %v531_v0  ;;  %v8822_v6 = vcombine.high %v528_v1, %v532_v2  ;;  %v579_v60 = vld [vmem:[#allocation8 + $0x4f0] sm:$0xff]  ;;  %v576_v0 = vld [vmem:[#allocation8 + $0x4d8] sm:$0xff] }
 0x260   :  { %4041 = vmatprep.subr.bf16.mxu1 %v8774_v7  ;;  %v535_v7 = vld [vmem:[#allocation8 + $0x390] sm:$0xff] }
 0x261   :  { %v8827_v18 = vcombine.low %v535_v7, %v539_v29 }
 0x262   :  { %3878 = vmatpush1.bf16.msra.mxu0 %v8771_v10  ;;  %v8821_v10 = vcombine.low %v528_v1, %v532_v2  ;;  %v580_v1 = vld [vmem:[#allocation8 + $0x4f8] sm:$0xff] }
 0x263   :  { %4042 = vmatpush1.bf16.msra.mxu1 %v8773_v11  ;;  %3879 = vmatprep.subr.bf16.mxu0 %v8780_v12  ;;  %v8828_v11 = vcombine.high %v535_v7, %v539_v29  ;;  %v8830_v12 = vcombine.high %v536_v8, %v540_v62  ;;  %v584_v7 = vld [vmem:[#allocation8 + $0x518] sm:$0xff] }
 0x264   :  { %4043 = vmatprep.subr.bf16.mxu1 %v8782_v13  ;;  %v543_v13 = vld [vmem:[#allocation8 + $0x3d0] sm:$0xff]  ;;  %v588_v29 = vld [vmem:[#allocation8 + $0x538] sm:$0xff] }
 0x265   :  { %v8835_v53 = vcombine.low %v543_v13, %v547_v14 }
 0x266   :  { %3880 = vmatpush1.bf16.msra.mxu0 %v8779_v19  ;;  %v8829_v19 = vcombine.low %v536_v8, %v540_v62  ;;  %v8869_v8 = vcombine.low %v576_v0, %v580_v1 }
 0x267   :  { %4044 = vmatpush1.bf16.msra.mxu1 %v8781_v20  ;;  %3881 = vmatprep.subr.bf16.mxu0 %v8788_v38  ;;  %v8836_v20 = vcombine.high %v543_v13, %v547_v14  ;;  %v8838_v38 = vcombine.high %v544_v16, %v548_v50  ;;  %v596_v13 = vld [vmem:[#allocation8 + $0x578] sm:$0xff] }
 0x268   :  { %4045 = vmatprep.subr.bf16.mxu1 %v8790_v21  ;;  %v551_v21 = vld [vmem:[#allocation8 + $0x410] sm:$0xff] }
 0x269   :  { %v8843_v36 = vcombine.low %v551_v21, %v555_v23 }
 0x26a   :  { %3882 = vmatpush1.bf16.msra.mxu0 %v8787_v33  ;;  %v8837_v33 = vcombine.low %v544_v16, %v548_v50  ;;  %v8877_v16 = vcombine.low %v584_v7, %v588_v29 }
 0x26b   :  { %4046 = vmatpush1.bf16.msra.mxu1 %v8789_v63  ;;  %3883 = vmatprep.subr.bf16.mxu0 %v8796_v34  ;;  %v8844_v63 = vcombine.high %v551_v21, %v555_v23  ;;  %v8846_v34 = vcombine.high %v552_v24, %v556_v26  ;;  %v604_v21 = vld [vmem:[#allocation8 + $0x5b8] sm:$0xff] }
 0x26c   :  { %4047 = vmatprep.subr.bf16.mxu1 %v8798_v27  ;;  %v559_v27 = vld [vmem:[#allocation8 + $0x450] sm:$0xff] }
 0x26d   :  { %v8851_v52 = vcombine.low %v559_v27, %v563_v35 }
 0x26e   :  { %3884 = vmatpush1.bf16.msra.mxu0 %v8795_v42  ;;  %v8845_v42 = vcombine.low %v552_v24, %v556_v26 }
 0x26f   :  { %4048 = vmatpush1.bf16.msra.mxu1 %v8797_v44  ;;  %3885 = vmatprep.subr.bf16.mxu0 %v8804_v45  ;;  %v8852_v44 = vcombine.high %v559_v27, %v563_v35  ;;  %v567_v45 = vld [vmem:[#allocation8 + $0x490] sm:$0xff]  ;;  %v612_v27 = vld [vmem:[#allocation8 + $0x5f8] sm:$0xff] }
 0x270   :  { %4049 = vmatprep.subr.bf16.mxu1 %v8806_v47  ;;  %v571_v47 = vld [vmem:[#allocation8 + $0x4b0] sm:$0xff] }
 0x271   :  { %v8859_v2 = vcombine.low %v567_v45, %v571_v47 }
 0x272   :  { %3886 = vmatpush1.bf16.msra.mxu0 %v8803_v55  ;;  %v8853_v55 = vcombine.low %v560_v37, %v564_v39 }
 0x273   :  { %4050 = vmatpush1.bf16.msra.mxu1 %v8805_v57  ;;  %3887 = vmatprep.subr.bf16.mxu0 %v8812_v58  ;;  %v8860_v57 = vcombine.high %v567_v45, %v571_v47  ;;  %v8862_v58 = vcombine.high %v568_v49, %v572_v51  ;;  %v616_v45 = vld [vmem:[#allocation8 + $0x618] sm:$0xff] }
 0x274   :  { %4051 = vmatprep.subr.bf16.mxu1 %v8814_v59  ;;  %v575_v59 = vld [vmem:[#allocation8 + $0x4d0] sm:$0xff]  ;;  %v620_v47 = vld [vmem:[#allocation8 + $0x638] sm:$0xff] }
 0x276   :  { %3888 = vmatpush1.bf16.msra.mxu0 %v8811_v46  ;;  %v8868_v46 = vcombine.high %v575_v59, %v579_v60 }
 0x277   :  { %4052 = vmatpush1.bf16.msra.mxu1 %v8813_v3  ;;  %3889 = vmatprep.subr.bf16.mxu0 %v8820_v4  ;;  %v8870_v3 = vcombine.high %v576_v0, %v580_v1  ;;  %v583_v4 = vld [vmem:[#allocation8 + $0x510] sm:$0xff]  ;;  %v8909_v0 = vcombine.low %v616_v45, %v620_v47 }
 0x278   :  { %4053 = vmatprep.subr.bf16.mxu1 %v8822_v6  ;;  %v587_v6 = vld [vmem:[#allocation8 + $0x530] sm:$0xff] }
 0x279   :  { %v8876_v62 = vcombine.high %v583_v4, %v587_v6  ;;  %v8875_v14 = vcombine.low %v583_v4, %v587_v6  ;;  %v636_v4 = vld [vmem:[#allocation8 + $0x6b8] sm:$0xff] }
 0x27a   :  { %3890 = vmatpush1.bf16.msra.mxu0 %v8819_v9  ;;  %v8878_v9 = vcombine.high %v584_v7, %v588_v29 }
 0x27b   :  { %4054 = vmatpush1.bf16.msra.mxu1 %v8821_v10  ;;  %3891 = vmatprep.subr.bf16.mxu0 %v8828_v11  ;;  %v591_v10 = vld [vmem:[#allocation8 + $0x550] sm:$0xff] }
 0x27c   :  { %4055 = vmatprep.subr.bf16.mxu1 %v8830_v12  ;;  %v595_v11 = vld [vmem:[#allocation8 + $0x570] sm:$0xff]  ;;  %v592_v12 = vld [vmem:[#allocation8 + $0x558] sm:$0xff] }
 0x27d   :  { %v8884_v50 = vcombine.high %v591_v10, %v595_v11  ;;  %v8883_v23 = vcombine.low %v591_v10, %v595_v11  ;;  %v8885_v24 = vcombine.low %v592_v12, %v596_v13  ;;  %v644_v10 = vld [vmem:[#allocation8 + $0x6f8] sm:$0xff] }
 0x27e   :  { %3892 = vmatpush1.bf16.msra.mxu0 %v8827_v18  ;;  %v8886_v18 = vcombine.high %v592_v12, %v596_v13 }
 0x27f   :  { %4056 = vmatpush1.bf16.msra.mxu1 %v8829_v19  ;;  %3893 = vmatprep.subr.bf16.mxu0 %v8836_v20  ;;  %v599_v19 = vld [vmem:[#allocation8 + $0x590] sm:$0xff] }
 0x280   :  { %4057 = vmatprep.subr.bf16.mxu1 %v8838_v38  ;;  %v603_v20 = vld [vmem:[#allocation8 + $0x5b0] sm:$0xff]  ;;  %v600_v38 = vld [vmem:[#allocation8 + $0x598] sm:$0xff] }
 0x281   :  { %v8892_v26 = vcombine.high %v599_v19, %v603_v20  ;;  %v8891_v35 = vcombine.low %v599_v19, %v603_v20  ;;  %v652_v19 = vld [vmem:[#allocation8 + $0x738] sm:$0xff] }
 0x282   :  { %3894 = vmatpush1.bf16.msra.mxu0 %v8835_v53  ;;  %v8894_v53 = vcombine.high %v600_v38, %v604_v21 }
 0x283   :  { %4058 = vmatpush1.bf16.msra.mxu1 %v8837_v33  ;;  %3904 = vmatprep.subr.bf16.mxu0 %v8844_v63  ;;  %v607_v33 = vld [vmem:[#allocation8 + $0x5d0] sm:$0xff] }
 0x284   :  { %4068 = vmatprep.subr.bf16.mxu1 %v8846_v34  ;;  %v611_v63 = vld [vmem:[#allocation8 + $0x5f0] sm:$0xff]  ;;  %v608_v34 = vld [vmem:[#allocation8 + $0x5d8] sm:$0xff] }
 0x285   :  { %3896 = vmatmul.mubr.bf16.vlgmr.msra.gmra.mrb[12].mxu0 %v10527_v54  ;;  %v8900_v37 = vcombine.high %v607_v33, %v611_v63  ;;  %v8902_v39 = vcombine.high %v608_v34, %v612_v27 }
 0x286   :  { %4060 = vmatmul.mubr.bf16.vlgmr.msra.gmra.mrb[12].mxu1 %v10527_v54  ;;  %3905 = vmatpush1.bf16.msra.mxu0 %v8843_v36  ;;  %v8861_v54 = vcombine.low %v568_v49, %v572_v51  ;;  %v8893_v36 = vcombine.low %v600_v38, %v604_v21  ;;  %v8901_v49 = vcombine.low %v608_v34, %v612_v27 }
 0x287   :  { %3936 = vmatprep.mubr.bf16.mxu0 %v10531_v61  ;;  %4069 = vmatpush1.bf16.msra.mxu1 %v8845_v42  ;;  %v615_v42 = vld [vmem:[#allocation8 + $0x610] sm:$0xff] }
 0x288   :  { %4100 = vmatprep.mubr.bf16.mxu1 %v10531_v61  ;;  %3906 = vmatprep.subr.bf16.mxu0 %v8852_v44  ;;  %v8867_v61 = vcombine.low %v575_v59, %v579_v60  ;;  %v619_v44 = vld [vmem:[#allocation8 + $0x630] sm:$0xff]  ;;  %v628_v59 = vld [vmem:[#allocation8 + $0x678] sm:$0xff] }
 0x289   :  { %4070 = vmatprep.subr.bf16.mxu1 %v8854_v48  ;;  %v8899_v48 = vcombine.low %v607_v33, %v611_v63  ;;  %v8908_v51 = vcombine.high %v615_v42, %v619_v44  ;;  %v8907_v60 = vcombine.low %v615_v42, %v619_v44  ;;  %v660_v33 = vld [vmem:[#allocation8 + $0x778] sm:$0xff] }
 0x28a   :  { %3907 = vmatpush1.bf16.msra.mxu0 %v8851_v52  ;;  %v8910_v52 = vcombine.high %v616_v45, %v620_v47  ;;  %v668_v42 = vld [vmem:[#allocation8 + $0x7b8] sm:$0xff] }
 0x28b   :  { %4071 = vmatpush1.bf16.msra.mxu1 %v8853_v55  ;;  %3908 = vmatprep.subr.bf16.mxu0 %v8860_v57  ;;  %v623_v55 = vld [vmem:[#allocation8 + $0x650] sm:$0xff] }
 0x28c   :  { %4072 = vmatprep.subr.bf16.mxu1 %v8862_v58  ;;  %v627_v57 = vld [vmem:[#allocation8 + $0x670] sm:$0xff]  ;;  %v624_v58 = vld [vmem:[#allocation8 + $0x658] sm:$0xff] }
 0x28d   :  { %v8916_v1 = vcombine.high %v623_v55, %v627_v57  ;;  %v8915_v6 = vcombine.low %v623_v55, %v627_v57  ;;  %v8917_v7 = vcombine.low %v624_v58, %v628_v59  ;;  %v676_v55 = vld [vmem:[#allocation8 + $0x7f8] sm:$0xff] }
 0x28e   :  { %3909 = vmatpush1.bf16.msra.mxu0 %v8859_v2  ;;  %v8918_v2 = vcombine.high %v624_v58, %v628_v59 }
 0x28f   :  { %4073 = vmatpush1.bf16.msra.mxu1 %v8861_v54  ;;  %3910 = vmatprep.subr.bf16.mxu0 %v8868_v46  ;;  %v631_v54 = vld [vmem:[#allocation8 + $0x690] sm:$0xff] }
 0x290   :  { %4074 = vmatprep.subr.bf16.mxu1 %v8870_v3  ;;  %v635_v46 = vld [vmem:[#allocation8 + $0x6b0] sm:$0xff]  ;;  %v632_v3 = vld [vmem:[#allocation8 + $0x698] sm:$0xff] }
 0x291   :  { %v8924_v29 = vcombine.high %v631_v54, %v635_v46  ;;  %v8923_v11 = vcombine.low %v631_v54, %v635_v46  ;;  %v8925_v12 = vcombine.low %v632_v3, %v636_v4  ;;  %v684_v54 = vld [vmem:[#allocation8 + $0x838] sm:$0xff] }
 0x292   :  { %3911 = vmatpush1.bf16.msra.mxu0 %v8867_v61  ;;  %v8926_v61 = vcombine.high %v632_v3, %v636_v4 }
 0x293   :  { %4075 = vmatpush1.bf16.msra.mxu1 %v8869_v8  ;;  %3912 = vmatprep.subr.bf16.mxu0 %v8876_v62  ;;  %v639_v8 = vld [vmem:[#allocation8 + $0x6d0] sm:$0xff] }
 0x294   :  { %4076 = vmatprep.subr.bf16.mxu1 %v8878_v9  ;;  %v643_v62 = vld [vmem:[#allocation8 + $0x6f0] sm:$0xff]  ;;  %v640_v9 = vld [vmem:[#allocation8 + $0x6d8] sm:$0xff] }
 0x295   :  { %v8932_v13 = vcombine.high %v639_v8, %v643_v62  ;;  %v8931_v20 = vcombine.low %v639_v8, %v643_v62  ;;  %v8933_v38 = vcombine.low %v640_v9, %v644_v10  ;;  %v688_v8 = vld [vmem:[#allocation8 + $0x858] sm:$0xff] }
 0x296   :  { %3913 = vmatpush1.bf16.msra.mxu0 %v8875_v14  ;;  %v8934_v14 = vcombine.high %v640_v9, %v644_v10  ;;  %v692_v62 = vld [vmem:[#allocation8 + $0x878] sm:$0xff] }
 0x297   :  { %4077 = vmatpush1.bf16.msra.mxu1 %v8877_v16  ;;  %3914 = vmatprep.subr.bf16.mxu0 %v8884_v50  ;;  %v647_v16 = vld [vmem:[#allocation8 + $0x710] sm:$0xff] }
 0x298   :  { %4078 = vmatprep.subr.bf16.mxu1 %v8886_v18  ;;  %v651_v50 = vld [vmem:[#allocation8 + $0x730] sm:$0xff]  ;;  %v648_v18 = vld [vmem:[#allocation8 + $0x718] sm:$0xff] }
 0x299   :  { %v8940_v21 = vcombine.high %v647_v16, %v651_v50  ;;  %v8939_v63 = vcombine.low %v647_v16, %v651_v50  ;;  %v8941_v34 = vcombine.low %v648_v18, %v652_v19  ;;  %v700_v16 = vld [vmem:[#allocation8 + $0x8b8] sm:$0xff] }
 0x29a   :  { %3915 = vmatpush1.bf16.msra.mxu0 %v8883_v23  ;;  %v8942_v23 = vcombine.high %v648_v18, %v652_v19  ;;  %v8981_v18 = vcombine.low %v688_v8, %v692_v62 }
 0x29b   :  { %4079 = vmatpush1.bf16.msra.mxu1 %v8885_v24  ;;  %3916 = vmatprep.subr.bf16.mxu0 %v8892_v26  ;;  %v655_v24 = vld [vmem:[#allocation8 + $0x750] sm:$0xff] }
 0x29c   :  { %4080 = vmatprep.subr.bf16.mxu1 %v8894_v53  ;;  %v659_v26 = vld [vmem:[#allocation8 + $0x770] sm:$0xff]  ;;  %v656_v53 = vld [vmem:[#allocation8 + $0x758] sm:$0xff] }
 0x29d   :  { %v8948_v27 = vcombine.high %v655_v24, %v659_v26  ;;  %v8947_v44 = vcombine.low %v655_v24, %v659_v26  ;;  %v8949_v45 = vcombine.low %v656_v53, %v660_v33  ;;  %v708_v24 = vld [vmem:[#allocation8 + $0x8f8] sm:$0xff] }
 0x29e   :  { %3917 = vmatpush1.bf16.msra.mxu0 %v8891_v35  ;;  %v8950_v35 = vcombine.high %v656_v53, %v660_v33 }
 0x29f   :  { %4081 = vmatpush1.bf16.msra.mxu1 %v8893_v36  ;;  %3918 = vmatprep.subr.bf16.mxu0 %v8900_v37  ;;  %v663_v36 = vld [vmem:[#allocation8 + $0x790] sm:$0xff] }
 0x2a0   :  { %4082 = vmatprep.subr.bf16.mxu1 %v8902_v39  ;;  %v667_v37 = vld [vmem:[#allocation8 + $0x7b0] sm:$0xff]  ;;  %v664_v39 = vld [vmem:[#allocation8 + $0x798] sm:$0xff] }
 0x2a1   :  { %v8956_v47 = vcombine.high %v663_v36, %v667_v37  ;;  %v8955_v57 = vcombine.low %v663_v36, %v667_v37  ;;  %v8957_v58 = vcombine.low %v664_v39, %v668_v42 }
 0x2a2   :  { %3919 = vmatpush1.bf16.msra.mxu0 %v8899_v48  ;;  %v8958_v48 = vcombine.high %v664_v39, %v668_v42  ;;  %v719_v42 = vld [vmem:[#allocation8 + $0x950] sm:$0xff] }
 0x2a3   :  { %4083 = vmatpush1.bf16.msra.mxu1 %v8901_v49  ;;  %3920 = vmatprep.subr.bf16.mxu0 %v8908_v51  ;;  %v671_v49 = vld [vmem:[#allocation8 + $0x7d0] sm:$0xff] }
 0x2a4   :  { %4084 = vmatprep.subr.bf16.mxu1 %v8910_v52  ;;  %v675_v51 = vld [vmem:[#allocation8 + $0x7f0] sm:$0xff]  ;;  %v672_v52 = vld [vmem:[#allocation8 + $0x7d8] sm:$0xff] }
 0x2a5   :  { %v8964_v59 = vcombine.high %v671_v49, %v675_v51  ;;  %v8963_v46 = vcombine.low %v671_v49, %v675_v51  ;;  %v8965_v3 = vcombine.low %v672_v52, %v676_v55 }
 0x2a6   :  { %3921 = vmatpush1.bf16.msra.mxu0 %v8907_v60  ;;  %v8966_v60 = vcombine.high %v672_v52, %v676_v55  ;;  %v727_v55 = vld [vmem:[#allocation8 + $0x990] sm:$0xff] }
 0x2a7   :  { %4085 = vmatpush1.bf16.msra.mxu1 %v8909_v0  ;;  %3922 = vmatprep.subr.bf16.mxu0 %v8916_v1  ;;  %v679_v0 = vld [vmem:[#allocation8 + $0x810] sm:$0xff] }
 0x2a8   :  { %4086 = vmatprep.subr.bf16.mxu1 %v8918_v2  ;;  %v683_v1 = vld [vmem:[#allocation8 + $0x830] sm:$0xff]  ;;  %v680_v2 = vld [vmem:[#allocation8 + $0x818] sm:$0xff] }
 0x2a9   :  { %v8972_v4 = vcombine.high %v679_v0, %v683_v1  ;;  %v8973_v9 = vcombine.low %v680_v2, %v684_v54 }
 0x2aa   :  { %3923 = vmatpush1.bf16.msra.mxu0 %v8915_v6  ;;  %v8974_v6 = vcombine.high %v680_v2, %v684_v54  ;;  %v735_v54 = vld [vmem:[#allocation8 + $0x9d0] sm:$0xff] }
 0x2ab   :  { %4087 = vmatpush1.bf16.msra.mxu1 %v8917_v7  ;;  %3924 = vmatprep.subr.bf16.mxu0 %v8924_v29  ;;  %v687_v7 = vld [vmem:[#allocation8 + $0x850] sm:$0xff] }
 0x2ac   :  { %4088 = vmatprep.subr.bf16.mxu1 %v8926_v61  ;;  %v691_v29 = vld [vmem:[#allocation8 + $0x870] sm:$0xff]  ;;  %v8971_v61 = vcombine.low %v679_v0, %v683_v1 }
 0x2ad   :  { %v8980_v10 = vcombine.high %v687_v7, %v691_v29  ;;  %v8979_v50 = vcombine.low %v687_v7, %v691_v29 }
 0x2ae   :  { %3925 = vmatpush1.bf16.msra.mxu0 %v8923_v11  ;;  %v695_v11 = vld [vmem:[#allocation8 + $0x890] sm:$0xff] }
 0x2af   :  { %4089 = vmatpush1.bf16.msra.mxu1 %v8925_v12  ;;  %3926 = vmatprep.subr.bf16.mxu0 %v8932_v13  ;;  %v699_v12 = vld [vmem:[#allocation8 + $0x8b0] sm:$0xff]  ;;  %v8982_v13 = vcombine.high %v688_v8, %v692_v62 }
 0x2b0   :  { %4090 = vmatprep.subr.bf16.mxu1 %v8934_v14  ;;  %v696_v14 = vld [vmem:[#allocation8 + $0x898] sm:$0xff]  ;;  %v8988_v19 = vcombine.high %v695_v11, %v699_v12  ;;  %v8987_v26 = vcombine.low %v695_v11, %v699_v12  ;;  %v743_v8 = vld [vmem:[#allocation8 + $0xa10] sm:$0xff] }
 0x2b1   :  { %v747_v62 = vld [vmem:[#allocation8 + $0xa30] sm:$0xff] }
 0x2b2   :  { %3927 = vmatpush1.bf16.msra.mxu0 %v8931_v20  ;;  %v8990_v20 = vcombine.high %v696_v14, %v700_v16 }
 0x2b3   :  { %4091 = vmatpush1.bf16.msra.mxu1 %v8933_v38  ;;  %3928 = vmatprep.subr.bf16.mxu0 %v8940_v21  ;;  %v703_v38 = vld [vmem:[#allocation8 + $0x8d0] sm:$0xff] }
 0x2b4   :  { %4092 = vmatprep.subr.bf16.mxu1 %v8942_v23  ;;  %v707_v21 = vld [vmem:[#allocation8 + $0x8f0] sm:$0xff]  ;;  %v704_v23 = vld [vmem:[#allocation8 + $0x8d8] sm:$0xff] }
 0x2b5   :  { %v8996_v53 = vcombine.high %v703_v38, %v707_v21  ;;  %v8998_v33 = vcombine.high %v704_v23, %v708_v24  ;;  %v8997_v36 = vcombine.low %v704_v23, %v708_v24  ;;  %v759_v24 = vld [vmem:[#allocation8 + $0xa90] sm:$0xff] }
 0x2b6   :  { %3929 = vmatpush1.bf16.msra.mxu0 %v8939_v63  ;;  %v711_v63 = vld [vmem:[#allocation8 + $0x910] sm:$0xff] }
 0x2b7   :  { %4093 = vmatpush1.bf16.msra.mxu1 %v8941_v34  ;;  %3930 = vmatprep.subr.bf16.mxu0 %v8948_v27  ;;  %v715_v34 = vld [vmem:[#allocation8 + $0x930] sm:$0xff]  ;;  %v712_v27 = vld [vmem:[#allocation8 + $0x918] sm:$0xff] }
 0x2b8   :  { %4094 = vmatprep.subr.bf16.mxu1 %v8950_v35  ;;  %v716_v35 = vld [vmem:[#allocation8 + $0x938] sm:$0xff]  ;;  %v9004_v37 = vcombine.high %v711_v63, %v715_v34 }
 0x2b9   :  { %v9006_v39 = vcombine.high %v712_v27, %v716_v35  ;;  %v9005_v49 = vcombine.low %v712_v27, %v716_v35  ;;  %v767_v35 = vld [vmem:[#allocation8 + $0xad0] sm:$0xff] }
 0x2ba   :  { %3931 = vmatpush1.bf16.msra.mxu0 %v8947_v44  ;;  %v723_v44 = vld [vmem:[#allocation8 + $0x970] sm:$0xff] }
 0x2bb   :  { %4095 = vmatpush1.bf16.msra.mxu1 %v8949_v45  ;;  %3932 = vmatprep.subr.bf16.mxu0 %v8956_v47  ;;  %v720_v45 = vld [vmem:[#allocation8 + $0x958] sm:$0xff]  ;;  %v9012_v51 = vcombine.high %v719_v42, %v723_v44 }
 0x2bc   :  { %4096 = vmatprep.subr.bf16.mxu1 %v8958_v48  ;;  %v724_v47 = vld [vmem:[#allocation8 + $0x978] sm:$0xff]  ;;  %v9003_v48 = vcombine.low %v711_v63, %v715_v34 }
 0x2bd   :  { %v9014_v52 = vcombine.high %v720_v45, %v724_v47  ;;  %v9013_v0 = vcombine.low %v720_v45, %v724_v47  ;;  %v775_v47 = vld [vmem:[#allocation8 + $0xb10] sm:$0xff] }
 0x2be   :  { %3933 = vmatpush1.bf16.msra.mxu0 %v8955_v57  ;;  %v731_v57 = vld [vmem:[#allocation8 + $0x9b0] sm:$0xff] }
 0x2bf   :  { %4097 = vmatpush1.bf16.msra.mxu1 %v8957_v58  ;;  %3934 = vmatprep.subr.bf16.mxu0 %v8964_v59  ;;  %v728_v58 = vld [vmem:[#allocation8 + $0x998] sm:$0xff]  ;;  %v9020_v1 = vcombine.high %v727_v55, %v731_v57 }
 0x2c0   :  { %4098 = vmatprep.subr.bf16.mxu1 %v8966_v60  ;;  %v732_v59 = vld [vmem:[#allocation8 + $0x9b8] sm:$0xff]  ;;  %v9011_v60 = vcombine.low %v719_v42, %v723_v44 }
 0x2c1   :  { %v9022_v2 = vcombine.high %v728_v58, %v732_v59  ;;  %v9021_v7 = vcombine.low %v728_v58, %v732_v59  ;;  %v783_v59 = vld [vmem:[#allocation8 + $0xb50] sm:$0xff] }
 0x2c2   :  { %3935 = vmatpush1.bf16.msra.mxu0 %v8963_v46  ;;  %v739_v46 = vld [vmem:[#allocation8 + $0x9f0] sm:$0xff] }
 0x2c3   :  { %4099 = vmatpush1.bf16.msra.mxu1 %v8965_v3  ;;  %3945 = vmatprep.subr.bf16.mxu0 %v8972_v4  ;;  %v736_v3 = vld [vmem:[#allocation8 + $0x9d8] sm:$0xff]  ;;  %v9028_v29 = vcombine.high %v735_v54, %v739_v46  ;;  %v9027_v11 = vcombine.low %v735_v54, %v739_v46 }
 0x2c4   :  { %4109 = vmatprep.subr.bf16.mxu1 %v8974_v6  ;;  %v740_v4 = vld [vmem:[#allocation8 + $0x9f8] sm:$0xff]  ;;  %v9019_v6 = vcombine.low %v727_v55, %v731_v57 }
 0x2c5   :  { %3937 = vmatmul.mubr.bf16.vlgmr.msra.gmra.mrb[12].mxu0 %v10557_v32  ;;  %v9029_v12 = vcombine.low %v736_v3, %v740_v4 }
 0x2c6   :  { %4101 = vmatmul.mubr.bf16.vlgmr.msra.gmra.mrb[12].mxu1 %v10557_v32  ;;  %3946 = vmatpush1.bf16.msra.mxu0 %v8971_v61  ;;  %v8989_v32 = vcombine.low %v696_v14, %v700_v16  ;;  %v9030_v61 = vcombine.high %v736_v3, %v740_v4  ;;  %v751_v16 = vld [vmem:[#allocation8 + $0xa50] sm:$0xff] }
 0x2c7   :  { %3977 = vmatprep.mubr.bf16.mxu0 %v10559_v41  ;;  %4110 = vmatpush1.bf16.msra.mxu1 %v8973_v9  ;;  %v744_v9 = vld [vmem:[#allocation8 + $0xa18] sm:$0xff]  ;;  %v791_v4 = vld [vmem:[#allocation8 + $0xb90] sm:$0xff] }
 0x2c8   :  { %4141 = vmatprep.mubr.bf16.mxu1 %v10559_v41  ;;  %3947 = vmatprep.subr.bf16.mxu0 %v8980_v10  ;;  %v8995_v41 = vcombine.low %v703_v38, %v707_v21  ;;  %v748_v10 = vld [vmem:[#allocation8 + $0xa38] sm:$0xff] }
 0x2c9   :  { %4111 = vmatprep.subr.bf16.mxu1 %v8982_v13  ;;  %v9036_v13 = vcombine.high %v743_v8, %v747_v62  ;;  %v9038_v14 = vcombine.high %v744_v9, %v748_v10  ;;  %v9037_v38 = vcombine.low %v744_v9, %v748_v10  ;;  %v799_v10 = vld [vmem:[#allocation8 + $0xbd0] sm:$0xff] }
 0x2ca   :  { %3948 = vmatpush1.bf16.msra.mxu0 %v8979_v50  ;;  %v755_v50 = vld [vmem:[#allocation8 + $0xa70] sm:$0xff] }
 0x2cb   :  { %4112 = vmatpush1.bf16.msra.mxu1 %v8981_v18  ;;  %3949 = vmatprep.subr.bf16.mxu0 %v8988_v19  ;;  %v752_v18 = vld [vmem:[#allocation8 + $0xa58] sm:$0xff]  ;;  %v9044_v21 = vcombine.high %v751_v16, %v755_v50 }
 0x2cc   :  { %4113 = vmatprep.subr.bf16.mxu1 %v8990_v20  ;;  %v756_v19 = vld [vmem:[#allocation8 + $0xa78] sm:$0xff]  ;;  %v9035_v20 = vcombine.low %v743_v8, %v747_v62 }
 0x2cd   :  { %v9046_v23 = vcombine.high %v752_v18, %v756_v19  ;;  %v9045_v63 = vcombine.low %v752_v18, %v756_v19  ;;  %v807_v19 = vld [vmem:[#allocation8 + $0xc10] sm:$0xff] }
 0x2ce   :  { %3950 = vmatpush1.bf16.msra.mxu0 %v8987_v26  ;;  %v763_v26 = vld [vmem:[#allocation8 + $0xab0] sm:$0xff] }
 0x2cf   :  { %4114 = vmatpush1.bf16.msra.mxu1 %v8989_v32  ;;  %3951 = vmatprep.subr.bf16.mxu0 %v8996_v53  ;;  %v760_v32 = vld [vmem:[#allocation8 + $0xa98] sm:$0xff]  ;;  %v9052_v34 = vcombine.high %v759_v24, %v763_v26 }
 0x2d0   :  { %4115 = vmatprep.subr.bf16.mxu1 %v8998_v33  ;;  %v764_v53 = vld [vmem:[#allocation8 + $0xab8] sm:$0xff]  ;;  %v9043_v33 = vcombine.low %v751_v16, %v755_v50 }
 0x2d1   :  { %v9054_v27 = vcombine.high %v760_v32, %v764_v53  ;;  %v9053_v42 = vcombine.low %v760_v32, %v764_v53  ;;  %v815_v53 = vld [vmem:[#allocation8 + $0xc50] sm:$0xff] }
 0x2d2   :  { %3952 = vmatpush1.bf16.msra.mxu0 %v8995_v41  ;;  %v771_v41 = vld [vmem:[#allocation8 + $0xaf0] sm:$0xff] }
 0x2d3   :  { %4116 = vmatpush1.bf16.msra.mxu1 %v8997_v36  ;;  %3953 = vmatprep.subr.bf16.mxu0 %v9004_v37  ;;  %v768_v36 = vld [vmem:[#allocation8 + $0xad8] sm:$0xff]  ;;  %v9060_v44 = vcombine.high %v767_v35, %v771_v41 }
 0x2d4   :  { %4117 = vmatprep.subr.bf16.mxu1 %v9006_v39  ;;  %v772_v37 = vld [vmem:[#allocation8 + $0xaf8] sm:$0xff]  ;;  %v9051_v39 = vcombine.low %v759_v24, %v763_v26 }
 0x2d5   :  { %v9062_v45 = vcombine.high %v768_v36, %v772_v37  ;;  %v9061_v55 = vcombine.low %v768_v36, %v772_v37  ;;  %v823_v36 = vld [vmem:[#allocation8 + $0xc90] sm:$0xff] }
 0x2d6   :  { %3954 = vmatpush1.bf16.msra.mxu0 %v9003_v48  ;;  %v779_v48 = vld [vmem:[#allocation8 + $0xb30] sm:$0xff] }
 0x2d7   :  { %4118 = vmatpush1.bf16.msra.mxu1 %v9005_v49  ;;  %3955 = vmatprep.subr.bf16.mxu0 %v9012_v51  ;;  %v776_v49 = vld [vmem:[#allocation8 + $0xb18] sm:$0xff]  ;;  %v9068_v57 = vcombine.high %v775_v47, %v779_v48  ;;  %v827_v37 = vld [vmem:[#allocation8 + $0xcb0] sm:$0xff] }
 0x2d8   :  { %4119 = vmatprep.subr.bf16.mxu1 %v9014_v52  ;;  %v780_v51 = vld [vmem:[#allocation8 + $0xb38] sm:$0xff]  ;;  %v9059_v52 = vcombine.low %v767_v35, %v771_v41 }
 0x2d9   :  { %v9070_v58 = vcombine.high %v776_v49, %v780_v51  ;;  %v9069_v54 = vcombine.low %v776_v49, %v780_v51  ;;  %v831_v51 = vld [vmem:[#allocation8 + $0xcd0] sm:$0xff] }
 0x2da   :  { %3956 = vmatpush1.bf16.msra.mxu0 %v9011_v60  ;;  %v787_v60 = vld [vmem:[#allocation8 + $0xb70] sm:$0xff] }
 0x2db   :  { %4120 = vmatpush1.bf16.msra.mxu1 %v9013_v0  ;;  %3957 = vmatprep.subr.bf16.mxu0 %v9020_v1  ;;  %v784_v0 = vld [vmem:[#allocation8 + $0xb58] sm:$0xff]  ;;  %v9076_v46 = vcombine.high %v783_v59, %v787_v60 }
 0x2dc   :  { %4121 = vmatprep.subr.bf16.mxu1 %v9022_v2  ;;  %v788_v1 = vld [vmem:[#allocation8 + $0xb78] sm:$0xff]  ;;  %v9067_v2 = vcombine.low %v775_v47, %v779_v48  ;;  %v9116_v48 = vcombine.high %v823_v36, %v827_v37 }
 0x2dd   :  { %v9078_v3 = vcombine.high %v784_v0, %v788_v1  ;;  %v9077_v8 = vcombine.low %v784_v0, %v788_v1  ;;  %v839_v0 = vld [vmem:[#allocation8 + $0xd10] sm:$0xff] }
 0x2de   :  { %3958 = vmatpush1.bf16.msra.mxu0 %v9019_v6  ;;  %v795_v6 = vld [vmem:[#allocation8 + $0xbb0] sm:$0xff] }
 0x2df   :  { %4122 = vmatpush1.bf16.msra.mxu1 %v9021_v7  ;;  %3959 = vmatprep.subr.bf16.mxu0 %v9028_v29  ;;  %v792_v7 = vld [vmem:[#allocation8 + $0xb98] sm:$0xff]  ;;  %v9084_v62 = vcombine.high %v791_v4, %v795_v6  ;;  %v843_v1 = vld [vmem:[#allocation8 + $0xd30] sm:$0xff] }
 0x2e0   :  { %4123 = vmatprep.subr.bf16.mxu1 %v9030_v61  ;;  %v796_v29 = vld [vmem:[#allocation8 + $0xbb8] sm:$0xff]  ;;  %v9075_v61 = vcombine.low %v783_v59, %v787_v60 }
 0x2e1   :  { %v9086_v9 = vcombine.high %v792_v7, %v796_v29  ;;  %v9085_v16 = vcombine.low %v792_v7, %v796_v29  ;;  %v851_v7 = vld [vmem:[#allocation8 + $0xd70] sm:$0xff]  ;;  %v848_v29 = vld [vmem:[#allocation8 + $0xd58] sm:$0xff] }
 0x2e2   :  { %3960 = vmatpush1.bf16.msra.mxu0 %v9027_v11  ;;  %v803_v11 = vld [vmem:[#allocation8 + $0xbf0] sm:$0xff] }
 0x2e3   :  { %4124 = vmatpush1.bf16.msra.mxu1 %v9029_v12  ;;  %3961 = vmatprep.subr.bf16.mxu0 %v9036_v13  ;;  %v800_v12 = vld [vmem:[#allocation8 + $0xbd8] sm:$0xff]  ;;  %v9092_v50 = vcombine.high %v799_v10, %v803_v11 }
 0x2e4   :  { %4125 = vmatprep.subr.bf16.mxu1 %v9038_v14  ;;  %v804_v13 = vld [vmem:[#allocation8 + $0xbf8] sm:$0xff]  ;;  %v9083_v14 = vcombine.low %v791_v4, %v795_v6  ;;  %v847_v6 = vld [vmem:[#allocation8 + $0xd50] sm:$0xff] }
 0x2e5   :  { %v9094_v18 = vcombine.high %v800_v12, %v804_v13  ;;  %v9093_v24 = vcombine.low %v800_v12, %v804_v13  ;;  %v859_v12 = vld [vmem:[#allocation8 + $0xdb0] sm:$0xff]  ;;  %v856_v13 = vld [vmem:[#allocation8 + $0xd98] sm:$0xff] }
 0x2e6   :  { %3962 = vmatpush1.bf16.msra.mxu0 %v9035_v20  ;;  %v811_v20 = vld [vmem:[#allocation8 + $0xc30] sm:$0xff] }
 0x2e7   :  { %4126 = vmatpush1.bf16.msra.mxu1 %v9037_v38  ;;  %3963 = vmatprep.subr.bf16.mxu0 %v9044_v21  ;;  %v808_v38 = vld [vmem:[#allocation8 + $0xc18] sm:$0xff]  ;;  %v9100_v26 = vcombine.high %v807_v19, %v811_v20 }
 0x2e8   :  { %4127 = vmatprep.subr.bf16.mxu1 %v9046_v23  ;;  %v812_v21 = vld [vmem:[#allocation8 + $0xc38] sm:$0xff]  ;;  %v9091_v23 = vcombine.low %v799_v10, %v803_v11  ;;  %v855_v11 = vld [vmem:[#allocation8 + $0xd90] sm:$0xff] }
 0x2e9   :  { %v9102_v32 = vcombine.high %v808_v38, %v812_v21  ;;  %v9101_v35 = vcombine.low %v808_v38, %v812_v21  ;;  %v863_v21 = vld [vmem:[#allocation8 + $0xdd0] sm:$0xff] }
 0x2ea   :  { %3964 = vmatpush1.bf16.msra.mxu0 %v9043_v33  ;;  %v819_v33 = vld [vmem:[#allocation8 + $0xc70] sm:$0xff] }
 0x2eb   :  { %4128 = vmatpush1.bf16.msra.mxu1 %v9045_v63  ;;  %3965 = vmatprep.subr.bf16.mxu0 %v9052_v34  ;;  %v9099_v63 = vcombine.low %v807_v19, %v811_v20  ;;  %v816_v34 = vld [vmem:[#allocation8 + $0xc58] sm:$0xff]  ;;  %v9108_v41 = vcombine.high %v815_v53, %v819_v33 }
 0x2ec   :  { %4129 = vmatprep.subr.bf16.mxu1 %v9054_v27  ;;  %v820_v27 = vld [vmem:[#allocation8 + $0xc78] sm:$0xff] }
 0x2ed   :  { %v9109_v47 = vcombine.low %v816_v34, %v820_v27 }
 0x2ee   :  { %3966 = vmatpush1.bf16.msra.mxu0 %v9051_v39  ;;  %v9110_v39 = vcombine.high %v816_v34, %v820_v27  ;;  %v9147_v34 = vcombine.low %v855_v11, %v859_v12 }
 0x2ef   :  { %4130 = vmatpush1.bf16.msra.mxu1 %v9053_v42  ;;  %3967 = vmatprep.subr.bf16.mxu0 %v9060_v44  ;;  %v824_v42 = vld [vmem:[#allocation8 + $0xc98] sm:$0xff] }
 0x2f0   :  { %4131 = vmatprep.subr.bf16.mxu1 %v9062_v45  ;;  %v828_v44 = vld [vmem:[#allocation8 + $0xcb8] sm:$0xff]  ;;  %v9107_v45 = vcombine.low %v815_v53, %v819_v33 }
 0x2f1   :  { %v9118_v49 = vcombine.high %v824_v42, %v828_v44  ;;  %v868_v53 = vld [vmem:[#allocation8 + $0xdf8] sm:$0xff] }
 0x2f2   :  { %3968 = vmatpush1.bf16.msra.mxu0 %v9059_v52  ;;  %v835_v52 = vld [vmem:[#allocation8 + $0xcf0] sm:$0xff] }
 0x2f3   :  { %4132 = vmatpush1.bf16.msra.mxu1 %v9061_v55  ;;  %3969 = vmatprep.subr.bf16.mxu0 %v9068_v57  ;;  %v832_v55 = vld [vmem:[#allocation8 + $0xcd8] sm:$0xff]  ;;  %v9124_v59 = vcombine.high %v831_v51, %v835_v52 }
 0x2f4   :  { %4133 = vmatprep.subr.bf16.mxu1 %v9070_v58  ;;  %v836_v57 = vld [vmem:[#allocation8 + $0xcf8] sm:$0xff]  ;;  %v9115_v58 = vcombine.low %v823_v36, %v827_v37 }
 0x2f5   :  { %v9126_v60 = vcombine.high %v832_v55, %v836_v57 }
 0x2f6   :  { %3970 = vmatpush1.bf16.msra.mxu0 %v9067_v2  ;;  %v840_v2 = vld [vmem:[#allocation8 + $0xd18] sm:$0xff] }
 0x2f7   :  { %4134 = vmatpush1.bf16.msra.mxu1 %v9069_v54  ;;  %3971 = vmatprep.subr.bf16.mxu0 %v9076_v46  ;;  %v844_v54 = vld [vmem:[#allocation8 + $0xd38] sm:$0xff]  ;;  %v9125_v46 = vcombine.low %v832_v55, %v836_v57  ;;  %v883_v55 = vld [vmem:[#allocation8 + $0xe70] sm:$0xff] }
 0x2f8   :  { %4135 = vmatprep.subr.bf16.mxu1 %v9078_v3  ;;  %v9132_v3 = vcombine.high %v839_v0, %v843_v1  ;;  %v9134_v4 = vcombine.high %v840_v2, %v844_v54  ;;  %v880_v57 = vld [vmem:[#allocation8 + $0xe58] sm:$0xff] }
 0x2fa   :  { %3972 = vmatpush1.bf16.msra.mxu0 %v9075_v61  ;;  %v852_v61 = vld [vmem:[#allocation8 + $0xd78] sm:$0xff] }
 0x2fb   :  { %4136 = vmatpush1.bf16.msra.mxu1 %v9077_v8  ;;  %3973 = vmatprep.subr.bf16.mxu0 %v9084_v62  ;;  %v9131_v8 = vcombine.low %v839_v0, %v843_v1  ;;  %v9133_v62 = vcombine.low %v840_v2, %v844_v54  ;;  %v9142_v10 = vcombine.high %v848_v29, %v852_v61  ;;  %v887_v1 = vld [vmem:[#allocation8 + $0xe90] sm:$0xff]  ;;  %v888_v54 = vld [vmem:[#allocation8 + $0xe98] sm:$0xff] }
 0x2fc   :  { %4137 = vmatprep.subr.bf16.mxu1 %v9086_v9  ;;  %v9140_v9 = vcombine.high %v847_v6, %v851_v7  ;;  %v891_v2 = vld [vmem:[#allocation8 + $0xeb0] sm:$0xff] }
 0x2fe   :  { %3974 = vmatpush1.bf16.msra.mxu0 %v9083_v14  ;;  %v860_v14 = vld [vmem:[#allocation8 + $0xdb8] sm:$0xff] }
 0x2ff   :  { %4138 = vmatpush1.bf16.msra.mxu1 %v9085_v16  ;;  %3975 = vmatprep.subr.bf16.mxu0 %v9092_v50  ;;  %v9139_v16 = vcombine.low %v847_v6, %v851_v7  ;;  %v9141_v50 = vcombine.low %v848_v29, %v852_v61  ;;  %v9150_v38 = vcombine.high %v856_v13, %v860_v14  ;;  %v895_v7 = vld [vmem:[#allocation8 + $0xed0] sm:$0xff]  ;;  %v896_v61 = vld [vmem:[#allocation8 + $0xed8] sm:$0xff] }
 0x300   :  { %4139 = vmatprep.subr.bf16.mxu1 %v9094_v18  ;;  %v9148_v18 = vcombine.high %v855_v11, %v859_v12  ;;  %v899_v29 = vld [vmem:[#allocation8 + $0xef0] sm:$0xff] }
 0x301   :  { %v903_v12 = vld [vmem:[#allocation8 + $0xf10] sm:$0xff] }
 0x302   :  { %3976 = vmatpush1.bf16.msra.mxu0 %v9091_v23  ;;  %v867_v23 = vld [vmem:[#allocation8 + $0xdf0] sm:$0xff] }
 0x303   :  { %4140 = vmatpush1.bf16.msra.mxu1 %v9093_v24  ;;  %3986 = vmatprep.subr.bf16.mxu0 %v9100_v26  ;;  %v9156_v36 = vcombine.high %v863_v21, %v867_v23 }
 0x304   :  { %4150 = vmatprep.subr.bf16.mxu1 %v9102_v32  ;;  %v864_v32 = vld [vmem:[#allocation8 + $0xdd8] sm:$0xff] }
 0x305   :  { %3978 = vmatmul.mubr.bf16.vlgmr.msra.gmra.mrb[12].mxu0 %v10577_v15  ;;  %v9158_v37 = vcombine.high %v864_v32, %v868_v53 }
 0x306   :  { %4142 = vmatmul.mubr.bf16.vlgmr.msra.gmra.mrb[12].mxu1 %v10577_v15  ;;  %3987 = vmatpush1.bf16.msra.mxu0 %v9099_v63  ;;  %v9117_v15 = vcombine.low %v824_v42, %v828_v44  ;;  %v875_v42 = vld [vmem:[#allocation8 + $0xe30] sm:$0xff]  ;;  %v872_v44 = vld [vmem:[#allocation8 + $0xe18] sm:$0xff] }
 0x307   :  { %4018 = vmatprep.mubr.bf16.mxu0 %v10579_v22  ;;  %4151 = vmatpush1.bf16.msra.mxu1 %v9101_v35 }
 0x308   :  { %4182 = vmatprep.mubr.bf16.mxu1 %v10579_v22  ;;  %3988 = vmatprep.subr.bf16.mxu0 %v9108_v41  ;;  %v9123_v22 = vcombine.low %v831_v51, %v835_v52  ;;  %v9149_v41 = vcombine.low %v856_v13, %v860_v14  ;;  %v879_v52 = vld [vmem:[#allocation8 + $0xe50] sm:$0xff]  ;;  %v904_v14 = vld [vmem:[#allocation8 + $0xf18] sm:$0xff] }
 0x309   :  { %4152 = vmatprep.subr.bf16.mxu1 %v9110_v39  ;;  %v871_v39 = vld [vmem:[#allocation8 + $0xe10] sm:$0xff] }
 0x30a   :  { %3989 = vmatpush1.bf16.msra.mxu0 %v9107_v45  ;;  %v876_v45 = vld [vmem:[#allocation8 + $0xe38] sm:$0xff]  ;;  %v907_v13 = vld [vmem:[#allocation8 + $0xf30] sm:$0xff] }
 0x30b   :  { %4153 = vmatpush1.bf16.msra.mxu1 %v9109_v47  ;;  %3990 = vmatprep.subr.bf16.mxu0 %v9116_v48  ;;  %v9155_v47 = vcombine.low %v863_v21, %v867_v23  ;;  %v9157_v48 = vcombine.low %v864_v32, %v868_v53  ;;  %v9166_v51 = vcombine.high %v872_v44, %v876_v45  ;;  %v911_v23 = vld [vmem:[#allocation8 + $0xf50] sm:$0xff]  ;;  %v912_v53 = vld [vmem:[#allocation8 + $0xf58] sm:$0xff] }
 0x30c   :  { %4154 = vmatprep.subr.bf16.mxu1 %v9118_v49  ;;  %v9164_v49 = vcombine.high %v871_v39, %v875_v42  ;;  %v915_v32 = vld [vmem:[#allocation8 + $0xf70] sm:$0xff] }
 0x30e   :  { %3991 = vmatpush1.bf16.msra.mxu0 %v9115_v58  ;;  %v884_v58 = vld [vmem:[#allocation8 + $0xe78] sm:$0xff] }
 0x30f   :  { %4155 = vmatpush1.bf16.msra.mxu1 %v9117_v15  ;;  %3992 = vmatprep.subr.bf16.mxu0 %v9124_v59  ;;  %v9163_v15 = vcombine.low %v871_v39, %v875_v42  ;;  %v9165_v59 = vcombine.low %v872_v44, %v876_v45  ;;  %v9174_v0 = vcombine.high %v880_v57, %v884_v58  ;;  %v924_v39 = vld [vmem:[#allocation8 + $0xfb8] sm:$0xff]  ;;  %v10616_v42 = vld [vmem:[#allocation10] sm:$0xff] }
 0x310   :  { %4156 = vmatprep.subr.bf16.mxu1 %v9126_v60  ;;  %v9172_v60 = vcombine.high %v879_v52, %v883_v55  ;;  %v9203_v44 = vcombine.low %v911_v23, %v915_v32 }
 0x312   :  { %3993 = vmatpush1.bf16.msra.mxu0 %v9123_v22  ;;  %v892_v22 = vld [vmem:[#allocation8 + $0xeb8] sm:$0xff] }
 0x313   :  { %4157 = vmatpush1.bf16.msra.mxu1 %v9125_v46  ;;  %3994 = vmatprep.subr.bf16.mxu0 %v9132_v3  ;;  %v9171_v46 = vcombine.low %v879_v52, %v883_v55  ;;  %v9173_v3 = vcombine.low %v880_v57, %v884_v58  ;;  %v9182_v6 = vcombine.high %v888_v54, %v892_v22  ;;  %v928_v55 = vld [vmem:[#allocation8 + $0xfd8] sm:$0xff] }
 0x314   :  { %4158 = vmatprep.subr.bf16.mxu1 %v9134_v4  ;;  %v9180_v4 = vcombine.high %v887_v1, %v891_v2  ;;  %v942_v52 = vrot.slane %v10616_v42, %v10512_v30  ;;  %v932_v57 = vld [vmem:[#allocation8 + $0xff8] sm:$0xff] }
 0x316   :  { %3995 = vmatpush1.bf16.msra.mxu0 %v9131_v8  ;;  %v900_v8 = vld [vmem:[#allocation8 + $0xef8] sm:$0xff] }
 0x317   :  { %4159 = vmatpush1.bf16.msra.mxu1 %v9133_v62  ;;  %3996 = vmatprep.subr.bf16.mxu0 %v9140_v9  ;;  %v9179_v62 = vcombine.low %v887_v1, %v891_v2  ;;  %v9181_v9 = vcombine.low %v888_v54, %v892_v22  ;;  %v9190_v11 = vcombine.high %v896_v61, %v900_v8  ;;  %v4211_v1 = vld [vmem:[#allocation11 + $0x20] sm:$0xff]  ;;  %v4208_v54 = vld [vmem:[#allocation11 + $0x8] sm:$0xff] }
 0x318   :  { %v10608_v19 = vpop.f32.mrb[8].mxu0  ;;  %v10610_v20 = vpop.f32.mrb[8].mxu1  ;;  %4160 = vmatprep.subr.bf16.mxu1 %v9142_v10  ;;  %v9188_v10 = vcombine.high %v895_v7, %v899_v29  ;;  %v4212_v22 = vld [vmem:[#allocation11 + $0x28] sm:$0xff] }
 0x319   :  { %v10612_v24 = vpop.f32.mrb[9].mxu0  ;;  %v10614_v26 = vpop.f32.mrb[9].mxu1 }
 0x31a   :  { %v3696_v33 = vpop.f32.mrb[10].mxu0  ;;  %v3860_v63 = vpop.f32.mrb[10].mxu1  ;;  %3997 = vmatpush1.bf16.msra.mxu0 %v9139_v16  ;;  %v908_v16 = vld [vmem:[#allocation8 + $0xf38] sm:$0xff]  ;;  %v9890_v2 = vadd.f32 %v10612_v24, %v942_v52  ;;  %v9225_v24 = vcombine.low %v4208_v54, %v4212_v22  ;;  %v4248_v52 = vld [vmem:[#allocation11 + $0x148] sm:$0xff] }
 0x31b   :  { %4161 = vmatpush1.bf16.msra.mxu1 %v9141_v50  ;;  %v3697_v27 = vpop.f32.mrb[11].mxu0  ;;  %v3861_v35 = vpop.f32.mrb[11].mxu1  ;;  %3998 = vmatprep.subr.bf16.mxu0 %v9148_v18  ;;  %v9187_v50 = vcombine.low %v895_v7, %v899_v29  ;;  %v9189_v18 = vcombine.low %v896_v61, %v900_v8  ;;  %v9198_v21 = vcombine.high %v904_v14, %v908_v16  ;;  %v916_v33 = vld [vmem:[#allocation8 + $0xf78] sm:$0xff]  ;;  %v4215_v29 = vld [vmem:[#allocation11 + $0x40] sm:$0xff] }
 0x31c   :  { %4162 = vmatprep.subr.bf16.mxu1 %v9150_v38  ;;  %v9196_v38 = vcombine.high %v903_v12, %v907_v13  ;;  %v9195_v63 = vcombine.low %v903_v12, %v907_v13  ;;  %v9204_v27 = vcombine.high %v911_v23, %v915_v32  ;;  %v9206_v35 = vcombine.high %v912_v53, %v916_v33  ;;  %v4219_v61 = vld [vmem:[#allocation11 + $0x60] sm:$0xff] }
 0x31d   :  { %v9205_v45 = vcombine.low %v912_v53, %v916_v33  ;;  %v4192_v7 = vmax.f32 %v9890_v2, 0.0  ;;  %v4227_v12 = vld [vmem:[#allocation11 + $0xa0] sm:$0xff]  ;;  %v4232_v33 = vld [vmem:[#allocation11 + $0xc8] sm:$0xff] }
 0x31e   :  { %3999 = vmatpush1.bf16.msra.mxu0 %v9147_v34  ;;  %v9197_v34 = vcombine.low %v904_v14, %v908_v16  ;;  %v4224_v16 = vld [vmem:[#allocation11 + $0x88] sm:$0xff]  ;;  %v4231_v32 = vld [vmem:[#allocation11 + $0xc0] sm:$0xff] }
 0x31f   :  { %4163 = vmatpush1.bf16.msra.mxu1 %v9149_v41  ;;  %4000 = vmatprep.subr.bf16.mxu0 %v9156_v36  ;;  %v919_v41 = vld [vmem:[#allocation8 + $0xf90] sm:$0xff]  ;;  %v10621_v13 = vpack.c.bf16 %v4192_v7, %v4192_v7  ;;  %v4235_v53 = vld [vmem:[#allocation11 + $0xe0] sm:$0xff] }
 0x320   :  { %4164 = vmatprep.subr.bf16.mxu1 %v9158_v37  ;;  %v923_v36 = vld [vmem:[#allocation8 + $0xfb0] sm:$0xff]  ;;  %v920_v37 = vld [vmem:[#allocation8 + $0xf98] sm:$0xff] }
 0x321   :  { %v9211_v58 = vcombine.low %v919_v41, %v923_v36  ;;  %v4260_v2 = vld [vmem:[#allocation11 + $0x1a8] sm:$0xff] }
 0x322   :  { %4001 = vmatpush1.bf16.msra.mxu0 %v9155_v47  ;;  %v9212_v47 = vcombine.high %v919_v41, %v923_v36  ;;  %v4239_v41 = vld [vmem:[#allocation11 + $0x100] sm:$0xff]  ;;  %v4264_v7 = vld [vmem:[#allocation11 + $0x1c8] sm:$0xff] }
 0x323   :  { %4165 = vmatpush1.bf16.msra.mxu1 %v9157_v48  ;;  %4002 = vmatprep.subr.bf16.mxu0 %v9164_v49  ;;  %v9214_v48 = vcombine.high %v920_v37, %v924_v39  ;;  %v927_v49 = vld [vmem:[#allocation8 + $0xfd0] sm:$0xff]  ;;  %v4243_v36 = vld [vmem:[#allocation11 + $0x120] sm:$0xff] }
 0x324   :  { %4166 = vmatprep.subr.bf16.mxu1 %v9166_v51  ;;  %v931_v51 = vld [vmem:[#allocation8 + $0xff0] sm:$0xff] }
 0x326   :  { %4003 = vmatpush1.bf16.msra.mxu0 %v9163_v15  ;;  %v9213_v15 = vcombine.low %v920_v37, %v924_v39  ;;  %v4240_v37 = vld [vmem:[#allocation11 + $0x108] sm:$0xff] }
 0x327   :  { %4167 = vmatpush1.bf16.msra.mxu1 %v9165_v59  ;;  %4004 = vmatprep.subr.bf16.mxu0 %v9172_v60  ;;  %v9220_v59 = vcombine.high %v927_v49, %v931_v51  ;;  %v9222_v60 = vcombine.high %v928_v55, %v932_v57  ;;  %v4244_v39 = vld [vmem:[#allocation11 + $0x128] sm:$0xff] }
 0x328   :  { %4168 = vmatprep.subr.bf16.mxu1 %v9174_v0  ;;  %v4207_v0 = vld [vmem:[#allocation11] sm:$0xff] }
 0x329   :  { %v9223_v8 = vcombine.low %v4207_v0, %v4211_v1 }
 0x32a   :  { %4005 = vmatpush1.bf16.msra.mxu0 %v9171_v46  ;;  %v9219_v46 = vcombine.low %v927_v49, %v931_v51  ;;  %v4247_v49 = vld [vmem:[#allocation11 + $0x140] sm:$0xff] }
 0x32b   :  { %4169 = vmatpush1.bf16.msra.mxu1 %v9173_v3  ;;  %4006 = vmatprep.subr.bf16.mxu0 %v9180_v4  ;;  %v9221_v3 = vcombine.low %v928_v55, %v932_v57  ;;  %v9224_v4 = vcombine.high %v4207_v0, %v4211_v1  ;;  %v4251_v51 = vld [vmem:[#allocation11 + $0x160] sm:$0xff]  ;;  %v4252_v55 = vld [vmem:[#allocation11 + $0x168] sm:$0xff]  ;;  %v9255_v57 = vcombine.low %v4239_v41, %v4243_v36 }
 0x32c   :  { %4170 = vmatprep.subr.bf16.mxu1 %v9182_v6  ;;  %v9226_v6 = vcombine.high %v4208_v54, %v4212_v22  ;;  %v4259_v0 = vld [vmem:[#allocation11 + $0x1a0] sm:$0xff]  ;;  %v4256_v1 = vld [vmem:[#allocation11 + $0x188] sm:$0xff]  ;;  %v9263_v54 = vcombine.low %v4247_v49, %v4251_v51  ;;  %v9265_v22 = vcombine.low %v4248_v52, %v4252_v55 }
 0x32e   :  { %4007 = vmatpush1.bf16.msra.mxu0 %v9179_v62  ;;  %v4216_v62 = vld [vmem:[#allocation11 + $0x48] sm:$0xff] }
 0x32f   :  { %4171 = vmatpush1.bf16.msra.mxu1 %v9181_v9  ;;  %4008 = vmatprep.subr.bf16.mxu0 %v9188_v10  ;;  %v4220_v9 = vld [vmem:[#allocation11 + $0x68] sm:$0xff]  ;;  %v9232_v10 = vcombine.high %v4215_v29, %v4219_v61 }
 0x330   :  { %4172 = vmatprep.subr.bf16.mxu1 %v9190_v11  ;;  %v4223_v11 = vld [vmem:[#allocation11 + $0x80] sm:$0xff]  ;;  %v9234_v14 = vcombine.high %v4216_v62, %v4220_v9 }
 0x332   :  { %4009 = vmatpush1.bf16.msra.mxu0 %v9187_v50  ;;  %v4228_v50 = vld [vmem:[#allocation11 + $0xa8] sm:$0xff] }
 0x333   :  { %4173 = vmatpush1.bf16.msra.mxu1 %v9189_v18  ;;  %4010 = vmatprep.subr.bf16.mxu0 %v9196_v38  ;;  %v9231_v18 = vcombine.low %v4215_v29, %v4219_v61  ;;  %v9233_v38 = vcombine.low %v4216_v62, %v4220_v9  ;;  %v9242_v23 = vcombine.high %v4224_v16, %v4228_v50  ;;  %v4268_v29 = vld [vmem:[#allocation11 + $0x1e8] sm:$0xff] }
 0x334   :  { %4174 = vmatprep.subr.bf16.mxu1 %v9198_v21  ;;  %v9240_v21 = vcombine.high %v4223_v11, %v4227_v12  ;;  %v9282_v9 = vcombine.high %v4264_v7, %v4268_v29 }
 0x336   :  { %4011 = vmatpush1.bf16.msra.mxu0 %v9195_v63  ;;  %v4236_v63 = vld [vmem:[#allocation11 + $0xe8] sm:$0xff] }
 0x337   :  { %4175 = vmatpush1.bf16.msra.mxu1 %v9197_v34  ;;  %4012 = vmatprep.subr.bf16.mxu0 %v9204_v27  ;;  %v9239_v34 = vcombine.low %v4223_v11, %v4227_v12  ;;  %v9248_v27 = vcombine.high %v4231_v32, %v4235_v53  ;;  %v4272_v11 = vld [vmem:[#allocation11 + $0x208] sm:$0xff] }
 0x338   :  { %4176 = vmatprep.subr.bf16.mxu1 %v9206_v35  ;;  %v9250_v35 = vcombine.high %v4232_v33, %v4236_v63  ;;  %v4276_v12 = vld [vmem:[#allocation11 + $0x228] sm:$0xff] }
 0x33a   :  { %4013 = vmatpush1.bf16.msra.mxu0 %v9203_v44  ;;  %v9247_v44 = vcombine.low %v4231_v32, %v4235_v53  ;;  %v4284_v32 = vld [vmem:[#allocation11 + $0x268] sm:$0xff] }
 0x33b   :  { %4177 = vmatpush1.bf16.msra.mxu1 %v9205_v45  ;;  %4014 = vmatprep.subr.bf16.mxu0 %v9212_v47  ;;  %v9249_v45 = vcombine.low %v4232_v33, %v4236_v63  ;;  %v9256_v47 = vcombine.high %v4239_v41, %v4243_v36  ;;  %v9289_v33 = vcombine.low %v4272_v11, %v4276_v12  ;;  %v4292_v41 = vld [vmem:[#allocation11 + $0x2a8] sm:$0xff] }
 0x33c   :  { %4178 = vmatprep.subr.bf16.mxu1 %v9214_v48  ;;  %v9258_v48 = vcombine.high %v4240_v37, %v4244_v39 }
 0x33e   :  { %4015 = vmatpush1.bf16.msra.mxu0 %v9211_v58  ;;  %v9257_v58 = vcombine.low %v4240_v37, %v4244_v39 }
 0x33f   :  { %4179 = vmatpush1.bf16.msra.mxu1 %v9213_v15  ;;  %4016 = vmatprep.subr.bf16.mxu0 %v9220_v59  ;;  %v9264_v15 = vcombine.high %v4247_v49, %v4251_v51  ;;  %v9266_v59 = vcombine.high %v4248_v52, %v4252_v55  ;;  %v4300_v49 = vld [vmem:[#allocation11 + $0x2e8] sm:$0xff] }
 0x340   :  { %4180 = vmatprep.subr.bf16.mxu1 %v9222_v60  ;;  %v4255_v60 = vld [vmem:[#allocation11 + $0x180] sm:$0xff] }
 0x341   :  { %v9271_v61 = vcombine.low %v4255_v60, %v4259_v0 }
 0x342   :  { %4017 = vmatpush1.bf16.msra.mxu0 %v9219_v46  ;;  %v9272_v46 = vcombine.high %v4255_v60, %v4259_v0  ;;  %v4308_v60 = vld [vmem:[#allocation11 + $0x328] sm:$0xff] }
 0x343   :  { %4181 = vmatpush1.bf16.msra.mxu1 %v9221_v3  ;;  %7321 = vmatprep.subr.bf16.mxu0 %v9224_v4  ;;  %v9274_v3 = vcombine.high %v4256_v1, %v4260_v2  ;;  %v4263_v4 = vld [vmem:[#allocation11 + $0x1c0] sm:$0xff] }
 0x344   :  { %7485 = vmatprep.subr.bf16.mxu1 %v9226_v6  ;;  %v4267_v6 = vld [vmem:[#allocation11 + $0x1e0] sm:$0xff] }
 0x345   :  { %4019 = vmatmul.mubr.bf16.vlgmr.msra.gmra.mrb[12].mxu0 %v10590_v5  ;;  %v9280_v62 = vcombine.high %v4263_v4, %v4267_v6 }
 0x346   :  { %4183 = vmatmul.mubr.bf16.vlgmr.msra.gmra.mrb[12].mxu1 %v10590_v5  ;;  %7322 = vmatpush1.bf16.msra.mxu0 %v9223_v8  ;;  %v9241_v5 = vcombine.low %v4224_v16, %v4228_v50  ;;  %v9273_v8 = vcombine.low %v4256_v1, %v4260_v2  ;;  %v9281_v16 = vcombine.low %v4264_v7, %v4268_v29 }
 0x347   :  { %7353 = vmatprep.mubr.bf16.mxu0 %v10621_v13  ;;  %7486 = vmatpush1.bf16.msra.mxu1 %v9225_v24  ;;  %v4271_v24 = vld [vmem:[#allocation11 + $0x200] sm:$0xff] }
 0x348   :  { %7517 = vmatprep.mubr.bf16.mxu1 %v10621_v13  ;;  %7323 = vmatprep.subr.bf16.mxu0 %v9232_v10  ;;  %v4275_v10 = vld [vmem:[#allocation11 + $0x220] sm:$0xff] }
 0x349   :  { %7487 = vmatprep.subr.bf16.mxu1 %v9234_v14  ;;  %v9279_v14 = vcombine.low %v4263_v4, %v4267_v6  ;;  %v9288_v50 = vcombine.high %v4271_v24, %v4275_v10  ;;  %v9287_v53 = vcombine.low %v4271_v24, %v4275_v10  ;;  %v4316_v4 = vld [vmem:[#allocation11 + $0x368] sm:$0xff] }
 0x34a   :  { %7324 = vmatpush1.bf16.msra.mxu0 %v9231_v18  ;;  %v9290_v18 = vcombine.high %v4272_v11, %v4276_v12  ;;  %v4324_v24 = vld [vmem:[#allocation11 + $0x3a8] sm:$0xff]  ;;  %v938_v11 = vrot.slane %v10616_v42, %v10507_v28 }
 0x34b   :  { %7488 = vmatpush1.bf16.msra.mxu1 %v9233_v38  ;;  %7325 = vmatprep.subr.bf16.mxu0 %v9240_v21  ;;  %v4279_v38 = vld [vmem:[#allocation11 + $0x240] sm:$0xff] }
 0x34c   :  { %7489 = vmatprep.subr.bf16.mxu1 %v9242_v23  ;;  %v4283_v21 = vld [vmem:[#allocation11 + $0x260] sm:$0xff]  ;;  %v4280_v23 = vld [vmem:[#allocation11 + $0x248] sm:$0xff] }
 0x34d   :  { %v9296_v63 = vcombine.high %v4279_v38, %v4283_v21  ;;  %v9295_v36 = vcombine.low %v4279_v38, %v4283_v21  ;;  %v9297_v37 = vcombine.low %v4280_v23, %v4284_v32  ;;  %v950_v38 = vrot.slane %v10616_v42, %v10515_v31  ;;  %v4328_v21 = vld [vmem:[#allocation11 + $0x3c8] sm:$0xff] }
 0x34e   :  { %7326 = vmatpush1.bf16.msra.mxu0 %v9239_v34  ;;  %v9298_v34 = vcombine.high %v4280_v23, %v4284_v32  ;;  %v4332_v23 = vld [vmem:[#allocation11 + $0x3e8] sm:$0xff] }
 0x34f   :  { %7490 = vmatpush1.bf16.msra.mxu1 %v9241_v5  ;;  %7327 = vmatprep.subr.bf16.mxu0 %v9248_v27  ;;  %v4287_v5 = vld [vmem:[#allocation11 + $0x280] sm:$0xff] }
 0x350   :  { %7491 = vmatprep.subr.bf16.mxu1 %v9250_v35  ;;  %v4291_v27 = vld [vmem:[#allocation11 + $0x2a0] sm:$0xff]  ;;  %v4288_v35 = vld [vmem:[#allocation11 + $0x288] sm:$0xff] }
 0x351   :  { %v9304_v39 = vcombine.high %v4287_v5, %v4291_v27  ;;  %v9303_v51 = vcombine.low %v4287_v5, %v4291_v27  ;;  %v9305_v52 = vcombine.low %v4288_v35, %v4292_v41  ;;  %v4335_v5 = vld [vmem:[#allocation11 + $0x400] sm:$0xff] }
 0x352   :  { %7328 = vmatpush1.bf16.msra.mxu0 %v9247_v44  ;;  %v9306_v44 = vcombine.high %v4288_v35, %v4292_v41  ;;  %v4339_v27 = vld [vmem:[#allocation11 + $0x420] sm:$0xff]  ;;  %v9892_v35 = vadd.f32 %v10614_v26, %v950_v38  ;;  %v4336_v41 = vld [vmem:[#allocation11 + $0x408] sm:$0xff] }
 0x353   :  { %7492 = vmatpush1.bf16.msra.mxu1 %v9249_v45  ;;  %7329 = vmatprep.subr.bf16.mxu0 %v9256_v47  ;;  %v4295_v45 = vld [vmem:[#allocation11 + $0x2c0] sm:$0xff] }
 0x354   :  { %7493 = vmatprep.subr.bf16.mxu1 %v9258_v48  ;;  %v4299_v47 = vld [vmem:[#allocation11 + $0x2e0] sm:$0xff]  ;;  %v4296_v48 = vld [vmem:[#allocation11 + $0x2c8] sm:$0xff] }
 0x355   :  { %v9312_v55 = vcombine.high %v4295_v45, %v4299_v47  ;;  %v9311_v0 = vcombine.low %v4295_v45, %v4299_v47  ;;  %v9313_v1 = vcombine.low %v4296_v48, %v4300_v49  ;;  %v9352_v45 = vcombine.high %v4335_v5, %v4339_v27  ;;  %v4375_v38 = vld [vmem:[#allocation11 + $0x540] sm:$0xff] }
 0x356   :  { %7330 = vmatpush1.bf16.msra.mxu0 %v9255_v57  ;;  %v9314_v57 = vcombine.high %v4296_v48, %v4300_v49  ;;  %v4194_v47 = vmax.f32 %v9892_v35, 0.0  ;;  %v4343_v48 = vld [vmem:[#allocation11 + $0x440] sm:$0xff]  ;;  %v4384_v35 = vld [vmem:[#allocation11 + $0x588] sm:$0xff] }
 0x357   :  { %7494 = vmatpush1.bf16.msra.mxu1 %v9257_v58  ;;  %7331 = vmatprep.subr.bf16.mxu0 %v9264_v15  ;;  %v4303_v58 = vld [vmem:[#allocation11 + $0x300] sm:$0xff] }
 0x358   :  { %7495 = vmatprep.subr.bf16.mxu1 %v9266_v59  ;;  %v4307_v15 = vld [vmem:[#allocation11 + $0x320] sm:$0xff]  ;;  %v4304_v59 = vld [vmem:[#allocation11 + $0x308] sm:$0xff] }
 0x359   :  { %v9320_v2 = vcombine.high %v4303_v58, %v4307_v15  ;;  %v9319_v6 = vcombine.low %v4303_v58, %v4307_v15  ;;  %v9321_v7 = vcombine.low %v4304_v59, %v4308_v60  ;;  %v4347_v49 = vld [vmem:[#allocation11 + $0x460] sm:$0xff] }
 0x35a   :  { %7332 = vmatpush1.bf16.msra.mxu0 %v9263_v54  ;;  %v9322_v54 = vcombine.high %v4304_v59, %v4308_v60  ;;  %v9360_v58 = vcombine.high %v4343_v48, %v4347_v49  ;;  %v4351_v15 = vld [vmem:[#allocation11 + $0x480] sm:$0xff]  ;;  %v10635_v60 = vpack.c.bf16 %v4194_v47, %v4194_v47  ;;  %v4392_v47 = vld [vmem:[#allocation11 + $0x5c8] sm:$0xff] }
 0x35b   :  { %7496 = vmatpush1.bf16.msra.mxu1 %v9265_v22  ;;  %7333 = vmatprep.subr.bf16.mxu0 %v9272_v46  ;;  %v4311_v22 = vld [vmem:[#allocation11 + $0x340] sm:$0xff] }
 0x35c   :  { %7497 = vmatprep.subr.bf16.mxu1 %v9274_v3  ;;  %v4315_v46 = vld [vmem:[#allocation11 + $0x360] sm:$0xff]  ;;  %v4312_v3 = vld [vmem:[#allocation11 + $0x348] sm:$0xff] }
 0x35d   :  { %v9328_v29 = vcombine.high %v4311_v22, %v4315_v46  ;;  %v9327_v10 = vcombine.low %v4311_v22, %v4315_v46  ;;  %v9329_v12 = vcombine.low %v4312_v3, %v4316_v4  ;;  %v4355_v59 = vld [vmem:[#allocation11 + $0x4a0] sm:$0xff] }
 0x35e   :  { %7334 = vmatpush1.bf16.msra.mxu0 %v9271_v61  ;;  %v9330_v61 = vcombine.high %v4312_v3, %v4316_v4  ;;  %v9368_v46 = vcombine.high %v4351_v15, %v4355_v59  ;;  %v4359_v4 = vld [vmem:[#allocation11 + $0x4c0] sm:$0xff] }
 0x35f   :  { %7498 = vmatpush1.bf16.msra.mxu1 %v9273_v8  ;;  %7335 = vmatprep.subr.bf16.mxu0 %v9280_v62  ;;  %v4319_v8 = vld [vmem:[#allocation11 + $0x380] sm:$0xff] }
 0x360   :  { %7499 = vmatprep.subr.bf16.mxu1 %v9282_v9  ;;  %v4323_v62 = vld [vmem:[#allocation11 + $0x3a0] sm:$0xff]  ;;  %v4320_v9 = vld [vmem:[#allocation11 + $0x388] sm:$0xff] }
 0x361   :  { %v9335_v32 = vcombine.low %v4319_v8, %v4323_v62 }
 0x362   :  { %7336 = vmatpush1.bf16.msra.mxu0 %v9279_v14  ;;  %v9336_v14 = vcombine.high %v4319_v8, %v4323_v62 }
 0x363   :  { %7500 = vmatpush1.bf16.msra.mxu1 %v9281_v16  ;;  %7337 = vmatprep.subr.bf16.mxu0 %v9288_v50  ;;  %v9338_v16 = vcombine.high %v4320_v9, %v4324_v24  ;;  %v4327_v50 = vld [vmem:[#allocation11 + $0x3c0] sm:$0xff] }
 0x364   :  { %7501 = vmatprep.subr.bf16.mxu1 %v9290_v18  ;;  %v4331_v18 = vld [vmem:[#allocation11 + $0x3e0] sm:$0xff] }
 0x366   :  { %7338 = vmatpush1.bf16.msra.mxu0 %v9287_v53  ;;  %v9889_v53 = vadd.f32 %v10608_v19, %v938_v11  ;;  %v4368_v11 = vld [vmem:[#allocation11 + $0x508] sm:$0xff] }
 0x367   :  { %7502 = vmatpush1.bf16.msra.mxu1 %v9289_v33  ;;  %7339 = vmatprep.subr.bf16.mxu0 %v9296_v63  ;;  %v9337_v33 = vcombine.low %v4320_v9, %v4324_v24  ;;  %v9344_v63 = vcombine.high %v4327_v50, %v4331_v18  ;;  %v4367_v24 = vld [vmem:[#allocation11 + $0x500] sm:$0xff] }
 0x368   :  { %7503 = vmatprep.subr.bf16.mxu1 %v9298_v34  ;;  %v9346_v34 = vcombine.high %v4328_v21, %v4332_v23 }
 0x36a   :  { %7340 = vmatpush1.bf16.msra.mxu0 %v9295_v36  ;;  %v4340_v36 = vld [vmem:[#allocation11 + $0x428] sm:$0xff] }
 0x36b   :  { %7504 = vmatpush1.bf16.msra.mxu1 %v9297_v37  ;;  %7341 = vmatprep.subr.bf16.mxu0 %v9304_v39  ;;  %v9343_v37 = vcombine.low %v4327_v50, %v4331_v18  ;;  %v4191_v39 = vmax.f32 %v9889_v53, 0.0  ;;  %v9354_v19 = vcombine.high %v4336_v41, %v4340_v36  ;;  %v9353_v26 = vcombine.low %v4336_v41, %v4340_v36  ;;  %v4388_v41 = vld [vmem:[#allocation11 + $0x5a8] sm:$0xff] }
 0x36c   :  { %7505 = vmatprep.subr.bf16.mxu1 %v9306_v44  ;;  %v9345_v44 = vcombine.low %v4328_v21, %v4332_v23  ;;  %v4379_v21 = vld [vmem:[#allocation11 + $0x560] sm:$0xff]  ;;  %v4376_v23 = vld [vmem:[#allocation11 + $0x548] sm:$0xff] }
 0x36d   :  { %v9391_v36 = vcombine.low %v4375_v38, %v4379_v21 }
 0x36e   :  { %7342 = vmatpush1.bf16.msra.mxu0 %v9303_v51  ;;  %v9351_v51 = vcombine.low %v4335_v5, %v4339_v27  ;;  %v4383_v5 = vld [vmem:[#allocation11 + $0x580] sm:$0xff] }
 0x36f   :  { %7506 = vmatpush1.bf16.msra.mxu1 %v9305_v52  ;;  %7343 = vmatprep.subr.bf16.mxu0 %v9312_v55  ;;  %v4344_v52 = vld [vmem:[#allocation11 + $0x448] sm:$0xff]  ;;  %v4387_v27 = vld [vmem:[#allocation11 + $0x5a0] sm:$0xff] }
 0x370   :  { %7507 = vmatprep.subr.bf16.mxu1 %v9314_v57  ;;  %v4348_v55 = vld [vmem:[#allocation11 + $0x468] sm:$0xff]  ;;  %v10633_v57 = vpack.c.bf16 %v4191_v39, %v4191_v39  ;;  %v9400_v39 = vcombine.high %v4383_v5, %v4387_v27 }
 0x371   :  { %v9361_v22 = vcombine.low %v4344_v52, %v4348_v55 }
 0x372   :  { %7344 = vmatpush1.bf16.msra.mxu0 %v9311_v0  ;;  %v9362_v0 = vcombine.high %v4344_v52, %v4348_v55 }
 0x373   :  { %7508 = vmatpush1.bf16.msra.mxu1 %v9313_v1  ;;  %7345 = vmatprep.subr.bf16.mxu0 %v9320_v2  ;;  %v4352_v1 = vld [vmem:[#allocation11 + $0x488] sm:$0xff] }
 0x374   :  { %7509 = vmatprep.subr.bf16.mxu1 %v9322_v54  ;;  %v4356_v2 = vld [vmem:[#allocation11 + $0x4a8] sm:$0xff]  ;;  %v9359_v54 = vcombine.low %v4343_v48, %v4347_v49  ;;  %v9399_v49 = vcombine.low %v4383_v5, %v4387_v27 }
 0x375   :  { %v9370_v3 = vcombine.high %v4352_v1, %v4356_v2  ;;  %v9369_v8 = vcombine.low %v4352_v1, %v4356_v2  ;;  %v4396_v48 = vld [vmem:[#allocation11 + $0x5e8] sm:$0xff] }
 0x376   :  { %7346 = vmatpush1.bf16.msra.mxu0 %v9319_v6  ;;  %v4363_v6 = vld [vmem:[#allocation11 + $0x4e0] sm:$0xff]  ;;  %v9410_v55 = vcombine.high %v4392_v47, %v4396_v48  ;;  %v9409_v1 = vcombine.low %v4392_v47, %v4396_v48  ;;  %v4436_v5 = vld [vmem:[#allocation11 + $0x728] sm:$0xff] }
 0x377   :  { %7510 = vmatpush1.bf16.msra.mxu1 %v9321_v7  ;;  %7347 = vmatprep.subr.bf16.mxu0 %v9328_v29  ;;  %v4360_v7 = vld [vmem:[#allocation11 + $0x4c8] sm:$0xff]  ;;  %v9376_v62 = vcombine.high %v4359_v4, %v4363_v6 }
 0x378   :  { %7511 = vmatprep.subr.bf16.mxu1 %v9330_v61  ;;  %v4364_v29 = vld [vmem:[#allocation11 + $0x4e8] sm:$0xff]  ;;  %v9367_v61 = vcombine.low %v4351_v15, %v4355_v59 }
 0x379   :  { %v9378_v9 = vcombine.high %v4360_v7, %v4364_v29  ;;  %v4400_v15 = vld [vmem:[#allocation11 + $0x608] sm:$0xff] }
 0x37a   :  { %7348 = vmatpush1.bf16.msra.mxu0 %v9327_v10  ;;  %v4371_v10 = vld [vmem:[#allocation11 + $0x520] sm:$0xff]  ;;  %v4404_v59 = vld [vmem:[#allocation11 + $0x628] sm:$0xff] }
 0x37b   :  { %7512 = vmatpush1.bf16.msra.mxu1 %v9329_v12  ;;  %7349 = vmatprep.subr.bf16.mxu0 %v9336_v14  ;;  %v4372_v12 = vld [vmem:[#allocation11 + $0x528] sm:$0xff]  ;;  %v9375_v14 = vcombine.low %v4359_v4, %v4363_v6  ;;  %v9384_v50 = vcombine.high %v4367_v24, %v4371_v10  ;;  %v9383_v53 = vcombine.low %v4367_v24, %v4371_v10 }
 0x37c   :  { %7513 = vmatprep.subr.bf16.mxu1 %v9338_v16  ;;  %v9377_v16 = vcombine.low %v4360_v7, %v4364_v29  ;;  %v9386_v18 = vcombine.high %v4368_v11, %v4372_v12  ;;  %v4412_v4 = vld [vmem:[#allocation11 + $0x668] sm:$0xff]  ;;  %v9417_v7 = vcombine.low %v4400_v15, %v4404_v59 }
 0x37d   :  { %v4420_v24 = vld [vmem:[#allocation11 + $0x6a8] sm:$0xff] }
 0x37e   :  { %7350 = vmatpush1.bf16.msra.mxu0 %v9335_v32  ;;  %v4380_v32 = vld [vmem:[#allocation11 + $0x568] sm:$0xff] }
 0x37f   :  { %7514 = vmatpush1.bf16.msra.mxu1 %v9337_v33  ;;  %7351 = vmatprep.subr.bf16.mxu0 %v9344_v63  ;;  %v9385_v33 = vcombine.low %v4368_v11, %v4372_v12  ;;  %v9392_v63 = vcombine.high %v4375_v38, %v4379_v21  ;;  %v4428_v38 = vld [vmem:[#allocation11 + $0x6e8] sm:$0xff] }
 0x380   :  { %7515 = vmatprep.subr.bf16.mxu1 %v9346_v34  ;;  %v9394_v34 = vcombine.high %v4376_v23, %v4380_v32 }
 0x382   :  { %7352 = vmatpush1.bf16.msra.mxu0 %v9343_v37  ;;  %v9393_v37 = vcombine.low %v4376_v23, %v4380_v32 }
 0x383   :  { %7516 = vmatpush1.bf16.msra.mxu1 %v9345_v44  ;;  %7362 = vmatprep.subr.bf16.mxu0 %v9352_v45  ;;  %v9402_v44 = vcombine.high %v4384_v35, %v4388_v41  ;;  %v4391_v45 = vld [vmem:[#allocation11 + $0x5c0] sm:$0xff] }
 0x384   :  { %7526 = vmatprep.subr.bf16.mxu1 %v9354_v19  ;;  %v4395_v19 = vld [vmem:[#allocation11 + $0x5e0] sm:$0xff] }
 0x385   :  { %7354 = vmatmul.mubr.bf16.vlgmr.msra.gmra.mrb[16].mxu0 %v10633_v57  ;;  %v9408_v52 = vcombine.high %v4391_v45, %v4395_v19 }
 0x386   :  { %7518 = vmatmul.mubr.bf16.vlgmr.msra.gmra.mrb[16].mxu1 %v10633_v57  ;;  %7363 = vmatpush1.bf16.msra.mxu0 %v9351_v51  ;;  %v9401_v51 = vcombine.low %v4384_v35, %v4388_v41 }
 0x387   :  { %7394 = vmatprep.mubr.bf16.mxu0 %v10635_v60  ;;  %7527 = vmatpush1.bf16.msra.mxu1 %v9353_v26  ;;  %v4399_v26 = vld [vmem:[#allocation11 + $0x600] sm:$0xff] }
 0x388   :  { %7558 = vmatprep.mubr.bf16.mxu1 %v10635_v60  ;;  %7364 = vmatprep.subr.bf16.mxu0 %v9360_v58  ;;  %v4403_v58 = vld [vmem:[#allocation11 + $0x620] sm:$0xff] }
 0x389   :  { %7528 = vmatprep.subr.bf16.mxu1 %v9362_v0  ;;  %v9407_v0 = vcombine.low %v4391_v45, %v4395_v19  ;;  %v9416_v2 = vcombine.high %v4399_v26, %v4403_v58  ;;  %v9415_v6 = vcombine.low %v4399_v26, %v4403_v58  ;;  %v4444_v45 = vld [vmem:[#allocation11 + $0x768] sm:$0xff] }
 0x38a   :  { %7365 = vmatpush1.bf16.msra.mxu0 %v9359_v54  ;;  %v9418_v54 = vcombine.high %v4400_v15, %v4404_v59  ;;  %v4452_v26 = vld [vmem:[#allocation11 + $0x7a8] sm:$0xff]  ;;  %v946_v15 = vrot.slane %v10616_v42, %v10542_v43 }
 0x38b   :  { %7529 = vmatpush1.bf16.msra.mxu1 %v9361_v22  ;;  %7366 = vmatprep.subr.bf16.mxu0 %v9368_v46  ;;  %v4407_v22 = vld [vmem:[#allocation11 + $0x640] sm:$0xff] }
 0x38c   :  { %7530 = vmatprep.subr.bf16.mxu1 %v9370_v3  ;;  %v4411_v46 = vld [vmem:[#allocation11 + $0x660] sm:$0xff]  ;;  %v4408_v3 = vld [vmem:[#allocation11 + $0x648] sm:$0xff] }
 0x38d   :  { %v9424_v29 = vcombine.high %v4407_v22, %v4411_v46  ;;  %v9423_v10 = vcombine.low %v4407_v22, %v4411_v46  ;;  %v9425_v11 = vcombine.low %v4408_v3, %v4412_v4  ;;  %v4456_v22 = vld [vmem:[#allocation11 + $0x7c8] sm:$0xff] }
 0x38e   :  { %7367 = vmatpush1.bf16.msra.mxu0 %v9367_v61  ;;  %v9426_v61 = vcombine.high %v4408_v3, %v4412_v4  ;;  %v4460_v46 = vld [vmem:[#allocation11 + $0x7e8] sm:$0xff]  ;;  %v9891_v4 = vadd.f32 %v10610_v20, %v946_v15  ;;  %v4471_v20 = vld [vmem:[#allocation11 + $0x840] sm:$0xff] }
 0x38f   :  { %7531 = vmatpush1.bf16.msra.mxu1 %v9369_v8  ;;  %7368 = vmatprep.subr.bf16.mxu0 %v9376_v62  ;;  %v4415_v8 = vld [vmem:[#allocation11 + $0x680] sm:$0xff]  ;;  %v9474_v42 = vcombine.high %v4456_v22, %v4460_v46 }
 0x390   :  { %7532 = vmatprep.subr.bf16.mxu1 %v9378_v9  ;;  %v4419_v62 = vld [vmem:[#allocation11 + $0x6a0] sm:$0xff]  ;;  %v4416_v9 = vld [vmem:[#allocation11 + $0x688] sm:$0xff] }
 0x391   :  { %v9432_v12 = vcombine.high %v4415_v8, %v4419_v62  ;;  %v9431_v21 = vcombine.low %v4415_v8, %v4419_v62  ;;  %v9433_v23 = vcombine.low %v4416_v9, %v4420_v24  ;;  %v4464_v8 = vld [vmem:[#allocation11 + $0x808] sm:$0xff] }
 0x392   :  { %7369 = vmatpush1.bf16.msra.mxu0 %v9375_v14  ;;  %v9434_v14 = vcombine.high %v4416_v9, %v4420_v24  ;;  %v4468_v62 = vld [vmem:[#allocation11 + $0x828] sm:$0xff]  ;;  %v4193_v24 = vmax.f32 %v9891_v4, 0.0 }
 0x393   :  { %7533 = vmatpush1.bf16.msra.mxu1 %v9377_v16  ;;  %7370 = vmatprep.subr.bf16.mxu0 %v9384_v50  ;;  %v4423_v16 = vld [vmem:[#allocation11 + $0x6c0] sm:$0xff] }
 0x394   :  { %7534 = vmatprep.subr.bf16.mxu1 %v9386_v18  ;;  %v4427_v50 = vld [vmem:[#allocation11 + $0x6e0] sm:$0xff]  ;;  %v4424_v18 = vld [vmem:[#allocation11 + $0x6c8] sm:$0xff] }
 0x395   :  { %v9440_v32 = vcombine.high %v4423_v16, %v4427_v50  ;;  %v9439_v27 = vcombine.low %v4423_v16, %v4427_v50  ;;  %v9441_v35 = vcombine.low %v4424_v18, %v4428_v38  ;;  %v4472_v16 = vld [vmem:[#allocation11 + $0x848] sm:$0xff] }
 0x396   :  { %7371 = vmatpush1.bf16.msra.mxu0 %v9383_v53  ;;  %v9442_v53 = vcombine.high %v4424_v18, %v4428_v38  ;;  %v4476_v50 = vld [vmem:[#allocation11 + $0x868] sm:$0xff]  ;;  %v10644_v38 = vpack.c.bf16 %v4193_v24, %v4193_v24  ;;  %v4519_v24 = vld [vmem:[#allocation11 + $0x9c0] sm:$0xff] }
 0x397   :  { %7535 = vmatpush1.bf16.msra.mxu1 %v9385_v33  ;;  %7372 = vmatprep.subr.bf16.mxu0 %v9392_v63  ;;  %v4431_v33 = vld [vmem:[#allocation11 + $0x700] sm:$0xff] }
 0x398   :  { %7536 = vmatprep.subr.bf16.mxu1 %v9394_v34  ;;  %v4435_v63 = vld [vmem:[#allocation11 + $0x720] sm:$0xff]  ;;  %v4432_v34 = vld [vmem:[#allocation11 + $0x708] sm:$0xff] }
 0x399   :  { %v9448_v41 = vcombine.high %v4431_v33, %v4435_v63  ;;  %v9447_v19 = vcombine.low %v4431_v33, %v4435_v63  ;;  %v9449_v47 = vcombine.low %v4432_v34, %v4436_v5  ;;  %v4483_v33 = vld [vmem:[#allocation11 + $0x8a0] sm:$0xff]  ;;  %v4480_v63 = vld [vmem:[#allocation11 + $0x888] sm:$0xff] }
 0x39a   :  { %7373 = vmatpush1.bf16.msra.mxu0 %v9391_v36  ;;  %v9450_v36 = vcombine.high %v4432_v34, %v4436_v5  ;;  %v4484_v34 = vld [vmem:[#allocation11 + $0x8a8] sm:$0xff] }
 0x39b   :  { %7537 = vmatpush1.bf16.msra.mxu1 %v9393_v37  ;;  %7374 = vmatprep.subr.bf16.mxu0 %v9400_v39  ;;  %v4439_v37 = vld [vmem:[#allocation11 + $0x740] sm:$0xff] }
 0x39c   :  { %7538 = vmatprep.subr.bf16.mxu1 %v9402_v44  ;;  %v4443_v39 = vld [vmem:[#allocation11 + $0x760] sm:$0xff]  ;;  %v4440_v44 = vld [vmem:[#allocation11 + $0x748] sm:$0xff] }
 0x39d   :  { %v9456_v48 = vcombine.high %v4439_v37, %v4443_v39  ;;  %v9455_v58 = vcombine.low %v4439_v37, %v4443_v39  ;;  %v9457_v59 = vcombine.low %v4440_v44, %v4444_v45  ;;  %v4491_v37 = vld [vmem:[#allocation11 + $0x8e0] sm:$0xff]  ;;  %v4488_v39 = vld [vmem:[#allocation11 + $0x8c8] sm:$0xff] }
 0x39e   :  { %7375 = vmatpush1.bf16.msra.mxu0 %v9399_v49  ;;  %v9458_v49 = vcombine.high %v4440_v44, %v4444_v45  ;;  %v4492_v44 = vld [vmem:[#allocation11 + $0x8e8] sm:$0xff] }
 0x39f   :  { %7539 = vmatpush1.bf16.msra.mxu1 %v9401_v51  ;;  %7376 = vmatprep.subr.bf16.mxu0 %v9408_v52  ;;  %v4447_v51 = vld [vmem:[#allocation11 + $0x780] sm:$0xff] }
 0x3a0   :  { %7540 = vmatprep.subr.bf16.mxu1 %v9410_v55  ;;  %v4451_v52 = vld [vmem:[#allocation11 + $0x7a0] sm:$0xff]  ;;  %v4448_v55 = vld [vmem:[#allocation11 + $0x788] sm:$0xff] }
 0x3a1   :  { %v9463_v3 = vcombine.low %v4447_v51, %v4451_v52 }
 0x3a2   :  { %7377 = vmatpush1.bf16.msra.mxu0 %v9407_v0  ;;  %v9464_v0 = vcombine.high %v4447_v51, %v4451_v52  ;;  %v4499_v51 = vld [vmem:[#allocation11 + $0x920] sm:$0xff]  ;;  %v4496_v52 = vld [vmem:[#allocation11 + $0x908] sm:$0xff] }
 0x3a3   :  { %7541 = vmatpush1.bf16.msra.mxu1 %v9409_v1  ;;  %7378 = vmatprep.subr.bf16.mxu0 %v9416_v2  ;;  %v9466_v1 = vcombine.high %v4448_v55, %v4452_v26  ;;  %v4455_v2 = vld [vmem:[#allocation11 + $0x7c0] sm:$0xff] }
 0x3a4   :  { %7542 = vmatprep.subr.bf16.mxu1 %v9418_v54  ;;  %v4459_v54 = vld [vmem:[#allocation11 + $0x7e0] sm:$0xff] }
 0x3a5   :  { %v9471_v9 = vcombine.low %v4455_v2, %v4459_v54 }
 0x3a6   :  { %7379 = vmatpush1.bf16.msra.mxu0 %v9415_v6  ;;  %v9465_v6 = vcombine.low %v4448_v55, %v4452_v26  ;;  %v4500_v55 = vld [vmem:[#allocation11 + $0x928] sm:$0xff] }
 0x3a7   :  { %7543 = vmatpush1.bf16.msra.mxu1 %v9417_v7  ;;  %7380 = vmatprep.subr.bf16.mxu0 %v9424_v29  ;;  %v9472_v7 = vcombine.high %v4455_v2, %v4459_v54  ;;  %v4463_v29 = vld [vmem:[#allocation11 + $0x800] sm:$0xff]  ;;  %v4504_v2 = vld [vmem:[#allocation11 + $0x948] sm:$0xff] }
 0x3a8   :  { %7544 = vmatprep.subr.bf16.mxu1 %v9426_v61  ;;  %v4467_v61 = vld [vmem:[#allocation11 + $0x820] sm:$0xff]  ;;  %v4508_v54 = vld [vmem:[#allocation11 + $0x968] sm:$0xff] }
 0x3a9   :  { %v9479_v18 = vcombine.low %v4463_v29, %v4467_v61  ;;  %v9522_v4 = vcombine.high %v4504_v2, %v4508_v54 }
 0x3aa   :  { %7381 = vmatpush1.bf16.msra.mxu0 %v9423_v10  ;;  %v9473_v10 = vcombine.low %v4456_v22, %v4460_v46  ;;  %v9513_v46 = vcombine.low %v4496_v52, %v4500_v55 }
 0x3ab   :  { %7545 = vmatpush1.bf16.msra.mxu1 %v9425_v11  ;;  %7382 = vmatprep.subr.bf16.mxu0 %v9432_v12  ;;  %v9480_v11 = vcombine.high %v4463_v29, %v4467_v61  ;;  %v9482_v12 = vcombine.high %v4464_v8, %v4468_v62  ;;  %v4516_v29 = vld [vmem:[#allocation11 + $0x9a8] sm:$0xff] }
 0x3ac   :  { %7546 = vmatprep.subr.bf16.mxu1 %v9434_v14  ;;  %v4475_v14 = vld [vmem:[#allocation11 + $0x860] sm:$0xff] }
 0x3ad   :  { %v9487_v5 = vcombine.low %v4471_v20, %v4475_v14 }
 0x3ae   :  { %7383 = vmatpush1.bf16.msra.mxu0 %v9431_v21  ;;  %v9481_v21 = vcombine.low %v4464_v8, %v4468_v62  ;;  %v9521_v8 = vcombine.low %v4504_v2, %v4508_v54 }
 0x3af   :  { %7547 = vmatpush1.bf16.msra.mxu1 %v9433_v23  ;;  %7384 = vmatprep.subr.bf16.mxu0 %v9440_v32  ;;  %v9488_v23 = vcombine.high %v4471_v20, %v4475_v14  ;;  %v9490_v32 = vcombine.high %v4472_v16, %v4476_v50 }
 0x3b0   :  { %7548 = vmatprep.subr.bf16.mxu1 %v9442_v53  ;;  %v4479_v53 = vld [vmem:[#allocation11 + $0x880] sm:$0xff] }
 0x3b1   :  { %v9495_v45 = vcombine.low %v4479_v53, %v4483_v33 }
 0x3b2   :  { %7385 = vmatpush1.bf16.msra.mxu0 %v9439_v27  ;;  %v9489_v27 = vcombine.low %v4472_v16, %v4476_v50 }
 0x3b3   :  { %7549 = vmatpush1.bf16.msra.mxu1 %v9441_v35  ;;  %7386 = vmatprep.subr.bf16.mxu0 %v9448_v41  ;;  %v9496_v35 = vcombine.high %v4479_v53, %v4483_v33  ;;  %v9498_v41 = vcombine.high %v4480_v63, %v4484_v34 }
 0x3b4   :  { %7550 = vmatprep.subr.bf16.mxu1 %v9450_v36  ;;  %v4487_v36 = vld [vmem:[#allocation11 + $0x8c0] sm:$0xff] }
 0x3b5   :  { %v9503_v26 = vcombine.low %v4487_v36, %v4491_v37 }
 0x3b6   :  { %7387 = vmatpush1.bf16.msra.mxu0 %v9447_v19  ;;  %v9497_v19 = vcombine.low %v4480_v63, %v4484_v34 }
 0x3b7   :  { %7551 = vmatpush1.bf16.msra.mxu1 %v9449_v47  ;;  %7388 = vmatprep.subr.bf16.mxu0 %v9456_v48  ;;  %v9504_v47 = vcombine.high %v4487_v36, %v4491_v37  ;;  %v9506_v48 = vcombine.high %v4488_v39, %v4492_v44 }
 0x3b8   :  { %7552 = vmatprep.subr.bf16.mxu1 %v9458_v49  ;;  %v4495_v49 = vld [vmem:[#allocation11 + $0x900] sm:$0xff] }
 0x3b9   :  { %v9512_v15 = vcombine.high %v4495_v49, %v4499_v51  ;;  %v9511_v22 = vcombine.low %v4495_v49, %v4499_v51 }
 0x3ba   :  { %7389 = vmatpush1.bf16.msra.mxu0 %v9455_v58  ;;  %v9505_v58 = vcombine.low %v4488_v39, %v4492_v44 }
 0x3bb   :  { %7553 = vmatpush1.bf16.msra.mxu1 %v9457_v59  ;;  %7390 = vmatprep.subr.bf16.mxu0 %v9464_v0  ;;  %v9514_v59 = vcombine.high %v4496_v52, %v4500_v55  ;;  %v4503_v0 = vld [vmem:[#allocation11 + $0x940] sm:$0xff] }
 0x3bc   :  { %7554 = vmatprep.subr.bf16.mxu1 %v9466_v1  ;;  %v4507_v1 = vld [vmem:[#allocation11 + $0x960] sm:$0xff] }
 0x3bd   :  { %v9519_v61 = vcombine.low %v4503_v0, %v4507_v1 }
 0x3be   :  { %7391 = vmatpush1.bf16.msra.mxu0 %v9463_v3  ;;  %v9520_v3 = vcombine.high %v4503_v0, %v4507_v1 }
 0x3bf   :  { %7555 = vmatpush1.bf16.msra.mxu1 %v9465_v6  ;;  %7392 = vmatprep.subr.bf16.mxu0 %v9472_v7  ;;  %v4511_v6 = vld [vmem:[#allocation11 + $0x980] sm:$0xff] }
 0x3c0   :  { %7556 = vmatprep.subr.bf16.mxu1 %v9474_v42  ;;  %v4515_v7 = vld [vmem:[#allocation11 + $0x9a0] sm:$0xff]  ;;  %v4512_v42 = vld [vmem:[#allocation11 + $0x988] sm:$0xff] }
 0x3c1   :  { %v9528_v62 = vcombine.high %v4511_v6, %v4515_v7  ;;  %v9527_v20 = vcombine.low %v4511_v6, %v4515_v7  ;;  %v9529_v14 = vcombine.low %v4512_v42, %v4516_v29 }
 0x3c2   :  { %7393 = vmatpush1.bf16.msra.mxu0 %v9471_v9  ;;  %v9530_v9 = vcombine.high %v4512_v42, %v4516_v29 }
 0x3c3   :  { %7557 = vmatpush1.bf16.msra.mxu1 %v9473_v10  ;;  %7403 = vmatprep.subr.bf16.mxu0 %v9480_v11  ;;  %v4523_v10 = vld [vmem:[#allocation11 + $0x9e0] sm:$0xff]  ;;  %v4520_v11 = vld [vmem:[#allocation11 + $0x9c8] sm:$0xff] }
 0x3c4   :  { %7567 = vmatprep.subr.bf16.mxu1 %v9482_v12  ;;  %v4524_v12 = vld [vmem:[#allocation11 + $0x9e8] sm:$0xff]  ;;  %v9536_v16 = vcombine.high %v4519_v24, %v4523_v10  ;;  %v9535_v53 = vcombine.low %v4519_v24, %v4523_v10 }
 0x3c5   :  { %7395 = vmatmul.mubr.bf16.vlgmr.msra.gmra.mrb[16].mxu0 %v10644_v38  ;;  %v9538_v50 = vcombine.high %v4520_v11, %v4524_v12  ;;  %v9537_v33 = vcombine.low %v4520_v11, %v4524_v12 }
 0x3c6   :  { %7559 = vmatmul.mubr.bf16.vlgmr.msra.gmra.mrb[16].mxu1 %v10644_v38  ;;  %7404 = vmatpush1.bf16.msra.mxu0 %v9479_v18  ;;  %v4527_v18 = vld [vmem:[#allocation11 + $0xa00] sm:$0xff] }
 0x3c7   :  { %7568 = vmatpush1.bf16.msra.mxu1 %v9481_v21  ;;  %7405 = vmatprep.subr.bf16.mxu0 %v9488_v23  ;;  %v4531_v21 = vld [vmem:[#allocation11 + $0xa20] sm:$0xff]  ;;  %v4528_v23 = vld [vmem:[#allocation11 + $0xa08] sm:$0xff] }
 0x3c8   :  { %7569 = vmatprep.subr.bf16.mxu1 %v9490_v32  ;;  %v4532_v32 = vld [vmem:[#allocation11 + $0xa28] sm:$0xff]  ;;  %v9544_v63 = vcombine.high %v4527_v18, %v4531_v21  ;;  %v9543_v36 = vcombine.low %v4527_v18, %v4531_v21 }
 0x3c9   :  { %v9546_v34 = vcombine.high %v4528_v23, %v4532_v32  ;;  %v9545_v37 = vcombine.low %v4528_v23, %v4532_v32 }
 0x3ca   :  { %7406 = vmatpush1.bf16.msra.mxu0 %v9487_v5  ;;  %v4535_v5 = vld [vmem:[#allocation11 + $0xa40] sm:$0xff] }
 0x3cb   :  { %7570 = vmatpush1.bf16.msra.mxu1 %v9489_v27  ;;  %7407 = vmatprep.subr.bf16.mxu0 %v9496_v35  ;;  %v4539_v27 = vld [vmem:[#allocation11 + $0xa60] sm:$0xff]  ;;  %v4536_v35 = vld [vmem:[#allocation11 + $0xa48] sm:$0xff] }
 0x3cc   :  { %7571 = vmatprep.subr.bf16.mxu1 %v9498_v41  ;;  %v4540_v41 = vld [vmem:[#allocation11 + $0xa68] sm:$0xff]  ;;  %v9552_v39 = vcombine.high %v4535_v5, %v4539_v27  ;;  %v9551_v49 = vcombine.low %v4535_v5, %v4539_v27 }
 0x3cd   :  { %v9554_v44 = vcombine.high %v4536_v35, %v4540_v41  ;;  %v9553_v51 = vcombine.low %v4536_v35, %v4540_v41 }
 0x3ce   :  { %7408 = vmatpush1.bf16.msra.mxu0 %v9495_v45  ;;  %v4543_v45 = vld [vmem:[#allocation11 + $0xa80] sm:$0xff] }
 0x3cf   :  { %7572 = vmatpush1.bf16.msra.mxu1 %v9497_v19  ;;  %7409 = vmatprep.subr.bf16.mxu0 %v9504_v47  ;;  %v4547_v19 = vld [vmem:[#allocation11 + $0xaa0] sm:$0xff]  ;;  %v4544_v47 = vld [vmem:[#allocation11 + $0xa88] sm:$0xff] }
 0x3d0   :  { %7573 = vmatprep.subr.bf16.mxu1 %v9506_v48  ;;  %v4548_v48 = vld [vmem:[#allocation11 + $0xaa8] sm:$0xff]  ;;  %v9560_v52 = vcombine.high %v4543_v45, %v4547_v19  ;;  %v9559_v0 = vcombine.low %v4543_v45, %v4547_v19 }
 0x3d1   :  { %v9562_v55 = vcombine.high %v4544_v47, %v4548_v48  ;;  %v9561_v1 = vcombine.low %v4544_v47, %v4548_v48 }
 0x3d2   :  { %7410 = vmatpush1.bf16.msra.mxu0 %v9503_v26  ;;  %v4551_v26 = vld [vmem:[#allocation11 + $0xac0] sm:$0xff] }
 0x3d3   :  { %7574 = vmatpush1.bf16.msra.mxu1 %v9505_v58  ;;  %7411 = vmatprep.subr.bf16.mxu0 %v9512_v15  ;;  %v4555_v58 = vld [vmem:[#allocation11 + $0xae0] sm:$0xff]  ;;  %v4552_v15 = vld [vmem:[#allocation11 + $0xac8] sm:$0xff] }
 0x3d4   :  { %7575 = vmatprep.subr.bf16.mxu1 %v9514_v59  ;;  %v4556_v59 = vld [vmem:[#allocation11 + $0xae8] sm:$0xff]  ;;  %v9568_v2 = vcombine.high %v4551_v26, %v4555_v58  ;;  %v9567_v6 = vcombine.low %v4551_v26, %v4555_v58 }
 0x3d5   :  { %v9570_v54 = vcombine.high %v4552_v15, %v4556_v59  ;;  %v9569_v7 = vcombine.low %v4552_v15, %v4556_v59 }
 0x3d6   :  { %7412 = vmatpush1.bf16.msra.mxu0 %v9511_v22  ;;  %v4559_v22 = vld [vmem:[#allocation11 + $0xb00] sm:$0xff] }
 0x3d7   :  { %7576 = vmatpush1.bf16.msra.mxu1 %v9513_v46  ;;  %7413 = vmatprep.subr.bf16.mxu0 %v9520_v3  ;;  %v4563_v46 = vld [vmem:[#allocation11 + $0xb20] sm:$0xff]  ;;  %v4560_v3 = vld [vmem:[#allocation11 + $0xb08] sm:$0xff] }
 0x3d8   :  { %7577 = vmatprep.subr.bf16.mxu1 %v9522_v4  ;;  %v4564_v4 = vld [vmem:[#allocation11 + $0xb28] sm:$0xff]  ;;  %v9576_v42 = vcombine.high %v4559_v22, %v4563_v46  ;;  %v9575_v24 = vcombine.low %v4559_v22, %v4563_v46 }
 0x3d9   :  { %v9578_v29 = vcombine.high %v4560_v3, %v4564_v4  ;;  %v9577_v10 = vcombine.low %v4560_v3, %v4564_v4 }
 0x3da   :  { %7414 = vmatpush1.bf16.msra.mxu0 %v9519_v61  ;;  %v4567_v61 = vld [vmem:[#allocation11 + $0xb40] sm:$0xff] }
 0x3db   :  { %7578 = vmatpush1.bf16.msra.mxu1 %v9521_v8  ;;  %7415 = vmatprep.subr.bf16.mxu0 %v9528_v62  ;;  %v4571_v8 = vld [vmem:[#allocation11 + $0xb60] sm:$0xff]  ;;  %v4568_v62 = vld [vmem:[#allocation11 + $0xb48] sm:$0xff] }
 0x3dc   :  { %7579 = vmatprep.subr.bf16.mxu1 %v9530_v9  ;;  %v4572_v9 = vld [vmem:[#allocation11 + $0xb68] sm:$0xff]  ;;  %v9584_v11 = vcombine.high %v4567_v61, %v4571_v8  ;;  %v9583_v18 = vcombine.low %v4567_v61, %v4571_v8 }
 0x3dd   :  { %v9586_v12 = vcombine.high %v4568_v62, %v4572_v9  ;;  %v9585_v21 = vcombine.low %v4568_v62, %v4572_v9  ;;  %v4600_v61 = vld [vmem:[#allocation11 + $0xc48] sm:$0xff] }
 0x3de   :  { %7416 = vmatpush1.bf16.msra.mxu0 %v9527_v20  ;;  %v4575_v20 = vld [vmem:[#allocation11 + $0xb80] sm:$0xff]  ;;  %v4604_v8 = vld [vmem:[#allocation11 + $0xc68] sm:$0xff] }
 0x3df   :  { %7580 = vmatpush1.bf16.msra.mxu1 %v9529_v14  ;;  %7417 = vmatprep.subr.bf16.mxu0 %v9536_v16  ;;  %v4579_v14 = vld [vmem:[#allocation11 + $0xba0] sm:$0xff]  ;;  %v4576_v16 = vld [vmem:[#allocation11 + $0xb88] sm:$0xff] }
 0x3e0   :  { %7581 = vmatprep.subr.bf16.mxu1 %v9538_v50  ;;  %v4580_v50 = vld [vmem:[#allocation11 + $0xba8] sm:$0xff]  ;;  %v9592_v23 = vcombine.high %v4575_v20, %v4579_v14  ;;  %v9591_v5 = vcombine.low %v4575_v20, %v4579_v14  ;;  %v9618_v20 = vcombine.high %v4600_v61, %v4604_v8  ;;  %v4611_v14 = vld [vmem:[#allocation11 + $0xca0] sm:$0xff] }
 0x3e1   :  { %v9594_v32 = vcombine.high %v4576_v16, %v4580_v50  ;;  %v9593_v27 = vcombine.low %v4576_v16, %v4580_v50  ;;  %v4608_v16 = vld [vmem:[#allocation11 + $0xc88] sm:$0xff] }
 0x3e2   :  { %7418 = vmatpush1.bf16.msra.mxu0 %v9535_v53  ;;  %v4583_v53 = vld [vmem:[#allocation11 + $0xbc0] sm:$0xff]  ;;  %v4612_v50 = vld [vmem:[#allocation11 + $0xca8] sm:$0xff] }
 0x3e3   :  { %7582 = vmatpush1.bf16.msra.mxu1 %v9537_v33  ;;  %7419 = vmatprep.subr.bf16.mxu0 %v9544_v63  ;;  %v4587_v33 = vld [vmem:[#allocation11 + $0xbe0] sm:$0xff]  ;;  %v4584_v63 = vld [vmem:[#allocation11 + $0xbc8] sm:$0xff] }
 0x3e4   :  { %7583 = vmatprep.subr.bf16.mxu1 %v9546_v34  ;;  %v4588_v34 = vld [vmem:[#allocation11 + $0xbe8] sm:$0xff]  ;;  %v9600_v35 = vcombine.high %v4583_v53, %v4587_v33  ;;  %v9599_v45 = vcombine.low %v4583_v53, %v4587_v33  ;;  %v9626_v53 = vcombine.high %v4608_v16, %v4612_v50  ;;  %v4615_v33 = vld [vmem:[#allocation11 + $0xcc0] sm:$0xff] }
 0x3e5   :  { %v9602_v41 = vcombine.high %v4584_v63, %v4588_v34  ;;  %v9601_v19 = vcombine.low %v4584_v63, %v4588_v34  ;;  %v4619_v63 = vld [vmem:[#allocation11 + $0xce0] sm:$0xff]  ;;  %v4616_v34 = vld [vmem:[#allocation11 + $0xcc8] sm:$0xff] }
 0x3e6   :  { %7420 = vmatpush1.bf16.msra.mxu0 %v9543_v36  ;;  %v4591_v36 = vld [vmem:[#allocation11 + $0xc00] sm:$0xff] }
 0x3e7   :  { %7584 = vmatpush1.bf16.msra.mxu1 %v9545_v37  ;;  %7421 = vmatprep.subr.bf16.mxu0 %v9552_v39  ;;  %v4595_v37 = vld [vmem:[#allocation11 + $0xc20] sm:$0xff]  ;;  %v4592_v39 = vld [vmem:[#allocation11 + $0xc08] sm:$0xff] }
 0x3e8   :  { %7585 = vmatprep.subr.bf16.mxu1 %v9554_v44  ;;  %v4596_v44 = vld [vmem:[#allocation11 + $0xc28] sm:$0xff]  ;;  %v9608_v47 = vcombine.high %v4591_v36, %v4595_v37  ;;  %v9607_v9 = vcombine.low %v4591_v36, %v4595_v37  ;;  %v4623_v37 = vld [vmem:[#allocation11 + $0xd00] sm:$0xff] }
 0x3e9   :  { %v9610_v48 = vcombine.high %v4592_v39, %v4596_v44 }
 0x3ea   :  { %7422 = vmatpush1.bf16.msra.mxu0 %v9551_v49  ;;  %v10648_v49 = vld [vmem:[#allocation10] sm:$0xff] }
 0x3eb   :  { %7586 = vmatpush1.bf16.msra.mxu1 %v9553_v51  ;;  %7423 = vmatprep.subr.bf16.mxu0 %v9560_v52  ;;  %v954_v51 = vrot.slane %v10648_v49, %v10566_v25  ;;  %v958_v52 = vrot.slane %v10648_v49, %v10549_v56 }
 0x3ec   :  { %7587 = vmatprep.subr.bf16.mxu1 %v9562_v55  ;;  %v966_v55 = vrot.slane %v10648_v49, %v10569_v40 }
 0x3ee   :  { %7424 = vmatpush1.bf16.msra.mxu0 %v9559_v0 }
 0x3ef   :  { %7588 = vmatpush1.bf16.msra.mxu1 %v9561_v1  ;;  %7425 = vmatprep.subr.bf16.mxu0 %v9568_v2 }
 0x3f0   :  { %7589 = vmatprep.subr.bf16.mxu1 %v9570_v54 }
 0x3f2   :  { %7426 = vmatpush1.bf16.msra.mxu0 %v9567_v6 }
 0x3f3   :  { %7590 = vmatpush1.bf16.msra.mxu1 %v9569_v7  ;;  %7427 = vmatprep.subr.bf16.mxu0 %v9576_v42  ;;  %v4599_v7 = vld [vmem:[#allocation11 + $0xc40] sm:$0xff] }
 0x3f4   :  { %7591 = vmatprep.subr.bf16.mxu1 %v9578_v29  ;;  %v4603_v29 = vld [vmem:[#allocation11 + $0xc60] sm:$0xff] }
 0x3f6   :  { %7428 = vmatpush1.bf16.msra.mxu0 %v9575_v24  ;;  %v9609_v24 = vcombine.low %v4592_v39, %v4596_v44  ;;  %v4627_v39 = vld [vmem:[#allocation11 + $0xd20] sm:$0xff]  ;;  %v4624_v44 = vld [vmem:[#allocation11 + $0xd08] sm:$0xff] }
 0x3f7   :  { %7592 = vmatpush1.bf16.msra.mxu1 %v9577_v10  ;;  %7429 = vmatprep.subr.bf16.mxu0 %v9584_v11  ;;  %v4607_v11 = vld [vmem:[#allocation11 + $0xc80] sm:$0xff] }
 0x3f8   :  { %7593 = vmatprep.subr.bf16.mxu1 %v9586_v12  ;;  %v9616_v12 = vcombine.high %v4599_v7, %v4603_v29 }
 0x3fa   :  { %7430 = vmatpush1.bf16.msra.mxu0 %v9583_v18 }
 0x3fb   :  { %7594 = vmatpush1.bf16.msra.mxu1 %v9585_v21  ;;  %7431 = vmatprep.subr.bf16.mxu0 %v9592_v23  ;;  %v9615_v21 = vcombine.low %v4599_v7, %v4603_v29  ;;  %v9617_v23 = vcombine.low %v4600_v61, %v4604_v8  ;;  %v4647_v29 = vld [vmem:[#allocation11 + $0xdc0] sm:$0xff]  ;;  %v4648_v8 = vld [vmem:[#allocation11 + $0xdc8] sm:$0xff] }
 0x3fc   :  { %7595 = vmatprep.subr.bf16.mxu1 %v9594_v32  ;;  %v9624_v32 = vcombine.high %v4607_v11, %v4611_v14  ;;  %v4651_v61 = vld [vmem:[#allocation11 + $0xde0] sm:$0xff] }
 0x3fe   :  { %7432 = vmatpush1.bf16.msra.mxu0 %v9591_v5  ;;  %v4620_v5 = vld [vmem:[#allocation11 + $0xce8] sm:$0xff] }
 0x3ff   :  { %7596 = vmatpush1.bf16.msra.mxu1 %v9593_v27  ;;  %7433 = vmatprep.subr.bf16.mxu0 %v9600_v35  ;;  %v9623_v27 = vcombine.low %v4607_v11, %v4611_v14  ;;  %v9625_v35 = vcombine.low %v4608_v16, %v4612_v50  ;;  %v9634_v36 = vcombine.high %v4616_v34, %v4620_v5  ;;  %v4655_v14 = vld [vmem:[#allocation11 + $0xe00] sm:$0xff]  ;;  %v4656_v50 = vld [vmem:[#allocation11 + $0xe08] sm:$0xff] }
 0x400   :  { %7597 = vmatprep.subr.bf16.mxu1 %v9602_v41  ;;  %v9632_v41 = vcombine.high %v4615_v33, %v4619_v63  ;;  %v4659_v16 = vld [vmem:[#allocation11 + $0xe20] sm:$0xff] }
 0x402   :  { %7434 = vmatpush1.bf16.msra.mxu0 %v9599_v45  ;;  %v4628_v45 = vld [vmem:[#allocation11 + $0xd28] sm:$0xff] }
 0x403   :  { %7598 = vmatpush1.bf16.msra.mxu1 %v9601_v19  ;;  %7444 = vmatprep.subr.bf16.mxu0 %v9608_v47  ;;  %v9631_v19 = vcombine.low %v4615_v33, %v4619_v63  ;;  %v9633_v47 = vcombine.low %v4616_v34, %v4620_v5  ;;  %v4663_v63 = vld [vmem:[#allocation11 + $0xe40] sm:$0xff]  ;;  %v4664_v5 = vld [vmem:[#allocation11 + $0xe48] sm:$0xff] }
 0x404   :  { %7608 = vmatprep.subr.bf16.mxu1 %v9610_v48  ;;  %v9640_v48 = vcombine.high %v4623_v37, %v4627_v39  ;;  %v4667_v34 = vld [vmem:[#allocation11 + $0xe60] sm:$0xff] }
 0x418   :  { %v4020_v26 = vpop.f32.mrb[12].mxu0 }
 0x419   :  { %v9893_v58 = vadd.f32 %v4020_v26, %v954_v51  ;;  %v10656_v15 = vpop.f32.mrb[12].mxu1  ;;  %v4022_v59 = vpop.f32.mrb[13].mxu0  ;;  %v9642_v51 = vcombine.high %v4624_v44, %v4628_v45  ;;  %v4632_v26 = vld [vmem:[#allocation11 + $0xd48] sm:$0xff] }
 0x41a   :  { %v9894_v0 = vadd.f32 %v4022_v59, %v958_v52  ;;  %v4186_v1 = vpop.f32.mrb[13].mxu1  ;;  %v4024_v2 = vpop.f32.mrb[14].mxu0  ;;  %v4631_v52 = vld [vmem:[#allocation11 + $0xd40] sm:$0xff]  ;;  %v9639_v59 = vcombine.low %v4623_v37, %v4627_v39 }
 0x41b   :  { %v4195_v54 = vmax.f32 %v9893_v58, 0.0  ;;  %v9896_v22 = vadd.f32 %v4186_v1, %v966_v55  ;;  %v4188_v46 = vpop.f32.mrb[14].mxu1  ;;  %v4025_v3 = vpop.f32.mrb[15].mxu0  ;;  %v4635_v55 = vld [vmem:[#allocation11 + $0xd60] sm:$0xff]  ;;  %v4636_v58 = vld [vmem:[#allocation11 + $0xd68] sm:$0xff] }
 0x41c   :  { %v4196_v4 = vmax.f32 %v9894_v0, 0.0  ;;  %v4189_v6 = vpop.f32.mrb[15].mxu1  ;;  %v9641_v0 = vcombine.low %v4624_v44, %v4628_v45  ;;  %v9648_v1 = vcombine.high %v4631_v52, %v4635_v55  ;;  %v9650_v2 = vcombine.high %v4632_v26, %v4636_v58  ;;  %v4640_v46 = vld [vmem:[#allocation11 + $0xd88] sm:$0xff]  ;;  %v4671_v39 = vld [vmem:[#allocation11 + $0xe80] sm:$0xff] }
 0x41d   :  { %v4198_v42 = vmax.f32 %v9896_v22, 0.0  ;;  %v10660_v10 = vpack.c.bf16 %v4195_v54, %v4195_v54  ;;  %v4639_v54 = vld [vmem:[#allocation11 + $0xd80] sm:$0xff]  ;;  %v4644_v3 = vld [vmem:[#allocation11 + $0xda8] sm:$0xff]  ;;  %v9649_v6 = vcombine.low %v4632_v26, %v4636_v58 }
 0x41e   :  { %v10658_v62 = vpack.c.bf16 %v4196_v4, %v4196_v4  ;;  %v4643_v22 = vld [vmem:[#allocation11 + $0xda0] sm:$0xff]  ;;  %v9647_v4 = vcombine.low %v4631_v52, %v4635_v55  ;;  %v9657_v11 = vcombine.low %v4640_v46, %v4644_v3  ;;  %v4672_v45 = vld [vmem:[#allocation11 + $0xe88] sm:$0xff] }
 0x41f   :  { %v10664_v18 = vpack.c.bf16 %v4198_v42, %v4198_v42  ;;  %v9656_v7 = vcombine.high %v4639_v54, %v4643_v22  ;;  %v9658_v42 = vcombine.high %v4640_v46, %v4644_v3  ;;  %v4675_v44 = vld [vmem:[#allocation11 + $0xea0] sm:$0xff]  ;;  %v4680_v58 = vld [vmem:[#allocation11 + $0xec8] sm:$0xff] }
 0x420   :  { %7435 = vmatprep.mubr.bf16.mxu0 %v10658_v62  ;;  %7599 = vmatprep.mubr.bf16.mxu1 %v10658_v62  ;;  %v4679_v55 = vld [vmem:[#allocation11 + $0xec0] sm:$0xff]  ;;  %v4688_v3 = vld [vmem:[#allocation11 + $0xf08] sm:$0xff] }
 0x421   :  { %7436 = vmatmul.mubr.bf16.vlgmr.msra.gmra.mrb[16].mxu0 %v10660_v10  ;;  %7600 = vmatmul.mubr.bf16.vlgmr.msra.gmra.mrb[16].mxu1 %v10660_v10  ;;  %v4683_v26 = vld [vmem:[#allocation11 + $0xee0] sm:$0xff] }
 0x422   :  { %7445 = vmatpush1.bf16.msra.mxu0 %v9607_v9  ;;  %7609 = vmatpush1.bf16.msra.mxu1 %v9609_v24  ;;  %v4652_v9 = vld [vmem:[#allocation11 + $0xde8] sm:$0xff]  ;;  %v9655_v24 = vcombine.low %v4639_v54, %v4643_v22  ;;  %v4687_v22 = vld [vmem:[#allocation11 + $0xf00] sm:$0xff] }
 0x423   :  { %7476 = vmatprep.mubr.bf16.mxu0 %v10664_v18  ;;  %7640 = vmatprep.mubr.bf16.mxu1 %v10664_v18  ;;  %v4691_v46 = vld [vmem:[#allocation11 + $0xf20] sm:$0xff] }
 0x424   :  { %7446 = vmatprep.subr.bf16.mxu0 %v9616_v12  ;;  %7610 = vmatprep.subr.bf16.mxu1 %v9618_v20  ;;  %v9664_v12 = vcombine.high %v4647_v29, %v4651_v61  ;;  %v9666_v20 = vcombine.high %v4648_v8, %v4652_v9 }
 0x426   :  { %7447 = vmatpush1.bf16.msra.mxu0 %v9615_v21  ;;  %7611 = vmatpush1.bf16.msra.mxu1 %v9617_v23  ;;  %v4660_v21 = vld [vmem:[#allocation11 + $0xe28] sm:$0xff]  ;;  %v9663_v23 = vcombine.low %v4647_v29, %v4651_v61  ;;  %v4695_v61 = vld [vmem:[#allocation11 + $0xf40] sm:$0xff] }
 0x427   :  { %7448 = vmatprep.subr.bf16.mxu0 %v9624_v32  ;;  %7612 = vmatprep.subr.bf16.mxu1 %v9626_v53  ;;  %v9665_v32 = vcombine.low %v4648_v8, %v4652_v9  ;;  %v9672_v53 = vcombine.high %v4655_v14, %v4659_v16  ;;  %v9674_v33 = vcombine.high %v4656_v50, %v4660_v21  ;;  %v4699_v8 = vld [vmem:[#allocation11 + $0xf60] sm:$0xff]  ;;  %v4696_v9 = vld [vmem:[#allocation11 + $0xf48] sm:$0xff] }
 0x42a   :  { %7449 = vmatpush1.bf16.msra.mxu0 %v9623_v27  ;;  %7613 = vmatpush1.bf16.msra.mxu1 %v9625_v35  ;;  %v4668_v27 = vld [vmem:[#allocation11 + $0xe68] sm:$0xff]  ;;  %v9671_v35 = vcombine.low %v4655_v14, %v4659_v16  ;;  %v4703_v16 = vld [vmem:[#allocation11 + $0xf80] sm:$0xff] }
 0x42b   :  { %7450 = vmatprep.subr.bf16.mxu0 %v9632_v41  ;;  %7614 = vmatprep.subr.bf16.mxu1 %v9634_v36  ;;  %v9673_v41 = vcombine.low %v4656_v50, %v4660_v21  ;;  %v9680_v36 = vcombine.high %v4663_v63, %v4667_v34  ;;  %v9682_v37 = vcombine.high %v4664_v5, %v4668_v27  ;;  %v4707_v50 = vld [vmem:[#allocation11 + $0xfa0] sm:$0xff]  ;;  %v4704_v21 = vld [vmem:[#allocation11 + $0xf88] sm:$0xff] }
 0x42e   :  { %7451 = vmatpush1.bf16.msra.mxu0 %v9631_v19  ;;  %7615 = vmatpush1.bf16.msra.mxu1 %v9633_v47  ;;  %v4676_v19 = vld [vmem:[#allocation11 + $0xea8] sm:$0xff]  ;;  %v9679_v47 = vcombine.low %v4663_v63, %v4667_v34  ;;  %v9720_v63 = vcombine.high %v4703_v16, %v4707_v50 }
 0x42f   :  { %7452 = vmatprep.subr.bf16.mxu0 %v9640_v48  ;;  %7616 = vmatprep.subr.bf16.mxu1 %v9642_v51  ;;  %v9681_v48 = vcombine.low %v4664_v5, %v4668_v27  ;;  %v9688_v51 = vcombine.high %v4671_v39, %v4675_v44  ;;  %v9690_v52 = vcombine.high %v4672_v45, %v4676_v19  ;;  %v4711_v5 = vld [vmem:[#allocation11 + $0xfc0] sm:$0xff] }
 0x430   :  { %v4715_v27 = vld [vmem:[#allocation11 + $0xfe0] sm:$0xff] }
 0x432   :  { %7453 = vmatpush1.bf16.msra.mxu0 %v9639_v59  ;;  %7617 = vmatpush1.bf16.msra.mxu1 %v9641_v0  ;;  %v4684_v59 = vld [vmem:[#allocation11 + $0xee8] sm:$0xff]  ;;  %v9687_v0 = vcombine.low %v4671_v39, %v4675_v44  ;;  %v9728_v44 = vcombine.high %v4711_v5, %v4715_v27 }
 0x433   :  { %7454 = vmatprep.subr.bf16.mxu0 %v9648_v1  ;;  %7618 = vmatprep.subr.bf16.mxu1 %v9650_v2  ;;  %v9689_v1 = vcombine.low %v4672_v45, %v4676_v19  ;;  %v9696_v2 = vcombine.high %v4679_v55, %v4683_v26  ;;  %v9698_v54 = vcombine.high %v4680_v58, %v4684_v59  ;;  %v4209_v19 = vld [vmem:[#allocation11 + $0x10] sm:$0xff] }
 0x436   :  { %7455 = vmatpush1.bf16.msra.mxu0 %v9647_v4  ;;  %7619 = vmatpush1.bf16.msra.mxu1 %v9649_v6  ;;  %v4692_v4 = vld [vmem:[#allocation11 + $0xf28] sm:$0xff]  ;;  %v9695_v6 = vcombine.low %v4679_v55, %v4683_v26 }
 0x437   :  { %7456 = vmatprep.subr.bf16.mxu0 %v9656_v7  ;;  %7620 = vmatprep.subr.bf16.mxu1 %v9658_v42  ;;  %v9697_v7 = vcombine.low %v4680_v58, %v4684_v59  ;;  %v9704_v42 = vcombine.high %v4687_v22, %v4691_v46  ;;  %v9706_v29 = vcombine.high %v4688_v3, %v4692_v4  ;;  %v4217_v59 = vld [vmem:[#allocation11 + $0x50] sm:$0xff] }
 0x43a   :  { %7457 = vmatpush1.bf16.msra.mxu0 %v9655_v24  ;;  %7621 = vmatpush1.bf16.msra.mxu1 %v9657_v11  ;;  %v4700_v24 = vld [vmem:[#allocation11 + $0xf68] sm:$0xff]  ;;  %v9703_v11 = vcombine.low %v4687_v22, %v4691_v46 }
 0x43b   :  { %7458 = vmatprep.subr.bf16.mxu0 %v9664_v12  ;;  %7622 = vmatprep.subr.bf16.mxu1 %v9666_v20  ;;  %v9705_v12 = vcombine.low %v4688_v3, %v4692_v4  ;;  %v9712_v20 = vcombine.high %v4695_v61, %v4699_v8  ;;  %v9714_v14 = vcombine.high %v4696_v9, %v4700_v24  ;;  %v4225_v4 = vld [vmem:[#allocation11 + $0x90] sm:$0xff] }
 0x43e   :  { %7459 = vmatpush1.bf16.msra.mxu0 %v9663_v23  ;;  %7623 = vmatpush1.bf16.msra.mxu1 %v9665_v32  ;;  %v4708_v23 = vld [vmem:[#allocation11 + $0xfa8] sm:$0xff]  ;;  %v9711_v32 = vcombine.low %v4695_v61, %v4699_v8 }
 0x43f   :  { %7460 = vmatprep.subr.bf16.mxu0 %v9672_v53  ;;  %7624 = vmatprep.subr.bf16.mxu1 %v9674_v33  ;;  %v9713_v53 = vcombine.low %v4696_v9, %v4700_v24  ;;  %v962_v33 = vrot.slane %v10648_v49, %v10586_v17  ;;  %v9722_v34 = vcombine.high %v4704_v21, %v4708_v23  ;;  %v4213_v49 = vld [vmem:[#allocation11 + $0x30] sm:$0xff] }
 0x440   :  { %v9228_v26 = vcombine.high %v4209_v19, %v4213_v49  ;;  %v4233_v24 = vld [vmem:[#allocation11 + $0xd0] sm:$0xff] }
 0x441   :  { %v9895_v39 = vadd.f32 %v10656_v15, %v962_v33  ;;  %v4218_v15 = vld [vmem:[#allocation11 + $0x58] sm:$0xff] }
 0x442   :  { %7461 = vmatpush1.bf16.msra.mxu0 %v9671_v35  ;;  %7625 = vmatpush1.bf16.msra.mxu1 %v9673_v41  ;;  %v4712_v35 = vld [vmem:[#allocation11 + $0xfc8] sm:$0xff] }
 0x443   :  { %7462 = vmatprep.subr.bf16.mxu0 %v9680_v36  ;;  %7626 = vmatprep.subr.bf16.mxu1 %v9682_v37  ;;  %v4716_v41 = vld [vmem:[#allocation11 + $0xfe8] sm:$0xff]  ;;  %v9719_v36 = vcombine.low %v4703_v16, %v4707_v50  ;;  %v9721_v37 = vcombine.low %v4704_v21, %v4708_v23  ;;  %v4197_v55 = vmax.f32 %v9895_v39, 0.0  ;;  %v4241_v23 = vld [vmem:[#allocation11 + $0x110] sm:$0xff] }
 0x444   :  { %v9730_v45 = vcombine.high %v4712_v35, %v4716_v41 }
 0x446   :  { %7463 = vmatpush1.bf16.msra.mxu0 %v9679_v47  ;;  %7627 = vmatpush1.bf16.msra.mxu1 %v9681_v48  ;;  %v4210_v47 = vld [vmem:[#allocation11 + $0x18] sm:$0xff] }
 0x447   :  { %7464 = vmatprep.subr.bf16.mxu0 %v9688_v51  ;;  %7628 = vmatprep.subr.bf16.mxu1 %v9690_v52  ;;  %v4214_v48 = vld [vmem:[#allocation11 + $0x38] sm:$0xff]  ;;  %v9727_v51 = vcombine.low %v4711_v5, %v4715_v27  ;;  %v9729_v52 = vcombine.low %v4712_v35, %v4716_v41  ;;  %v4249_v27 = vld [vmem:[#allocation11 + $0x150] sm:$0xff] }
 0x448   :  { %v9230_v58 = vcombine.high %v4210_v47, %v4214_v48  ;;  %v9229_v22 = vcombine.low %v4210_v47, %v4214_v48  ;;  %v4253_v35 = vld [vmem:[#allocation11 + $0x170] sm:$0xff]  ;;  %v4250_v41 = vld [vmem:[#allocation11 + $0x158] sm:$0xff] }
 0x449   :  { %v4258_v47 = vld [vmem:[#allocation11 + $0x198] sm:$0xff] }
 0x44a   :  { %7465 = vmatpush1.bf16.msra.mxu0 %v9687_v0  ;;  %7629 = vmatpush1.bf16.msra.mxu1 %v9689_v1  ;;  %v4221_v0 = vld [vmem:[#allocation11 + $0x70] sm:$0xff]  ;;  %v4222_v1 = vld [vmem:[#allocation11 + $0x78] sm:$0xff] }
 0x44b   :  { %7466 = vmatprep.subr.bf16.mxu0 %v9696_v2  ;;  %7630 = vmatprep.subr.bf16.mxu1 %v9698_v54  ;;  %v9227_v2 = vcombine.low %v4209_v19, %v4213_v49  ;;  %v10673_v54 = vpack.c.bf16 %v4197_v55, %v4197_v55  ;;  %v9236_v46 = vcombine.high %v4217_v59, %v4221_v0  ;;  %v4257_v19 = vld [vmem:[#allocation11 + $0x190] sm:$0xff]  ;;  %v4262_v48 = vld [vmem:[#allocation11 + $0x1b8] sm:$0xff] }
 0x44c   :  { %v9238_v3 = vcombine.high %v4218_v15, %v4222_v1  ;;  %v9237_v61 = vcombine.low %v4218_v15, %v4222_v1  ;;  %v4261_v49 = vld [vmem:[#allocation11 + $0x1b0] sm:$0xff]  ;;  %v4270_v15 = vld [vmem:[#allocation11 + $0x1f8] sm:$0xff] }
 0x44d   :  { %v9276_v55 = vcombine.high %v4257_v19, %v4261_v49  ;;  %v9275_v1 = vcombine.low %v4257_v19, %v4261_v49  ;;  %v4309_v19 = vld [vmem:[#allocation11 + $0x330] sm:$0xff]  ;;  %v4306_v49 = vld [vmem:[#allocation11 + $0x318] sm:$0xff] }
 0x44e   :  { %7467 = vmatpush1.bf16.msra.mxu0 %v9695_v6  ;;  %7631 = vmatpush1.bf16.msra.mxu1 %v9697_v7  ;;  %v4229_v6 = vld [vmem:[#allocation11 + $0xb0] sm:$0xff]  ;;  %v4226_v7 = vld [vmem:[#allocation11 + $0x98] sm:$0xff] }
 0x44f   :  { %7468 = vmatprep.subr.bf16.mxu0 %v9704_v42  ;;  %7632 = vmatprep.subr.bf16.mxu1 %v9706_v29  ;;  %v4230_v42 = vld [vmem:[#allocation11 + $0xb8] sm:$0xff]  ;;  %v9235_v29 = vcombine.low %v4217_v59, %v4221_v0  ;;  %v9244_v8 = vcombine.high %v4225_v4, %v4229_v6  ;;  %v4269_v59 = vld [vmem:[#allocation11 + $0x1f0] sm:$0xff] }
 0x450   :  { %v9246_v9 = vcombine.high %v4226_v7, %v4230_v42  ;;  %v9245_v16 = vcombine.low %v4226_v7, %v4230_v42  ;;  %v4266_v0 = vld [vmem:[#allocation11 + $0x1d8] sm:$0xff] }
 0x451   :  { %v4278_v7 = vld [vmem:[#allocation11 + $0x238] sm:$0xff] }
 0x452   :  { %7469 = vmatpush1.bf16.msra.mxu0 %v9703_v11  ;;  %7633 = vmatpush1.bf16.msra.mxu1 %v9705_v12  ;;  %v4237_v11 = vld [vmem:[#allocation11 + $0xf0] sm:$0xff]  ;;  %v4234_v12 = vld [vmem:[#allocation11 + $0xd8] sm:$0xff] }
 0x453   :  { %7470 = vmatprep.subr.bf16.mxu0 %v9712_v20  ;;  %7634 = vmatprep.subr.bf16.mxu1 %v9714_v14  ;;  %v4238_v20 = vld [vmem:[#allocation11 + $0xf8] sm:$0xff]  ;;  %v9243_v14 = vcombine.low %v4225_v4, %v4229_v6  ;;  %v9252_v50 = vcombine.high %v4233_v24, %v4237_v11  ;;  %v9251_v33 = vcombine.low %v4233_v24, %v4237_v11  ;;  %v4277_v4 = vld [vmem:[#allocation11 + $0x230] sm:$0xff] }
 0x454   :  { %v9254_v21 = vcombine.high %v4234_v12, %v4238_v20  ;;  %v4274_v6 = vld [vmem:[#allocation11 + $0x218] sm:$0xff]  ;;  %v4285_v24 = vld [vmem:[#allocation11 + $0x270] sm:$0xff] }
 0x455   :  { %v4282_v11 = vld [vmem:[#allocation11 + $0x258] sm:$0xff] }
 0x456   :  { %7471 = vmatpush1.bf16.msra.mxu0 %v9711_v32  ;;  %7635 = vmatpush1.bf16.msra.mxu1 %v9713_v53  ;;  %v4245_v32 = vld [vmem:[#allocation11 + $0x130] sm:$0xff]  ;;  %v4246_v53 = vld [vmem:[#allocation11 + $0x138] sm:$0xff] }
 0x457   :  { %7472 = vmatprep.subr.bf16.mxu0 %v9720_v63  ;;  %7636 = vmatprep.subr.bf16.mxu1 %v9722_v34  ;;  %v9253_v63 = vcombine.low %v4234_v12, %v4238_v20  ;;  %v9260_v34 = vcombine.high %v4241_v23, %v4245_v32  ;;  %v4286_v12 = vld [vmem:[#allocation11 + $0x278] sm:$0xff] }
 0x45a   :  { %7473 = vmatpush1.bf16.msra.mxu0 %v9719_v36  ;;  %7637 = vmatpush1.bf16.msra.mxu1 %v9721_v37  ;;  %v4254_v36 = vld [vmem:[#allocation11 + $0x178] sm:$0xff]  ;;  %v9259_v37 = vcombine.low %v4241_v23, %v4245_v32  ;;  %v4293_v23 = vld [vmem:[#allocation11 + $0x2b0] sm:$0xff] }
 0x45b   :  { %7474 = vmatprep.subr.bf16.mxu0 %v9728_v44  ;;  %7638 = vmatprep.subr.bf16.mxu1 %v9730_v45  ;;  %v9268_v44 = vcombine.high %v4249_v27, %v4253_v35  ;;  %v9270_v45 = vcombine.high %v4250_v41, %v4254_v36  ;;  %v4290_v32 = vld [vmem:[#allocation11 + $0x298] sm:$0xff] }
 0x45e   :  { %7475 = vmatpush1.bf16.msra.mxu0 %v9727_v51  ;;  %7639 = vmatpush1.bf16.msra.mxu1 %v9729_v52  ;;  %v9267_v51 = vcombine.low %v4249_v27, %v4253_v35  ;;  %v9269_v52 = vcombine.low %v4250_v41, %v4254_v36  ;;  %v4301_v27 = vld [vmem:[#allocation11 + $0x2f0] sm:$0xff]  ;;  %v4298_v35 = vld [vmem:[#allocation11 + $0x2d8] sm:$0xff] }
 0x45f   :  { %7649 = vmatprep.subr.bf16.mxu0 %v9228_v26  ;;  %7813 = vmatprep.subr.bf16.mxu1 %v9230_v58  ;;  %v9278_v26 = vcombine.high %v4258_v47, %v4262_v48  ;;  %v4265_v58 = vld [vmem:[#allocation11 + $0x1d0] sm:$0xff]  ;;  %v4302_v41 = vld [vmem:[#allocation11 + $0x2f8] sm:$0xff] }
 0x460   :  { %v9283_v42 = vcombine.low %v4265_v58, %v4269_v59 }
 0x461   :  { %7477 = vmatmul.mubr.bf16.vlgmr.msra.gmra.mrb[16].mxu0 %v10673_v54  ;;  %7641 = vmatmul.mubr.bf16.vlgmr.msra.gmra.mrb[16].mxu1 %v10673_v54 }
 0x462   :  { %7650 = vmatpush1.bf16.msra.mxu0 %v9227_v2  ;;  %7681 = vmatprep.mubr.bf16.mxu0 %v10621_v13  ;;  %v9277_v2 = vcombine.low %v4258_v47, %v4262_v48  ;;  %v4310_v47 = vld [vmem:[#allocation11 + $0x338] sm:$0xff] }
 0x463   :  { %7814 = vmatpush1.bf16.msra.mxu1 %v9229_v22  ;;  %7845 = vmatprep.mubr.bf16.mxu1 %v10621_v13  ;;  %v4242_v13 = vld [vmem:[#allocation11 + $0x118] sm:$0xff]  ;;  %v9284_v22 = vcombine.high %v4265_v58, %v4269_v59  ;;  %v4317_v58 = vld [vmem:[#allocation11 + $0x370] sm:$0xff] }
 0x464   :  { %7651 = vmatprep.subr.bf16.mxu0 %v9236_v46  ;;  %7815 = vmatprep.subr.bf16.mxu1 %v9238_v3  ;;  %v9262_v5 = vcombine.high %v4242_v13, %v4246_v53  ;;  %v9261_v39 = vcombine.low %v4242_v13, %v4246_v53  ;;  %v9286_v46 = vcombine.high %v4266_v0, %v4270_v15  ;;  %v4273_v3 = vld [vmem:[#allocation11 + $0x210] sm:$0xff]  ;;  %v4294_v13 = vld [vmem:[#allocation11 + $0x2b8] sm:$0xff] }
 0x465   :  { %v9291_v20 = vcombine.low %v4273_v3, %v4277_v4  ;;  %v4314_v59 = vld [vmem:[#allocation11 + $0x358] sm:$0xff] }
 0x466   :  { %7652 = vmatpush1.bf16.msra.mxu0 %v9235_v29  ;;  %v9285_v29 = vcombine.low %v4266_v0, %v4270_v15  ;;  %v4318_v0 = vld [vmem:[#allocation11 + $0x378] sm:$0xff] }
 0x467   :  { %7816 = vmatpush1.bf16.msra.mxu1 %v9237_v61  ;;  %7653 = vmatprep.subr.bf16.mxu0 %v9244_v8  ;;  %v9292_v61 = vcombine.high %v4273_v3, %v4277_v4  ;;  %v9294_v8 = vcombine.high %v4274_v6, %v4278_v7  ;;  %v4325_v3 = vld [vmem:[#allocation11 + $0x3b0] sm:$0xff]  ;;  %v4322_v4 = vld [vmem:[#allocation11 + $0x398] sm:$0xff] }
 0x468   :  { %7817 = vmatprep.subr.bf16.mxu1 %v9246_v9  ;;  %v4281_v9 = vld [vmem:[#allocation11 + $0x250] sm:$0xff] }
 0x469   :  { %v9299_v53 = vcombine.low %v4281_v9, %v4285_v24 }
 0x46a   :  { %7654 = vmatpush1.bf16.msra.mxu0 %v9243_v14  ;;  %v9293_v14 = vcombine.low %v4274_v6, %v4278_v7  ;;  %v4326_v6 = vld [vmem:[#allocation11 + $0x3b8] sm:$0xff] }
 0x46b   :  { %7818 = vmatpush1.bf16.msra.mxu1 %v9245_v16  ;;  %7655 = vmatprep.subr.bf16.mxu0 %v9252_v50  ;;  %v9300_v16 = vcombine.high %v4281_v9, %v4285_v24  ;;  %v9302_v50 = vcombine.high %v4282_v11, %v4286_v12  ;;  %v4333_v9 = vld [vmem:[#allocation11 + $0x3f0] sm:$0xff]  ;;  %v4330_v24 = vld [vmem:[#allocation11 + $0x3d8] sm:$0xff] }
 0x46c   :  { %7819 = vmatprep.subr.bf16.mxu1 %v9254_v21  ;;  %v4289_v21 = vld [vmem:[#allocation11 + $0x290] sm:$0xff] }
 0x46d   :  { %v9307_v36 = vcombine.low %v4289_v21, %v4293_v23 }
 0x46e   :  { %7656 = vmatpush1.bf16.msra.mxu0 %v9251_v33  ;;  %v9301_v33 = vcombine.low %v4282_v11, %v4286_v12  ;;  %v4334_v11 = vld [vmem:[#allocation11 + $0x3f8] sm:$0xff] }
 0x46f   :  { %7820 = vmatpush1.bf16.msra.mxu1 %v9253_v63  ;;  %7657 = vmatprep.subr.bf16.mxu0 %v9260_v34  ;;  %v9308_v63 = vcombine.high %v4289_v21, %v4293_v23  ;;  %v9310_v34 = vcombine.high %v4290_v32, %v4294_v13  ;;  %v4341_v21 = vld [vmem:[#allocation11 + $0x430] sm:$0xff]  ;;  %v4338_v23 = vld [vmem:[#allocation11 + $0x418] sm:$0xff] }
 0x470   :  { %7821 = vmatprep.subr.bf16.mxu1 %v9262_v5  ;;  %v4297_v5 = vld [vmem:[#allocation11 + $0x2d0] sm:$0xff] }
 0x471   :  { %v9315_v48 = vcombine.low %v4297_v5, %v4301_v27 }
 0x472   :  { %7658 = vmatpush1.bf16.msra.mxu0 %v9259_v37  ;;  %v9309_v37 = vcombine.low %v4290_v32, %v4294_v13  ;;  %v4342_v32 = vld [vmem:[#allocation11 + $0x438] sm:$0xff] }
 0x473   :  { %7822 = vmatpush1.bf16.msra.mxu1 %v9261_v39  ;;  %7659 = vmatprep.subr.bf16.mxu0 %v9268_v44  ;;  %v9316_v39 = vcombine.high %v4297_v5, %v4301_v27  ;;  %v9318_v44 = vcombine.high %v4298_v35, %v4302_v41  ;;  %v4349_v5 = vld [vmem:[#allocation11 + $0x470] sm:$0xff] }
 0x474   :  { %7823 = vmatprep.subr.bf16.mxu1 %v9270_v45  ;;  %v4305_v45 = vld [vmem:[#allocation11 + $0x310] sm:$0xff] }
 0x475   :  { %v9323_v15 = vcombine.low %v4305_v45, %v4309_v19 }
 0x476   :  { %7660 = vmatpush1.bf16.msra.mxu0 %v9267_v51  ;;  %v9317_v51 = vcombine.low %v4298_v35, %v4302_v41  ;;  %v4346_v35 = vld [vmem:[#allocation11 + $0x458] sm:$0xff] }
 0x477   :  { %7824 = vmatpush1.bf16.msra.mxu1 %v9269_v52  ;;  %7661 = vmatprep.subr.bf16.mxu0 %v9276_v55  ;;  %v9324_v52 = vcombine.high %v4305_v45, %v4309_v19  ;;  %v9326_v55 = vcombine.high %v4306_v49, %v4310_v47  ;;  %v4350_v41 = vld [vmem:[#allocation11 + $0x478] sm:$0xff] }
 0x478   :  { %7825 = vmatprep.subr.bf16.mxu1 %v9278_v26  ;;  %v4313_v26 = vld [vmem:[#allocation11 + $0x350] sm:$0xff]  ;;  %v9366_v45 = vcombine.high %v4346_v35, %v4350_v41  ;;  %v4354_v19 = vld [vmem:[#allocation11 + $0x498] sm:$0xff] }
 0x479   :  { %v9331_v7 = vcombine.low %v4313_v26, %v4317_v58 }
 0x47a   :  { %7662 = vmatpush1.bf16.msra.mxu0 %v9275_v1  ;;  %v9325_v1 = vcombine.low %v4306_v49, %v4310_v47  ;;  %v4358_v49 = vld [vmem:[#allocation11 + $0x4b8] sm:$0xff] }
 0x47b   :  { %7826 = vmatpush1.bf16.msra.mxu1 %v9277_v2  ;;  %7663 = vmatprep.subr.bf16.mxu0 %v9284_v22  ;;  %v9332_v2 = vcombine.high %v4313_v26, %v4317_v58  ;;  %v9334_v22 = vcombine.high %v4314_v59, %v4318_v0  ;;  %v4365_v26 = vld [vmem:[#allocation11 + $0x4f0] sm:$0xff]  ;;  %v4362_v58 = vld [vmem:[#allocation11 + $0x4d8] sm:$0xff] }
 0x47c   :  { %7827 = vmatprep.subr.bf16.mxu1 %v9286_v46  ;;  %v4321_v46 = vld [vmem:[#allocation11 + $0x390] sm:$0xff] }
 0x47d   :  { %v9339_v12 = vcombine.low %v4321_v46, %v4325_v3 }
 0x47e   :  { %7664 = vmatpush1.bf16.msra.mxu0 %v9283_v42  ;;  %v9333_v42 = vcombine.low %v4314_v59, %v4318_v0  ;;  %v4366_v59 = vld [vmem:[#allocation11 + $0x4f8] sm:$0xff] }
 0x47f   :  { %7828 = vmatpush1.bf16.msra.mxu1 %v9285_v29  ;;  %7665 = vmatprep.subr.bf16.mxu0 %v9292_v61  ;;  %v9340_v29 = vcombine.high %v4321_v46, %v4325_v3  ;;  %v9342_v61 = vcombine.high %v4322_v4, %v4326_v6  ;;  %v4370_v46 = vld [vmem:[#allocation11 + $0x518] sm:$0xff] }
 0x480   :  { %7829 = vmatprep.subr.bf16.mxu1 %v9294_v8  ;;  %v4329_v8 = vld [vmem:[#allocation11 + $0x3d0] sm:$0xff]  ;;  %v4374_v3 = vld [vmem:[#allocation11 + $0x538] sm:$0xff] }
 0x481   :  { %v9347_v13 = vcombine.low %v4329_v8, %v4333_v9 }
 0x482   :  { %7666 = vmatpush1.bf16.msra.mxu0 %v9291_v20  ;;  %v9341_v20 = vcombine.low %v4322_v4, %v4326_v6  ;;  %v9381_v4 = vcombine.low %v4362_v58, %v4366_v59 }
 0x483   :  { %7830 = vmatpush1.bf16.msra.mxu1 %v9293_v14  ;;  %7667 = vmatprep.subr.bf16.mxu0 %v9300_v16  ;;  %v9348_v14 = vcombine.high %v4329_v8, %v4333_v9  ;;  %v9350_v16 = vcombine.high %v4330_v24, %v4334_v11  ;;  %v4382_v8 = vld [vmem:[#allocation11 + $0x578] sm:$0xff] }
 0x484   :  { %7831 = vmatprep.subr.bf16.mxu1 %v9302_v50  ;;  %v4337_v50 = vld [vmem:[#allocation11 + $0x410] sm:$0xff] }
 0x485   :  { %v9355_v27 = vcombine.low %v4337_v50, %v4341_v21 }
 0x486   :  { %7668 = vmatpush1.bf16.msra.mxu0 %v9299_v53  ;;  %v9349_v53 = vcombine.low %v4330_v24, %v4334_v11  ;;  %v9389_v24 = vcombine.low %v4370_v46, %v4374_v3 }
 0x487   :  { %7832 = vmatpush1.bf16.msra.mxu1 %v9301_v33  ;;  %7669 = vmatprep.subr.bf16.mxu0 %v9308_v63  ;;  %v9356_v33 = vcombine.high %v4337_v50, %v4341_v21  ;;  %v9358_v63 = vcombine.high %v4338_v23, %v4342_v32  ;;  %v4390_v50 = vld [vmem:[#allocation11 + $0x5b8] sm:$0xff] }
 0x488   :  { %7833 = vmatprep.subr.bf16.mxu1 %v9310_v34  ;;  %v4345_v34 = vld [vmem:[#allocation11 + $0x450] sm:$0xff] }
 0x489   :  { %v9363_v47 = vcombine.low %v4345_v34, %v4349_v5 }
 0x48a   :  { %7670 = vmatpush1.bf16.msra.mxu0 %v9307_v36  ;;  %v9357_v36 = vcombine.low %v4338_v23, %v4342_v32 }
 0x48b   :  { %7834 = vmatpush1.bf16.msra.mxu1 %v9309_v37  ;;  %7671 = vmatprep.subr.bf16.mxu0 %v9316_v39  ;;  %v9364_v37 = vcombine.high %v4345_v34, %v4349_v5  ;;  %v4353_v39 = vld [vmem:[#allocation11 + $0x490] sm:$0xff]  ;;  %v4398_v34 = vld [vmem:[#allocation11 + $0x5f8] sm:$0xff] }
 0x48c   :  { %7835 = vmatprep.subr.bf16.mxu1 %v9318_v44  ;;  %v4357_v44 = vld [vmem:[#allocation11 + $0x4b0] sm:$0xff] }
 0x48d   :  { %v9371_v0 = vcombine.low %v4353_v39, %v4357_v44 }
 0x48e   :  { %7672 = vmatpush1.bf16.msra.mxu0 %v9315_v48  ;;  %v9365_v48 = vcombine.low %v4346_v35, %v4350_v41 }
 0x48f   :  { %7836 = vmatpush1.bf16.msra.mxu1 %v9317_v51  ;;  %7673 = vmatprep.subr.bf16.mxu0 %v9324_v52  ;;  %v9372_v51 = vcombine.high %v4353_v39, %v4357_v44  ;;  %v9374_v52 = vcombine.high %v4354_v19, %v4358_v49  ;;  %v4402_v39 = vld [vmem:[#allocation11 + $0x618] sm:$0xff] }
 0x490   :  { %7837 = vmatprep.subr.bf16.mxu1 %v9326_v55  ;;  %v4361_v55 = vld [vmem:[#allocation11 + $0x4d0] sm:$0xff]  ;;  %v4406_v44 = vld [vmem:[#allocation11 + $0x638] sm:$0xff] }
 0x492   :  { %7674 = vmatpush1.bf16.msra.mxu0 %v9323_v15  ;;  %v9380_v15 = vcombine.high %v4361_v55, %v4365_v26 }
 0x493   :  { %7838 = vmatpush1.bf16.msra.mxu1 %v9325_v1  ;;  %7675 = vmatprep.subr.bf16.mxu0 %v9332_v2  ;;  %v9382_v1 = vcombine.high %v4362_v58, %v4366_v59  ;;  %v4369_v2 = vld [vmem:[#allocation11 + $0x510] sm:$0xff]  ;;  %v9421_v58 = vcombine.low %v4402_v39, %v4406_v44 }
 0x494   :  { %7839 = vmatprep.subr.bf16.mxu1 %v9334_v22  ;;  %v4373_v22 = vld [vmem:[#allocation11 + $0x530] sm:$0xff] }
 0x495   :  { %v9388_v6 = vcombine.high %v4369_v2, %v4373_v22  ;;  %v9387_v9 = vcombine.low %v4369_v2, %v4373_v22  ;;  %v4422_v2 = vld [vmem:[#allocation11 + $0x6b8] sm:$0xff] }
 0x496   :  { %7676 = vmatpush1.bf16.msra.mxu0 %v9331_v7  ;;  %v9390_v7 = vcombine.high %v4370_v46, %v4374_v3 }
 0x497   :  { %7840 = vmatpush1.bf16.msra.mxu1 %v9333_v42  ;;  %7677 = vmatprep.subr.bf16.mxu0 %v9340_v29  ;;  %v4377_v42 = vld [vmem:[#allocation11 + $0x550] sm:$0xff] }
 0x498   :  { %7841 = vmatprep.subr.bf16.mxu1 %v9342_v61  ;;  %v4381_v29 = vld [vmem:[#allocation11 + $0x570] sm:$0xff]  ;;  %v4378_v61 = vld [vmem:[#allocation11 + $0x558] sm:$0xff] }
 0x499   :  { %v9396_v11 = vcombine.high %v4377_v42, %v4381_v29  ;;  %v9395_v21 = vcombine.low %v4377_v42, %v4381_v29  ;;  %v9397_v23 = vcombine.low %v4378_v61, %v4382_v8  ;;  %v4430_v42 = vld [vmem:[#allocation11 + $0x6f8] sm:$0xff] }
 0x49a   :  { %7678 = vmatpush1.bf16.msra.mxu0 %v9339_v12  ;;  %v9398_v12 = vcombine.high %v4378_v61, %v4382_v8 }
 0x49b   :  { %7842 = vmatpush1.bf16.msra.mxu1 %v9341_v20  ;;  %7679 = vmatprep.subr.bf16.mxu0 %v9348_v14  ;;  %v4385_v20 = vld [vmem:[#allocation11 + $0x590] sm:$0xff] }
 0x49c   :  { %7843 = vmatprep.subr.bf16.mxu1 %v9350_v16  ;;  %v4389_v14 = vld [vmem:[#allocation11 + $0x5b0] sm:$0xff]  ;;  %v4386_v16 = vld [vmem:[#allocation11 + $0x598] sm:$0xff] }
 0x49d   :  { %v9404_v32 = vcombine.high %v4385_v20, %v4389_v14  ;;  %v9403_v5 = vcombine.low %v4385_v20, %v4389_v14  ;;  %v4438_v20 = vld [vmem:[#allocation11 + $0x738] sm:$0xff] }
 0x49e   :  { %7680 = vmatpush1.bf16.msra.mxu0 %v9347_v13  ;;  %v9406_v13 = vcombine.high %v4386_v16, %v4390_v50 }
 0x49f   :  { %7844 = vmatpush1.bf16.msra.mxu1 %v9349_v53  ;;  %7690 = vmatprep.subr.bf16.mxu0 %v9356_v33  ;;  %v4393_v53 = vld [vmem:[#allocation11 + $0x5d0] sm:$0xff] }
 0x4a0   :  { %7854 = vmatprep.subr.bf16.mxu1 %v9358_v63  ;;  %v4397_v33 = vld [vmem:[#allocation11 + $0x5f0] sm:$0xff]  ;;  %v4394_v63 = vld [vmem:[#allocation11 + $0x5d8] sm:$0xff] }
 0x4a1   :  { %7682 = vmatmul.mubr.bf16.vlgmr.msra.gmra.mrb[20].mxu0 %v10633_v57  ;;  %v9412_v35 = vcombine.high %v4393_v53, %v4397_v33  ;;  %v9414_v41 = vcombine.high %v4394_v63, %v4398_v34 }
 0x4a2   :  { %7846 = vmatmul.mubr.bf16.vlgmr.msra.gmra.mrb[20].mxu1 %v10633_v57  ;;  %7691 = vmatpush1.bf16.msra.mxu0 %v9355_v27  ;;  %v9373_v57 = vcombine.low %v4354_v19, %v4358_v49  ;;  %v9405_v27 = vcombine.low %v4386_v16, %v4390_v50  ;;  %v9413_v19 = vcombine.low %v4394_v63, %v4398_v34 }
 0x4a3   :  { %7722 = vmatprep.mubr.bf16.mxu0 %v10635_v60  ;;  %7855 = vmatpush1.bf16.msra.mxu1 %v9357_v36  ;;  %v4401_v36 = vld [vmem:[#allocation11 + $0x610] sm:$0xff] }
 0x4a4   :  { %7886 = vmatprep.mubr.bf16.mxu1 %v10635_v60  ;;  %7692 = vmatprep.subr.bf16.mxu0 %v9364_v37  ;;  %v9379_v60 = vcombine.low %v4361_v55, %v4365_v26  ;;  %v4405_v37 = vld [vmem:[#allocation11 + $0x630] sm:$0xff]  ;;  %v4414_v55 = vld [vmem:[#allocation11 + $0x678] sm:$0xff] }
 0x4a5   :  { %7856 = vmatprep.subr.bf16.mxu1 %v9366_v45  ;;  %v9411_v45 = vcombine.low %v4393_v53, %v4397_v33  ;;  %v9420_v49 = vcombine.high %v4401_v36, %v4405_v37  ;;  %v9419_v26 = vcombine.low %v4401_v36, %v4405_v37  ;;  %v4446_v53 = vld [vmem:[#allocation11 + $0x778] sm:$0xff] }
 0x4a6   :  { %7693 = vmatpush1.bf16.msra.mxu0 %v9363_v47  ;;  %v9422_v47 = vcombine.high %v4402_v39, %v4406_v44  ;;  %v4454_v36 = vld [vmem:[#allocation11 + $0x7b8] sm:$0xff] }
 0x4a7   :  { %7857 = vmatpush1.bf16.msra.mxu1 %v9365_v48  ;;  %7694 = vmatprep.subr.bf16.mxu0 %v9372_v51  ;;  %v4409_v48 = vld [vmem:[#allocation11 + $0x650] sm:$0xff] }
 0x4a8   :  { %7858 = vmatprep.subr.bf16.mxu1 %v9374_v52  ;;  %v4413_v51 = vld [vmem:[#allocation11 + $0x670] sm:$0xff]  ;;  %v4410_v52 = vld [vmem:[#allocation11 + $0x658] sm:$0xff] }
 0x4a9   :  { %v9428_v59 = vcombine.high %v4409_v48, %v4413_v51  ;;  %v9427_v22 = vcombine.low %v4409_v48, %v4413_v51  ;;  %v9429_v46 = vcombine.low %v4410_v52, %v4414_v55  ;;  %v4462_v48 = vld [vmem:[#allocation11 + $0x7f8] sm:$0xff] }
 0x4aa   :  { %7695 = vmatpush1.bf16.msra.mxu0 %v9371_v0  ;;  %v9430_v0 = vcombine.high %v4410_v52, %v4414_v55 }
 0x4ab   :  { %7859 = vmatpush1.bf16.msra.mxu1 %v9373_v57  ;;  %7696 = vmatprep.subr.bf16.mxu0 %v9380_v15  ;;  %v4417_v57 = vld [vmem:[#allocation11 + $0x690] sm:$0xff] }
 0x4ac   :  { %7860 = vmatprep.subr.bf16.mxu1 %v9382_v1  ;;  %v4421_v15 = vld [vmem:[#allocation11 + $0x6b0] sm:$0xff]  ;;  %v4418_v1 = vld [vmem:[#allocation11 + $0x698] sm:$0xff] }
 0x4ad   :  { %v9436_v3 = vcombine.high %v4417_v57, %v4421_v15  ;;  %v9435_v29 = vcombine.low %v4417_v57, %v4421_v15  ;;  %v9437_v61 = vcombine.low %v4418_v1, %v4422_v2  ;;  %v4470_v57 = vld [vmem:[#allocation11 + $0x838] sm:$0xff] }
 0x4ae   :  { %7697 = vmatpush1.bf16.msra.mxu0 %v9379_v60  ;;  %v9438_v60 = vcombine.high %v4418_v1, %v4422_v2 }
 0x4af   :  { %7861 = vmatpush1.bf16.msra.mxu1 %v9381_v4  ;;  %7698 = vmatprep.subr.bf16.mxu0 %v9388_v6  ;;  %v4425_v4 = vld [vmem:[#allocation11 + $0x6d0] sm:$0xff] }
 0x4b0   :  { %7862 = vmatprep.subr.bf16.mxu1 %v9390_v7  ;;  %v4429_v6 = vld [vmem:[#allocation11 + $0x6f0] sm:$0xff]  ;;  %v4426_v7 = vld [vmem:[#allocation11 + $0x6d8] sm:$0xff] }
 0x4b1   :  { %v9444_v8 = vcombine.high %v4425_v4, %v4429_v6  ;;  %v9443_v14 = vcombine.low %v4425_v4, %v4429_v6  ;;  %v9445_v16 = vcombine.low %v4426_v7, %v4430_v42  ;;  %v4474_v4 = vld [vmem:[#allocation11 + $0x858] sm:$0xff] }
 0x4b2   :  { %7699 = vmatpush1.bf16.msra.mxu0 %v9387_v9  ;;  %v9446_v9 = vcombine.high %v4426_v7, %v4430_v42  ;;  %v4478_v6 = vld [vmem:[#allocation11 + $0x878] sm:$0xff] }
 0x4b3   :  { %7863 = vmatpush1.bf16.msra.mxu1 %v9389_v24  ;;  %7700 = vmatprep.subr.bf16.mxu0 %v9396_v11  ;;  %v4433_v24 = vld [vmem:[#allocation11 + $0x710] sm:$0xff] }
 0x4b4   :  { %7864 = vmatprep.subr.bf16.mxu1 %v9398_v12  ;;  %v4437_v11 = vld [vmem:[#allocation11 + $0x730] sm:$0xff]  ;;  %v4434_v12 = vld [vmem:[#allocation11 + $0x718] sm:$0xff] }
 0x4b5   :  { %v9452_v50 = vcombine.high %v4433_v24, %v4437_v11  ;;  %v9451_v33 = vcombine.low %v4433_v24, %v4437_v11  ;;  %v9453_v63 = vcombine.low %v4434_v12, %v4438_v20  ;;  %v4486_v24 = vld [vmem:[#allocation11 + $0x8b8] sm:$0xff] }
 0x4b6   :  { %7701 = vmatpush1.bf16.msra.mxu0 %v9395_v21  ;;  %v9454_v21 = vcombine.high %v4434_v12, %v4438_v20  ;;  %v9493_v12 = vcombine.low %v4474_v4, %v4478_v6 }
 0x4b7   :  { %7865 = vmatpush1.bf16.msra.mxu1 %v9397_v23  ;;  %7702 = vmatprep.subr.bf16.mxu0 %v9404_v32  ;;  %v4441_v23 = vld [vmem:[#allocation11 + $0x750] sm:$0xff] }
 0x4b8   :  { %7866 = vmatprep.subr.bf16.mxu1 %v9406_v13  ;;  %v4445_v32 = vld [vmem:[#allocation11 + $0x770] sm:$0xff]  ;;  %v4442_v13 = vld [vmem:[#allocation11 + $0x758] sm:$0xff] }
 0x4b9   :  { %v9460_v34 = vcombine.high %v4441_v23, %v4445_v32  ;;  %v9459_v37 = vcombine.low %v4441_v23, %v4445_v32  ;;  %v9461_v39 = vcombine.low %v4442_v13, %v4446_v53  ;;  %v4494_v23 = vld [vmem:[#allocation11 + $0x8f8] sm:$0xff] }
 0x4ba   :  { %7703 = vmatpush1.bf16.msra.mxu0 %v9403_v5  ;;  %v9462_v5 = vcombine.high %v4442_v13, %v4446_v53 }
 0x4bb   :  { %7867 = vmatpush1.bf16.msra.mxu1 %v9405_v27  ;;  %7704 = vmatprep.subr.bf16.mxu0 %v9412_v35  ;;  %v4449_v27 = vld [vmem:[#allocation11 + $0x790] sm:$0xff] }
 0x4bc   :  { %7868 = vmatprep.subr.bf16.mxu1 %v9414_v41  ;;  %v4453_v35 = vld [vmem:[#allocation11 + $0x7b0] sm:$0xff]  ;;  %v4450_v41 = vld [vmem:[#allocation11 + $0x798] sm:$0xff] }
 0x4bd   :  { %v9468_v44 = vcombine.high %v4449_v27, %v4453_v35  ;;  %v9467_v51 = vcombine.low %v4449_v27, %v4453_v35  ;;  %v9469_v52 = vcombine.low %v4450_v41, %v4454_v36 }
 0x4be   :  { %7705 = vmatpush1.bf16.msra.mxu0 %v9411_v45  ;;  %v9470_v45 = vcombine.high %v4450_v41, %v4454_v36  ;;  %v4505_v36 = vld [vmem:[#allocation11 + $0x950] sm:$0xff] }
 0x4bf   :  { %7869 = vmatpush1.bf16.msra.mxu1 %v9413_v19  ;;  %7706 = vmatprep.subr.bf16.mxu0 %v9420_v49  ;;  %v4457_v19 = vld [vmem:[#allocation11 + $0x7d0] sm:$0xff] }
 0x4c0   :  { %7870 = vmatprep.subr.bf16.mxu1 %v9422_v47  ;;  %v4461_v49 = vld [vmem:[#allocation11 + $0x7f0] sm:$0xff]  ;;  %v4458_v47 = vld [vmem:[#allocation11 + $0x7d8] sm:$0xff] }
 0x4c1   :  { %v9476_v55 = vcombine.high %v4457_v19, %v4461_v49  ;;  %v9475_v15 = vcombine.low %v4457_v19, %v4461_v49  ;;  %v9477_v1 = vcombine.low %v4458_v47, %v4462_v48 }
 0x4c2   :  { %7707 = vmatpush1.bf16.msra.mxu0 %v9419_v26  ;;  %v9478_v26 = vcombine.high %v4458_v47, %v4462_v48  ;;  %v4513_v48 = vld [vmem:[#allocation11 + $0x990] sm:$0xff] }
 0x4c3   :  { %7871 = vmatpush1.bf16.msra.mxu1 %v9421_v58  ;;  %7708 = vmatprep.subr.bf16.mxu0 %v9428_v59  ;;  %v4465_v58 = vld [vmem:[#allocation11 + $0x810] sm:$0xff] }
 0x4c4   :  { %7872 = vmatprep.subr.bf16.mxu1 %v9430_v0  ;;  %v4469_v59 = vld [vmem:[#allocation11 + $0x830] sm:$0xff]  ;;  %v4466_v0 = vld [vmem:[#allocation11 + $0x818] sm:$0xff] }
 0x4c5   :  { %v9484_v2 = vcombine.high %v4465_v58, %v4469_v59  ;;  %v9485_v7 = vcombine.low %v4466_v0, %v4470_v57 }
 0x4c6   :  { %7709 = vmatpush1.bf16.msra.mxu0 %v9427_v22  ;;  %v9486_v22 = vcombine.high %v4466_v0, %v4470_v57  ;;  %v4521_v57 = vld [vmem:[#allocation11 + $0x9d0] sm:$0xff] }
 0x4c7   :  { %7873 = vmatpush1.bf16.msra.mxu1 %v9429_v46  ;;  %7710 = vmatprep.subr.bf16.mxu0 %v9436_v3  ;;  %v4473_v46 = vld [vmem:[#allocation11 + $0x850] sm:$0xff] }
 0x4c8   :  { %7874 = vmatprep.subr.bf16.mxu1 %v9438_v60  ;;  %v4477_v3 = vld [vmem:[#allocation11 + $0x870] sm:$0xff]  ;;  %v9483_v60 = vcombine.low %v4465_v58, %v4469_v59 }
 0x4c9   :  { %v9492_v42 = vcombine.high %v4473_v46, %v4477_v3  ;;  %v9491_v11 = vcombine.low %v4473_v46, %v4477_v3 }
 0x4ca   :  { %7711 = vmatpush1.bf16.msra.mxu0 %v9435_v29  ;;  %v4481_v29 = vld [vmem:[#allocation11 + $0x890] sm:$0xff] }
 0x4cb   :  { %7875 = vmatpush1.bf16.msra.mxu1 %v9437_v61  ;;  %7712 = vmatprep.subr.bf16.mxu0 %v9444_v8  ;;  %v4485_v61 = vld [vmem:[#allocation11 + $0x8b0] sm:$0xff]  ;;  %v9494_v8 = vcombine.high %v4474_v4, %v4478_v6 }
 0x4cc   :  { %7876 = vmatprep.subr.bf16.mxu1 %v9446_v9  ;;  %v4482_v9 = vld [vmem:[#allocation11 + $0x898] sm:$0xff]  ;;  %v9500_v20 = vcombine.high %v4481_v29, %v4485_v61  ;;  %v9499_v32 = vcombine.low %v4481_v29, %v4485_v61  ;;  %v4529_v4 = vld [vmem:[#allocation11 + $0xa10] sm:$0xff] }
 0x4cd   :  { %v4533_v6 = vld [vmem:[#allocation11 + $0xa30] sm:$0xff] }
 0x4ce   :  { %7713 = vmatpush1.bf16.msra.mxu0 %v9443_v14  ;;  %v9502_v14 = vcombine.high %v4482_v9, %v4486_v24 }
 0x4cf   :  { %7877 = vmatpush1.bf16.msra.mxu1 %v9445_v16  ;;  %7714 = vmatprep.subr.bf16.mxu0 %v9452_v50  ;;  %v4489_v16 = vld [vmem:[#allocation11 + $0x8d0] sm:$0xff] }
 0x4d0   :  { %7878 = vmatprep.subr.bf16.mxu1 %v9454_v21  ;;  %v4493_v50 = vld [vmem:[#allocation11 + $0x8f0] sm:$0xff]  ;;  %v4490_v21 = vld [vmem:[#allocation11 + $0x8d8] sm:$0xff] }
 0x4d1   :  { %v9508_v13 = vcombine.high %v4489_v16, %v4493_v50  ;;  %v9510_v53 = vcombine.high %v4490_v21, %v4494_v23  ;;  %v9509_v27 = vcombine.low %v4490_v21, %v4494_v23  ;;  %v4545_v23 = vld [vmem:[#allocation11 + $0xa90] sm:$0xff] }
 0x4d2   :  { %7715 = vmatpush1.bf16.msra.mxu0 %v9451_v33  ;;  %v4497_v33 = vld [vmem:[#allocation11 + $0x910] sm:$0xff] }
 0x4d3   :  { %7879 = vmatpush1.bf16.msra.mxu1 %v9453_v63  ;;  %7716 = vmatprep.subr.bf16.mxu0 %v9460_v34  ;;  %v4501_v63 = vld [vmem:[#allocation11 + $0x930] sm:$0xff]  ;;  %v4498_v34 = vld [vmem:[#allocation11 + $0x918] sm:$0xff] }
 0x4d4   :  { %7880 = vmatprep.subr.bf16.mxu1 %v9462_v5  ;;  %v4502_v5 = vld [vmem:[#allocation11 + $0x938] sm:$0xff]  ;;  %v9516_v35 = vcombine.high %v4497_v33, %v4501_v63 }
 0x4d5   :  { %v9518_v41 = vcombine.high %v4498_v34, %v4502_v5  ;;  %v9517_v19 = vcombine.low %v4498_v34, %v4502_v5  ;;  %v4553_v5 = vld [vmem:[#allocation11 + $0xad0] sm:$0xff] }
 0x4d6   :  { %7717 = vmatpush1.bf16.msra.mxu0 %v9459_v37  ;;  %v4509_v37 = vld [vmem:[#allocation11 + $0x970] sm:$0xff] }
 0x4d7   :  { %7881 = vmatpush1.bf16.msra.mxu1 %v9461_v39  ;;  %7718 = vmatprep.subr.bf16.mxu0 %v9468_v44  ;;  %v4506_v39 = vld [vmem:[#allocation11 + $0x958] sm:$0xff]  ;;  %v9524_v49 = vcombine.high %v4505_v36, %v4509_v37 }
 0x4d8   :  { %7882 = vmatprep.subr.bf16.mxu1 %v9470_v45  ;;  %v4510_v44 = vld [vmem:[#allocation11 + $0x978] sm:$0xff]  ;;  %v9515_v45 = vcombine.low %v4497_v33, %v4501_v63 }
 0x4d9   :  { %v9526_v47 = vcombine.high %v4506_v39, %v4510_v44  ;;  %v9525_v58 = vcombine.low %v4506_v39, %v4510_v44  ;;  %v4561_v44 = vld [vmem:[#allocation11 + $0xb10] sm:$0xff] }
 0x4da   :  { %7719 = vmatpush1.bf16.msra.mxu0 %v9467_v51  ;;  %v4517_v51 = vld [vmem:[#allocation11 + $0x9b0] sm:$0xff] }
 0x4db   :  { %7883 = vmatpush1.bf16.msra.mxu1 %v9469_v52  ;;  %7720 = vmatprep.subr.bf16.mxu0 %v9476_v55  ;;  %v4514_v52 = vld [vmem:[#allocation11 + $0x998] sm:$0xff]  ;;  %v9532_v59 = vcombine.high %v4513_v48, %v4517_v51 }
 0x4dc   :  { %7884 = vmatprep.subr.bf16.mxu1 %v9478_v26  ;;  %v4518_v55 = vld [vmem:[#allocation11 + $0x9b8] sm:$0xff]  ;;  %v9523_v26 = vcombine.low %v4505_v36, %v4509_v37 }
 0x4dd   :  { %v9534_v0 = vcombine.high %v4514_v52, %v4518_v55  ;;  %v9533_v46 = vcombine.low %v4514_v52, %v4518_v55  ;;  %v4569_v55 = vld [vmem:[#allocation11 + $0xb50] sm:$0xff] }
 0x4de   :  { %7721 = vmatpush1.bf16.msra.mxu0 %v9475_v15  ;;  %v4525_v15 = vld [vmem:[#allocation11 + $0x9f0] sm:$0xff] }
 0x4df   :  { %7885 = vmatpush1.bf16.msra.mxu1 %v9477_v1  ;;  %7731 = vmatprep.subr.bf16.mxu0 %v9484_v2  ;;  %v4522_v1 = vld [vmem:[#allocation11 + $0x9d8] sm:$0xff]  ;;  %v9540_v3 = vcombine.high %v4521_v57, %v4525_v15  ;;  %v9539_v29 = vcombine.low %v4521_v57, %v4525_v15 }
 0x4e0   :  { %7895 = vmatprep.subr.bf16.mxu1 %v9486_v22  ;;  %v4526_v2 = vld [vmem:[#allocation11 + $0x9f8] sm:$0xff]  ;;  %v9531_v22 = vcombine.low %v4513_v48, %v4517_v51 }
 0x4e1   :  { %7723 = vmatmul.mubr.bf16.vlgmr.msra.gmra.mrb[20].mxu0 %v10644_v38  ;;  %v9541_v61 = vcombine.low %v4522_v1, %v4526_v2 }
 0x4e2   :  { %7887 = vmatmul.mubr.bf16.vlgmr.msra.gmra.mrb[20].mxu1 %v10644_v38  ;;  %7732 = vmatpush1.bf16.msra.mxu0 %v9483_v60  ;;  %v9501_v38 = vcombine.low %v4482_v9, %v4486_v24  ;;  %v9542_v60 = vcombine.high %v4522_v1, %v4526_v2  ;;  %v4537_v24 = vld [vmem:[#allocation11 + $0xa50] sm:$0xff] }
 0x4e3   :  { %7763 = vmatprep.mubr.bf16.mxu0 %v10658_v62  ;;  %7896 = vmatpush1.bf16.msra.mxu1 %v9485_v7  ;;  %v4530_v7 = vld [vmem:[#allocation11 + $0xa18] sm:$0xff]  ;;  %v4577_v2 = vld [vmem:[#allocation11 + $0xb90] sm:$0xff] }
 0x4e4   :  { %7927 = vmatprep.mubr.bf16.mxu1 %v10658_v62  ;;  %7733 = vmatprep.subr.bf16.mxu0 %v9492_v42  ;;  %v9507_v62 = vcombine.low %v4489_v16, %v4493_v50  ;;  %v4534_v42 = vld [vmem:[#allocation11 + $0xa38] sm:$0xff] }
 0x4e5   :  { %7897 = vmatprep.subr.bf16.mxu1 %v9494_v8  ;;  %v9548_v8 = vcombine.high %v4529_v4, %v4533_v6  ;;  %v9550_v9 = vcombine.high %v4530_v7, %v4534_v42  ;;  %v9549_v16 = vcombine.low %v4530_v7, %v4534_v42  ;;  %v4585_v42 = vld [vmem:[#allocation11 + $0xbd0] sm:$0xff] }
 0x4e6   :  { %7734 = vmatpush1.bf16.msra.mxu0 %v9491_v11  ;;  %v4541_v11 = vld [vmem:[#allocation11 + $0xa70] sm:$0xff] }
 0x4e7   :  { %7898 = vmatpush1.bf16.msra.mxu1 %v9493_v12  ;;  %7735 = vmatprep.subr.bf16.mxu0 %v9500_v20  ;;  %v4538_v12 = vld [vmem:[#allocation11 + $0xa58] sm:$0xff]  ;;  %v9556_v50 = vcombine.high %v4537_v24, %v4541_v11 }
 0x4e8   :  { %7899 = vmatprep.subr.bf16.mxu1 %v9502_v14  ;;  %v4542_v20 = vld [vmem:[#allocation11 + $0xa78] sm:$0xff]  ;;  %v9547_v14 = vcombine.low %v4529_v4, %v4533_v6 }
 0x4e9   :  { %v9558_v21 = vcombine.high %v4538_v12, %v4542_v20  ;;  %v9557_v33 = vcombine.low %v4538_v12, %v4542_v20  ;;  %v4593_v20 = vld [vmem:[#allocation11 + $0xc10] sm:$0xff] }
 0x4ea   :  { %7736 = vmatpush1.bf16.msra.mxu0 %v9499_v32  ;;  %v4549_v32 = vld [vmem:[#allocation11 + $0xab0] sm:$0xff] }
 0x4eb   :  { %7900 = vmatpush1.bf16.msra.mxu1 %v9501_v38  ;;  %7737 = vmatprep.subr.bf16.mxu0 %v9508_v13  ;;  %v4546_v38 = vld [vmem:[#allocation11 + $0xa98] sm:$0xff]  ;;  %v9564_v63 = vcombine.high %v4545_v23, %v4549_v32 }
 0x4ec   :  { %7901 = vmatprep.subr.bf16.mxu1 %v9510_v53  ;;  %v4550_v13 = vld [vmem:[#allocation11 + $0xab8] sm:$0xff]  ;;  %v9555_v53 = vcombine.low %v4537_v24, %v4541_v11 }
 0x4ed   :  { %v9566_v34 = vcombine.high %v4546_v38, %v4550_v13  ;;  %v9565_v36 = vcombine.low %v4546_v38, %v4550_v13  ;;  %v4601_v13 = vld [vmem:[#allocation11 + $0xc50] sm:$0xff] }
 0x4ee   :  { %7738 = vmatpush1.bf16.msra.mxu0 %v9507_v62  ;;  %v4557_v62 = vld [vmem:[#allocation11 + $0xaf0] sm:$0xff] }
 0x4ef   :  { %7902 = vmatpush1.bf16.msra.mxu1 %v9509_v27  ;;  %7739 = vmatprep.subr.bf16.mxu0 %v9516_v35  ;;  %v4554_v27 = vld [vmem:[#allocation11 + $0xad8] sm:$0xff]  ;;  %v9572_v37 = vcombine.high %v4553_v5, %v4557_v62 }
 0x4f0   :  { %7903 = vmatprep.subr.bf16.mxu1 %v9518_v41  ;;  %v4558_v35 = vld [vmem:[#allocation11 + $0xaf8] sm:$0xff]  ;;  %v9563_v41 = vcombine.low %v4545_v23, %v4549_v32 }
 0x4f1   :  { %v9574_v39 = vcombine.high %v4554_v27, %v4558_v35  ;;  %v9573_v48 = vcombine.low %v4554_v27, %v4558_v35  ;;  %v4609_v27 = vld [vmem:[#allocation11 + $0xc90] sm:$0xff] }
 0x4f2   :  { %7740 = vmatpush1.bf16.msra.mxu0 %v9515_v45  ;;  %v4565_v45 = vld [vmem:[#allocation11 + $0xb30] sm:$0xff] }
 0x4f3   :  { %7904 = vmatpush1.bf16.msra.mxu1 %v9517_v19  ;;  %7741 = vmatprep.subr.bf16.mxu0 %v9524_v49  ;;  %v4562_v19 = vld [vmem:[#allocation11 + $0xb18] sm:$0xff]  ;;  %v9580_v51 = vcombine.high %v4561_v44, %v4565_v45  ;;  %v4613_v35 = vld [vmem:[#allocation11 + $0xcb0] sm:$0xff] }
 0x4f4   :  { %7905 = vmatprep.subr.bf16.mxu1 %v9526_v47  ;;  %v4566_v49 = vld [vmem:[#allocation11 + $0xb38] sm:$0xff]  ;;  %v9571_v47 = vcombine.low %v4553_v5, %v4557_v62 }
 0x4f5   :  { %v9582_v52 = vcombine.high %v4562_v19, %v4566_v49  ;;  %v9581_v57 = vcombine.low %v4562_v19, %v4566_v49  ;;  %v4617_v49 = vld [vmem:[#allocation11 + $0xcd0] sm:$0xff] }
 0x4f6   :  { %7742 = vmatpush1.bf16.msra.mxu0 %v9523_v26  ;;  %v4573_v26 = vld [vmem:[#allocation11 + $0xb70] sm:$0xff] }
 0x4f7   :  { %7906 = vmatpush1.bf16.msra.mxu1 %v9525_v58  ;;  %7743 = vmatprep.subr.bf16.mxu0 %v9532_v59  ;;  %v4570_v58 = vld [vmem:[#allocation11 + $0xb58] sm:$0xff]  ;;  %v9588_v15 = vcombine.high %v4569_v55, %v4573_v26 }
 0x4f8   :  { %7907 = vmatprep.subr.bf16.mxu1 %v9534_v0  ;;  %v4574_v59 = vld [vmem:[#allocation11 + $0xb78] sm:$0xff]  ;;  %v9579_v0 = vcombine.low %v4561_v44, %v4565_v45  ;;  %v9628_v45 = vcombine.high %v4609_v27, %v4613_v35 }
 0x4f9   :  { %v9590_v1 = vcombine.high %v4570_v58, %v4574_v59  ;;  %v9589_v4 = vcombine.low %v4570_v58, %v4574_v59  ;;  %v4625_v58 = vld [vmem:[#allocation11 + $0xd10] sm:$0xff] }
 0x4fa   :  { %7744 = vmatpush1.bf16.msra.mxu0 %v9531_v22  ;;  %v4581_v22 = vld [vmem:[#allocation11 + $0xbb0] sm:$0xff] }
 0x4fb   :  { %7908 = vmatpush1.bf16.msra.mxu1 %v9533_v46  ;;  %7745 = vmatprep.subr.bf16.mxu0 %v9540_v3  ;;  %v4578_v46 = vld [vmem:[#allocation11 + $0xb98] sm:$0xff]  ;;  %v9596_v6 = vcombine.high %v4577_v2, %v4581_v22  ;;  %v4629_v59 = vld [vmem:[#allocation11 + $0xd30] sm:$0xff] }
 0x4fc   :  { %7909 = vmatprep.subr.bf16.mxu1 %v9542_v60  ;;  %v4582_v3 = vld [vmem:[#allocation11 + $0xbb8] sm:$0xff]  ;;  %v9587_v60 = vcombine.low %v4569_v55, %v4573_v26 }
 0x4fd   :  { %v9598_v7 = vcombine.high %v4578_v46, %v4582_v3  ;;  %v9597_v24 = vcombine.low %v4578_v46, %v4582_v3  ;;  %v4637_v46 = vld [vmem:[#allocation11 + $0xd70] sm:$0xff]  ;;  %v4634_v3 = vld [vmem:[#allocation11 + $0xd58] sm:$0xff] }
 0x4fe   :  { %7746 = vmatpush1.bf16.msra.mxu0 %v9539_v29  ;;  %v4589_v29 = vld [vmem:[#allocation11 + $0xbf0] sm:$0xff] }
 0x4ff   :  { %7910 = vmatpush1.bf16.msra.mxu1 %v9541_v61  ;;  %7747 = vmatprep.subr.bf16.mxu0 %v9548_v8  ;;  %v4586_v61 = vld [vmem:[#allocation11 + $0xbd8] sm:$0xff]  ;;  %v9604_v11 = vcombine.high %v4585_v42, %v4589_v29 }
 0x500   :  { %7911 = vmatprep.subr.bf16.mxu1 %v9550_v9  ;;  %v4590_v8 = vld [vmem:[#allocation11 + $0xbf8] sm:$0xff]  ;;  %v9595_v9 = vcombine.low %v4577_v2, %v4581_v22  ;;  %v4633_v22 = vld [vmem:[#allocation11 + $0xd50] sm:$0xff] }
 0x501   :  { %v9606_v12 = vcombine.high %v4586_v61, %v4590_v8  ;;  %v9605_v23 = vcombine.low %v4586_v61, %v4590_v8  ;;  %v4645_v61 = vld [vmem:[#allocation11 + $0xdb0] sm:$0xff]  ;;  %v4642_v8 = vld [vmem:[#allocation11 + $0xd98] sm:$0xff] }
 0x502   :  { %7748 = vmatpush1.bf16.msra.mxu0 %v9547_v14  ;;  %v4597_v14 = vld [vmem:[#allocation11 + $0xc30] sm:$0xff] }
 0x503   :  { %7912 = vmatpush1.bf16.msra.mxu1 %v9549_v16  ;;  %7749 = vmatprep.subr.bf16.mxu0 %v9556_v50  ;;  %v4594_v16 = vld [vmem:[#allocation11 + $0xc18] sm:$0xff]  ;;  %v9612_v32 = vcombine.high %v4593_v20, %v4597_v14 }
 0x504   :  { %7913 = vmatprep.subr.bf16.mxu1 %v9558_v21  ;;  %v4598_v50 = vld [vmem:[#allocation11 + $0xc38] sm:$0xff]  ;;  %v9603_v21 = vcombine.low %v4585_v42, %v4589_v29  ;;  %v4641_v29 = vld [vmem:[#allocation11 + $0xd90] sm:$0xff] }
 0x505   :  { %v9614_v38 = vcombine.high %v4594_v16, %v4598_v50  ;;  %v9613_v5 = vcombine.low %v4594_v16, %v4598_v50  ;;  %v4649_v50 = vld [vmem:[#allocation11 + $0xdd0] sm:$0xff] }
 0x506   :  { %7750 = vmatpush1.bf16.msra.mxu0 %v9555_v53  ;;  %v4605_v53 = vld [vmem:[#allocation11 + $0xc70] sm:$0xff] }
 0x507   :  { %7914 = vmatpush1.bf16.msra.mxu1 %v9557_v33  ;;  %7751 = vmatprep.subr.bf16.mxu0 %v9564_v63  ;;  %v9611_v33 = vcombine.low %v4593_v20, %v4597_v14  ;;  %v4602_v63 = vld [vmem:[#allocation11 + $0xc58] sm:$0xff]  ;;  %v9620_v62 = vcombine.high %v4601_v13, %v4605_v53 }
 0x508   :  { %7915 = vmatprep.subr.bf16.mxu1 %v9566_v34  ;;  %v4606_v34 = vld [vmem:[#allocation11 + $0xc78] sm:$0xff] }
 0x509   :  { %v9621_v44 = vcombine.low %v4602_v63, %v4606_v34 }
 0x50a   :  { %7752 = vmatpush1.bf16.msra.mxu0 %v9563_v41  ;;  %v9622_v41 = vcombine.high %v4602_v63, %v4606_v34  ;;  %v9659_v63 = vcombine.low %v4641_v29, %v4645_v61 }
 0x50b   :  { %7916 = vmatpush1.bf16.msra.mxu1 %v9565_v36  ;;  %7753 = vmatprep.subr.bf16.mxu0 %v9572_v37  ;;  %v4610_v36 = vld [vmem:[#allocation11 + $0xc98] sm:$0xff] }
 0x50c   :  { %7917 = vmatprep.subr.bf16.mxu1 %v9574_v39  ;;  %v4614_v37 = vld [vmem:[#allocation11 + $0xcb8] sm:$0xff]  ;;  %v9619_v39 = vcombine.low %v4601_v13, %v4605_v53 }
 0x50d   :  { %v9630_v19 = vcombine.high %v4610_v36, %v4614_v37  ;;  %v4654_v13 = vld [vmem:[#allocation11 + $0xdf8] sm:$0xff] }
 0x50e   :  { %7754 = vmatpush1.bf16.msra.mxu0 %v9571_v47  ;;  %v4621_v47 = vld [vmem:[#allocation11 + $0xcf0] sm:$0xff] }
 0x50f   :  { %7918 = vmatpush1.bf16.msra.mxu1 %v9573_v48  ;;  %7755 = vmatprep.subr.bf16.mxu0 %v9580_v51  ;;  %v4618_v48 = vld [vmem:[#allocation11 + $0xcd8] sm:$0xff]  ;;  %v9636_v55 = vcombine.high %v4617_v49, %v4621_v47 }
 0x510   :  { %7919 = vmatprep.subr.bf16.mxu1 %v9582_v52  ;;  %v4622_v51 = vld [vmem:[#allocation11 + $0xcf8] sm:$0xff]  ;;  %v9627_v52 = vcombine.low %v4609_v27, %v4613_v35 }
 0x511   :  { %v9638_v26 = vcombine.high %v4618_v48, %v4622_v51 }
 0x512   :  { %7756 = vmatpush1.bf16.msra.mxu0 %v9579_v0  ;;  %v4626_v0 = vld [vmem:[#allocation11 + $0xd18] sm:$0xff] }
 0x513   :  { %7920 = vmatpush1.bf16.msra.mxu1 %v9581_v57  ;;  %7757 = vmatprep.subr.bf16.mxu0 %v9588_v15  ;;  %v4630_v57 = vld [vmem:[#allocation11 + $0xd38] sm:$0xff]  ;;  %v9637_v15 = vcombine.low %v4618_v48, %v4622_v51  ;;  %v4669_v48 = vld [vmem:[#allocation11 + $0xe70] sm:$0xff] }
 0x514   :  { %7921 = vmatprep.subr.bf16.mxu1 %v9590_v1  ;;  %v9644_v1 = vcombine.high %v4625_v58, %v4629_v59  ;;  %v9646_v2 = vcombine.high %v4626_v0, %v4630_v57  ;;  %v4666_v51 = vld [vmem:[#allocation11 + $0xe58] sm:$0xff] }
 0x516   :  { %7758 = vmatpush1.bf16.msra.mxu0 %v9587_v60  ;;  %v4638_v60 = vld [vmem:[#allocation11 + $0xd78] sm:$0xff] }
 0x517   :  { %7922 = vmatpush1.bf16.msra.mxu1 %v9589_v4  ;;  %7759 = vmatprep.subr.bf16.mxu0 %v9596_v6  ;;  %v9643_v4 = vcombine.low %v4625_v58, %v4629_v59  ;;  %v9645_v6 = vcombine.low %v4626_v0, %v4630_v57  ;;  %v9654_v42 = vcombine.high %v4634_v3, %v4638_v60  ;;  %v4673_v59 = vld [vmem:[#allocation11 + $0xe90] sm:$0xff]  ;;  %v4674_v57 = vld [vmem:[#allocation11 + $0xe98] sm:$0xff] }
 0x518   :  { %7923 = vmatprep.subr.bf16.mxu1 %v9598_v7  ;;  %v9652_v7 = vcombine.high %v4633_v22, %v4637_v46  ;;  %v4677_v0 = vld [vmem:[#allocation11 + $0xeb0] sm:$0xff] }
 0x51a   :  { %7760 = vmatpush1.bf16.msra.mxu0 %v9595_v9  ;;  %v4646_v9 = vld [vmem:[#allocation11 + $0xdb8] sm:$0xff] }
 0x51b   :  { %7924 = vmatpush1.bf16.msra.mxu1 %v9597_v24  ;;  %7761 = vmatprep.subr.bf16.mxu0 %v9604_v11  ;;  %v9651_v24 = vcombine.low %v4633_v22, %v4637_v46  ;;  %v9653_v11 = vcombine.low %v4634_v3, %v4638_v60  ;;  %v9662_v16 = vcombine.high %v4642_v8, %v4646_v9  ;;  %v4681_v46 = vld [vmem:[#allocation11 + $0xed0] sm:$0xff]  ;;  %v4682_v60 = vld [vmem:[#allocation11 + $0xed8] sm:$0xff] }
 0x51c   :  { %7925 = vmatprep.subr.bf16.mxu1 %v9606_v12  ;;  %v9660_v12 = vcombine.high %v4641_v29, %v4645_v61  ;;  %v4685_v3 = vld [vmem:[#allocation11 + $0xef0] sm:$0xff] }
 0x51d   :  { %v4689_v61 = vld [vmem:[#allocation11 + $0xf10] sm:$0xff] }
 0x51e   :  { %7762 = vmatpush1.bf16.msra.mxu0 %v9603_v21  ;;  %v4653_v21 = vld [vmem:[#allocation11 + $0xdf0] sm:$0xff] }
 0x51f   :  { %7926 = vmatpush1.bf16.msra.mxu1 %v9605_v23  ;;  %7772 = vmatprep.subr.bf16.mxu0 %v9612_v32  ;;  %v9668_v27 = vcombine.high %v4649_v50, %v4653_v21 }
 0x520   :  { %7936 = vmatprep.subr.bf16.mxu1 %v9614_v38  ;;  %v4650_v38 = vld [vmem:[#allocation11 + $0xdd8] sm:$0xff] }
 0x521   :  { %7764 = vmatmul.mubr.bf16.vlgmr.msra.gmra.mrb[20].mxu0 %v10660_v10  ;;  %v9670_v35 = vcombine.high %v4650_v38, %v4654_v13 }
 0x522   :  { %7928 = vmatmul.mubr.bf16.vlgmr.msra.gmra.mrb[20].mxu1 %v10660_v10  ;;  %7773 = vmatpush1.bf16.msra.mxu0 %v9611_v33  ;;  %v9629_v10 = vcombine.low %v4610_v36, %v4614_v37  ;;  %v4661_v36 = vld [vmem:[#allocation11 + $0xe30] sm:$0xff]  ;;  %v4658_v37 = vld [vmem:[#allocation11 + $0xe18] sm:$0xff] }
 0x523   :  { %7804 = vmatprep.mubr.bf16.mxu0 %v10664_v18  ;;  %7937 = vmatpush1.bf16.msra.mxu1 %v9613_v5 }
 0x524   :  { %7968 = vmatprep.mubr.bf16.mxu1 %v10664_v18  ;;  %7774 = vmatprep.subr.bf16.mxu0 %v9620_v62  ;;  %v9635_v18 = vcombine.low %v4617_v49, %v4621_v47  ;;  %v9661_v62 = vcombine.low %v4642_v8, %v4646_v9  ;;  %v4665_v47 = vld [vmem:[#allocation11 + $0xe50] sm:$0xff]  ;;  %v4690_v9 = vld [vmem:[#allocation11 + $0xf18] sm:$0xff] }
 0x525   :  { %7938 = vmatprep.subr.bf16.mxu1 %v9622_v41  ;;  %v4657_v41 = vld [vmem:[#allocation11 + $0xe10] sm:$0xff] }
 0x526   :  { %7775 = vmatpush1.bf16.msra.mxu0 %v9619_v39  ;;  %v4662_v39 = vld [vmem:[#allocation11 + $0xe38] sm:$0xff]  ;;  %v4693_v8 = vld [vmem:[#allocation11 + $0xf30] sm:$0xff] }
 0x527   :  { %7939 = vmatpush1.bf16.msra.mxu1 %v9621_v44  ;;  %7776 = vmatprep.subr.bf16.mxu0 %v9628_v45  ;;  %v9667_v44 = vcombine.low %v4649_v50, %v4653_v21  ;;  %v9669_v45 = vcombine.low %v4650_v38, %v4654_v13  ;;  %v9678_v49 = vcombine.high %v4658_v37, %v4662_v39  ;;  %v4697_v21 = vld [vmem:[#allocation11 + $0xf50] sm:$0xff]  ;;  %v4698_v13 = vld [vmem:[#allocation11 + $0xf58] sm:$0xff] }
 0x528   :  { %7940 = vmatprep.subr.bf16.mxu1 %v9630_v19  ;;  %v9676_v19 = vcombine.high %v4657_v41, %v4661_v36  ;;  %v4701_v38 = vld [vmem:[#allocation11 + $0xf70] sm:$0xff] }
 0x52a   :  { %7777 = vmatpush1.bf16.msra.mxu0 %v9627_v52  ;;  %v4670_v52 = vld [vmem:[#allocation11 + $0xe78] sm:$0xff] }
 0x52b   :  { %7941 = vmatpush1.bf16.msra.mxu1 %v9629_v10  ;;  %7778 = vmatprep.subr.bf16.mxu0 %v9636_v55  ;;  %v9675_v10 = vcombine.low %v4657_v41, %v4661_v36  ;;  %v9677_v55 = vcombine.low %v4658_v37, %v4662_v39  ;;  %v9686_v58 = vcombine.high %v4666_v51, %v4670_v52  ;;  %v4710_v41 = vld [vmem:[#allocation11 + $0xfb8] sm:$0xff]  ;;  %v10699_v36 = vld [vmem:[#allocation13] sm:$0xff] }
 0x52c   :  { %7942 = vmatprep.subr.bf16.mxu1 %v9638_v26  ;;  %v9684_v26 = vcombine.high %v4665_v47, %v4669_v48  ;;  %v9715_v37 = vcombine.low %v4697_v21, %v4701_v38 }
 0x52e   :  { %7779 = vmatpush1.bf16.msra.mxu0 %v9635_v18  ;;  %v4678_v18 = vld [vmem:[#allocation11 + $0xeb8] sm:$0xff] }
 0x52f   :  { %7943 = vmatpush1.bf16.msra.mxu1 %v9637_v15  ;;  %7780 = vmatprep.subr.bf16.mxu0 %v9644_v1  ;;  %v9683_v15 = vcombine.low %v4665_v47, %v4669_v48  ;;  %v9685_v1 = vcombine.low %v4666_v51, %v4670_v52  ;;  %v9694_v22 = vcombine.high %v4674_v57, %v4678_v18  ;;  %v4714_v48 = vld [vmem:[#allocation11 + $0xfd8] sm:$0xff] }
 0x530   :  { %7944 = vmatprep.subr.bf16.mxu1 %v9646_v2  ;;  %v9692_v2 = vcombine.high %v4673_v59, %v4677_v0  ;;  %v4728_v47 = vrot.slane %v10699_v36, %v10512_v30  ;;  %v4718_v51 = vld [vmem:[#allocation11 + $0xff8] sm:$0xff]  ;;  %v4736_v52 = vrot.slane %v10699_v36, %v10515_v31  ;;  %v10017_v31 = vld [vmem:[#allocation14 + $0xc0] sm:$0xff]  }
 0x531   :  { %v9733_v30 = vcombine.low %v4714_v48, %v4718_v51 }
 0x532   :  { %7781 = vmatpush1.bf16.msra.mxu0 %v9643_v4  ;;  %v4686_v4 = vld [vmem:[#allocation11 + $0xef8] sm:$0xff] }
 0x533   :  { %7945 = vmatpush1.bf16.msra.mxu1 %v9645_v6  ;;  %7782 = vmatprep.subr.bf16.mxu0 %v9652_v7  ;;  %v9691_v6 = vcombine.low %v4673_v59, %v4677_v0  ;;  %v9693_v7 = vcombine.low %v4674_v57, %v4678_v18  ;;  %v9702_v29 = vcombine.high %v4682_v60, %v4686_v4  ;;  %v10016_v18 = vld [vmem:[#allocation14 + $0x40] sm:$0xff]  }
 0x534   :  { %v10691_v20 = vpop.f32.mrb[16].mxu0  ;;  %v10693_v14 = vpop.f32.mrb[16].mxu1  ;;  %7946 = vmatprep.subr.bf16.mxu1 %v9654_v42  ;;  %v9700_v42 = vcombine.high %v4681_v46, %v4685_v3 }
 0x535   :  { %v10695_v23 = vpop.f32.mrb[17].mxu0  ;;  %v10697_v32 = vpop.f32.mrb[17].mxu1 }
 0x536   :  { %v7482_v53 = vpop.f32.mrb[18].mxu0  ;;  %v7646_v33 = vpop.f32.mrb[18].mxu1  ;;  %7783 = vmatpush1.bf16.msra.mxu0 %v9651_v24  ;;  %v4694_v24 = vld [vmem:[#allocation11 + $0xf38] sm:$0xff]  ;;  %v9898_v59 = vadd.f32 %v10695_v23, %v4728_v47  ;;  %v9900_v0 = vadd.f32 %v10697_v32, %v4736_v52  ;;  %v10021_v32 = vld [vmem:[#allocation14 + $0xc8] sm:$0xff]   ;;  %v10051_v47 = vld [vmem:[#allocation14 + $0x180] sm:$0xff]  }
 0x537   :  { %7947 = vmatpush1.bf16.msra.mxu1 %v9653_v11  ;;  %v7483_v34 = vpop.f32.mrb[19].mxu0  ;;  %v7647_v5 = vpop.f32.mrb[19].mxu1  ;;  %7784 = vmatprep.subr.bf16.mxu0 %v9660_v12  ;;  %v9699_v11 = vcombine.low %v4681_v46, %v4685_v3  ;;  %v9701_v12 = vcombine.low %v4682_v60, %v4686_v4  ;;  %v9710_v50 = vcombine.high %v4690_v9, %v4694_v24  ;;  %v4702_v53 = vld [vmem:[#allocation11 + $0xf78] sm:$0xff]  ;;  %v10020_v46 = vld [vmem:[#allocation14 + $0x48] sm:$0xff]  }
 0x538   :  { %7948 = vmatprep.subr.bf16.mxu1 %v9662_v16  ;;  %v9708_v16 = vcombine.high %v4689_v61, %v4693_v8  ;;  %v9707_v33 = vcombine.low %v4689_v61, %v4693_v8  ;;  %v9716_v34 = vcombine.high %v4697_v21, %v4701_v38  ;;  %v9718_v5 = vcombine.high %v4698_v13, %v4702_v53  ;;  %v10022_v60 = vld [vmem:[#allocation14 + $0x8] sm:$0xff]   ;;  %v10028_v61 = vld [vmem:[#allocation14 + $0x58] sm:$0xff]  }
 0x539   :  { %v9717_v39 = vcombine.low %v4698_v13, %v4702_v53  ;;  %v10023_v4 = vld [vmem:[#allocation14 + $0x88] sm:$0xff]   ;;  %v10029_v8 = vld [vmem:[#allocation14 + $0xd8] sm:$0xff]   ;;  %v4724_v13 = vrot.slane %v10699_v36, %v10507_v28 }
 0x53a   :  { %7785 = vmatpush1.bf16.msra.mxu0 %v9659_v63  ;;  %v9709_v63 = vcombine.low %v4690_v9, %v4694_v24  ;;  %v10031_v9 = vld [vmem:[#allocation14 + $0x98] sm:$0xff]   ;;  %v10032_v24 = vld [vmem:[#allocation14 + $0x60] sm:$0xff]   ;;  %v10037_v21 = vld [vmem:[#allocation14 + $0xe8] sm:$0xff]  }
 0x53b   :  { %7949 = vmatpush1.bf16.msra.mxu1 %v9661_v62  ;;  %7786 = vmatprep.subr.bf16.mxu0 %v9668_v27  ;;  %v4705_v62 = vld [vmem:[#allocation11 + $0xf90] sm:$0xff]  ;;  %v10045_v28 = vld [vmem:[#allocation14 + $0xf8] sm:$0xff]  }
 0x53c   :  { %7950 = vmatprep.subr.bf16.mxu1 %v9670_v35  ;;  %v4709_v27 = vld [vmem:[#allocation11 + $0xfb0] sm:$0xff]  ;;  %v4706_v35 = vld [vmem:[#allocation11 + $0xf98] sm:$0xff] }
 0x53d   :  { %v10038_v38 = vld [vmem:[#allocation14 + $0x28] sm:$0xff]  }
 0x53e   :  { %7787 = vmatpush1.bf16.msra.mxu0 %v9667_v44  ;;  %v9724_v44 = vcombine.high %v4705_v62, %v4709_v27  ;;  %v10039_v53 = vld [vmem:[#allocation14 + $0xa8] sm:$0xff]  }
 0x53f   :  { %7951 = vmatpush1.bf16.msra.mxu1 %v9669_v45  ;;  %7788 = vmatprep.subr.bf16.mxu0 %v9676_v19  ;;  %v9726_v45 = vcombine.high %v4706_v35, %v4710_v41  ;;  %v4713_v19 = vld [vmem:[#allocation11 + $0xfd0] sm:$0xff] }
 0x540   :  { %7952 = vmatprep.subr.bf16.mxu1 %v9678_v49  ;;  %v4717_v49 = vld [vmem:[#allocation11 + $0xff0] sm:$0xff] }
 0x541   :  { %v9731_v57 = vcombine.low %v4713_v19, %v4717_v49  ;;  %v10054_v52 = vld [vmem:[#allocation14 + $0x108] sm:$0xff]  }
 0x542   :  { %7789 = vmatpush1.bf16.msra.mxu0 %v9675_v10  ;;  %v9723_v10 = vcombine.low %v4705_v62, %v4709_v27  ;;  %v9897_v62 = vadd.f32 %v10691_v20, %v4724_v13  ;;  %v10043_v27 = vld [vmem:[#allocation14 + $0xb0] sm:$0xff]   ;;  %v10050_v20 = vld [vmem:[#allocation14 + $0x100] sm:$0xff]  }
 0x543   :  { %7953 = vmatpush1.bf16.msra.mxu1 %v9677_v55  ;;  %7790 = vmatprep.subr.bf16.mxu0 %v9684_v26  ;;  %v9725_v55 = vcombine.low %v4706_v35, %v4710_v41  ;;  %v9732_v26 = vcombine.high %v4713_v19, %v4717_v49  ;;  %v10044_v35 = vld [vmem:[#allocation14 + $0x78] sm:$0xff]   ;;  %v10049_v19 = vld [vmem:[#allocation14 + $0x1c0] sm:$0xff]  }
 0x544   :  { %7954 = vmatprep.subr.bf16.mxu1 %v9686_v58  ;;  %v9734_v58 = vcombine.high %v4714_v48, %v4718_v51  ;;  %v10052_v48 = vld [vmem:[#allocation14 + $0x148] sm:$0xff]  }
 0x545   :  { %v10053_v51 = vld [vmem:[#allocation14 + $0x1c8] sm:$0xff]  }
 0x546   :  { %7791 = vmatpush1.bf16.msra.mxu0 %v9683_v15  ;;  %v7978_v15 = vmax.f32 %v9898_v59, 0.0  ;;  %v10059_v59 = vld [vmem:[#allocation14 + $0x190] sm:$0xff]  }
 0x547   :  { %7955 = vmatpush1.bf16.msra.mxu1 %v9685_v1  ;;  %7792 = vmatprep.subr.bf16.mxu0 %v9692_v2  ;;  %v7980_v1 = vmax.f32 %v9900_v0, 0.0  ;;  %v10018_v2 = vld [vmem:[#allocation14] sm:$0xff]   ;;  %v10060_v0 = vld [vmem:[#allocation14 + $0x158] sm:$0xff]  }
 0x548   :  { %7956 = vmatprep.subr.bf16.mxu1 %v9694_v22  ;;  %v10019_v22 = vld [vmem:[#allocation14 + $0x80] sm:$0xff]   ;;  %v7986_v23 = vpack.c.bf16 %v7978_v15, %v7978_v15 }
 0x549   :  { %v7988_v3 = vpack.c.bf16 %v7980_v1, %v7980_v1  ;;  %v10065_v15 = vld [vmem:[#allocation14 + $0x1e0] sm:$0xff]  }
 0x54a   :  { %7793 = vmatpush1.bf16.msra.mxu0 %v9691_v6  ;;  %v10024_v6 = vld [vmem:[#allocation14 + $0x50] sm:$0xff]   ;;  %v10066_v1 = vld [vmem:[#allocation14 + $0x120] sm:$0xff]  }
 0x54b   :  { %7957 = vmatpush1.bf16.msra.mxu1 %v9693_v7  ;;  %7794 = vmatprep.subr.bf16.mxu0 %v9700_v42  ;;  %v10025_v7 = vld [vmem:[#allocation14 + $0xd0] sm:$0xff]  }
 0x54c   :  { %7958 = vmatprep.subr.bf16.mxu1 %v9702_v29  ;;  %v10026_v42 = vld [vmem:[#allocation14 + $0x10] sm:$0xff]  }
 0x54d   :  { %v10027_v29 = vld [vmem:[#allocation14 + $0x90] sm:$0xff]  }
 0x54e   :  { %7795 = vmatpush1.bf16.msra.mxu0 %v9699_v11  ;;  %v10033_v11 = vld [vmem:[#allocation14 + $0xe0] sm:$0xff]  }
 0x54f   :  { %7959 = vmatpush1.bf16.msra.mxu1 %v9701_v12  ;;  %7796 = vmatprep.subr.bf16.mxu0 %v9708_v16  ;;  %v10034_v12 = vld [vmem:[#allocation14 + $0x20] sm:$0xff]  }
 0x550   :  { %7960 = vmatprep.subr.bf16.mxu1 %v9710_v50  ;;  %v10035_v16 = vld [vmem:[#allocation14 + $0xa0] sm:$0xff]   ;;  %v10036_v50 = vld [vmem:[#allocation14 + $0x68] sm:$0xff]  }
 0x552   :  { %7797 = vmatpush1.bf16.msra.mxu0 %v9707_v33  ;;  %v10040_v33 = vld [vmem:[#allocation14 + $0x70] sm:$0xff]  }
 0x553   :  { %7961 = vmatpush1.bf16.msra.mxu1 %v9709_v63  ;;  %7798 = vmatprep.subr.bf16.mxu0 %v9716_v34  ;;  %v4732_v63 = vrot.slane %v10699_v36, %v10542_v43  ;;  %v10041_v34 = vld [vmem:[#allocation14 + $0xf0] sm:$0xff]   ;;  %v10047_v43 = vld [vmem:[#allocation14 + $0xb8] sm:$0xff]  }
 0x554   :  { %7962 = vmatprep.subr.bf16.mxu1 %v9718_v5  ;;  %v10042_v5 = vld [vmem:[#allocation14 + $0x30] sm:$0xff]  }
 0x555   :  { %v9899_v41 = vadd.f32 %v10693_v14, %v4732_v63 }
 0x556   :  { %7799 = vmatpush1.bf16.msra.mxu0 %v9715_v37  ;;  %v10046_v37 = vld [vmem:[#allocation14 + $0x38] sm:$0xff]  }
 0x557   :  { %7963 = vmatpush1.bf16.msra.mxu1 %v9717_v39  ;;  %7800 = vmatprep.subr.bf16.mxu0 %v9724_v44  ;;  %v7977_v39 = vmax.f32 %v9897_v62, 0.0  ;;  %v10048_v44 = vld [vmem:[#allocation14 + $0x140] sm:$0xff]  }
 0x558   :  { %7964 = vmatprep.subr.bf16.mxu1 %v9726_v45  ;;  %v7979_v45 = vmax.f32 %v9899_v41, 0.0 }
 0x559   :  { %v7985_v49 = vpack.c.bf16 %v7977_v39, %v7977_v39 }
 0x55a   :  { %7801 = vmatpush1.bf16.msra.mxu0 %v9723_v10  ;;  %v7987_v14 = vpack.c.bf16 %v7979_v45, %v7979_v45  ;;  %v10055_v10 = vld [vmem:[#allocation14 + $0x188] sm:$0xff]  }
 0x55b   :  { %7965 = vmatpush1.bf16.msra.mxu1 %v9725_v55  ;;  %7802 = vmatprep.subr.bf16.mxu0 %v9732_v26  ;;  %v10056_v55 = vld [vmem:[#allocation14 + $0x150] sm:$0xff]  }
 0x55c   :  { %7966 = vmatprep.subr.bf16.mxu1 %v9734_v58  ;;  %v10057_v26 = vld [vmem:[#allocation14 + $0x1d0] sm:$0xff]  }
 0x55d   :  { %v10058_v58 = vld [vmem:[#allocation14 + $0x110] sm:$0xff]  }
 0x55e   :  { %7803 = vmatpush1.bf16.msra.mxu0 %v9731_v57  ;;  %v10061_v57 = vld [vmem:[#allocation14 + $0x1d8] sm:$0xff]  }
 0x55f   :  { %7967 = vmatpush1.bf16.msra.mxu1 %v9733_v30  ;;  %9801 = vmatprep.subr.bf16.mxu0 %v10016_v18  ;;  %v10062_v30 = vld [vmem:[#allocation14 + $0x118] sm:$0xff]  }
 0x560   :  { %9823 = vmatprep.subr.bf16.mxu1 %v10017_v31  ;;  %v10063_v18 = vld [vmem:[#allocation14 + $0x198] sm:$0xff]   ;;  %v10064_v31 = vld [vmem:[#allocation14 + $0x160] sm:$0xff]  }
 0x561   :  { %7805 = vmatmul.mubr.bf16.vlgmr.msra.gmra.mrb[20].mxu0 %v10673_v54 }
 0x562   :  { %7969 = vmatmul.mubr.bf16.vlgmr.msra.gmra.mrb[20].mxu1 %v10673_v54  ;;  %9802 = vmatpush3.bf16.msra.mxu0 %v10018_v2  ;;  %v10030_v54 = vld [vmem:[#allocation14 + $0x18] sm:$0xff]   ;;  %v10067_v2 = vld [vmem:[#allocation14 + $0x1a0] sm:$0xff]  }
 0x563   :  { %8544 = vmatprep.mubr.bf16.mxu0 %v7986_v23  ;;  %9824 = vmatpush3.bf16.msra.mxu1 %v10019_v22  ;;  %v10068_v22 = vld [vmem:[#allocation14 + $0x168] sm:$0xff]  }
 0x564   :  { %8584 = vmatprep.mubr.bf16.mxu1 %v7988_v3  ;;  %9803 = vmatprep.subr.bf16.mxu0 %v10020_v46  ;;  %v10069_v46 = vld [vmem:[#allocation14 + $0x1e8] sm:$0xff]   ;;  %v10072_v3 = vld [vmem:[#allocation14 + $0x170] sm:$0xff]  }
 0x565   :  { %9825 = vmatprep.subr.bf16.mxu1 %v10021_v32  ;;  %v10070_v23 = vld [vmem:[#allocation14 + $0x128] sm:$0xff]  }
 0x566   :  { %9804 = vmatpush3.bf16.msra.mxu0 %v10022_v60  ;;  %v10071_v32 = vld [vmem:[#allocation14 + $0x1a8] sm:$0xff]   ;;  %v10073_v60 = vld [vmem:[#allocation14 + $0x1f0] sm:$0xff]  }
 0x567   :  { %9826 = vmatpush3.bf16.msra.mxu1 %v10023_v4  ;;  %9805 = vmatprep.subr.bf16.mxu0 %v10024_v6  ;;  %v10074_v4 = vld [vmem:[#allocation14 + $0x130] sm:$0xff]  }
 0x568   :  { %9827 = vmatprep.subr.bf16.mxu1 %v10025_v7  ;;  %v10075_v6 = vld [vmem:[#allocation14 + $0x1b0] sm:$0xff]   ;;  %v10076_v7 = vld [vmem:[#allocation14 + $0x178] sm:$0xff]  }
 0x56a   :  { %9806 = vmatpush3.bf16.msra.mxu0 %v10026_v42  ;;  %v10077_v42 = vld [vmem:[#allocation14 + $0x1f8] sm:$0xff]  }
 0x56b   :  { %9828 = vmatpush3.bf16.msra.mxu1 %v10027_v29  ;;  %9807 = vmatprep.subr.bf16.mxu0 %v10028_v61  ;;  %v10078_v29 = vld [vmem:[#allocation14 + $0x138] sm:$0xff]  }
 0x56c   :  { %9829 = vmatprep.subr.bf16.mxu1 %v10029_v8  ;;  %v10079_v61 = vld [vmem:[#allocation14 + $0x1b8] sm:$0xff]   ;;  %v4740_v8 = vrot.slane %v10699_v36, %v10566_v25 }
 0x56e   :  { %9808 = vmatpush3.bf16.msra.mxu0 %v10030_v54  ;;  %v4748_v54 = vrot.slane %v10699_v36, %v10586_v17 }
 0x56f   :  { %9830 = vmatpush3.bf16.msra.mxu1 %v10031_v9  ;;  %9809 = vmatprep.subr.bf16.mxu0 %v10032_v24  ;;  %v4744_v9 = vrot.slane %v10699_v36, %v10549_v56  ;;  %v4752_v24 = vrot.slane %v10699_v36, %v10569_v40 }
 0x570   :  { %9831 = vmatprep.subr.bf16.mxu1 %v10033_v11 }
 0x572   :  { %9810 = vmatpush3.bf16.msra.mxu0 %v10034_v12 }
 0x573   :  { %9832 = vmatpush3.bf16.msra.mxu1 %v10035_v16  ;;  %9811 = vmatprep.subr.bf16.mxu0 %v10036_v50 }
 0x574   :  { %9833 = vmatprep.subr.bf16.mxu1 %v10037_v21 }
 0x576   :  { %9812 = vmatpush3.bf16.msra.mxu0 %v10038_v38 }
 0x577   :  { %9834 = vmatpush3.bf16.msra.mxu1 %v10039_v53  ;;  %9813 = vmatprep.subr.bf16.mxu0 %v10040_v33 }
 0x578   :  { %9835 = vmatprep.subr.bf16.mxu1 %v10041_v34 }
 0x57a   :  { %9814 = vmatpush3.bf16.msra.mxu0 %v10042_v5 }
 0x57b   :  { %9836 = vmatpush3.bf16.msra.mxu1 %v10043_v27  ;;  %9815 = vmatprep.subr.bf16.mxu0 %v10044_v35 }
 0x57c   :  { %9837 = vmatprep.subr.bf16.mxu1 %v10045_v28 }
 0x57e   :  { %9816 = vmatpush3.bf16.msra.mxu0 %v10046_v37  ;;  %v9735_v37 = vld [vmem:[#allocation16] ss:$0 sm:$0xff] }
 0x57f   :  { %9838 = vmatpush3.bf16.msra.mxu1 %v10047_v43  ;;  %9845 = vmatprep.subr.bf16.mxu0 %v10048_v44 }
 0x580   :  { %9867 = vmatprep.subr.bf16.mxu1 %v10049_v19 }
 0x581   :  { %8545 = vmatmul.mubr.bf16.vlgmr.msra.gmra.mrb[24].mxu0 %v7985_v49 }
 0x582   :  { %8585 = vmatmul.mubr.bf16.vlgmr.msra.gmra.mrb[24].mxu1 %v7987_v14  ;;  %9846 = vmatpush3.bf16.msra.mxu0 %v10050_v20 }
 0x583   :  { %9868 = vmatpush3.bf16.msra.mxu1 %v10051_v47  ;;  %9847 = vmatprep.subr.bf16.mxu0 %v10052_v48 }
 0x584   :  { %9869 = vmatprep.subr.bf16.mxu1 %v10053_v51 }
 0x586   :  { %9848 = vmatpush3.bf16.msra.mxu0 %v10054_v52 }
 0x587   :  { %9870 = vmatpush3.bf16.msra.mxu1 %v10055_v10  ;;  %9849 = vmatprep.subr.bf16.mxu0 %v10056_v55 }
 0x588   :  { %9871 = vmatprep.subr.bf16.mxu1 %v10057_v26 }
 0x58a   :  { %9850 = vmatpush3.bf16.msra.mxu0 %v10058_v58 }
 0x58b   :  { %9872 = vmatpush3.bf16.msra.mxu1 %v10059_v59  ;;  %9851 = vmatprep.subr.bf16.mxu0 %v10060_v0 }
 0x58c   :  { %9873 = vmatprep.subr.bf16.mxu1 %v10061_v57 }
 0x58e   :  { %9852 = vmatpush3.bf16.msra.mxu0 %v10062_v30 }
 0x58f   :  { %9874 = vmatpush3.bf16.msra.mxu1 %v10063_v18  ;;  %9853 = vmatprep.subr.bf16.mxu0 %v10064_v31 }
 0x590   :  { %9875 = vmatprep.subr.bf16.mxu1 %v10065_v15 }
 0x592   :  { %9854 = vmatpush3.bf16.msra.mxu0 %v10066_v1 }
 0x593   :  { %9876 = vmatpush3.bf16.msra.mxu1 %v10067_v2  ;;  %9855 = vmatprep.subr.bf16.mxu0 %v10068_v22 }
 0x594   :  { %9877 = vmatprep.subr.bf16.mxu1 %v10069_v46 }
 0x596   :  { %9856 = vmatpush3.bf16.msra.mxu0 %v10070_v23 }
 0x597   :  { %9878 = vmatpush3.bf16.msra.mxu1 %v10071_v32  ;;  %9857 = vmatprep.subr.bf16.mxu0 %v10072_v3 }
 0x598   :  { %9879 = vmatprep.subr.bf16.mxu1 %v10073_v60 }
 0x59a   :  { %9858 = vmatpush3.bf16.msra.mxu0 %v10074_v4 }
 0x59b   :  { %9880 = vmatpush3.bf16.msra.mxu1 %v10075_v6  ;;  %9859 = vmatprep.subr.bf16.mxu0 %v10076_v7 }
 0x59c   :  { %9881 = vmatprep.subr.bf16.mxu1 %v10077_v42 }
 0x59e   :  { %9860 = vmatpush3.bf16.msra.mxu0 %v10078_v29 }
 0x59f   :  { %9882 = vmatpush3.bf16.msra.mxu1 %v10079_v61 }
 0x634   :  { %v7806_v11 = vpop.f32.mrb[20].mxu0 }
 0x635   :  { %v9901_v12 = vadd.f32 %v7806_v11, %v4740_v8  ;;  %v7970_v16 = vpop.f32.mrb[20].mxu1  ;;  %v7808_v50 = vpop.f32.mrb[21].mxu0 }
 0x636   :  { %v9903_v21 = vadd.f32 %v7970_v16, %v4748_v54  ;;  %v9902_v38 = vadd.f32 %v7808_v50, %v4744_v9  ;;  %v7972_v13 = vpop.f32.mrb[21].mxu1  ;;  %v7810_v53 = vpop.f32.mrb[22].mxu0 }
 0x637   :  { %v7981_v33 = vmax.f32 %v9901_v12, 0.0  ;;  %v9904_v63 = vadd.f32 %v7972_v13, %v4752_v24  ;;  %v7974_v25 = vpop.f32.mrb[22].mxu1  ;;  %v7811_v34 = vpop.f32.mrb[23].mxu0 }
 0x638   :  { %v7983_v5 = vmax.f32 %v9903_v21, 0.0  ;;  %v7982_v17 = vmax.f32 %v9902_v38, 0.0  ;;  %v7975_v62 = vpop.f32.mrb[23].mxu1 }
 0x639   :  { %v7984_v27 = vmax.f32 %v9904_v63, 0.0  ;;  %v7989_v35 = vpack.c.bf16 %v7981_v33, %v7981_v33 }
 0x63a   :  { %v7990_v56 = vpack.c.bf16 %v7982_v17, %v7982_v17  ;;  %v7991_v40 = vpack.c.bf16 %v7983_v5, %v7983_v5 }
 0x63b   :  { %v7992_v41 = vpack.c.bf16 %v7984_v27, %v7984_v27 }
 0x63c   :  { %8624 = vmatprep.mubr.bf16.mxu0 %v7990_v56 }
 0x63d   :  { %8664 = vmatprep.mubr.bf16.mxu1 %v7992_v41  ;;  %8625 = vmatmul.mubr.bf16.vlgmr.msra.gmra.mrb[28].mxu0 %v7989_v35 }
 0x63e   :  { %8665 = vmatmul.mubr.bf16.vlgmr.msra.gmra.mrb[28].mxu1 %v7991_v40 }
 0x654   :  { %v9817_v36 = vpop.f32.mrb[24].mxu0 }
 0x655   :  { %v9839_v28 = vpop.f32.mrb[24].mxu1  ;;  %v9818_v39 = vpop.f32.mrb[25].mxu0 }
 0x656   :  { %v9819_v43 = vadd.f32 %v9818_v39, %v9817_v36  ;;  %v9840_v44 = vpop.f32.mrb[25].mxu1  ;;  %v9820_v45 = vpop.f32.mrb[26].mxu0 }
 0x657   :  { %v9841_v19 = vadd.f32 %v9840_v44, %v9839_v28  ;;  %v9842_v20 = vpop.f32.mrb[26].mxu1  ;;  %v9821_v49 = vpop.f32.mrb[27].mxu0 }
 0x658   :  { %v8547_v47 = vadd.f32 %v9819_v43, %v9735_v37  ;;  %v9843_v48 = vpop.f32.mrb[27].mxu1 }
 0x65a   :  { %v8587_v14 = vadd.f32 %v9841_v19, %v8547_v47 }
 0x710   :  { %v9861_v51 = vpop.f32.mrb[28].mxu0 }
 0x711   :  { %v9883_v52 = vpop.f32.mrb[28].mxu1  ;;  %v9862_v10 = vpop.f32.mrb[29].mxu0 }
 0x712   :  { %v9863_v55 = vadd.f32 %v9862_v10, %v9861_v51  ;;  %v9884_v26 = vpop.f32.mrb[29].mxu1  ;;  %v9864_v58 = vpop.f32.mrb[30].mxu0 }
 0x713   :  { %v9885_v59 = vadd.f32 %v9884_v26, %v9883_v52  ;;  %v9886_v0 = vpop.f32.mrb[30].mxu1  ;;  %v9865_v57 = vpop.f32.mrb[31].mxu0 }
 0x714   :  { %v8627_v30 = vadd.f32 %v9863_v55, %v8587_v14  ;;  %v9887_v18 = vpop.f32.mrb[31].mxu1 }
 0x716   :  { %v8667_v31 = vadd.f32 %v9885_v59, %v8627_v30 }
 0x718   :  { %v9800_v15 = vmul.f32 -1.442695, %v8667_v31 }
 0x71a   :  { %10080 = vpow2.f32 %v9800_v15 }
 0x724   :  { %v10081_v1 = vpop.eup %10080 }
 0x725   :  { %v8675_v2 = vadd.f32 1.0, %v10081_v1 }
 0x727   :  { %10082 = vrcp.f32 %v8675_v2 }
 0x731   :  { %v10083_v22 = vpop.eup %10082 }
 0x732   :  { %v8678_v46 = vpack.c.bf16 %v10083_v22, %v10083_v22 }
 0x734   :  { %8679 = vst [vmem:[#allocation17] sm:$0xf] %v8678_v46 }
 0x735   :  { %10295 = shalt.err (!%p10292_p6)
}
 0x736   :  { %s10296_s18 = scalar_lea.hbm %s10744_s9, 64 }
 0x737   :  { %p10297_p7 = scmp.ne.s32.totalorder %s10744_s9, %s10296_s18  ;;  %p10300_p8 = scmp.lt.u32.totalorder %s10296_s18, %s10744_s9 }
 0x739   :  { %p10302_p9 = pnand %p10300_p8, %p10297_p7 }
 0x73b   :  { %10305 = shalt.err (!%p10302_p9)
}
 0x73c   :  { %8689 = dma.vmem_to_hbm [thread:$0]  %s8687_s25, 64, %s10744_s9, [#allocation4]  }
 0x73d   :  { %10316 = dma.done.wait [#allocation4], 64  }
 0x73e   :  { %10317 = vsyncadd [#allocation4], 4294967232 }
 0x73f   :  { %8693 = vsyncpa [#allocation3], 1 }
 0x740   :  { %8694 = vsyncpa [#allocation6], 1 }
 0x741   :  { %8695 = vsyncpa [#allocation9], 1 }
 0x742   :  { %8696 = vsyncpa [#allocation12], 1 }
 0x743   :  { %8697 = vsyncpa [#allocation15], 1 }
 0x744   :  { %8698 = vsyncpa [#allocation4], 1 }

</bundles_post_ra>
